<compile_context>
chip_gen: v6e
topology: v6e:2x2x1
jax: 0.10.0
libtpu: 0.0.40
codegen_flags: <defaults>
</compile_context>

<pallas_src>
import functools

import jax
import jax.numpy as jnp
from jax.experimental import pallas as pl
from jax.experimental.pallas import tpu as pltpu


# ----------------------------------------------------------------------------
# Hardware-aware sizing helpers.
# ----------------------------------------------------------------------------
@functools.lru_cache(maxsize=None)
def _tpu_vmem_bytes():
    try:
        return int(pltpu.get_tpu_info().vmem_capacity_bytes)
    except Exception:
        return 0  # unknown


def _vmem_limit_bytes():
    phys = _tpu_vmem_bytes()
    if phys <= 0:
        return 64 * 1024 * 1024  # safe default everywhere
    # Leave headroom for Mosaic internal scratch and double-buffered I/O tiles.
    return max(32 * 1024 * 1024, min(phys - 16 * 1024 * 1024, 112 * 1024 * 1024))


def _target_rows():
    phys = _tpu_vmem_bytes()
    # Bigger resident slabs on 128 MiB parts (v5e/v6e); smaller on 64 MiB (v7x).
    return 512 if (phys <= 0 or phys >= 96 * 1024 * 1024) else 256


def _pick_batch_tile(batch, seq):
    """Largest Bt dividing batch with Bt*seq <= target rows, >=2 grid steps when
    batch >= 2 (v7x megacore), preferring sublane-aligned (Bt*seq % 8 == 0)."""
    target = _target_rows()
    cap = max(1, target // max(seq, 1))
    if batch >= 2:
        cap = min(cap, batch // 2)  # at least two grid steps -> both v7x TCs busy
    cap = max(1, min(cap, batch))
    divisors = [b for b in range(1, cap + 1) if batch % b == 0]
    aligned = [b for b in divisors if (b * seq) % 8 == 0]
    pool = aligned or divisors or [1]
    return max(pool)


# ----------------------------------------------------------------------------
# Pallas kernel: one full DecoderBlock forward for a tile of the batch.
# ----------------------------------------------------------------------------
def _decoder_block_kernel(x_ref, ctx_ref,
                          w_qkv1, b_qkv1, wo1, bo1,          # self-attention
                          wq2, bq2, w_kv2, b_kv2, wo2, bo2,  # cross-attention
                          w1f, b1f, w2f, b2f,                # feed-forward
                          g1, be1, g2, be2, g3, be3,         # layernorms
                          out_ref, *, n_heads):
    f32, bf16 = jnp.float32, jnp.bfloat16
    bt, S, D = x_ref.shape
    T = ctx_ref.shape[1]
    H = n_heads
    hd = D // H
    scale = 1.0 / float(hd) ** 0.5

    x2d = x_ref[...].astype(f32).reshape(bt * S, D)        # (Bt*S, D) f32
    ctx2d = ctx_ref[...].astype(f32).reshape(bt * T, D)    # (Bt*T, D) f32

    def project(a, w_ref, b_ref):
        # bf16 MXU operands, f32 accumulation, f32 bias add.
        return (jnp.dot(a.astype(bf16), w_ref[...],
                        preferred_element_type=f32) + b_ref[...])

    def layer_norm(v, g_ref, b_ref):
        mu = jnp.mean(v, axis=-1, keepdims=True)
        c = v - mu
        var = jnp.mean(c * c, axis=-1, keepdims=True)       # two-pass variance
        return c * jax.lax.rsqrt(var + 1e-5) * g_ref[...] + b_ref[...]

    def attend(q_src, q_off, kv_src, k_off, v_off, s_q, s_kv,
               wo_ref, bo_ref, mask):
        # Per-head attention.  Heads are read directly as lane slices of the
        # fused projection output (no stacked (H*Bt,...) copies, no axis-0
        # concat).  H is small and static so the Python loop fully unrolls;
        # each head is a batched-over-Bt MXU contraction (same MXU work as a
        # batched einsum over heads).  Head outputs are re-concatenated on the
        # lane axis so the output projection is a single full-depth K=D matmul.
        outs = []
        for h in range(H):
            q_h = (q_src[:, q_off + h * hd: q_off + (h + 1) * hd]
                   .reshape(bt, s_q, hd).astype(bf16))
            k_h = (kv_src[:, k_off + h * hd: k_off + (h + 1) * hd]
                   .reshape(bt, s_kv, hd).astype(bf16))
            v_h = (kv_src[:, v_off + h * hd: v_off + (h + 1) * hd]
                   .reshape(bt, s_kv, hd).astype(bf16))
            s = jnp.einsum('bqd,bkd->bqk', q_h, k_h,
                           preferred_element_type=f32) * scale
            if mask is not None:                 # hoisted mask, shared by heads
                s = jnp.where(mask[None], s, -1e30)
            p = jnp.exp(s - jnp.max(s, axis=-1, keepdims=True))
            p = p * pl.reciprocal(jnp.sum(p, axis=-1, keepdims=True),
                                  approx=True)
            o_h = jnp.einsum('bqk,bkd->bqd', p.astype(bf16), v_h,
                             preferred_element_type=f32)    # (Bt, s_q, hd)
            outs.append(o_h)
        # Head-major lane concat == PyTorch nn.MultiheadAttention head concat.
        o2d = jnp.concatenate(outs, axis=-1).reshape(bt * s_q, D)
        return (jnp.dot(o2d.astype(bf16), wo_ref[...],
                        preferred_element_type=f32) + bo_ref[...])

    # 1) causal self-attention + residual + post-LN
    qkv = project(x2d, w_qkv1, b_qkv1)               # (Bt*S, 3D), fused QKV
    causal = (jax.lax.broadcasted_iota(jnp.int32, (S, S), 0) >=
              jax.lax.broadcasted_iota(jnp.int32, (S, S), 1))
    sa = attend(qkv, 0, qkv, D, 2 * D, S, S, wo1, bo1, causal)
    x1 = layer_norm(x2d + sa, g1, be1)

    # 2) cross-attention to the context + residual + post-LN
    q2 = project(x1, wq2, bq2)                        # (Bt*S, D)
    kv2 = project(ctx2d, w_kv2, b_kv2)                # (Bt*T, 2D), fused KV
    ca = attend(q2, 0, kv2, 0, D, S, T, wo2, bo2, None)
    x2 = layer_norm(x1 + ca, g2, be2)

    # 3) feed-forward (Linear -> ReLU -> Linear) + residual + post-LN
    hidden = jnp.maximum(project(x2, w1f, b1f), 0.0)
    ff = project(hidden, w2f, b2f)
    y = layer_norm(x2 + ff, g3, be3)
    out_ref[...] = y.astype(out_ref.dtype).reshape(bt, S, D)
    # TODO(synk): dropout layers are identity here (dropout_rate=0 / eval mode).


# ----------------------------------------------------------------------------
# Wrapper: call the kernel over a batch-tile grid for one DecoderBlock.
# ----------------------------------------------------------------------------
def decoder_block(x, context, params, n_heads, out_dtype=jnp.float32):
    B, S, D = x.shape
    T = context.shape[1]
    bt = _pick_batch_tile(B, S)
    kernel = functools.partial(_decoder_block_kernel, n_heads=n_heads)

    in_specs = [
        pl.BlockSpec((bt, S, D), lambda b: (b, 0, 0)),
        pl.BlockSpec((bt, T, D), lambda b: (b, 0, 0)),
    ]
    # Weights / biases / LN params: full array, constant block index so the
    # pipeline does not re-fetch them across grid steps.
    for p in params:
        in_specs.append(pl.BlockSpec(p.shape, lambda b, nd=p.ndim: (0,) * nd))

    return pl.pallas_call(
        kernel,
        out_shape=jax.ShapeDtypeStruct((B, S, D), out_dtype),
        grid=(B // bt,),
        in_specs=in_specs,
        out_specs=pl.BlockSpec((bt, S, D), lambda b: (b, 0, 0)),
        compiler_params=pltpu.CompilerParams(
            dimension_semantics=("parallel",),
            vmem_limit_bytes=_vmem_limit_bytes()),
    )(x, context, *params)


# ----------------------------------------------------------------------------
# Deterministic parameter initialization (synthetic weights).
# ----------------------------------------------------------------------------
def _init_linear(key, din, dout):
    kw, kb = jax.random.split(key)
    w = jax.random.normal(kw, (din, dout), jnp.float32) / jnp.sqrt(float(din))
    b = 0.01 * jax.random.normal(kb, (1, dout), jnp.float32)
    return w, b


def init_decoder_block_params(key, d_model, n_heads, dff):
    del n_heads  # head split is layout-only; weights are stored fused / (D, D)
    ks = jax.random.split(key, 10)
    wq1, bq1 = _init_linear(ks[0], d_model, d_model)
    wk1, bk1 = _init_linear(ks[1], d_model, d_model)
    wv1, bv1 = _init_linear(ks[2], d_model, d_model)
    wo1, bo1 = _init_linear(ks[3], d_model, d_model)
    wq2, bq2 = _init_linear(ks[4], d_model, d_model)
    wk2, bk2 = _init_linear(ks[5], d_model, d_model)
    wv2, bv2 = _init_linear(ks[6], d_model, d_model)
    wo2, bo2 = _init_linear(ks[7], d_model, d_model)
    w1f, b1f = _init_linear(ks[8], d_model, dff)
    w2f, b2f = _init_linear(ks[9], dff, d_model)

    bf16 = jnp.bfloat16
    # Fused projections (pure layout transform, same math as separate Q/K/V).
    w_qkv1 = jnp.concatenate([wq1, wk1, wv1], axis=1).astype(bf16)   # (D, 3D)
    b_qkv1 = jnp.concatenate([bq1, bk1, bv1], axis=1)                # (1, 3D) f32
    w_kv2 = jnp.concatenate([wk2, wv2], axis=1).astype(bf16)         # (D, 2D)
    b_kv2 = jnp.concatenate([bk2, bv2], axis=1)                      # (1, 2D) f32

    ln = lambda: (jnp.ones((1, d_model), jnp.float32),
                  jnp.zeros((1, d_model), jnp.float32))
    g1, be1 = ln()
    g2, be2 = ln()
    g3, be3 = ln()

    return [w_qkv1, b_qkv1, wo1.astype(bf16), bo1,
            wq2.astype(bf16), bq2, w_kv2, b_kv2, wo2.astype(bf16), bo2,
            w1f.astype(bf16), b1f, w2f.astype(bf16), b2f,
            g1, be1, g2, be2, g3, be3]


# ----------------------------------------------------------------------------
# Full MultiAttentionDecoder chain.
# ----------------------------------------------------------------------------
def _chain_forward(params, x, contexts, *, n_heads):
    n_layers = len(params)
    n_contexts = len(contexts)
    final_dtype = x.dtype
    # Inter-block activations & contexts travel through HBM in bf16 (halves the
    # activation DMA); in-kernel math stays f32 and the final block writes the
    # caller's dtype.  Contexts only feed bf16 MXU operands, so this is exact.
    contexts = [c.astype(jnp.bfloat16) for c in contexts]
    n_blocks = n_layers * n_contexts
    idx = 0
    for i in range(n_layers):
        for j in range(n_contexts):
            idx += 1
            out_dtype = final_dtype if idx == n_blocks else jnp.bfloat16
            x = decoder_block(x, contexts[j], params[i][j], n_heads,
                              out_dtype=out_dtype)
    return x


class MultiAttentionDecoderPallas:
    """Pallas equivalent of MultiAttentionDecoder (n_layers x n_contexts DecoderBlocks)."""

    def __init__(self, key, d_model, n_layers, n_contexts, n_heads, dff):
        self.n_layers = n_layers
        self.n_contexts = n_contexts
        self.n_heads = n_heads
        keys = jax.random.split(key, n_layers * n_contexts)
        self.params = [
            [init_decoder_block_params(keys[i * n_contexts + j],
                                       d_model, n_heads, dff)
             for j in range(n_contexts)]
            for i in range(n_layers)
        ]
        # jit the whole chain: blocks dispatch back-to-back, activations stay
        # device-resident between the 2*n_contexts*n_layers kernel calls.
        self._forward = jax.jit(functools.partial(_chain_forward,
                                                  n_heads=n_heads))
        # TODO(synk): contexts of equal T could be fused into one
        # weight-streaming pallas_call (grid axis over blocks).

    def __call__(self, x, contexts):
        return self._forward(self.params, x, tuple(contexts))


# ----------------------------------------------------------------------------
if __name__ == "__main__":
    key = jax.random.PRNGKey(0)
    k_model, k_x, k_c0, k_c1 = jax.random.split(key, 4)

    B, S, D = 2, 8, 32
    n_heads, dff = 4, 64
    n_layers, n_contexts = 2, 2

    x = jax.random.normal(k_x, (B, S, D), jnp.float32)
    contexts = [
        jax.random.normal(k_c0, (B, 8, D), jnp.float32),
        jax.random.normal(k_c1, (B, 16, D), jnp.float32),
    ]

    model = MultiAttentionDecoderPallas(k_model, d_model=D, n_layers=n_layers,
                                        n_contexts=n_contexts, n_heads=n_heads,
                                        dff=dff)
    out = model(x, contexts)
    out = jax.block_until_ready(out)
    assert out.shape == (B, S, D)
    assert out.dtype == jnp.float32
    assert bool(jnp.all(jnp.isfinite(out)))
    print("KERNEL_OK")
</pallas_src>

<mosaic_0001>
module attributes {stable_mosaic.version = 11 : i64} {
  func.func @_decoder_block_kernel(%arg0: i32, %arg1: memref<1x8x32xf32, #tpu.memory_space<vmem>>, %arg2: memref<1x8x32xbf16, #tpu.memory_space<vmem>>, %arg3: memref<32x96xbf16, #tpu.memory_space<vmem>>, %arg4: memref<1x96xf32, #tpu.memory_space<vmem>>, %arg5: memref<32x32xbf16, #tpu.memory_space<vmem>>, %arg6: memref<1x32xf32, #tpu.memory_space<vmem>>, %arg7: memref<32x32xbf16, #tpu.memory_space<vmem>>, %arg8: memref<1x32xf32, #tpu.memory_space<vmem>>, %arg9: memref<32x64xbf16, #tpu.memory_space<vmem>>, %arg10: memref<1x64xf32, #tpu.memory_space<vmem>>, %arg11: memref<32x32xbf16, #tpu.memory_space<vmem>>, %arg12: memref<1x32xf32, #tpu.memory_space<vmem>>, %arg13: memref<32x64xbf16, #tpu.memory_space<vmem>>, %arg14: memref<1x64xf32, #tpu.memory_space<vmem>>, %arg15: memref<64x32xbf16, #tpu.memory_space<vmem>>, %arg16: memref<1x32xf32, #tpu.memory_space<vmem>>, %arg17: memref<1x32xf32, #tpu.memory_space<vmem>>, %arg18: memref<1x32xf32, #tpu.memory_space<vmem>>, %arg19: memref<1x32xf32, #tpu.memory_space<vmem>>, %arg20: memref<1x32xf32, #tpu.memory_space<vmem>>, %arg21: memref<1x32xf32, #tpu.memory_space<vmem>>, %arg22: memref<1x32xf32, #tpu.memory_space<vmem>>, %arg23: memref<1x8x32xbf16, #tpu.memory_space<vmem>>) attributes {dimension_semantics = [#tpu.dimension_semantics<parallel>], iteration_bounds = array<i64: 2>, scalar_prefetch = 0 : i64, scratch_operands = 0 : i64, tpu.core_type = #tpu.core_type<tc>, window_params = [{transform_indices = @transform_0, window_bounds = array<i64: 1, 8, 32>}, {transform_indices = @transform_1, window_bounds = array<i64: 1, 8, 32>}, {pipeline_mode = #tpu.pipeline_mode<synchronous>, transform_indices = @transform_2, window_bounds = array<i64: 32, 96>}, {pipeline_mode = #tpu.pipeline_mode<synchronous>, transform_indices = @transform_3, window_bounds = array<i64: 1, 96>}, {pipeline_mode = #tpu.pipeline_mode<synchronous>, transform_indices = @transform_4, window_bounds = array<i64: 32, 32>}, {pipeline_mode = #tpu.pipeline_mode<synchronous>, transform_indices = @transform_5, window_bounds = array<i64: 1, 32>}, {pipeline_mode = #tpu.pipeline_mode<synchronous>, transform_indices = @transform_6, window_bounds = array<i64: 32, 32>}, {pipeline_mode = #tpu.pipeline_mode<synchronous>, transform_indices = @transform_7, window_bounds = array<i64: 1, 32>}, {pipeline_mode = #tpu.pipeline_mode<synchronous>, transform_indices = @transform_8, window_bounds = array<i64: 32, 64>}, {pipeline_mode = #tpu.pipeline_mode<synchronous>, transform_indices = @transform_9, window_bounds = array<i64: 1, 64>}, {pipeline_mode = #tpu.pipeline_mode<synchronous>, transform_indices = @transform_10, window_bounds = array<i64: 32, 32>}, {pipeline_mode = #tpu.pipeline_mode<synchronous>, transform_indices = @transform_11, window_bounds = array<i64: 1, 32>}, {pipeline_mode = #tpu.pipeline_mode<synchronous>, transform_indices = @transform_12, window_bounds = array<i64: 32, 64>}, {pipeline_mode = #tpu.pipeline_mode<synchronous>, transform_indices = @transform_13, window_bounds = array<i64: 1, 64>}, {pipeline_mode = #tpu.pipeline_mode<synchronous>, transform_indices = @transform_14, window_bounds = array<i64: 64, 32>}, {pipeline_mode = #tpu.pipeline_mode<synchronous>, transform_indices = @transform_15, window_bounds = array<i64: 1, 32>}, {pipeline_mode = #tpu.pipeline_mode<synchronous>, transform_indices = @transform_16, window_bounds = array<i64: 1, 32>}, {pipeline_mode = #tpu.pipeline_mode<synchronous>, transform_indices = @transform_17, window_bounds = array<i64: 1, 32>}, {pipeline_mode = #tpu.pipeline_mode<synchronous>, transform_indices = @transform_18, window_bounds = array<i64: 1, 32>}, {pipeline_mode = #tpu.pipeline_mode<synchronous>, transform_indices = @transform_19, window_bounds = array<i64: 1, 32>}, {pipeline_mode = #tpu.pipeline_mode<synchronous>, transform_indices = @transform_20, window_bounds = array<i64: 1, 32>}, {pipeline_mode = #tpu.pipeline_mode<synchronous>, transform_indices = @transform_21, window_bounds = array<i64: 1, 32>}, {transform_indices = @transform_22, window_bounds = array<i64: 1, 8, 32>}]} {
    %c0 = arith.constant 0 : index
    %c0_0 = arith.constant 0 : index
    %c0_1 = arith.constant 0 : index
    %0 = vector.load %arg1[%c0, %c0_0, %c0_1] : memref<1x8x32xf32, #tpu.memory_space<vmem>>, vector<1x8x32xf32>
    %1 = vector.shape_cast %0 : vector<1x8x32xf32> to vector<8x32xf32>
    %c0_2 = arith.constant 0 : index
    %c0_3 = arith.constant 0 : index
    %c0_4 = arith.constant 0 : index
    %2 = vector.load %arg2[%c0_2, %c0_3, %c0_4] : memref<1x8x32xbf16, #tpu.memory_space<vmem>>, vector<1x8x32xbf16>
    %3 = arith.extf %2 : vector<1x8x32xbf16> to vector<1x8x32xf32>
    %4 = vector.shape_cast %3 : vector<1x8x32xf32> to vector<8x32xf32>
    %5 = arith.truncf %1 : vector<8x32xf32> to vector<8x32xbf16>
    %c0_5 = arith.constant 0 : index
    %c0_6 = arith.constant 0 : index
    %6 = vector.load %arg3[%c0_5, %c0_6] : memref<32x96xbf16, #tpu.memory_space<vmem>>, vector<32x96xbf16>
    %cst = arith.constant dense<0.000000e+00> : vector<8x96xf32>
    %7 = tpu.matmul %5, %6, %cst {dimension_numbers = #tpu.dot_dimension_numbers<[1], [0], [0], [1], [0, 0, 1, 1], [], []>} : vector<8x32xbf16>, vector<32x96xbf16>, vector<8x96xf32> -> vector<8x96xf32>
    %c0_7 = arith.constant 0 : index
    %c0_8 = arith.constant 0 : index
    %8 = vector.load %arg4[%c0_7, %c0_8] : memref<1x96xf32, #tpu.memory_space<vmem>>, vector<1x96xf32>
    %9 = vector.broadcast %8 : vector<1x96xf32> to vector<8x96xf32>
    %10 = arith.addf %7, %9 : vector<8x96xf32>
    %11 = tpu.iota {dimensions = array<i32: 0>} : vector<8x8xi32>
    %12 = tpu.iota {dimensions = array<i32: 1>} : vector<8x8xi32>
    %13 = arith.cmpi sge, %11, %12 : vector<8x8xi32>
    %14 = vector.extract_strided_slice %10 {offsets = [0, 0], sizes = [8, 8], strides = [1, 1]} : vector<8x96xf32> to vector<8x8xf32>
    %15 = vector.shape_cast %14 : vector<8x8xf32> to vector<1x8x8xf32>
    %16 = arith.truncf %15 : vector<1x8x8xf32> to vector<1x8x8xbf16>
    %17 = vector.extract_strided_slice %10 {offsets = [0, 32], sizes = [8, 8], strides = [1, 1]} : vector<8x96xf32> to vector<8x8xf32>
    %18 = vector.shape_cast %17 : vector<8x8xf32> to vector<1x8x8xf32>
    %19 = arith.truncf %18 : vector<1x8x8xf32> to vector<1x8x8xbf16>
    %20 = vector.extract_strided_slice %10 {offsets = [0, 64], sizes = [8, 8], strides = [1, 1]} : vector<8x96xf32> to vector<8x8xf32>
    %21 = vector.shape_cast %20 : vector<8x8xf32> to vector<1x8x8xf32>
    %22 = arith.truncf %21 : vector<1x8x8xf32> to vector<1x8x8xbf16>
    "tpu.trace_start"() <{level = 10 : i32, message = "bqd,bkd->bqk"}> : () -> ()
    %cst_9 = arith.constant dense<0.000000e+00> : vector<1x8x8xf32>
    %23 = tpu.matmul %16, %19, %cst_9 {dimension_numbers = #tpu.dot_dimension_numbers<[2], [2], [1], [1], [0, 0, 0, 1, 1, 1], [0], [0]>} : vector<1x8x8xbf16>, vector<1x8x8xbf16>, vector<1x8x8xf32> -> vector<1x8x8xf32>
    "tpu.trace_stop"() : () -> ()
    %cst_10 = arith.constant 0.353553385 : f32
    %24 = vector.broadcast %cst_10 : f32 to vector<1x8x8xf32>
    %25 = arith.mulf %23, %24 : vector<1x8x8xf32>
    %26 = vector.shape_cast %13 : vector<8x8xi1> to vector<1x8x8xi1>
    %cst_11 = arith.constant -1.000000e+30 : f32
    %27 = vector.broadcast %cst_11 : f32 to vector<1x8x8xf32>
    %28 = arith.select %26, %25, %27 : vector<1x8x8xi1>, vector<1x8x8xf32>
    %cst_12 = arith.constant dense<0xFF800000> : vector<1x8xf32>
    %29 = vector.multi_reduction <maximumf>, %28, %cst_12 [2] : vector<1x8x8xf32> to vector<1x8xf32>
    %30 = vector.shape_cast %29 : vector<1x8xf32> to vector<1x8x1xf32>
    %31 = vector.broadcast %30 : vector<1x8x1xf32> to vector<1x8x8xf32>
    %32 = arith.subf %28, %31 : vector<1x8x8xf32>
    %33 = math.exp %32 : vector<1x8x8xf32>
    %cst_13 = arith.constant dense<0.000000e+00> : vector<1x8xf32>
    %34 = vector.multi_reduction <add>, %33, %cst_13 [2] : vector<1x8x8xf32> to vector<1x8xf32>
    %35 = vector.shape_cast %34 : vector<1x8xf32> to vector<1x8x1xf32>
    %36 = tpu.reciprocal %35 {approx = true} : vector<1x8x1xf32> -> vector<1x8x1xf32>
    %37 = vector.broadcast %36 : vector<1x8x1xf32> to vector<1x8x8xf32>
    %38 = arith.mulf %33, %37 : vector<1x8x8xf32>
    %39 = arith.truncf %38 : vector<1x8x8xf32> to vector<1x8x8xbf16>
    "tpu.trace_start"() <{level = 10 : i32, message = "bqk,bkd->bqd"}> : () -> ()
    %cst_14 = arith.constant dense<0.000000e+00> : vector<1x8x8xf32>
    %40 = tpu.matmul %39, %22, %cst_14 {dimension_numbers = #tpu.dot_dimension_numbers<[2], [1], [1], [2], [0, 0, 0, 1, 1, 2], [0], [0]>} : vector<1x8x8xbf16>, vector<1x8x8xbf16>, vector<1x8x8xf32> -> vector<1x8x8xf32>
    "tpu.trace_stop"() : () -> ()
    %41 = vector.extract_strided_slice %10 {offsets = [0, 8], sizes = [8, 8], strides = [1, 1]} : vector<8x96xf32> to vector<8x8xf32>
    %42 = vector.shape_cast %41 : vector<8x8xf32> to vector<1x8x8xf32>
    %43 = arith.truncf %42 : vector<1x8x8xf32> to vector<1x8x8xbf16>
    %44 = vector.extract_strided_slice %10 {offsets = [0, 40], sizes = [8, 8], strides = [1, 1]} : vector<8x96xf32> to vector<8x8xf32>
    %45 = vector.shape_cast %44 : vector<8x8xf32> to vector<1x8x8xf32>
    %46 = arith.truncf %45 : vector<1x8x8xf32> to vector<1x8x8xbf16>
    %47 = vector.extract_strided_slice %10 {offsets = [0, 72], sizes = [8, 8], strides = [1, 1]} : vector<8x96xf32> to vector<8x8xf32>
    %48 = vector.shape_cast %47 : vector<8x8xf32> to vector<1x8x8xf32>
    %49 = arith.truncf %48 : vector<1x8x8xf32> to vector<1x8x8xbf16>
    "tpu.trace_start"() <{level = 10 : i32, message = "bqd,bkd->bqk"}> : () -> ()
    %cst_15 = arith.constant dense<0.000000e+00> : vector<1x8x8xf32>
    %50 = tpu.matmul %43, %46, %cst_15 {dimension_numbers = #tpu.dot_dimension_numbers<[2], [2], [1], [1], [0, 0, 0, 1, 1, 1], [0], [0]>} : vector<1x8x8xbf16>, vector<1x8x8xbf16>, vector<1x8x8xf32> -> vector<1x8x8xf32>
    "tpu.trace_stop"() : () -> ()
    %cst_16 = arith.constant 0.353553385 : f32
    %51 = vector.broadcast %cst_16 : f32 to vector<1x8x8xf32>
    %52 = arith.mulf %50, %51 : vector<1x8x8xf32>
    %53 = vector.shape_cast %13 : vector<8x8xi1> to vector<1x8x8xi1>
    %cst_17 = arith.constant -1.000000e+30 : f32
    %54 = vector.broadcast %cst_17 : f32 to vector<1x8x8xf32>
    %55 = arith.select %53, %52, %54 : vector<1x8x8xi1>, vector<1x8x8xf32>
    %cst_18 = arith.constant dense<0xFF800000> : vector<1x8xf32>
    %56 = vector.multi_reduction <maximumf>, %55, %cst_18 [2] : vector<1x8x8xf32> to vector<1x8xf32>
    %57 = vector.shape_cast %56 : vector<1x8xf32> to vector<1x8x1xf32>
    %58 = vector.broadcast %57 : vector<1x8x1xf32> to vector<1x8x8xf32>
    %59 = arith.subf %55, %58 : vector<1x8x8xf32>
    %60 = math.exp %59 : vector<1x8x8xf32>
    %cst_19 = arith.constant dense<0.000000e+00> : vector<1x8xf32>
    %61 = vector.multi_reduction <add>, %60, %cst_19 [2] : vector<1x8x8xf32> to vector<1x8xf32>
    %62 = vector.shape_cast %61 : vector<1x8xf32> to vector<1x8x1xf32>
    %63 = tpu.reciprocal %62 {approx = true} : vector<1x8x1xf32> -> vector<1x8x1xf32>
    %64 = vector.broadcast %63 : vector<1x8x1xf32> to vector<1x8x8xf32>
    %65 = arith.mulf %60, %64 : vector<1x8x8xf32>
    %66 = arith.truncf %65 : vector<1x8x8xf32> to vector<1x8x8xbf16>
    "tpu.trace_start"() <{level = 10 : i32, message = "bqk,bkd->bqd"}> : () -> ()
    %cst_20 = arith.constant dense<0.000000e+00> : vector<1x8x8xf32>
    %67 = tpu.matmul %66, %49, %cst_20 {dimension_numbers = #tpu.dot_dimension_numbers<[2], [1], [1], [2], [0, 0, 0, 1, 1, 2], [0], [0]>} : vector<1x8x8xbf16>, vector<1x8x8xbf16>, vector<1x8x8xf32> -> vector<1x8x8xf32>
    "tpu.trace_stop"() : () -> ()
    %68 = vector.extract_strided_slice %10 {offsets = [0, 16], sizes = [8, 8], strides = [1, 1]} : vector<8x96xf32> to vector<8x8xf32>
    %69 = vector.shape_cast %68 : vector<8x8xf32> to vector<1x8x8xf32>
    %70 = arith.truncf %69 : vector<1x8x8xf32> to vector<1x8x8xbf16>
    %71 = vector.extract_strided_slice %10 {offsets = [0, 48], sizes = [8, 8], strides = [1, 1]} : vector<8x96xf32> to vector<8x8xf32>
    %72 = vector.shape_cast %71 : vector<8x8xf32> to vector<1x8x8xf32>
    %73 = arith.truncf %72 : vector<1x8x8xf32> to vector<1x8x8xbf16>
    %74 = vector.extract_strided_slice %10 {offsets = [0, 80], sizes = [8, 8], strides = [1, 1]} : vector<8x96xf32> to vector<8x8xf32>
    %75 = vector.shape_cast %74 : vector<8x8xf32> to vector<1x8x8xf32>
    %76 = arith.truncf %75 : vector<1x8x8xf32> to vector<1x8x8xbf16>
    "tpu.trace_start"() <{level = 10 : i32, message = "bqd,bkd->bqk"}> : () -> ()
    %cst_21 = arith.constant dense<0.000000e+00> : vector<1x8x8xf32>
    %77 = tpu.matmul %70, %73, %cst_21 {dimension_numbers = #tpu.dot_dimension_numbers<[2], [2], [1], [1], [0, 0, 0, 1, 1, 1], [0], [0]>} : vector<1x8x8xbf16>, vector<1x8x8xbf16>, vector<1x8x8xf32> -> vector<1x8x8xf32>
    "tpu.trace_stop"() : () -> ()
    %cst_22 = arith.constant 0.353553385 : f32
    %78 = vector.broadcast %cst_22 : f32 to vector<1x8x8xf32>
    %79 = arith.mulf %77, %78 : vector<1x8x8xf32>
    %80 = vector.shape_cast %13 : vector<8x8xi1> to vector<1x8x8xi1>
    %cst_23 = arith.constant -1.000000e+30 : f32
    %81 = vector.broadcast %cst_23 : f32 to vector<1x8x8xf32>
    %82 = arith.select %80, %79, %81 : vector<1x8x8xi1>, vector<1x8x8xf32>
    %cst_24 = arith.constant dense<0xFF800000> : vector<1x8xf32>
    %83 = vector.multi_reduction <maximumf>, %82, %cst_24 [2] : vector<1x8x8xf32> to vector<1x8xf32>
    %84 = vector.shape_cast %83 : vector<1x8xf32> to vector<1x8x1xf32>
    %85 = vector.broadcast %84 : vector<1x8x1xf32> to vector<1x8x8xf32>
    %86 = arith.subf %82, %85 : vector<1x8x8xf32>
    %87 = math.exp %86 : vector<1x8x8xf32>
    %cst_25 = arith.constant dense<0.000000e+00> : vector<1x8xf32>
    %88 = vector.multi_reduction <add>, %87, %cst_25 [2] : vector<1x8x8xf32> to vector<1x8xf32>
    %89 = vector.shape_cast %88 : vector<1x8xf32> to vector<1x8x1xf32>
    %90 = tpu.reciprocal %89 {approx = true} : vector<1x8x1xf32> -> vector<1x8x1xf32>
    %91 = vector.broadcast %90 : vector<1x8x1xf32> to vector<1x8x8xf32>
    %92 = arith.mulf %87, %91 : vector<1x8x8xf32>
    %93 = arith.truncf %92 : vector<1x8x8xf32> to vector<1x8x8xbf16>
    "tpu.trace_start"() <{level = 10 : i32, message = "bqk,bkd->bqd"}> : () -> ()
    %cst_26 = arith.constant dense<0.000000e+00> : vector<1x8x8xf32>
    %94 = tpu.matmul %93, %76, %cst_26 {dimension_numbers = #tpu.dot_dimension_numbers<[2], [1], [1], [2], [0, 0, 0, 1, 1, 2], [0], [0]>} : vector<1x8x8xbf16>, vector<1x8x8xbf16>, vector<1x8x8xf32> -> vector<1x8x8xf32>
    "tpu.trace_stop"() : () -> ()
    %95 = vector.extract_strided_slice %10 {offsets = [0, 24], sizes = [8, 8], strides = [1, 1]} : vector<8x96xf32> to vector<8x8xf32>
    %96 = vector.shape_cast %95 : vector<8x8xf32> to vector<1x8x8xf32>
    %97 = arith.truncf %96 : vector<1x8x8xf32> to vector<1x8x8xbf16>
    %98 = vector.extract_strided_slice %10 {offsets = [0, 56], sizes = [8, 8], strides = [1, 1]} : vector<8x96xf32> to vector<8x8xf32>
    %99 = vector.shape_cast %98 : vector<8x8xf32> to vector<1x8x8xf32>
    %100 = arith.truncf %99 : vector<1x8x8xf32> to vector<1x8x8xbf16>
    %101 = vector.extract_strided_slice %10 {offsets = [0, 88], sizes = [8, 8], strides = [1, 1]} : vector<8x96xf32> to vector<8x8xf32>
    %102 = vector.shape_cast %101 : vector<8x8xf32> to vector<1x8x8xf32>
    %103 = arith.truncf %102 : vector<1x8x8xf32> to vector<1x8x8xbf16>
    "tpu.trace_start"() <{level = 10 : i32, message = "bqd,bkd->bqk"}> : () -> ()
    %cst_27 = arith.constant dense<0.000000e+00> : vector<1x8x8xf32>
    %104 = tpu.matmul %97, %100, %cst_27 {dimension_numbers = #tpu.dot_dimension_numbers<[2], [2], [1], [1], [0, 0, 0, 1, 1, 1], [0], [0]>} : vector<1x8x8xbf16>, vector<1x8x8xbf16>, vector<1x8x8xf32> -> vector<1x8x8xf32>
    "tpu.trace_stop"() : () -> ()
    %cst_28 = arith.constant 0.353553385 : f32
    %105 = vector.broadcast %cst_28 : f32 to vector<1x8x8xf32>
    %106 = arith.mulf %104, %105 : vector<1x8x8xf32>
    %107 = vector.shape_cast %13 : vector<8x8xi1> to vector<1x8x8xi1>
    %cst_29 = arith.constant -1.000000e+30 : f32
    %108 = vector.broadcast %cst_29 : f32 to vector<1x8x8xf32>
    %109 = arith.select %107, %106, %108 : vector<1x8x8xi1>, vector<1x8x8xf32>
    %cst_30 = arith.constant dense<0xFF800000> : vector<1x8xf32>
    %110 = vector.multi_reduction <maximumf>, %109, %cst_30 [2] : vector<1x8x8xf32> to vector<1x8xf32>
    %111 = vector.shape_cast %110 : vector<1x8xf32> to vector<1x8x1xf32>
    %112 = vector.broadcast %111 : vector<1x8x1xf32> to vector<1x8x8xf32>
    %113 = arith.subf %109, %112 : vector<1x8x8xf32>
    %114 = math.exp %113 : vector<1x8x8xf32>
    %cst_31 = arith.constant dense<0.000000e+00> : vector<1x8xf32>
    %115 = vector.multi_reduction <add>, %114, %cst_31 [2] : vector<1x8x8xf32> to vector<1x8xf32>
    %116 = vector.shape_cast %115 : vector<1x8xf32> to vector<1x8x1xf32>
    %117 = tpu.reciprocal %116 {approx = true} : vector<1x8x1xf32> -> vector<1x8x1xf32>
    %118 = vector.broadcast %117 : vector<1x8x1xf32> to vector<1x8x8xf32>
    %119 = arith.mulf %114, %118 : vector<1x8x8xf32>
    %120 = arith.truncf %119 : vector<1x8x8xf32> to vector<1x8x8xbf16>
    "tpu.trace_start"() <{level = 10 : i32, message = "bqk,bkd->bqd"}> : () -> ()
    %cst_32 = arith.constant dense<0.000000e+00> : vector<1x8x8xf32>
    %121 = tpu.matmul %120, %103, %cst_32 {dimension_numbers = #tpu.dot_dimension_numbers<[2], [1], [1], [2], [0, 0, 0, 1, 1, 2], [0], [0]>} : vector<1x8x8xbf16>, vector<1x8x8xbf16>, vector<1x8x8xf32> -> vector<1x8x8xf32>
    "tpu.trace_stop"() : () -> ()
    %122 = tpu.concatenate %40, %67, %94, %121 in 2 : vector<1x8x8xf32>, vector<1x8x8xf32>, vector<1x8x8xf32>, vector<1x8x8xf32> -> vector<1x8x32xf32>
    %123 = vector.shape_cast %122 : vector<1x8x32xf32> to vector<8x32xf32>
    %124 = arith.truncf %123 : vector<8x32xf32> to vector<8x32xbf16>
    %c0_33 = arith.constant 0 : index
    %c0_34 = arith.constant 0 : index
    %125 = vector.load %arg5[%c0_33, %c0_34] : memref<32x32xbf16, #tpu.memory_space<vmem>>, vector<32x32xbf16>
    %cst_35 = arith.constant dense<0.000000e+00> : vector<8x32xf32>
    %126 = tpu.matmul %124, %125, %cst_35 {dimension_numbers = #tpu.dot_dimension_numbers<[1], [0], [0], [1], [0, 0, 1, 1], [], []>} : vector<8x32xbf16>, vector<32x32xbf16>, vector<8x32xf32> -> vector<8x32xf32>
    %c0_36 = arith.constant 0 : index
    %c0_37 = arith.constant 0 : index
    %127 = vector.load %arg6[%c0_36, %c0_37] : memref<1x32xf32, #tpu.memory_space<vmem>>, vector<1x32xf32>
    %128 = vector.broadcast %127 : vector<1x32xf32> to vector<8x32xf32>
    %129 = arith.addf %126, %128 : vector<8x32xf32>
    %130 = arith.addf %1, %129 : vector<8x32xf32>
    %cst_38 = arith.constant dense<0.000000e+00> : vector<8xf32>
    %131 = vector.multi_reduction <add>, %130, %cst_38 [1] : vector<8x32xf32> to vector<8xf32>
    %132 = vector.shape_cast %131 : vector<8xf32> to vector<8x1xf32>
    %cst_39 = arith.constant 3.200000e+01 : f32
    %133 = vector.broadcast %cst_39 : f32 to vector<8x1xf32>
    %134 = arith.divf %132, %133 : vector<8x1xf32>
    %135 = vector.broadcast %134 : vector<8x1xf32> to vector<8x32xf32>
    %136 = arith.subf %130, %135 : vector<8x32xf32>
    %137 = arith.mulf %136, %136 : vector<8x32xf32>
    %cst_40 = arith.constant dense<0.000000e+00> : vector<8xf32>
    %138 = vector.multi_reduction <add>, %137, %cst_40 [1] : vector<8x32xf32> to vector<8xf32>
    %139 = vector.shape_cast %138 : vector<8xf32> to vector<8x1xf32>
    %cst_41 = arith.constant 3.200000e+01 : f32
    %140 = vector.broadcast %cst_41 : f32 to vector<8x1xf32>
    %141 = arith.divf %139, %140 : vector<8x1xf32>
    %cst_42 = arith.constant 9.99999974E-6 : f32
    %142 = vector.broadcast %cst_42 : f32 to vector<8x1xf32>
    %143 = arith.addf %141, %142 : vector<8x1xf32>
    %144 = math.rsqrt %143 : vector<8x1xf32>
    %145 = vector.broadcast %144 : vector<8x1xf32> to vector<8x32xf32>
    %146 = arith.mulf %136, %145 : vector<8x32xf32>
    %c0_43 = arith.constant 0 : index
    %c0_44 = arith.constant 0 : index
    %147 = vector.load %arg17[%c0_43, %c0_44] : memref<1x32xf32, #tpu.memory_space<vmem>>, vector<1x32xf32>
    %148 = vector.broadcast %147 : vector<1x32xf32> to vector<8x32xf32>
    %149 = arith.mulf %146, %148 : vector<8x32xf32>
    %c0_45 = arith.constant 0 : index
    %c0_46 = arith.constant 0 : index
    %150 = vector.load %arg18[%c0_45, %c0_46] : memref<1x32xf32, #tpu.memory_space<vmem>>, vector<1x32xf32>
    %151 = vector.broadcast %150 : vector<1x32xf32> to vector<8x32xf32>
    %152 = arith.addf %149, %151 : vector<8x32xf32>
    %153 = arith.truncf %152 : vector<8x32xf32> to vector<8x32xbf16>
    %c0_47 = arith.constant 0 : index
    %c0_48 = arith.constant 0 : index
    %154 = vector.load %arg7[%c0_47, %c0_48] : memref<32x32xbf16, #tpu.memory_space<vmem>>, vector<32x32xbf16>
    %cst_49 = arith.constant dense<0.000000e+00> : vector<8x32xf32>
    %155 = tpu.matmul %153, %154, %cst_49 {dimension_numbers = #tpu.dot_dimension_numbers<[1], [0], [0], [1], [0, 0, 1, 1], [], []>} : vector<8x32xbf16>, vector<32x32xbf16>, vector<8x32xf32> -> vector<8x32xf32>
    %c0_50 = arith.constant 0 : index
    %c0_51 = arith.constant 0 : index
    %156 = vector.load %arg8[%c0_50, %c0_51] : memref<1x32xf32, #tpu.memory_space<vmem>>, vector<1x32xf32>
    %157 = vector.broadcast %156 : vector<1x32xf32> to vector<8x32xf32>
    %158 = arith.addf %155, %157 : vector<8x32xf32>
    %159 = arith.truncf %4 : vector<8x32xf32> to vector<8x32xbf16>
    %c0_52 = arith.constant 0 : index
    %c0_53 = arith.constant 0 : index
    %160 = vector.load %arg9[%c0_52, %c0_53] : memref<32x64xbf16, #tpu.memory_space<vmem>>, vector<32x64xbf16>
    %cst_54 = arith.constant dense<0.000000e+00> : vector<8x64xf32>
    %161 = tpu.matmul %159, %160, %cst_54 {dimension_numbers = #tpu.dot_dimension_numbers<[1], [0], [0], [1], [0, 0, 1, 1], [], []>} : vector<8x32xbf16>, vector<32x64xbf16>, vector<8x64xf32> -> vector<8x64xf32>
    %c0_55 = arith.constant 0 : index
    %c0_56 = arith.constant 0 : index
    %162 = vector.load %arg10[%c0_55, %c0_56] : memref<1x64xf32, #tpu.memory_space<vmem>>, vector<1x64xf32>
    %163 = vector.broadcast %162 : vector<1x64xf32> to vector<8x64xf32>
    %164 = arith.addf %161, %163 : vector<8x64xf32>
    %165 = vector.extract_strided_slice %158 {offsets = [0, 0], sizes = [8, 8], strides = [1, 1]} : vector<8x32xf32> to vector<8x8xf32>
    %166 = vector.shape_cast %165 : vector<8x8xf32> to vector<1x8x8xf32>
    %167 = arith.truncf %166 : vector<1x8x8xf32> to vector<1x8x8xbf16>
    %168 = vector.extract_strided_slice %164 {offsets = [0, 0], sizes = [8, 8], strides = [1, 1]} : vector<8x64xf32> to vector<8x8xf32>
    %169 = vector.shape_cast %168 : vector<8x8xf32> to vector<1x8x8xf32>
    %170 = arith.truncf %169 : vector<1x8x8xf32> to vector<1x8x8xbf16>
    %171 = vector.extract_strided_slice %164 {offsets = [0, 32], sizes = [8, 8], strides = [1, 1]} : vector<8x64xf32> to vector<8x8xf32>
    %172 = vector.shape_cast %171 : vector<8x8xf32> to vector<1x8x8xf32>
    %173 = arith.truncf %172 : vector<1x8x8xf32> to vector<1x8x8xbf16>
    "tpu.trace_start"() <{level = 10 : i32, message = "bqd,bkd->bqk"}> : () -> ()
    %cst_57 = arith.constant dense<0.000000e+00> : vector<1x8x8xf32>
    %174 = tpu.matmul %167, %170, %cst_57 {dimension_numbers = #tpu.dot_dimension_numbers<[2], [2], [1], [1], [0, 0, 0, 1, 1, 1], [0], [0]>} : vector<1x8x8xbf16>, vector<1x8x8xbf16>, vector<1x8x8xf32> -> vector<1x8x8xf32>
    "tpu.trace_stop"() : () -> ()
    %cst_58 = arith.constant 0.353553385 : f32
    %175 = vector.broadcast %cst_58 : f32 to vector<1x8x8xf32>
    %176 = arith.mulf %174, %175 : vector<1x8x8xf32>
    %cst_59 = arith.constant dense<0xFF800000> : vector<1x8xf32>
    %177 = vector.multi_reduction <maximumf>, %176, %cst_59 [2] : vector<1x8x8xf32> to vector<1x8xf32>
    %178 = vector.shape_cast %177 : vector<1x8xf32> to vector<1x8x1xf32>
    %179 = vector.broadcast %178 : vector<1x8x1xf32> to vector<1x8x8xf32>
    %180 = arith.subf %176, %179 : vector<1x8x8xf32>
    %181 = math.exp %180 : vector<1x8x8xf32>
    %cst_60 = arith.constant dense<0.000000e+00> : vector<1x8xf32>
    %182 = vector.multi_reduction <add>, %181, %cst_60 [2] : vector<1x8x8xf32> to vector<1x8xf32>
    %183 = vector.shape_cast %182 : vector<1x8xf32> to vector<1x8x1xf32>
    %184 = tpu.reciprocal %183 {approx = true} : vector<1x8x1xf32> -> vector<1x8x1xf32>
    %185 = vector.broadcast %184 : vector<1x8x1xf32> to vector<1x8x8xf32>
    %186 = arith.mulf %181, %185 : vector<1x8x8xf32>
    %187 = arith.truncf %186 : vector<1x8x8xf32> to vector<1x8x8xbf16>
    "tpu.trace_start"() <{level = 10 : i32, message = "bqk,bkd->bqd"}> : () -> ()
    %cst_61 = arith.constant dense<0.000000e+00> : vector<1x8x8xf32>
    %188 = tpu.matmul %187, %173, %cst_61 {dimension_numbers = #tpu.dot_dimension_numbers<[2], [1], [1], [2], [0, 0, 0, 1, 1, 2], [0], [0]>} : vector<1x8x8xbf16>, vector<1x8x8xbf16>, vector<1x8x8xf32> -> vector<1x8x8xf32>
    "tpu.trace_stop"() : () -> ()
    %189 = vector.extract_strided_slice %158 {offsets = [0, 8], sizes = [8, 8], strides = [1, 1]} : vector<8x32xf32> to vector<8x8xf32>
    %190 = vector.shape_cast %189 : vector<8x8xf32> to vector<1x8x8xf32>
    %191 = arith.truncf %190 : vector<1x8x8xf32> to vector<1x8x8xbf16>
    %192 = vector.extract_strided_slice %164 {offsets = [0, 8], sizes = [8, 8], strides = [1, 1]} : vector<8x64xf32> to vector<8x8xf32>
    %193 = vector.shape_cast %192 : vector<8x8xf32> to vector<1x8x8xf32>
    %194 = arith.truncf %193 : vector<1x8x8xf32> to vector<1x8x8xbf16>
    %195 = vector.extract_strided_slice %164 {offsets = [0, 40], sizes = [8, 8], strides = [1, 1]} : vector<8x64xf32> to vector<8x8xf32>
    %196 = vector.shape_cast %195 : vector<8x8xf32> to vector<1x8x8xf32>
    %197 = arith.truncf %196 : vector<1x8x8xf32> to vector<1x8x8xbf16>
    "tpu.trace_start"() <{level = 10 : i32, message = "bqd,bkd->bqk"}> : () -> ()
    %cst_62 = arith.constant dense<0.000000e+00> : vector<1x8x8xf32>
    %198 = tpu.matmul %191, %194, %cst_62 {dimension_numbers = #tpu.dot_dimension_numbers<[2], [2], [1], [1], [0, 0, 0, 1, 1, 1], [0], [0]>} : vector<1x8x8xbf16>, vector<1x8x8xbf16>, vector<1x8x8xf32> -> vector<1x8x8xf32>
    "tpu.trace_stop"() : () -> ()
    %cst_63 = arith.constant 0.353553385 : f32
    %199 = vector.broadcast %cst_63 : f32 to vector<1x8x8xf32>
    %200 = arith.mulf %198, %199 : vector<1x8x8xf32>
    %cst_64 = arith.constant dense<0xFF800000> : vector<1x8xf32>
    %201 = vector.multi_reduction <maximumf>, %200, %cst_64 [2] : vector<1x8x8xf32> to vector<1x8xf32>
    %202 = vector.shape_cast %201 : vector<1x8xf32> to vector<1x8x1xf32>
    %203 = vector.broadcast %202 : vector<1x8x1xf32> to vector<1x8x8xf32>
    %204 = arith.subf %200, %203 : vector<1x8x8xf32>
    %205 = math.exp %204 : vector<1x8x8xf32>
    %cst_65 = arith.constant dense<0.000000e+00> : vector<1x8xf32>
    %206 = vector.multi_reduction <add>, %205, %cst_65 [2] : vector<1x8x8xf32> to vector<1x8xf32>
    %207 = vector.shape_cast %206 : vector<1x8xf32> to vector<1x8x1xf32>
    %208 = tpu.reciprocal %207 {approx = true} : vector<1x8x1xf32> -> vector<1x8x1xf32>
    %209 = vector.broadcast %208 : vector<1x8x1xf32> to vector<1x8x8xf32>
    %210 = arith.mulf %205, %209 : vector<1x8x8xf32>
    %211 = arith.truncf %210 : vector<1x8x8xf32> to vector<1x8x8xbf16>
    "tpu.trace_start"() <{level = 10 : i32, message = "bqk,bkd->bqd"}> : () -> ()
    %cst_66 = arith.constant dense<0.000000e+00> : vector<1x8x8xf32>
    %212 = tpu.matmul %211, %197, %cst_66 {dimension_numbers = #tpu.dot_dimension_numbers<[2], [1], [1], [2], [0, 0, 0, 1, 1, 2], [0], [0]>} : vector<1x8x8xbf16>, vector<1x8x8xbf16>, vector<1x8x8xf32> -> vector<1x8x8xf32>
    "tpu.trace_stop"() : () -> ()
    %213 = vector.extract_strided_slice %158 {offsets = [0, 16], sizes = [8, 8], strides = [1, 1]} : vector<8x32xf32> to vector<8x8xf32>
    %214 = vector.shape_cast %213 : vector<8x8xf32> to vector<1x8x8xf32>
    %215 = arith.truncf %214 : vector<1x8x8xf32> to vector<1x8x8xbf16>
    %216 = vector.extract_strided_slice %164 {offsets = [0, 16], sizes = [8, 8], strides = [1, 1]} : vector<8x64xf32> to vector<8x8xf32>
    %217 = vector.shape_cast %216 : vector<8x8xf32> to vector<1x8x8xf32>
    %218 = arith.truncf %217 : vector<1x8x8xf32> to vector<1x8x8xbf16>
    %219 = vector.extract_strided_slice %164 {offsets = [0, 48], sizes = [8, 8], strides = [1, 1]} : vector<8x64xf32> to vector<8x8xf32>
    %220 = vector.shape_cast %219 : vector<8x8xf32> to vector<1x8x8xf32>
    %221 = arith.truncf %220 : vector<1x8x8xf32> to vector<1x8x8xbf16>
    "tpu.trace_start"() <{level = 10 : i32, message = "bqd,bkd->bqk"}> : () -> ()
    %cst_67 = arith.constant dense<0.000000e+00> : vector<1x8x8xf32>
    %222 = tpu.matmul %215, %218, %cst_67 {dimension_numbers = #tpu.dot_dimension_numbers<[2], [2], [1], [1], [0, 0, 0, 1, 1, 1], [0], [0]>} : vector<1x8x8xbf16>, vector<1x8x8xbf16>, vector<1x8x8xf32> -> vector<1x8x8xf32>
    "tpu.trace_stop"() : () -> ()
    %cst_68 = arith.constant 0.353553385 : f32
    %223 = vector.broadcast %cst_68 : f32 to vector<1x8x8xf32>
    %224 = arith.mulf %222, %223 : vector<1x8x8xf32>
    %cst_69 = arith.constant dense<0xFF800000> : vector<1x8xf32>
    %225 = vector.multi_reduction <maximumf>, %224, %cst_69 [2] : vector<1x8x8xf32> to vector<1x8xf32>
    %226 = vector.shape_cast %225 : vector<1x8xf32> to vector<1x8x1xf32>
    %227 = vector.broadcast %226 : vector<1x8x1xf32> to vector<1x8x8xf32>
    %228 = arith.subf %224, %227 : vector<1x8x8xf32>
    %229 = math.exp %228 : vector<1x8x8xf32>
    %cst_70 = arith.constant dense<0.000000e+00> : vector<1x8xf32>
    %230 = vector.multi_reduction <add>, %229, %cst_70 [2] : vector<1x8x8xf32> to vector<1x8xf32>
    %231 = vector.shape_cast %230 : vector<1x8xf32> to vector<1x8x1xf32>
    %232 = tpu.reciprocal %231 {approx = true} : vector<1x8x1xf32> -> vector<1x8x1xf32>
    %233 = vector.broadcast %232 : vector<1x8x1xf32> to vector<1x8x8xf32>
    %234 = arith.mulf %229, %233 : vector<1x8x8xf32>
    %235 = arith.truncf %234 : vector<1x8x8xf32> to vector<1x8x8xbf16>
    "tpu.trace_start"() <{level = 10 : i32, message = "bqk,bkd->bqd"}> : () -> ()
    %cst_71 = arith.constant dense<0.000000e+00> : vector<1x8x8xf32>
    %236 = tpu.matmul %235, %221, %cst_71 {dimension_numbers = #tpu.dot_dimension_numbers<[2], [1], [1], [2], [0, 0, 0, 1, 1, 2], [0], [0]>} : vector<1x8x8xbf16>, vector<1x8x8xbf16>, vector<1x8x8xf32> -> vector<1x8x8xf32>
    "tpu.trace_stop"() : () -> ()
    %237 = vector.extract_strided_slice %158 {offsets = [0, 24], sizes = [8, 8], strides = [1, 1]} : vector<8x32xf32> to vector<8x8xf32>
    %238 = vector.shape_cast %237 : vector<8x8xf32> to vector<1x8x8xf32>
    %239 = arith.truncf %238 : vector<1x8x8xf32> to vector<1x8x8xbf16>
    %240 = vector.extract_strided_slice %164 {offsets = [0, 24], sizes = [8, 8], strides = [1, 1]} : vector<8x64xf32> to vector<8x8xf32>
    %241 = vector.shape_cast %240 : vector<8x8xf32> to vector<1x8x8xf32>
    %242 = arith.truncf %241 : vector<1x8x8xf32> to vector<1x8x8xbf16>
    %243 = vector.extract_strided_slice %164 {offsets = [0, 56], sizes = [8, 8], strides = [1, 1]} : vector<8x64xf32> to vector<8x8xf32>
    %244 = vector.shape_cast %243 : vector<8x8xf32> to vector<1x8x8xf32>
    %245 = arith.truncf %244 : vector<1x8x8xf32> to vector<1x8x8xbf16>
    "tpu.trace_start"() <{level = 10 : i32, message = "bqd,bkd->bqk"}> : () -> ()
    %cst_72 = arith.constant dense<0.000000e+00> : vector<1x8x8xf32>
    %246 = tpu.matmul %239, %242, %cst_72 {dimension_numbers = #tpu.dot_dimension_numbers<[2], [2], [1], [1], [0, 0, 0, 1, 1, 1], [0], [0]>} : vector<1x8x8xbf16>, vector<1x8x8xbf16>, vector<1x8x8xf32> -> vector<1x8x8xf32>
    "tpu.trace_stop"() : () -> ()
    %cst_73 = arith.constant 0.353553385 : f32
    %247 = vector.broadcast %cst_73 : f32 to vector<1x8x8xf32>
    %248 = arith.mulf %246, %247 : vector<1x8x8xf32>
    %cst_74 = arith.constant dense<0xFF800000> : vector<1x8xf32>
    %249 = vector.multi_reduction <maximumf>, %248, %cst_74 [2] : vector<1x8x8xf32> to vector<1x8xf32>
    %250 = vector.shape_cast %249 : vector<1x8xf32> to vector<1x8x1xf32>
    %251 = vector.broadcast %250 : vector<1x8x1xf32> to vector<1x8x8xf32>
    %252 = arith.subf %248, %251 : vector<1x8x8xf32>
    %253 = math.exp %252 : vector<1x8x8xf32>
    %cst_75 = arith.constant dense<0.000000e+00> : vector<1x8xf32>
    %254 = vector.multi_reduction <add>, %253, %cst_75 [2] : vector<1x8x8xf32> to vector<1x8xf32>
    %255 = vector.shape_cast %254 : vector<1x8xf32> to vector<1x8x1xf32>
    %256 = tpu.reciprocal %255 {approx = true} : vector<1x8x1xf32> -> vector<1x8x1xf32>
    %257 = vector.broadcast %256 : vector<1x8x1xf32> to vector<1x8x8xf32>
    %258 = arith.mulf %253, %257 : vector<1x8x8xf32>
    %259 = arith.truncf %258 : vector<1x8x8xf32> to vector<1x8x8xbf16>
    "tpu.trace_start"() <{level = 10 : i32, message = "bqk,bkd->bqd"}> : () -> ()
    %cst_76 = arith.constant dense<0.000000e+00> : vector<1x8x8xf32>
    %260 = tpu.matmul %259, %245, %cst_76 {dimension_numbers = #tpu.dot_dimension_numbers<[2], [1], [1], [2], [0, 0, 0, 1, 1, 2], [0], [0]>} : vector<1x8x8xbf16>, vector<1x8x8xbf16>, vector<1x8x8xf32> -> vector<1x8x8xf32>
    "tpu.trace_stop"() : () -> ()
    %261 = tpu.concatenate %188, %212, %236, %260 in 2 : vector<1x8x8xf32>, vector<1x8x8xf32>, vector<1x8x8xf32>, vector<1x8x8xf32> -> vector<1x8x32xf32>
    %262 = vector.shape_cast %261 : vector<1x8x32xf32> to vector<8x32xf32>
    %263 = arith.truncf %262 : vector<8x32xf32> to vector<8x32xbf16>
    %c0_77 = arith.constant 0 : index
    %c0_78 = arith.constant 0 : index
    %264 = vector.load %arg11[%c0_77, %c0_78] : memref<32x32xbf16, #tpu.memory_space<vmem>>, vector<32x32xbf16>
    %cst_79 = arith.constant dense<0.000000e+00> : vector<8x32xf32>
    %265 = tpu.matmul %263, %264, %cst_79 {dimension_numbers = #tpu.dot_dimension_numbers<[1], [0], [0], [1], [0, 0, 1, 1], [], []>} : vector<8x32xbf16>, vector<32x32xbf16>, vector<8x32xf32> -> vector<8x32xf32>
    %c0_80 = arith.constant 0 : index
    %c0_81 = arith.constant 0 : index
    %266 = vector.load %arg12[%c0_80, %c0_81] : memref<1x32xf32, #tpu.memory_space<vmem>>, vector<1x32xf32>
    %267 = vector.broadcast %266 : vector<1x32xf32> to vector<8x32xf32>
    %268 = arith.addf %265, %267 : vector<8x32xf32>
    %269 = arith.addf %152, %268 : vector<8x32xf32>
    %cst_82 = arith.constant dense<0.000000e+00> : vector<8xf32>
    %270 = vector.multi_reduction <add>, %269, %cst_82 [1] : vector<8x32xf32> to vector<8xf32>
    %271 = vector.shape_cast %270 : vector<8xf32> to vector<8x1xf32>
    %cst_83 = arith.constant 3.200000e+01 : f32
    %272 = vector.broadcast %cst_83 : f32 to vector<8x1xf32>
    %273 = arith.divf %271, %272 : vector<8x1xf32>
    %274 = vector.broadcast %273 : vector<8x1xf32> to vector<8x32xf32>
    %275 = arith.subf %269, %274 : vector<8x32xf32>
    %276 = arith.mulf %275, %275 : vector<8x32xf32>
    %cst_84 = arith.constant dense<0.000000e+00> : vector<8xf32>
    %277 = vector.multi_reduction <add>, %276, %cst_84 [1] : vector<8x32xf32> to vector<8xf32>
    %278 = vector.shape_cast %277 : vector<8xf32> to vector<8x1xf32>
    %cst_85 = arith.constant 3.200000e+01 : f32
    %279 = vector.broadcast %cst_85 : f32 to vector<8x1xf32>
    %280 = arith.divf %278, %279 : vector<8x1xf32>
    %cst_86 = arith.constant 9.99999974E-6 : f32
    %281 = vector.broadcast %cst_86 : f32 to vector<8x1xf32>
    %282 = arith.addf %280, %281 : vector<8x1xf32>
    %283 = math.rsqrt %282 : vector<8x1xf32>
    %284 = vector.broadcast %283 : vector<8x1xf32> to vector<8x32xf32>
    %285 = arith.mulf %275, %284 : vector<8x32xf32>
    %c0_87 = arith.constant 0 : index
    %c0_88 = arith.constant 0 : index
    %286 = vector.load %arg19[%c0_87, %c0_88] : memref<1x32xf32, #tpu.memory_space<vmem>>, vector<1x32xf32>
    %287 = vector.broadcast %286 : vector<1x32xf32> to vector<8x32xf32>
    %288 = arith.mulf %285, %287 : vector<8x32xf32>
    %c0_89 = arith.constant 0 : index
    %c0_90 = arith.constant 0 : index
    %289 = vector.load %arg20[%c0_89, %c0_90] : memref<1x32xf32, #tpu.memory_space<vmem>>, vector<1x32xf32>
    %290 = vector.broadcast %289 : vector<1x32xf32> to vector<8x32xf32>
    %291 = arith.addf %288, %290 : vector<8x32xf32>
    %292 = arith.truncf %291 : vector<8x32xf32> to vector<8x32xbf16>
    %c0_91 = arith.constant 0 : index
    %c0_92 = arith.constant 0 : index
    %293 = vector.load %arg13[%c0_91, %c0_92] : memref<32x64xbf16, #tpu.memory_space<vmem>>, vector<32x64xbf16>
    %cst_93 = arith.constant dense<0.000000e+00> : vector<8x64xf32>
    %294 = tpu.matmul %292, %293, %cst_93 {dimension_numbers = #tpu.dot_dimension_numbers<[1], [0], [0], [1], [0, 0, 1, 1], [], []>} : vector<8x32xbf16>, vector<32x64xbf16>, vector<8x64xf32> -> vector<8x64xf32>
    %c0_94 = arith.constant 0 : index
    %c0_95 = arith.constant 0 : index
    %295 = vector.load %arg14[%c0_94, %c0_95] : memref<1x64xf32, #tpu.memory_space<vmem>>, vector<1x64xf32>
    %296 = vector.broadcast %295 : vector<1x64xf32> to vector<8x64xf32>
    %297 = arith.addf %294, %296 : vector<8x64xf32>
    %cst_96 = arith.constant 0.000000e+00 : f32
    %298 = vector.broadcast %cst_96 : f32 to vector<8x64xf32>
    %299 = arith.maximumf %297, %298 : vector<8x64xf32>
    %300 = arith.truncf %299 : vector<8x64xf32> to vector<8x64xbf16>
    %c0_97 = arith.constant 0 : index
    %c0_98 = arith.constant 0 : index
    %301 = vector.load %arg15[%c0_97, %c0_98] : memref<64x32xbf16, #tpu.memory_space<vmem>>, vector<64x32xbf16>
    %cst_99 = arith.constant dense<0.000000e+00> : vector<8x32xf32>
    %302 = tpu.matmul %300, %301, %cst_99 {dimension_numbers = #tpu.dot_dimension_numbers<[1], [0], [0], [1], [0, 0, 1, 1], [], []>} : vector<8x64xbf16>, vector<64x32xbf16>, vector<8x32xf32> -> vector<8x32xf32>
    %c0_100 = arith.constant 0 : index
    %c0_101 = arith.constant 0 : index
    %303 = vector.load %arg16[%c0_100, %c0_101] : memref<1x32xf32, #tpu.memory_space<vmem>>, vector<1x32xf32>
    %304 = vector.broadcast %303 : vector<1x32xf32> to vector<8x32xf32>
    %305 = arith.addf %302, %304 : vector<8x32xf32>
    %306 = arith.addf %291, %305 : vector<8x32xf32>
    %cst_102 = arith.constant dense<0.000000e+00> : vector<8xf32>
    %307 = vector.multi_reduction <add>, %306, %cst_102 [1] : vector<8x32xf32> to vector<8xf32>
    %308 = vector.shape_cast %307 : vector<8xf32> to vector<8x1xf32>
    %cst_103 = arith.constant 3.200000e+01 : f32
    %309 = vector.broadcast %cst_103 : f32 to vector<8x1xf32>
    %310 = arith.divf %308, %309 : vector<8x1xf32>
    %311 = vector.broadcast %310 : vector<8x1xf32> to vector<8x32xf32>
    %312 = arith.subf %306, %311 : vector<8x32xf32>
    %313 = arith.mulf %312, %312 : vector<8x32xf32>
    %cst_104 = arith.constant dense<0.000000e+00> : vector<8xf32>
    %314 = vector.multi_reduction <add>, %313, %cst_104 [1] : vector<8x32xf32> to vector<8xf32>
    %315 = vector.shape_cast %314 : vector<8xf32> to vector<8x1xf32>
    %cst_105 = arith.constant 3.200000e+01 : f32
    %316 = vector.broadcast %cst_105 : f32 to vector<8x1xf32>
    %317 = arith.divf %315, %316 : vector<8x1xf32>
    %cst_106 = arith.constant 9.99999974E-6 : f32
    %318 = vector.broadcast %cst_106 : f32 to vector<8x1xf32>
    %319 = arith.addf %317, %318 : vector<8x1xf32>
    %320 = math.rsqrt %319 : vector<8x1xf32>
    %321 = vector.broadcast %320 : vector<8x1xf32> to vector<8x32xf32>
    %322 = arith.mulf %312, %321 : vector<8x32xf32>
    %c0_107 = arith.constant 0 : index
    %c0_108 = arith.constant 0 : index
    %323 = vector.load %arg21[%c0_107, %c0_108] : memref<1x32xf32, #tpu.memory_space<vmem>>, vector<1x32xf32>
    %324 = vector.broadcast %323 : vector<1x32xf32> to vector<8x32xf32>
    %325 = arith.mulf %322, %324 : vector<8x32xf32>
    %c0_109 = arith.constant 0 : index
    %c0_110 = arith.constant 0 : index
    %326 = vector.load %arg22[%c0_109, %c0_110] : memref<1x32xf32, #tpu.memory_space<vmem>>, vector<1x32xf32>
    %327 = vector.broadcast %326 : vector<1x32xf32> to vector<8x32xf32>
    %328 = arith.addf %325, %327 : vector<8x32xf32>
    %329 = arith.truncf %328 : vector<8x32xf32> to vector<8x32xbf16>
    %330 = vector.shape_cast %329 : vector<8x32xbf16> to vector<1x8x32xbf16>
    %c0_111 = arith.constant 0 : index
    %c0_112 = arith.constant 0 : index
    %c0_113 = arith.constant 0 : index
    %331 = vector.load %arg23[%c0_111, %c0_112, %c0_113] : memref<1x8x32xbf16, #tpu.memory_space<vmem>>, vector<1x8x32xbf16>
    tpu.vector_store %arg23[%c0_111, %c0_112, %c0_113], %330 {strides = array<i32>} : memref<1x8x32xbf16, #tpu.memory_space<vmem>>, vector<1x8x32xbf16>,
    return
  }
  func.func @transform_0(%arg0: i32) -> (i32, i32, i32) {
    %c0_i32 = arith.constant 0 : i32
    %c0_i32_0 = arith.constant 0 : i32
    %c0_i32_1 = arith.constant 0 : i32
    return %arg0, %c0_i32, %c0_i32_0 : i32, i32, i32
  }
  func.func @transform_1(%arg0: i32) -> (i32, i32, i32) {
    %c0_i32 = arith.constant 0 : i32
    %c0_i32_0 = arith.constant 0 : i32
    %c0_i32_1 = arith.constant 0 : i32
    return %arg0, %c0_i32, %c0_i32_0 : i32, i32, i32
  }
  func.func @transform_2(%arg0: i32) -> (i32, i32) {
    %c0_i32 = arith.constant 0 : i32
    %c0_i32_0 = arith.constant 0 : i32
    %c0_i32_1 = arith.constant 0 : i32
    return %c0_i32, %c0_i32_0 : i32, i32
  }
  func.func @transform_3(%arg0: i32) -> (i32, i32) {
    %c0_i32 = arith.constant 0 : i32
    %c0_i32_0 = arith.constant 0 : i32
    %c0_i32_1 = arith.constant 0 : i32
    return %c0_i32, %c0_i32_0 : i32, i32
  }
  func.func @transform_4(%arg0: i32) -> (i32, i32) {
    %c0_i32 = arith.constant 0 : i32
    %c0_i32_0 = arith.constant 0 : i32
    %c0_i32_1 = arith.constant 0 : i32
    return %c0_i32, %c0_i32_0 : i32, i32
  }
  func.func @transform_5(%arg0: i32) -> (i32, i32) {
    %c0_i32 = arith.constant 0 : i32
    %c0_i32_0 = arith.constant 0 : i32
    %c0_i32_1 = arith.constant 0 : i32
    return %c0_i32, %c0_i32_0 : i32, i32
  }
  func.func @transform_6(%arg0: i32) -> (i32, i32) {
    %c0_i32 = arith.constant 0 : i32
    %c0_i32_0 = arith.constant 0 : i32
    %c0_i32_1 = arith.constant 0 : i32
    return %c0_i32, %c0_i32_0 : i32, i32
  }
  func.func @transform_7(%arg0: i32) -> (i32, i32) {
    %c0_i32 = arith.constant 0 : i32
    %c0_i32_0 = arith.constant 0 : i32
    %c0_i32_1 = arith.constant 0 : i32
    return %c0_i32, %c0_i32_0 : i32, i32
  }
  func.func @transform_8(%arg0: i32) -> (i32, i32) {
    %c0_i32 = arith.constant 0 : i32
    %c0_i32_0 = arith.constant 0 : i32
    %c0_i32_1 = arith.constant 0 : i32
    return %c0_i32, %c0_i32_0 : i32, i32
  }
  func.func @transform_9(%arg0: i32) -> (i32, i32) {
    %c0_i32 = arith.constant 0 : i32
    %c0_i32_0 = arith.constant 0 : i32
    %c0_i32_1 = arith.constant 0 : i32
    return %c0_i32, %c0_i32_0 : i32, i32
  }
  func.func @transform_10(%arg0: i32) -> (i32, i32) {
    %c0_i32 = arith.constant 0 : i32
    %c0_i32_0 = arith.constant 0 : i32
    %c0_i32_1 = arith.constant 0 : i32
    return %c0_i32, %c0_i32_0 : i32, i32
  }
  func.func @transform_11(%arg0: i32) -> (i32, i32) {
    %c0_i32 = arith.constant 0 : i32
    %c0_i32_0 = arith.constant 0 : i32
    %c0_i32_1 = arith.constant 0 : i32
    return %c0_i32, %c0_i32_0 : i32, i32
  }
  func.func @transform_12(%arg0: i32) -> (i32, i32) {
    %c0_i32 = arith.constant 0 : i32
    %c0_i32_0 = arith.constant 0 : i32
    %c0_i32_1 = arith.constant 0 : i32
    return %c0_i32, %c0_i32_0 : i32, i32
  }
  func.func @transform_13(%arg0: i32) -> (i32, i32) {
    %c0_i32 = arith.constant 0 : i32
    %c0_i32_0 = arith.constant 0 : i32
    %c0_i32_1 = arith.constant 0 : i32
    return %c0_i32, %c0_i32_0 : i32, i32
  }
  func.func @transform_14(%arg0: i32) -> (i32, i32) {
    %c0_i32 = arith.constant 0 : i32
    %c0_i32_0 = arith.constant 0 : i32
    %c0_i32_1 = arith.constant 0 : i32
    return %c0_i32, %c0_i32_0 : i32, i32
  }
  func.func @transform_15(%arg0: i32) -> (i32, i32) {
    %c0_i32 = arith.constant 0 : i32
    %c0_i32_0 = arith.constant 0 : i32
    %c0_i32_1 = arith.constant 0 : i32
    return %c0_i32, %c0_i32_0 : i32, i32
  }
  func.func @transform_16(%arg0: i32) -> (i32, i32) {
    %c0_i32 = arith.constant 0 : i32
    %c0_i32_0 = arith.constant 0 : i32
    %c0_i32_1 = arith.constant 0 : i32
    return %c0_i32, %c0_i32_0 : i32, i32
  }
  func.func @transform_17(%arg0: i32) -> (i32, i32) {
    %c0_i32 = arith.constant 0 : i32
    %c0_i32_0 = arith.constant 0 : i32
    %c0_i32_1 = arith.constant 0 : i32
    return %c0_i32, %c0_i32_0 : i32, i32
  }
  func.func @transform_18(%arg0: i32) -> (i32, i32) {
    %c0_i32 = arith.constant 0 : i32
    %c0_i32_0 = arith.constant 0 : i32
    %c0_i32_1 = arith.constant 0 : i32
    return %c0_i32, %c0_i32_0 : i32, i32
  }
  func.func @transform_19(%arg0: i32) -> (i32, i32) {
    %c0_i32 = arith.constant 0 : i32
    %c0_i32_0 = arith.constant 0 : i32
    %c0_i32_1 = arith.constant 0 : i32
    return %c0_i32, %c0_i32_0 : i32, i32
  }
  func.func @transform_20(%arg0: i32) -> (i32, i32) {
    %c0_i32 = arith.constant 0 : i32
    %c0_i32_0 = arith.constant 0 : i32
    %c0_i32_1 = arith.constant 0 : i32
    return %c0_i32, %c0_i32_0 : i32, i32
  }
  func.func @transform_21(%arg0: i32) -> (i32, i32) {
    %c0_i32 = arith.constant 0 : i32
    %c0_i32_0 = arith.constant 0 : i32
    %c0_i32_1 = arith.constant 0 : i32
    return %c0_i32, %c0_i32_0 : i32, i32
  }
  func.func @transform_22(%arg0: i32) -> (i32, i32, i32) {
    %c0_i32 = arith.constant 0 : i32
    %c0_i32_0 = arith.constant 0 : i32
    %c0_i32_1 = arith.constant 0 : i32
    return %arg0, %c0_i32, %c0_i32_0 : i32, i32, i32
  }
}

module attributes {stable_mosaic.version = 11 : i64} {
  func.func @_decoder_block_kernel(%arg0: i32, %arg1: memref<1x8x32xbf16, #tpu.memory_space<vmem>>, %arg2: memref<1x16x32xbf16, #tpu.memory_space<vmem>>, %arg3: memref<32x96xbf16, #tpu.memory_space<vmem>>, %arg4: memref<1x96xf32, #tpu.memory_space<vmem>>, %arg5: memref<32x32xbf16, #tpu.memory_space<vmem>>, %arg6: memref<1x32xf32, #tpu.memory_space<vmem>>, %arg7: memref<32x32xbf16, #tpu.memory_space<vmem>>, %arg8: memref<1x32xf32, #tpu.memory_space<vmem>>, %arg9: memref<32x64xbf16, #tpu.memory_space<vmem>>, %arg10: memref<1x64xf32, #tpu.memory_space<vmem>>, %arg11: memref<32x32xbf16, #tpu.memory_space<vmem>>, %arg12: memref<1x32xf32, #tpu.memory_space<vmem>>, %arg13: memref<32x64xbf16, #tpu.memory_space<vmem>>, %arg14: memref<1x64xf32, #tpu.memory_space<vmem>>, %arg15: memref<64x32xbf16, #tpu.memory_space<vmem>>, %arg16: memref<1x32xf32, #tpu.memory_space<vmem>>, %arg17: memref<1x32xf32, #tpu.memory_space<vmem>>, %arg18: memref<1x32xf32, #tpu.memory_space<vmem>>, %arg19: memref<1x32xf32, #tpu.memory_space<vmem>>, %arg20: memref<1x32xf32, #tpu.memory_space<vmem>>, %arg21: memref<1x32xf32, #tpu.memory_space<vmem>>, %arg22: memref<1x32xf32, #tpu.memory_space<vmem>>, %arg23: memref<1x8x32xbf16, #tpu.memory_space<vmem>>) attributes {dimension_semantics = [#tpu.dimension_semantics<parallel>], iteration_bounds = array<i64: 2>, scalar_prefetch = 0 : i64, scratch_operands = 0 : i64, tpu.core_type = #tpu.core_type<tc>, window_params = [{transform_indices = @transform_0, window_bounds = array<i64: 1, 8, 32>}, {transform_indices = @transform_1, window_bounds = array<i64: 1, 16, 32>}, {pipeline_mode = #tpu.pipeline_mode<synchronous>, transform_indices = @transform_2, window_bounds = array<i64: 32, 96>}, {pipeline_mode = #tpu.pipeline_mode<synchronous>, transform_indices = @transform_3, window_bounds = array<i64: 1, 96>}, {pipeline_mode = #tpu.pipeline_mode<synchronous>, transform_indices = @transform_4, window_bounds = array<i64: 32, 32>}, {pipeline_mode = #tpu.pipeline_mode<synchronous>, transform_indices = @transform_5, window_bounds = array<i64: 1, 32>}, {pipeline_mode = #tpu.pipeline_mode<synchronous>, transform_indices = @transform_6, window_bounds = array<i64: 32, 32>}, {pipeline_mode = #tpu.pipeline_mode<synchronous>, transform_indices = @transform_7, window_bounds = array<i64: 1, 32>}, {pipeline_mode = #tpu.pipeline_mode<synchronous>, transform_indices = @transform_8, window_bounds = array<i64: 32, 64>}, {pipeline_mode = #tpu.pipeline_mode<synchronous>, transform_indices = @transform_9, window_bounds = array<i64: 1, 64>}, {pipeline_mode = #tpu.pipeline_mode<synchronous>, transform_indices = @transform_10, window_bounds = array<i64: 32, 32>}, {pipeline_mode = #tpu.pipeline_mode<synchronous>, transform_indices = @transform_11, window_bounds = array<i64: 1, 32>}, {pipeline_mode = #tpu.pipeline_mode<synchronous>, transform_indices = @transform_12, window_bounds = array<i64: 32, 64>}, {pipeline_mode = #tpu.pipeline_mode<synchronous>, transform_indices = @transform_13, window_bounds = array<i64: 1, 64>}, {pipeline_mode = #tpu.pipeline_mode<synchronous>, transform_indices = @transform_14, window_bounds = array<i64: 64, 32>}, {pipeline_mode = #tpu.pipeline_mode<synchronous>, transform_indices = @transform_15, window_bounds = array<i64: 1, 32>}, {pipeline_mode = #tpu.pipeline_mode<synchronous>, transform_indices = @transform_16, window_bounds = array<i64: 1, 32>}, {pipeline_mode = #tpu.pipeline_mode<synchronous>, transform_indices = @transform_17, window_bounds = array<i64: 1, 32>}, {pipeline_mode = #tpu.pipeline_mode<synchronous>, transform_indices = @transform_18, window_bounds = array<i64: 1, 32>}, {pipeline_mode = #tpu.pipeline_mode<synchronous>, transform_indices = @transform_19, window_bounds = array<i64: 1, 32>}, {pipeline_mode = #tpu.pipeline_mode<synchronous>, transform_indices = @transform_20, window_bounds = array<i64: 1, 32>}, {pipeline_mode = #tpu.pipeline_mode<synchronous>, transform_indices = @transform_21, window_bounds = array<i64: 1, 32>}, {transform_indices = @transform_22, window_bounds = array<i64: 1, 8, 32>}]} {
    %c0 = arith.constant 0 : index
    %c0_0 = arith.constant 0 : index
    %c0_1 = arith.constant 0 : index
    %0 = vector.load %arg1[%c0, %c0_0, %c0_1] : memref<1x8x32xbf16, #tpu.memory_space<vmem>>, vector<1x8x32xbf16>
    %1 = arith.extf %0 : vector<1x8x32xbf16> to vector<1x8x32xf32>
    %2 = vector.shape_cast %1 : vector<1x8x32xf32> to vector<8x32xf32>
    %c0_2 = arith.constant 0 : index
    %c0_3 = arith.constant 0 : index
    %c0_4 = arith.constant 0 : index
    %3 = vector.load %arg2[%c0_2, %c0_3, %c0_4] : memref<1x16x32xbf16, #tpu.memory_space<vmem>>, vector<1x16x32xbf16>
    %4 = arith.extf %3 : vector<1x16x32xbf16> to vector<1x16x32xf32>
    %5 = vector.shape_cast %4 : vector<1x16x32xf32> to vector<16x32xf32>
    %6 = arith.truncf %2 : vector<8x32xf32> to vector<8x32xbf16>
    %c0_5 = arith.constant 0 : index
    %c0_6 = arith.constant 0 : index
    %7 = vector.load %arg3[%c0_5, %c0_6] : memref<32x96xbf16, #tpu.memory_space<vmem>>, vector<32x96xbf16>
    %cst = arith.constant dense<0.000000e+00> : vector<8x96xf32>
    %8 = tpu.matmul %6, %7, %cst {dimension_numbers = #tpu.dot_dimension_numbers<[1], [0], [0], [1], [0, 0, 1, 1], [], []>} : vector<8x32xbf16>, vector<32x96xbf16>, vector<8x96xf32> -> vector<8x96xf32>
    %c0_7 = arith.constant 0 : index
    %c0_8 = arith.constant 0 : index
    %9 = vector.load %arg4[%c0_7, %c0_8] : memref<1x96xf32, #tpu.memory_space<vmem>>, vector<1x96xf32>
    %10 = vector.broadcast %9 : vector<1x96xf32> to vector<8x96xf32>
    %11 = arith.addf %8, %10 : vector<8x96xf32>
    %12 = tpu.iota {dimensions = array<i32: 0>} : vector<8x8xi32>
    %13 = tpu.iota {dimensions = array<i32: 1>} : vector<8x8xi32>
    %14 = arith.cmpi sge, %12, %13 : vector<8x8xi32>
    %15 = vector.extract_strided_slice %11 {offsets = [0, 0], sizes = [8, 8], strides = [1, 1]} : vector<8x96xf32> to vector<8x8xf32>
    %16 = vector.shape_cast %15 : vector<8x8xf32> to vector<1x8x8xf32>
    %17 = arith.truncf %16 : vector<1x8x8xf32> to vector<1x8x8xbf16>
    %18 = vector.extract_strided_slice %11 {offsets = [0, 32], sizes = [8, 8], strides = [1, 1]} : vector<8x96xf32> to vector<8x8xf32>
    %19 = vector.shape_cast %18 : vector<8x8xf32> to vector<1x8x8xf32>
    %20 = arith.truncf %19 : vector<1x8x8xf32> to vector<1x8x8xbf16>
    %21 = vector.extract_strided_slice %11 {offsets = [0, 64], sizes = [8, 8], strides = [1, 1]} : vector<8x96xf32> to vector<8x8xf32>
    %22 = vector.shape_cast %21 : vector<8x8xf32> to vector<1x8x8xf32>
    %23 = arith.truncf %22 : vector<1x8x8xf32> to vector<1x8x8xbf16>
    "tpu.trace_start"() <{level = 10 : i32, message = "bqd,bkd->bqk"}> : () -> ()
    %cst_9 = arith.constant dense<0.000000e+00> : vector<1x8x8xf32>
    %24 = tpu.matmul %17, %20, %cst_9 {dimension_numbers = #tpu.dot_dimension_numbers<[2], [2], [1], [1], [0, 0, 0, 1, 1, 1], [0], [0]>} : vector<1x8x8xbf16>, vector<1x8x8xbf16>, vector<1x8x8xf32> -> vector<1x8x8xf32>
    "tpu.trace_stop"() : () -> ()
    %cst_10 = arith.constant 0.353553385 : f32
    %25 = vector.broadcast %cst_10 : f32 to vector<1x8x8xf32>
    %26 = arith.mulf %24, %25 : vector<1x8x8xf32>
    %27 = vector.shape_cast %14 : vector<8x8xi1> to vector<1x8x8xi1>
    %cst_11 = arith.constant -1.000000e+30 : f32
    %28 = vector.broadcast %cst_11 : f32 to vector<1x8x8xf32>
    %29 = arith.select %27, %26, %28 : vector<1x8x8xi1>, vector<1x8x8xf32>
    %cst_12 = arith.constant dense<0xFF800000> : vector<1x8xf32>
    %30 = vector.multi_reduction <maximumf>, %29, %cst_12 [2] : vector<1x8x8xf32> to vector<1x8xf32>
    %31 = vector.shape_cast %30 : vector<1x8xf32> to vector<1x8x1xf32>
    %32 = vector.broadcast %31 : vector<1x8x1xf32> to vector<1x8x8xf32>
    %33 = arith.subf %29, %32 : vector<1x8x8xf32>
    %34 = math.exp %33 : vector<1x8x8xf32>
    %cst_13 = arith.constant dense<0.000000e+00> : vector<1x8xf32>
    %35 = vector.multi_reduction <add>, %34, %cst_13 [2] : vector<1x8x8xf32> to vector<1x8xf32>
    %36 = vector.shape_cast %35 : vector<1x8xf32> to vector<1x8x1xf32>
    %37 = tpu.reciprocal %36 {approx = true} : vector<1x8x1xf32> -> vector<1x8x1xf32>
    %38 = vector.broadcast %37 : vector<1x8x1xf32> to vector<1x8x8xf32>
    %39 = arith.mulf %34, %38 : vector<1x8x8xf32>
    %40 = arith.truncf %39 : vector<1x8x8xf32> to vector<1x8x8xbf16>
    "tpu.trace_start"() <{level = 10 : i32, message = "bqk,bkd->bqd"}> : () -> ()
    %cst_14 = arith.constant dense<0.000000e+00> : vector<1x8x8xf32>
    %41 = tpu.matmul %40, %23, %cst_14 {dimension_numbers = #tpu.dot_dimension_numbers<[2], [1], [1], [2], [0, 0, 0, 1, 1, 2], [0], [0]>} : vector<1x8x8xbf16>, vector<1x8x8xbf16>, vector<1x8x8xf32> -> vector<1x8x8xf32>
    "tpu.trace_stop"() : () -> ()
    %42 = vector.extract_strided_slice %11 {offsets = [0, 8], sizes = [8, 8], strides = [1, 1]} : vector<8x96xf32> to vector<8x8xf32>
    %43 = vector.shape_cast %42 : vector<8x8xf32> to vector<1x8x8xf32>
    %44 = arith.truncf %43 : vector<1x8x8xf32> to vector<1x8x8xbf16>
    %45 = vector.extract_strided_slice %11 {offsets = [0, 40], sizes = [8, 8], strides = [1, 1]} : vector<8x96xf32> to vector<8x8xf32>
    %46 = vector.shape_cast %45 : vector<8x8xf32> to vector<1x8x8xf32>
    %47 = arith.truncf %46 : vector<1x8x8xf32> to vector<1x8x8xbf16>
    %48 = vector.extract_strided_slice %11 {offsets = [0, 72], sizes = [8, 8], strides = [1, 1]} : vector<8x96xf32> to vector<8x8xf32>
    %49 = vector.shape_cast %48 : vector<8x8xf32> to vector<1x8x8xf32>
    %50 = arith.truncf %49 : vector<1x8x8xf32> to vector<1x8x8xbf16>
    "tpu.trace_start"() <{level = 10 : i32, message = "bqd,bkd->bqk"}> : () -> ()
    %cst_15 = arith.constant dense<0.000000e+00> : vector<1x8x8xf32>
    %51 = tpu.matmul %44, %47, %cst_15 {dimension_numbers = #tpu.dot_dimension_numbers<[2], [2], [1], [1], [0, 0, 0, 1, 1, 1], [0], [0]>} : vector<1x8x8xbf16>, vector<1x8x8xbf16>, vector<1x8x8xf32> -> vector<1x8x8xf32>
    "tpu.trace_stop"() : () -> ()
    %cst_16 = arith.constant 0.353553385 : f32
    %52 = vector.broadcast %cst_16 : f32 to vector<1x8x8xf32>
    %53 = arith.mulf %51, %52 : vector<1x8x8xf32>
    %54 = vector.shape_cast %14 : vector<8x8xi1> to vector<1x8x8xi1>
    %cst_17 = arith.constant -1.000000e+30 : f32
    %55 = vector.broadcast %cst_17 : f32 to vector<1x8x8xf32>
    %56 = arith.select %54, %53, %55 : vector<1x8x8xi1>, vector<1x8x8xf32>
    %cst_18 = arith.constant dense<0xFF800000> : vector<1x8xf32>
    %57 = vector.multi_reduction <maximumf>, %56, %cst_18 [2] : vector<1x8x8xf32> to vector<1x8xf32>
    %58 = vector.shape_cast %57 : vector<1x8xf32> to vector<1x8x1xf32>
    %59 = vector.broadcast %58 : vector<1x8x1xf32> to vector<1x8x8xf32>
    %60 = arith.subf %56, %59 : vector<1x8x8xf32>
    %61 = math.exp %60 : vector<1x8x8xf32>
    %cst_19 = arith.constant dense<0.000000e+00> : vector<1x8xf32>
    %62 = vector.multi_reduction <add>, %61, %cst_19 [2] : vector<1x8x8xf32> to vector<1x8xf32>
    %63 = vector.shape_cast %62 : vector<1x8xf32> to vector<1x8x1xf32>
    %64 = tpu.reciprocal %63 {approx = true} : vector<1x8x1xf32> -> vector<1x8x1xf32>
    %65 = vector.broadcast %64 : vector<1x8x1xf32> to vector<1x8x8xf32>
    %66 = arith.mulf %61, %65 : vector<1x8x8xf32>
    %67 = arith.truncf %66 : vector<1x8x8xf32> to vector<1x8x8xbf16>
    "tpu.trace_start"() <{level = 10 : i32, message = "bqk,bkd->bqd"}> : () -> ()
    %cst_20 = arith.constant dense<0.000000e+00> : vector<1x8x8xf32>
    %68 = tpu.matmul %67, %50, %cst_20 {dimension_numbers = #tpu.dot_dimension_numbers<[2], [1], [1], [2], [0, 0, 0, 1, 1, 2], [0], [0]>} : vector<1x8x8xbf16>, vector<1x8x8xbf16>, vector<1x8x8xf32> -> vector<1x8x8xf32>
    "tpu.trace_stop"() : () -> ()
    %69 = vector.extract_strided_slice %11 {offsets = [0, 16], sizes = [8, 8], strides = [1, 1]} : vector<8x96xf32> to vector<8x8xf32>
    %70 = vector.shape_cast %69 : vector<8x8xf32> to vector<1x8x8xf32>
    %71 = arith.truncf %70 : vector<1x8x8xf32> to vector<1x8x8xbf16>
    %72 = vector.extract_strided_slice %11 {offsets = [0, 48], sizes = [8, 8], strides = [1, 1]} : vector<8x96xf32> to vector<8x8xf32>
    %73 = vector.shape_cast %72 : vector<8x8xf32> to vector<1x8x8xf32>
    %74 = arith.truncf %73 : vector<1x8x8xf32> to vector<1x8x8xbf16>
    %75 = vector.extract_strided_slice %11 {offsets = [0, 80], sizes = [8, 8], strides = [1, 1]} : vector<8x96xf32> to vector<8x8xf32>
    %76 = vector.shape_cast %75 : vector<8x8xf32> to vector<1x8x8xf32>
    %77 = arith.truncf %76 : vector<1x8x8xf32> to vector<1x8x8xbf16>
    "tpu.trace_start"() <{level = 10 : i32, message = "bqd,bkd->bqk"}> : () -> ()
    %cst_21 = arith.constant dense<0.000000e+00> : vector<1x8x8xf32>
    %78 = tpu.matmul %71, %74, %cst_21 {dimension_numbers = #tpu.dot_dimension_numbers<[2], [2], [1], [1], [0, 0, 0, 1, 1, 1], [0], [0]>} : vector<1x8x8xbf16>, vector<1x8x8xbf16>, vector<1x8x8xf32> -> vector<1x8x8xf32>
    "tpu.trace_stop"() : () -> ()
    %cst_22 = arith.constant 0.353553385 : f32
    %79 = vector.broadcast %cst_22 : f32 to vector<1x8x8xf32>
    %80 = arith.mulf %78, %79 : vector<1x8x8xf32>
    %81 = vector.shape_cast %14 : vector<8x8xi1> to vector<1x8x8xi1>
    %cst_23 = arith.constant -1.000000e+30 : f32
    %82 = vector.broadcast %cst_23 : f32 to vector<1x8x8xf32>
    %83 = arith.select %81, %80, %82 : vector<1x8x8xi1>, vector<1x8x8xf32>
    %cst_24 = arith.constant dense<0xFF800000> : vector<1x8xf32>
    %84 = vector.multi_reduction <maximumf>, %83, %cst_24 [2] : vector<1x8x8xf32> to vector<1x8xf32>
    %85 = vector.shape_cast %84 : vector<1x8xf32> to vector<1x8x1xf32>
    %86 = vector.broadcast %85 : vector<1x8x1xf32> to vector<1x8x8xf32>
    %87 = arith.subf %83, %86 : vector<1x8x8xf32>
    %88 = math.exp %87 : vector<1x8x8xf32>
    %cst_25 = arith.constant dense<0.000000e+00> : vector<1x8xf32>
    %89 = vector.multi_reduction <add>, %88, %cst_25 [2] : vector<1x8x8xf32> to vector<1x8xf32>
    %90 = vector.shape_cast %89 : vector<1x8xf32> to vector<1x8x1xf32>
    %91 = tpu.reciprocal %90 {approx = true} : vector<1x8x1xf32> -> vector<1x8x1xf32>
    %92 = vector.broadcast %91 : vector<1x8x1xf32> to vector<1x8x8xf32>
    %93 = arith.mulf %88, %92 : vector<1x8x8xf32>
    %94 = arith.truncf %93 : vector<1x8x8xf32> to vector<1x8x8xbf16>
    "tpu.trace_start"() <{level = 10 : i32, message = "bqk,bkd->bqd"}> : () -> ()
    %cst_26 = arith.constant dense<0.000000e+00> : vector<1x8x8xf32>
    %95 = tpu.matmul %94, %77, %cst_26 {dimension_numbers = #tpu.dot_dimension_numbers<[2], [1], [1], [2], [0, 0, 0, 1, 1, 2], [0], [0]>} : vector<1x8x8xbf16>, vector<1x8x8xbf16>, vector<1x8x8xf32> -> vector<1x8x8xf32>
    "tpu.trace_stop"() : () -> ()
    %96 = vector.extract_strided_slice %11 {offsets = [0, 24], sizes = [8, 8], strides = [1, 1]} : vector<8x96xf32> to vector<8x8xf32>
    %97 = vector.shape_cast %96 : vector<8x8xf32> to vector<1x8x8xf32>
    %98 = arith.truncf %97 : vector<1x8x8xf32> to vector<1x8x8xbf16>
    %99 = vector.extract_strided_slice %11 {offsets = [0, 56], sizes = [8, 8], strides = [1, 1]} : vector<8x96xf32> to vector<8x8xf32>
    %100 = vector.shape_cast %99 : vector<8x8xf32> to vector<1x8x8xf32>
    %101 = arith.truncf %100 : vector<1x8x8xf32> to vector<1x8x8xbf16>
    %102 = vector.extract_strided_slice %11 {offsets = [0, 88], sizes = [8, 8], strides = [1, 1]} : vector<8x96xf32> to vector<8x8xf32>
    %103 = vector.shape_cast %102 : vector<8x8xf32> to vector<1x8x8xf32>
    %104 = arith.truncf %103 : vector<1x8x8xf32> to vector<1x8x8xbf16>
    "tpu.trace_start"() <{level = 10 : i32, message = "bqd,bkd->bqk"}> : () -> ()
    %cst_27 = arith.constant dense<0.000000e+00> : vector<1x8x8xf32>
    %105 = tpu.matmul %98, %101, %cst_27 {dimension_numbers = #tpu.dot_dimension_numbers<[2], [2], [1], [1], [0, 0, 0, 1, 1, 1], [0], [0]>} : vector<1x8x8xbf16>, vector<1x8x8xbf16>, vector<1x8x8xf32> -> vector<1x8x8xf32>
    "tpu.trace_stop"() : () -> ()
    %cst_28 = arith.constant 0.353553385 : f32
    %106 = vector.broadcast %cst_28 : f32 to vector<1x8x8xf32>
    %107 = arith.mulf %105, %106 : vector<1x8x8xf32>
    %108 = vector.shape_cast %14 : vector<8x8xi1> to vector<1x8x8xi1>
    %cst_29 = arith.constant -1.000000e+30 : f32
    %109 = vector.broadcast %cst_29 : f32 to vector<1x8x8xf32>
    %110 = arith.select %108, %107, %109 : vector<1x8x8xi1>, vector<1x8x8xf32>
    %cst_30 = arith.constant dense<0xFF800000> : vector<1x8xf32>
    %111 = vector.multi_reduction <maximumf>, %110, %cst_30 [2] : vector<1x8x8xf32> to vector<1x8xf32>
    %112 = vector.shape_cast %111 : vector<1x8xf32> to vector<1x8x1xf32>
    %113 = vector.broadcast %112 : vector<1x8x1xf32> to vector<1x8x8xf32>
    %114 = arith.subf %110, %113 : vector<1x8x8xf32>
    %115 = math.exp %114 : vector<1x8x8xf32>
    %cst_31 = arith.constant dense<0.000000e+00> : vector<1x8xf32>
    %116 = vector.multi_reduction <add>, %115, %cst_31 [2] : vector<1x8x8xf32> to vector<1x8xf32>
    %117 = vector.shape_cast %116 : vector<1x8xf32> to vector<1x8x1xf32>
    %118 = tpu.reciprocal %117 {approx = true} : vector<1x8x1xf32> -> vector<1x8x1xf32>
    %119 = vector.broadcast %118 : vector<1x8x1xf32> to vector<1x8x8xf32>
    %120 = arith.mulf %115, %119 : vector<1x8x8xf32>
    %121 = arith.truncf %120 : vector<1x8x8xf32> to vector<1x8x8xbf16>
    "tpu.trace_start"() <{level = 10 : i32, message = "bqk,bkd->bqd"}> : () -> ()
    %cst_32 = arith.constant dense<0.000000e+00> : vector<1x8x8xf32>
    %122 = tpu.matmul %121, %104, %cst_32 {dimension_numbers = #tpu.dot_dimension_numbers<[2], [1], [1], [2], [0, 0, 0, 1, 1, 2], [0], [0]>} : vector<1x8x8xbf16>, vector<1x8x8xbf16>, vector<1x8x8xf32> -> vector<1x8x8xf32>
    "tpu.trace_stop"() : () -> ()
    %123 = tpu.concatenate %41, %68, %95, %122 in 2 : vector<1x8x8xf32>, vector<1x8x8xf32>, vector<1x8x8xf32>, vector<1x8x8xf32> -> vector<1x8x32xf32>
    %124 = vector.shape_cast %123 : vector<1x8x32xf32> to vector<8x32xf32>
    %125 = arith.truncf %124 : vector<8x32xf32> to vector<8x32xbf16>
    %c0_33 = arith.constant 0 : index
    %c0_34 = arith.constant 0 : index
    %126 = vector.load %arg5[%c0_33, %c0_34] : memref<32x32xbf16, #tpu.memory_space<vmem>>, vector<32x32xbf16>
    %cst_35 = arith.constant dense<0.000000e+00> : vector<8x32xf32>
    %127 = tpu.matmul %125, %126, %cst_35 {dimension_numbers = #tpu.dot_dimension_numbers<[1], [0], [0], [1], [0, 0, 1, 1], [], []>} : vector<8x32xbf16>, vector<32x32xbf16>, vector<8x32xf32> -> vector<8x32xf32>
    %c0_36 = arith.constant 0 : index
    %c0_37 = arith.constant 0 : index
    %128 = vector.load %arg6[%c0_36, %c0_37] : memref<1x32xf32, #tpu.memory_space<vmem>>, vector<1x32xf32>
    %129 = vector.broadcast %128 : vector<1x32xf32> to vector<8x32xf32>
    %130 = arith.addf %127, %129 : vector<8x32xf32>
    %131 = arith.addf %2, %130 : vector<8x32xf32>
    %cst_38 = arith.constant dense<0.000000e+00> : vector<8xf32>
    %132 = vector.multi_reduction <add>, %131, %cst_38 [1] : vector<8x32xf32> to vector<8xf32>
    %133 = vector.shape_cast %132 : vector<8xf32> to vector<8x1xf32>
    %cst_39 = arith.constant 3.200000e+01 : f32
    %134 = vector.broadcast %cst_39 : f32 to vector<8x1xf32>
    %135 = arith.divf %133, %134 : vector<8x1xf32>
    %136 = vector.broadcast %135 : vector<8x1xf32> to vector<8x32xf32>
    %137 = arith.subf %131, %136 : vector<8x32xf32>
    %138 = arith.mulf %137, %137 : vector<8x32xf32>
    %cst_40 = arith.constant dense<0.000000e+00> : vector<8xf32>
    %139 = vector.multi_reduction <add>, %138, %cst_40 [1] : vector<8x32xf32> to vector<8xf32>
    %140 = vector.shape_cast %139 : vector<8xf32> to vector<8x1xf32>
    %cst_41 = arith.constant 3.200000e+01 : f32
    %141 = vector.broadcast %cst_41 : f32 to vector<8x1xf32>
    %142 = arith.divf %140, %141 : vector<8x1xf32>
    %cst_42 = arith.constant 9.99999974E-6 : f32
    %143 = vector.broadcast %cst_42 : f32 to vector<8x1xf32>
    %144 = arith.addf %142, %143 : vector<8x1xf32>
    %145 = math.rsqrt %144 : vector<8x1xf32>
    %146 = vector.broadcast %145 : vector<8x1xf32> to vector<8x32xf32>
    %147 = arith.mulf %137, %146 : vector<8x32xf32>
    %c0_43 = arith.constant 0 : index
    %c0_44 = arith.constant 0 : index
    %148 = vector.load %arg17[%c0_43, %c0_44] : memref<1x32xf32, #tpu.memory_space<vmem>>, vector<1x32xf32>
    %149 = vector.broadcast %148 : vector<1x32xf32> to vector<8x32xf32>
    %150 = arith.mulf %147, %149 : vector<8x32xf32>
    %c0_45 = arith.constant 0 : index
    %c0_46 = arith.constant 0 : index
    %151 = vector.load %arg18[%c0_45, %c0_46] : memref<1x32xf32, #tpu.memory_space<vmem>>, vector<1x32xf32>
    %152 = vector.broadcast %151 : vector<1x32xf32> to vector<8x32xf32>
    %153 = arith.addf %150, %152 : vector<8x32xf32>
    %154 = arith.truncf %153 : vector<8x32xf32> to vector<8x32xbf16>
    %c0_47 = arith.constant 0 : index
    %c0_48 = arith.constant 0 : index
    %155 = vector.load %arg7[%c0_47, %c0_48] : memref<32x32xbf16, #tpu.memory_space<vmem>>, vector<32x32xbf16>
    %cst_49 = arith.constant dense<0.000000e+00> : vector<8x32xf32>
    %156 = tpu.matmul %154, %155, %cst_49 {dimension_numbers = #tpu.dot_dimension_numbers<[1], [0], [0], [1], [0, 0, 1, 1], [], []>} : vector<8x32xbf16>, vector<32x32xbf16>, vector<8x32xf32> -> vector<8x32xf32>
    %c0_50 = arith.constant 0 : index
    %c0_51 = arith.constant 0 : index
    %157 = vector.load %arg8[%c0_50, %c0_51] : memref<1x32xf32, #tpu.memory_space<vmem>>, vector<1x32xf32>
    %158 = vector.broadcast %157 : vector<1x32xf32> to vector<8x32xf32>
    %159 = arith.addf %156, %158 : vector<8x32xf32>
    %160 = arith.truncf %5 : vector<16x32xf32> to vector<16x32xbf16>
    %c0_52 = arith.constant 0 : index
    %c0_53 = arith.constant 0 : index
    %161 = vector.load %arg9[%c0_52, %c0_53] : memref<32x64xbf16, #tpu.memory_space<vmem>>, vector<32x64xbf16>
    %cst_54 = arith.constant dense<0.000000e+00> : vector<16x64xf32>
    %162 = tpu.matmul %160, %161, %cst_54 {dimension_numbers = #tpu.dot_dimension_numbers<[1], [0], [0], [1], [0, 0, 1, 1], [], []>} : vector<16x32xbf16>, vector<32x64xbf16>, vector<16x64xf32> -> vector<16x64xf32>
    %c0_55 = arith.constant 0 : index
    %c0_56 = arith.constant 0 : index
    %163 = vector.load %arg10[%c0_55, %c0_56] : memref<1x64xf32, #tpu.memory_space<vmem>>, vector<1x64xf32>
    %164 = vector.broadcast %163 : vector<1x64xf32> to vector<16x64xf32>
    %165 = arith.addf %162, %164 : vector<16x64xf32>
    %166 = vector.extract_strided_slice %159 {offsets = [0, 0], sizes = [8, 8], strides = [1, 1]} : vector<8x32xf32> to vector<8x8xf32>
    %167 = vector.shape_cast %166 : vector<8x8xf32> to vector<1x8x8xf32>
    %168 = arith.truncf %167 : vector<1x8x8xf32> to vector<1x8x8xbf16>
    %169 = vector.extract_strided_slice %165 {offsets = [0, 0], sizes = [16, 8], strides = [1, 1]} : vector<16x64xf32> to vector<16x8xf32>
    %170 = vector.shape_cast %169 : vector<16x8xf32> to vector<1x16x8xf32>
    %171 = arith.truncf %170 : vector<1x16x8xf32> to vector<1x16x8xbf16>
    %172 = vector.extract_strided_slice %165 {offsets = [0, 32], sizes = [16, 8], strides = [1, 1]} : vector<16x64xf32> to vector<16x8xf32>
    %173 = vector.shape_cast %172 : vector<16x8xf32> to vector<1x16x8xf32>
    %174 = arith.truncf %173 : vector<1x16x8xf32> to vector<1x16x8xbf16>
    "tpu.trace_start"() <{level = 10 : i32, message = "bqd,bkd->bqk"}> : () -> ()
    %cst_57 = arith.constant dense<0.000000e+00> : vector<1x8x16xf32>
    %175 = tpu.matmul %168, %171, %cst_57 {dimension_numbers = #tpu.dot_dimension_numbers<[2], [2], [1], [1], [0, 0, 0, 1, 1, 1], [0], [0]>} : vector<1x8x8xbf16>, vector<1x16x8xbf16>, vector<1x8x16xf32> -> vector<1x8x16xf32>
    "tpu.trace_stop"() : () -> ()
    %cst_58 = arith.constant 0.353553385 : f32
    %176 = vector.broadcast %cst_58 : f32 to vector<1x8x16xf32>
    %177 = arith.mulf %175, %176 : vector<1x8x16xf32>
    %cst_59 = arith.constant dense<0xFF800000> : vector<1x8xf32>
    %178 = vector.multi_reduction <maximumf>, %177, %cst_59 [2] : vector<1x8x16xf32> to vector<1x8xf32>
    %179 = vector.shape_cast %178 : vector<1x8xf32> to vector<1x8x1xf32>
    %180 = vector.broadcast %179 : vector<1x8x1xf32> to vector<1x8x16xf32>
    %181 = arith.subf %177, %180 : vector<1x8x16xf32>
    %182 = math.exp %181 : vector<1x8x16xf32>
    %cst_60 = arith.constant dense<0.000000e+00> : vector<1x8xf32>
    %183 = vector.multi_reduction <add>, %182, %cst_60 [2] : vector<1x8x16xf32> to vector<1x8xf32>
    %184 = vector.shape_cast %183 : vector<1x8xf32> to vector<1x8x1xf32>
    %185 = tpu.reciprocal %184 {approx = true} : vector<1x8x1xf32> -> vector<1x8x1xf32>
    %186 = vector.broadcast %185 : vector<1x8x1xf32> to vector<1x8x16xf32>
    %187 = arith.mulf %182, %186 : vector<1x8x16xf32>
    %188 = arith.truncf %187 : vector<1x8x16xf32> to vector<1x8x16xbf16>
    "tpu.trace_start"() <{level = 10 : i32, message = "bqk,bkd->bqd"}> : () -> ()
    %cst_61 = arith.constant dense<0.000000e+00> : vector<1x8x8xf32>
    %189 = tpu.matmul %188, %174, %cst_61 {dimension_numbers = #tpu.dot_dimension_numbers<[2], [1], [1], [2], [0, 0, 0, 1, 1, 2], [0], [0]>} : vector<1x8x16xbf16>, vector<1x16x8xbf16>, vector<1x8x8xf32> -> vector<1x8x8xf32>
    "tpu.trace_stop"() : () -> ()
    %190 = vector.extract_strided_slice %159 {offsets = [0, 8], sizes = [8, 8], strides = [1, 1]} : vector<8x32xf32> to vector<8x8xf32>
    %191 = vector.shape_cast %190 : vector<8x8xf32> to vector<1x8x8xf32>
    %192 = arith.truncf %191 : vector<1x8x8xf32> to vector<1x8x8xbf16>
    %193 = vector.extract_strided_slice %165 {offsets = [0, 8], sizes = [16, 8], strides = [1, 1]} : vector<16x64xf32> to vector<16x8xf32>
    %194 = vector.shape_cast %193 : vector<16x8xf32> to vector<1x16x8xf32>
    %195 = arith.truncf %194 : vector<1x16x8xf32> to vector<1x16x8xbf16>
    %196 = vector.extract_strided_slice %165 {offsets = [0, 40], sizes = [16, 8], strides = [1, 1]} : vector<16x64xf32> to vector<16x8xf32>
    %197 = vector.shape_cast %196 : vector<16x8xf32> to vector<1x16x8xf32>
    %198 = arith.truncf %197 : vector<1x16x8xf32> to vector<1x16x8xbf16>
    "tpu.trace_start"() <{level = 10 : i32, message = "bqd,bkd->bqk"}> : () -> ()
    %cst_62 = arith.constant dense<0.000000e+00> : vector<1x8x16xf32>
    %199 = tpu.matmul %192, %195, %cst_62 {dimension_numbers = #tpu.dot_dimension_numbers<[2], [2], [1], [1], [0, 0, 0, 1, 1, 1], [0], [0]>} : vector<1x8x8xbf16>, vector<1x16x8xbf16>, vector<1x8x16xf32> -> vector<1x8x16xf32>
    "tpu.trace_stop"() : () -> ()
    %cst_63 = arith.constant 0.353553385 : f32
    %200 = vector.broadcast %cst_63 : f32 to vector<1x8x16xf32>
    %201 = arith.mulf %199, %200 : vector<1x8x16xf32>
    %cst_64 = arith.constant dense<0xFF800000> : vector<1x8xf32>
    %202 = vector.multi_reduction <maximumf>, %201, %cst_64 [2] : vector<1x8x16xf32> to vector<1x8xf32>
    %203 = vector.shape_cast %202 : vector<1x8xf32> to vector<1x8x1xf32>
    %204 = vector.broadcast %203 : vector<1x8x1xf32> to vector<1x8x16xf32>
    %205 = arith.subf %201, %204 : vector<1x8x16xf32>
    %206 = math.exp %205 : vector<1x8x16xf32>
    %cst_65 = arith.constant dense<0.000000e+00> : vector<1x8xf32>
    %207 = vector.multi_reduction <add>, %206, %cst_65 [2] : vector<1x8x16xf32> to vector<1x8xf32>
    %208 = vector.shape_cast %207 : vector<1x8xf32> to vector<1x8x1xf32>
    %209 = tpu.reciprocal %208 {approx = true} : vector<1x8x1xf32> -> vector<1x8x1xf32>
    %210 = vector.broadcast %209 : vector<1x8x1xf32> to vector<1x8x16xf32>
    %211 = arith.mulf %206, %210 : vector<1x8x16xf32>
    %212 = arith.truncf %211 : vector<1x8x16xf32> to vector<1x8x16xbf16>
    "tpu.trace_start"() <{level = 10 : i32, message = "bqk,bkd->bqd"}> : () -> ()
    %cst_66 = arith.constant dense<0.000000e+00> : vector<1x8x8xf32>
    %213 = tpu.matmul %212, %198, %cst_66 {dimension_numbers = #tpu.dot_dimension_numbers<[2], [1], [1], [2], [0, 0, 0, 1, 1, 2], [0], [0]>} : vector<1x8x16xbf16>, vector<1x16x8xbf16>, vector<1x8x8xf32> -> vector<1x8x8xf32>
    "tpu.trace_stop"() : () -> ()
    %214 = vector.extract_strided_slice %159 {offsets = [0, 16], sizes = [8, 8], strides = [1, 1]} : vector<8x32xf32> to vector<8x8xf32>
    %215 = vector.shape_cast %214 : vector<8x8xf32> to vector<1x8x8xf32>
    %216 = arith.truncf %215 : vector<1x8x8xf32> to vector<1x8x8xbf16>
    %217 = vector.extract_strided_slice %165 {offsets = [0, 16], sizes = [16, 8], strides = [1, 1]} : vector<16x64xf32> to vector<16x8xf32>
    %218 = vector.shape_cast %217 : vector<16x8xf32> to vector<1x16x8xf32>
    %219 = arith.truncf %218 : vector<1x16x8xf32> to vector<1x16x8xbf16>
    %220 = vector.extract_strided_slice %165 {offsets = [0, 48], sizes = [16, 8], strides = [1, 1]} : vector<16x64xf32> to vector<16x8xf32>
    %221 = vector.shape_cast %220 : vector<16x8xf32> to vector<1x16x8xf32>
    %222 = arith.truncf %221 : vector<1x16x8xf32> to vector<1x16x8xbf16>
    "tpu.trace_start"() <{level = 10 : i32, message = "bqd,bkd->bqk"}> : () -> ()
    %cst_67 = arith.constant dense<0.000000e+00> : vector<1x8x16xf32>
    %223 = tpu.matmul %216, %219, %cst_67 {dimension_numbers = #tpu.dot_dimension_numbers<[2], [2], [1], [1], [0, 0, 0, 1, 1, 1], [0], [0]>} : vector<1x8x8xbf16>, vector<1x16x8xbf16>, vector<1x8x16xf32> -> vector<1x8x16xf32>
    "tpu.trace_stop"() : () -> ()
    %cst_68 = arith.constant 0.353553385 : f32
    %224 = vector.broadcast %cst_68 : f32 to vector<1x8x16xf32>
    %225 = arith.mulf %223, %224 : vector<1x8x16xf32>
    %cst_69 = arith.constant dense<0xFF800000> : vector<1x8xf32>
    %226 = vector.multi_reduction <maximumf>, %225, %cst_69 [2] : vector<1x8x16xf32> to vector<1x8xf32>
    %227 = vector.shape_cast %226 : vector<1x8xf32> to vector<1x8x1xf32>
    %228 = vector.broadcast %227 : vector<1x8x1xf32> to vector<1x8x16xf32>
    %229 = arith.subf %225, %228 : vector<1x8x16xf32>
    %230 = math.exp %229 : vector<1x8x16xf32>
    %cst_70 = arith.constant dense<0.000000e+00> : vector<1x8xf32>
    %231 = vector.multi_reduction <add>, %230, %cst_70 [2] : vector<1x8x16xf32> to vector<1x8xf32>
    %232 = vector.shape_cast %231 : vector<1x8xf32> to vector<1x8x1xf32>
    %233 = tpu.reciprocal %232 {approx = true} : vector<1x8x1xf32> -> vector<1x8x1xf32>
    %234 = vector.broadcast %233 : vector<1x8x1xf32> to vector<1x8x16xf32>
    %235 = arith.mulf %230, %234 : vector<1x8x16xf32>
    %236 = arith.truncf %235 : vector<1x8x16xf32> to vector<1x8x16xbf16>
    "tpu.trace_start"() <{level = 10 : i32, message = "bqk,bkd->bqd"}> : () -> ()
    %cst_71 = arith.constant dense<0.000000e+00> : vector<1x8x8xf32>
    %237 = tpu.matmul %236, %222, %cst_71 {dimension_numbers = #tpu.dot_dimension_numbers<[2], [1], [1], [2], [0, 0, 0, 1, 1, 2], [0], [0]>} : vector<1x8x16xbf16>, vector<1x16x8xbf16>, vector<1x8x8xf32> -> vector<1x8x8xf32>
    "tpu.trace_stop"() : () -> ()
    %238 = vector.extract_strided_slice %159 {offsets = [0, 24], sizes = [8, 8], strides = [1, 1]} : vector<8x32xf32> to vector<8x8xf32>
    %239 = vector.shape_cast %238 : vector<8x8xf32> to vector<1x8x8xf32>
    %240 = arith.truncf %239 : vector<1x8x8xf32> to vector<1x8x8xbf16>
    %241 = vector.extract_strided_slice %165 {offsets = [0, 24], sizes = [16, 8], strides = [1, 1]} : vector<16x64xf32> to vector<16x8xf32>
    %242 = vector.shape_cast %241 : vector<16x8xf32> to vector<1x16x8xf32>
    %243 = arith.truncf %242 : vector<1x16x8xf32> to vector<1x16x8xbf16>
    %244 = vector.extract_strided_slice %165 {offsets = [0, 56], sizes = [16, 8], strides = [1, 1]} : vector<16x64xf32> to vector<16x8xf32>
    %245 = vector.shape_cast %244 : vector<16x8xf32> to vector<1x16x8xf32>
    %246 = arith.truncf %245 : vector<1x16x8xf32> to vector<1x16x8xbf16>
    "tpu.trace_start"() <{level = 10 : i32, message = "bqd,bkd->bqk"}> : () -> ()
    %cst_72 = arith.constant dense<0.000000e+00> : vector<1x8x16xf32>
    %247 = tpu.matmul %240, %243, %cst_72 {dimension_numbers = #tpu.dot_dimension_numbers<[2], [2], [1], [1], [0, 0, 0, 1, 1, 1], [0], [0]>} : vector<1x8x8xbf16>, vector<1x16x8xbf16>, vector<1x8x16xf32> -> vector<1x8x16xf32>
    "tpu.trace_stop"() : () -> ()
    %cst_73 = arith.constant 0.353553385 : f32
    %248 = vector.broadcast %cst_73 : f32 to vector<1x8x16xf32>
    %249 = arith.mulf %247, %248 : vector<1x8x16xf32>
    %cst_74 = arith.constant dense<0xFF800000> : vector<1x8xf32>
    %250 = vector.multi_reduction <maximumf>, %249, %cst_74 [2] : vector<1x8x16xf32> to vector<1x8xf32>
    %251 = vector.shape_cast %250 : vector<1x8xf32> to vector<1x8x1xf32>
    %252 = vector.broadcast %251 : vector<1x8x1xf32> to vector<1x8x16xf32>
    %253 = arith.subf %249, %252 : vector<1x8x16xf32>
    %254 = math.exp %253 : vector<1x8x16xf32>
    %cst_75 = arith.constant dense<0.000000e+00> : vector<1x8xf32>
    %255 = vector.multi_reduction <add>, %254, %cst_75 [2] : vector<1x8x16xf32> to vector<1x8xf32>
    %256 = vector.shape_cast %255 : vector<1x8xf32> to vector<1x8x1xf32>
    %257 = tpu.reciprocal %256 {approx = true} : vector<1x8x1xf32> -> vector<1x8x1xf32>
    %258 = vector.broadcast %257 : vector<1x8x1xf32> to vector<1x8x16xf32>
    %259 = arith.mulf %254, %258 : vector<1x8x16xf32>
    %260 = arith.truncf %259 : vector<1x8x16xf32> to vector<1x8x16xbf16>
    "tpu.trace_start"() <{level = 10 : i32, message = "bqk,bkd->bqd"}> : () -> ()
    %cst_76 = arith.constant dense<0.000000e+00> : vector<1x8x8xf32>
    %261 = tpu.matmul %260, %246, %cst_76 {dimension_numbers = #tpu.dot_dimension_numbers<[2], [1], [1], [2], [0, 0, 0, 1, 1, 2], [0], [0]>} : vector<1x8x16xbf16>, vector<1x16x8xbf16>, vector<1x8x8xf32> -> vector<1x8x8xf32>
    "tpu.trace_stop"() : () -> ()
    %262 = tpu.concatenate %189, %213, %237, %261 in 2 : vector<1x8x8xf32>, vector<1x8x8xf32>, vector<1x8x8xf32>, vector<1x8x8xf32> -> vector<1x8x32xf32>
    %263 = vector.shape_cast %262 : vector<1x8x32xf32> to vector<8x32xf32>
    %264 = arith.truncf %263 : vector<8x32xf32> to vector<8x32xbf16>
    %c0_77 = arith.constant 0 : index
    %c0_78 = arith.constant 0 : index
    %265 = vector.load %arg11[%c0_77, %c0_78] : memref<32x32xbf16, #tpu.memory_space<vmem>>, vector<32x32xbf16>
    %cst_79 = arith.constant dense<0.000000e+00> : vector<8x32xf32>
    %266 = tpu.matmul %264, %265, %cst_79 {dimension_numbers = #tpu.dot_dimension_numbers<[1], [0], [0], [1], [0, 0, 1, 1], [], []>} : vector<8x32xbf16>, vector<32x32xbf16>, vector<8x32xf32> -> vector<8x32xf32>
    %c0_80 = arith.constant 0 : index
    %c0_81 = arith.constant 0 : index
    %267 = vector.load %arg12[%c0_80, %c0_81] : memref<1x32xf32, #tpu.memory_space<vmem>>, vector<1x32xf32>
    %268 = vector.broadcast %267 : vector<1x32xf32> to vector<8x32xf32>
    %269 = arith.addf %266, %268 : vector<8x32xf32>
    %270 = arith.addf %153, %269 : vector<8x32xf32>
    %cst_82 = arith.constant dense<0.000000e+00> : vector<8xf32>
    %271 = vector.multi_reduction <add>, %270, %cst_82 [1] : vector<8x32xf32> to vector<8xf32>
    %272 = vector.shape_cast %271 : vector<8xf32> to vector<8x1xf32>
    %cst_83 = arith.constant 3.200000e+01 : f32
    %273 = vector.broadcast %cst_83 : f32 to vector<8x1xf32>
    %274 = arith.divf %272, %273 : vector<8x1xf32>
    %275 = vector.broadcast %274 : vector<8x1xf32> to vector<8x32xf32>
    %276 = arith.subf %270, %275 : vector<8x32xf32>
    %277 = arith.mulf %276, %276 : vector<8x32xf32>
    %cst_84 = arith.constant dense<0.000000e+00> : vector<8xf32>
    %278 = vector.multi_reduction <add>, %277, %cst_84 [1] : vector<8x32xf32> to vector<8xf32>
    %279 = vector.shape_cast %278 : vector<8xf32> to vector<8x1xf32>
    %cst_85 = arith.constant 3.200000e+01 : f32
    %280 = vector.broadcast %cst_85 : f32 to vector<8x1xf32>
    %281 = arith.divf %279, %280 : vector<8x1xf32>
    %cst_86 = arith.constant 9.99999974E-6 : f32
    %282 = vector.broadcast %cst_86 : f32 to vector<8x1xf32>
    %283 = arith.addf %281, %282 : vector<8x1xf32>
    %284 = math.rsqrt %283 : vector<8x1xf32>
    %285 = vector.broadcast %284 : vector<8x1xf32> to vector<8x32xf32>
    %286 = arith.mulf %276, %285 : vector<8x32xf32>
    %c0_87 = arith.constant 0 : index
    %c0_88 = arith.constant 0 : index
    %287 = vector.load %arg19[%c0_87, %c0_88] : memref<1x32xf32, #tpu.memory_space<vmem>>, vector<1x32xf32>
    %288 = vector.broadcast %287 : vector<1x32xf32> to vector<8x32xf32>
    %289 = arith.mulf %286, %288 : vector<8x32xf32>
    %c0_89 = arith.constant 0 : index
    %c0_90 = arith.constant 0 : index
    %290 = vector.load %arg20[%c0_89, %c0_90] : memref<1x32xf32, #tpu.memory_space<vmem>>, vector<1x32xf32>
    %291 = vector.broadcast %290 : vector<1x32xf32> to vector<8x32xf32>
    %292 = arith.addf %289, %291 : vector<8x32xf32>
    %293 = arith.truncf %292 : vector<8x32xf32> to vector<8x32xbf16>
    %c0_91 = arith.constant 0 : index
    %c0_92 = arith.constant 0 : index
    %294 = vector.load %arg13[%c0_91, %c0_92] : memref<32x64xbf16, #tpu.memory_space<vmem>>, vector<32x64xbf16>
    %cst_93 = arith.constant dense<0.000000e+00> : vector<8x64xf32>
    %295 = tpu.matmul %293, %294, %cst_93 {dimension_numbers = #tpu.dot_dimension_numbers<[1], [0], [0], [1], [0, 0, 1, 1], [], []>} : vector<8x32xbf16>, vector<32x64xbf16>, vector<8x64xf32> -> vector<8x64xf32>
    %c0_94 = arith.constant 0 : index
    %c0_95 = arith.constant 0 : index
    %296 = vector.load %arg14[%c0_94, %c0_95] : memref<1x64xf32, #tpu.memory_space<vmem>>, vector<1x64xf32>
    %297 = vector.broadcast %296 : vector<1x64xf32> to vector<8x64xf32>
    %298 = arith.addf %295, %297 : vector<8x64xf32>
    %cst_96 = arith.constant 0.000000e+00 : f32
    %299 = vector.broadcast %cst_96 : f32 to vector<8x64xf32>
    %300 = arith.maximumf %298, %299 : vector<8x64xf32>
    %301 = arith.truncf %300 : vector<8x64xf32> to vector<8x64xbf16>
    %c0_97 = arith.constant 0 : index
    %c0_98 = arith.constant 0 : index
    %302 = vector.load %arg15[%c0_97, %c0_98] : memref<64x32xbf16, #tpu.memory_space<vmem>>, vector<64x32xbf16>
    %cst_99 = arith.constant dense<0.000000e+00> : vector<8x32xf32>
    %303 = tpu.matmul %301, %302, %cst_99 {dimension_numbers = #tpu.dot_dimension_numbers<[1], [0], [0], [1], [0, 0, 1, 1], [], []>} : vector<8x64xbf16>, vector<64x32xbf16>, vector<8x32xf32> -> vector<8x32xf32>
    %c0_100 = arith.constant 0 : index
    %c0_101 = arith.constant 0 : index
    %304 = vector.load %arg16[%c0_100, %c0_101] : memref<1x32xf32, #tpu.memory_space<vmem>>, vector<1x32xf32>
    %305 = vector.broadcast %304 : vector<1x32xf32> to vector<8x32xf32>
    %306 = arith.addf %303, %305 : vector<8x32xf32>
    %307 = arith.addf %292, %306 : vector<8x32xf32>
    %cst_102 = arith.constant dense<0.000000e+00> : vector<8xf32>
    %308 = vector.multi_reduction <add>, %307, %cst_102 [1] : vector<8x32xf32> to vector<8xf32>
    %309 = vector.shape_cast %308 : vector<8xf32> to vector<8x1xf32>
    %cst_103 = arith.constant 3.200000e+01 : f32
    %310 = vector.broadcast %cst_103 : f32 to vector<8x1xf32>
    %311 = arith.divf %309, %310 : vector<8x1xf32>
    %312 = vector.broadcast %311 : vector<8x1xf32> to vector<8x32xf32>
    %313 = arith.subf %307, %312 : vector<8x32xf32>
    %314 = arith.mulf %313, %313 : vector<8x32xf32>
    %cst_104 = arith.constant dense<0.000000e+00> : vector<8xf32>
    %315 = vector.multi_reduction <add>, %314, %cst_104 [1] : vector<8x32xf32> to vector<8xf32>
    %316 = vector.shape_cast %315 : vector<8xf32> to vector<8x1xf32>
    %cst_105 = arith.constant 3.200000e+01 : f32
    %317 = vector.broadcast %cst_105 : f32 to vector<8x1xf32>
    %318 = arith.divf %316, %317 : vector<8x1xf32>
    %cst_106 = arith.constant 9.99999974E-6 : f32
    %319 = vector.broadcast %cst_106 : f32 to vector<8x1xf32>
    %320 = arith.addf %318, %319 : vector<8x1xf32>
    %321 = math.rsqrt %320 : vector<8x1xf32>
    %322 = vector.broadcast %321 : vector<8x1xf32> to vector<8x32xf32>
    %323 = arith.mulf %313, %322 : vector<8x32xf32>
    %c0_107 = arith.constant 0 : index
    %c0_108 = arith.constant 0 : index
    %324 = vector.load %arg21[%c0_107, %c0_108] : memref<1x32xf32, #tpu.memory_space<vmem>>, vector<1x32xf32>
    %325 = vector.broadcast %324 : vector<1x32xf32> to vector<8x32xf32>
    %326 = arith.mulf %323, %325 : vector<8x32xf32>
    %c0_109 = arith.constant 0 : index
    %c0_110 = arith.constant 0 : index
    %327 = vector.load %arg22[%c0_109, %c0_110] : memref<1x32xf32, #tpu.memory_space<vmem>>, vector<1x32xf32>
    %328 = vector.broadcast %327 : vector<1x32xf32> to vector<8x32xf32>
    %329 = arith.addf %326, %328 : vector<8x32xf32>
    %330 = arith.truncf %329 : vector<8x32xf32> to vector<8x32xbf16>
    %331 = vector.shape_cast %330 : vector<8x32xbf16> to vector<1x8x32xbf16>
    %c0_111 = arith.constant 0 : index
    %c0_112 = arith.constant 0 : index
    %c0_113 = arith.constant 0 : index
    %332 = vector.load %arg23[%c0_111, %c0_112, %c0_113] : memref<1x8x32xbf16, #tpu.memory_space<vmem>>, vector<1x8x32xbf16>
    tpu.vector_store %arg23[%c0_111, %c0_112, %c0_113], %331 {strides = array<i32>} : memref<1x8x32xbf16, #tpu.memory_space<vmem>>, vector<1x8x32xbf16>,
    return
  }
  func.func @transform_0(%arg0: i32) -> (i32, i32, i32) {
    %c0_i32 = arith.constant 0 : i32
    %c0_i32_0 = arith.constant 0 : i32
    %c0_i32_1 = arith.constant 0 : i32
    return %arg0, %c0_i32, %c0_i32_0 : i32, i32, i32
  }
  func.func @transform_1(%arg0: i32) -> (i32, i32, i32) {
    %c0_i32 = arith.constant 0 : i32
    %c0_i32_0 = arith.constant 0 : i32
    %c0_i32_1 = arith.constant 0 : i32
    return %arg0, %c0_i32, %c0_i32_0 : i32, i32, i32
  }
  func.func @transform_2(%arg0: i32) -> (i32, i32) {
    %c0_i32 = arith.constant 0 : i32
    %c0_i32_0 = arith.constant 0 : i32
    %c0_i32_1 = arith.constant 0 : i32
    return %c0_i32, %c0_i32_0 : i32, i32
  }
  func.func @transform_3(%arg0: i32) -> (i32, i32) {
    %c0_i32 = arith.constant 0 : i32
    %c0_i32_0 = arith.constant 0 : i32
    %c0_i32_1 = arith.constant 0 : i32
    return %c0_i32, %c0_i32_0 : i32, i32
  }
  func.func @transform_4(%arg0: i32) -> (i32, i32) {
    %c0_i32 = arith.constant 0 : i32
    %c0_i32_0 = arith.constant 0 : i32
    %c0_i32_1 = arith.constant 0 : i32
    return %c0_i32, %c0_i32_0 : i32, i32
  }
  func.func @transform_5(%arg0: i32) -> (i32, i32) {
    %c0_i32 = arith.constant 0 : i32
    %c0_i32_0 = arith.constant 0 : i32
    %c0_i32_1 = arith.constant 0 : i32
    return %c0_i32, %c0_i32_0 : i32, i32
  }
  func.func @transform_6(%arg0: i32) -> (i32, i32) {
    %c0_i32 = arith.constant 0 : i32
    %c0_i32_0 = arith.constant 0 : i32
    %c0_i32_1 = arith.constant 0 : i32
    return %c0_i32, %c0_i32_0 : i32, i32
  }
  func.func @transform_7(%arg0: i32) -> (i32, i32) {
    %c0_i32 = arith.constant 0 : i32
    %c0_i32_0 = arith.constant 0 : i32
    %c0_i32_1 = arith.constant 0 : i32
    return %c0_i32, %c0_i32_0 : i32, i32
  }
  func.func @transform_8(%arg0: i32) -> (i32, i32) {
    %c0_i32 = arith.constant 0 : i32
    %c0_i32_0 = arith.constant 0 : i32
    %c0_i32_1 = arith.constant 0 : i32
    return %c0_i32, %c0_i32_0 : i32, i32
  }
  func.func @transform_9(%arg0: i32) -> (i32, i32) {
    %c0_i32 = arith.constant 0 : i32
    %c0_i32_0 = arith.constant 0 : i32
    %c0_i32_1 = arith.constant 0 : i32
    return %c0_i32, %c0_i32_0 : i32, i32
  }
  func.func @transform_10(%arg0: i32) -> (i32, i32) {
    %c0_i32 = arith.constant 0 : i32
    %c0_i32_0 = arith.constant 0 : i32
    %c0_i32_1 = arith.constant 0 : i32
    return %c0_i32, %c0_i32_0 : i32, i32
  }
  func.func @transform_11(%arg0: i32) -> (i32, i32) {
    %c0_i32 = arith.constant 0 : i32
    %c0_i32_0 = arith.constant 0 : i32
    %c0_i32_1 = arith.constant 0 : i32
    return %c0_i32, %c0_i32_0 : i32, i32
  }
  func.func @transform_12(%arg0: i32) -> (i32, i32) {
    %c0_i32 = arith.constant 0 : i32
    %c0_i32_0 = arith.constant 0 : i32
    %c0_i32_1 = arith.constant 0 : i32
    return %c0_i32, %c0_i32_0 : i32, i32
  }
  func.func @transform_13(%arg0: i32) -> (i32, i32) {
    %c0_i32 = arith.constant 0 : i32
    %c0_i32_0 = arith.constant 0 : i32
    %c0_i32_1 = arith.constant 0 : i32
    return %c0_i32, %c0_i32_0 : i32, i32
  }
  func.func @transform_14(%arg0: i32) -> (i32, i32) {
    %c0_i32 = arith.constant 0 : i32
    %c0_i32_0 = arith.constant 0 : i32
    %c0_i32_1 = arith.constant 0 : i32
    return %c0_i32, %c0_i32_0 : i32, i32
  }
  func.func @transform_15(%arg0: i32) -> (i32, i32) {
    %c0_i32 = arith.constant 0 : i32
    %c0_i32_0 = arith.constant 0 : i32
    %c0_i32_1 = arith.constant 0 : i32
    return %c0_i32, %c0_i32_0 : i32, i32
  }
  func.func @transform_16(%arg0: i32) -> (i32, i32) {
    %c0_i32 = arith.constant 0 : i32
    %c0_i32_0 = arith.constant 0 : i32
    %c0_i32_1 = arith.constant 0 : i32
    return %c0_i32, %c0_i32_0 : i32, i32
  }
  func.func @transform_17(%arg0: i32) -> (i32, i32) {
    %c0_i32 = arith.constant 0 : i32
    %c0_i32_0 = arith.constant 0 : i32
    %c0_i32_1 = arith.constant 0 : i32
    return %c0_i32, %c0_i32_0 : i32, i32
  }
  func.func @transform_18(%arg0: i32) -> (i32, i32) {
    %c0_i32 = arith.constant 0 : i32
    %c0_i32_0 = arith.constant 0 : i32
    %c0_i32_1 = arith.constant 0 : i32
    return %c0_i32, %c0_i32_0 : i32, i32
  }
  func.func @transform_19(%arg0: i32) -> (i32, i32) {
    %c0_i32 = arith.constant 0 : i32
    %c0_i32_0 = arith.constant 0 : i32
    %c0_i32_1 = arith.constant 0 : i32
    return %c0_i32, %c0_i32_0 : i32, i32
  }
  func.func @transform_20(%arg0: i32) -> (i32, i32) {
    %c0_i32 = arith.constant 0 : i32
    %c0_i32_0 = arith.constant 0 : i32
    %c0_i32_1 = arith.constant 0 : i32
    return %c0_i32, %c0_i32_0 : i32, i32
  }
  func.func @transform_21(%arg0: i32) -> (i32, i32) {
    %c0_i32 = arith.constant 0 : i32
    %c0_i32_0 = arith.constant 0 : i32
    %c0_i32_1 = arith.constant 0 : i32
    return %c0_i32, %c0_i32_0 : i32, i32
  }
  func.func @transform_22(%arg0: i32) -> (i32, i32, i32) {
    %c0_i32 = arith.constant 0 : i32
    %c0_i32_0 = arith.constant 0 : i32
    %c0_i32_1 = arith.constant 0 : i32
    return %arg0, %c0_i32, %c0_i32_0 : i32, i32, i32
  }
}

module attributes {stable_mosaic.version = 11 : i64} {
  func.func @_decoder_block_kernel(%arg0: i32, %arg1: memref<1x8x32xbf16, #tpu.memory_space<vmem>>, %arg2: memref<1x8x32xbf16, #tpu.memory_space<vmem>>, %arg3: memref<32x96xbf16, #tpu.memory_space<vmem>>, %arg4: memref<1x96xf32, #tpu.memory_space<vmem>>, %arg5: memref<32x32xbf16, #tpu.memory_space<vmem>>, %arg6: memref<1x32xf32, #tpu.memory_space<vmem>>, %arg7: memref<32x32xbf16, #tpu.memory_space<vmem>>, %arg8: memref<1x32xf32, #tpu.memory_space<vmem>>, %arg9: memref<32x64xbf16, #tpu.memory_space<vmem>>, %arg10: memref<1x64xf32, #tpu.memory_space<vmem>>, %arg11: memref<32x32xbf16, #tpu.memory_space<vmem>>, %arg12: memref<1x32xf32, #tpu.memory_space<vmem>>, %arg13: memref<32x64xbf16, #tpu.memory_space<vmem>>, %arg14: memref<1x64xf32, #tpu.memory_space<vmem>>, %arg15: memref<64x32xbf16, #tpu.memory_space<vmem>>, %arg16: memref<1x32xf32, #tpu.memory_space<vmem>>, %arg17: memref<1x32xf32, #tpu.memory_space<vmem>>, %arg18: memref<1x32xf32, #tpu.memory_space<vmem>>, %arg19: memref<1x32xf32, #tpu.memory_space<vmem>>, %arg20: memref<1x32xf32, #tpu.memory_space<vmem>>, %arg21: memref<1x32xf32, #tpu.memory_space<vmem>>, %arg22: memref<1x32xf32, #tpu.memory_space<vmem>>, %arg23: memref<1x8x32xbf16, #tpu.memory_space<vmem>>) attributes {dimension_semantics = [#tpu.dimension_semantics<parallel>], iteration_bounds = array<i64: 2>, scalar_prefetch = 0 : i64, scratch_operands = 0 : i64, tpu.core_type = #tpu.core_type<tc>, window_params = [{transform_indices = @transform_0, window_bounds = array<i64: 1, 8, 32>}, {transform_indices = @transform_1, window_bounds = array<i64: 1, 8, 32>}, {pipeline_mode = #tpu.pipeline_mode<synchronous>, transform_indices = @transform_2, window_bounds = array<i64: 32, 96>}, {pipeline_mode = #tpu.pipeline_mode<synchronous>, transform_indices = @transform_3, window_bounds = array<i64: 1, 96>}, {pipeline_mode = #tpu.pipeline_mode<synchronous>, transform_indices = @transform_4, window_bounds = array<i64: 32, 32>}, {pipeline_mode = #tpu.pipeline_mode<synchronous>, transform_indices = @transform_5, window_bounds = array<i64: 1, 32>}, {pipeline_mode = #tpu.pipeline_mode<synchronous>, transform_indices = @transform_6, window_bounds = array<i64: 32, 32>}, {pipeline_mode = #tpu.pipeline_mode<synchronous>, transform_indices = @transform_7, window_bounds = array<i64: 1, 32>}, {pipeline_mode = #tpu.pipeline_mode<synchronous>, transform_indices = @transform_8, window_bounds = array<i64: 32, 64>}, {pipeline_mode = #tpu.pipeline_mode<synchronous>, transform_indices = @transform_9, window_bounds = array<i64: 1, 64>}, {pipeline_mode = #tpu.pipeline_mode<synchronous>, transform_indices = @transform_10, window_bounds = array<i64: 32, 32>}, {pipeline_mode = #tpu.pipeline_mode<synchronous>, transform_indices = @transform_11, window_bounds = array<i64: 1, 32>}, {pipeline_mode = #tpu.pipeline_mode<synchronous>, transform_indices = @transform_12, window_bounds = array<i64: 32, 64>}, {pipeline_mode = #tpu.pipeline_mode<synchronous>, transform_indices = @transform_13, window_bounds = array<i64: 1, 64>}, {pipeline_mode = #tpu.pipeline_mode<synchronous>, transform_indices = @transform_14, window_bounds = array<i64: 64, 32>}, {pipeline_mode = #tpu.pipeline_mode<synchronous>, transform_indices = @transform_15, window_bounds = array<i64: 1, 32>}, {pipeline_mode = #tpu.pipeline_mode<synchronous>, transform_indices = @transform_16, window_bounds = array<i64: 1, 32>}, {pipeline_mode = #tpu.pipeline_mode<synchronous>, transform_indices = @transform_17, window_bounds = array<i64: 1, 32>}, {pipeline_mode = #tpu.pipeline_mode<synchronous>, transform_indices = @transform_18, window_bounds = array<i64: 1, 32>}, {pipeline_mode = #tpu.pipeline_mode<synchronous>, transform_indices = @transform_19, window_bounds = array<i64: 1, 32>}, {pipeline_mode = #tpu.pipeline_mode<synchronous>, transform_indices = @transform_20, window_bounds = array<i64: 1, 32>}, {pipeline_mode = #tpu.pipeline_mode<synchronous>, transform_indices = @transform_21, window_bounds = array<i64: 1, 32>}, {transform_indices = @transform_22, window_bounds = array<i64: 1, 8, 32>}]} {
    %c0 = arith.constant 0 : index
    %c0_0 = arith.constant 0 : index
    %c0_1 = arith.constant 0 : index
    %0 = vector.load %arg1[%c0, %c0_0, %c0_1] : memref<1x8x32xbf16, #tpu.memory_space<vmem>>, vector<1x8x32xbf16>
    %1 = arith.extf %0 : vector<1x8x32xbf16> to vector<1x8x32xf32>
    %2 = vector.shape_cast %1 : vector<1x8x32xf32> to vector<8x32xf32>
    %c0_2 = arith.constant 0 : index
    %c0_3 = arith.constant 0 : index
    %c0_4 = arith.constant 0 : index
    %3 = vector.load %arg2[%c0_2, %c0_3, %c0_4] : memref<1x8x32xbf16, #tpu.memory_space<vmem>>, vector<1x8x32xbf16>
    %4 = arith.extf %3 : vector<1x8x32xbf16> to vector<1x8x32xf32>
    %5 = vector.shape_cast %4 : vector<1x8x32xf32> to vector<8x32xf32>
    %6 = arith.truncf %2 : vector<8x32xf32> to vector<8x32xbf16>
    %c0_5 = arith.constant 0 : index
    %c0_6 = arith.constant 0 : index
    %7 = vector.load %arg3[%c0_5, %c0_6] : memref<32x96xbf16, #tpu.memory_space<vmem>>, vector<32x96xbf16>
    %cst = arith.constant dense<0.000000e+00> : vector<8x96xf32>
    %8 = tpu.matmul %6, %7, %cst {dimension_numbers = #tpu.dot_dimension_numbers<[1], [0], [0], [1], [0, 0, 1, 1], [], []>} : vector<8x32xbf16>, vector<32x96xbf16>, vector<8x96xf32> -> vector<8x96xf32>
    %c0_7 = arith.constant 0 : index
    %c0_8 = arith.constant 0 : index
    %9 = vector.load %arg4[%c0_7, %c0_8] : memref<1x96xf32, #tpu.memory_space<vmem>>, vector<1x96xf32>
    %10 = vector.broadcast %9 : vector<1x96xf32> to vector<8x96xf32>
    %11 = arith.addf %8, %10 : vector<8x96xf32>
    %12 = tpu.iota {dimensions = array<i32: 0>} : vector<8x8xi32>
    %13 = tpu.iota {dimensions = array<i32: 1>} : vector<8x8xi32>
    %14 = arith.cmpi sge, %12, %13 : vector<8x8xi32>
    %15 = vector.extract_strided_slice %11 {offsets = [0, 0], sizes = [8, 8], strides = [1, 1]} : vector<8x96xf32> to vector<8x8xf32>
    %16 = vector.shape_cast %15 : vector<8x8xf32> to vector<1x8x8xf32>
    %17 = arith.truncf %16 : vector<1x8x8xf32> to vector<1x8x8xbf16>
    %18 = vector.extract_strided_slice %11 {offsets = [0, 32], sizes = [8, 8], strides = [1, 1]} : vector<8x96xf32> to vector<8x8xf32>
    %19 = vector.shape_cast %18 : vector<8x8xf32> to vector<1x8x8xf32>
    %20 = arith.truncf %19 : vector<1x8x8xf32> to vector<1x8x8xbf16>
    %21 = vector.extract_strided_slice %11 {offsets = [0, 64], sizes = [8, 8], strides = [1, 1]} : vector<8x96xf32> to vector<8x8xf32>
    %22 = vector.shape_cast %21 : vector<8x8xf32> to vector<1x8x8xf32>
    %23 = arith.truncf %22 : vector<1x8x8xf32> to vector<1x8x8xbf16>
    "tpu.trace_start"() <{level = 10 : i32, message = "bqd,bkd->bqk"}> : () -> ()
    %cst_9 = arith.constant dense<0.000000e+00> : vector<1x8x8xf32>
    %24 = tpu.matmul %17, %20, %cst_9 {dimension_numbers = #tpu.dot_dimension_numbers<[2], [2], [1], [1], [0, 0, 0, 1, 1, 1], [0], [0]>} : vector<1x8x8xbf16>, vector<1x8x8xbf16>, vector<1x8x8xf32> -> vector<1x8x8xf32>
    "tpu.trace_stop"() : () -> ()
    %cst_10 = arith.constant 0.353553385 : f32
    %25 = vector.broadcast %cst_10 : f32 to vector<1x8x8xf32>
    %26 = arith.mulf %24, %25 : vector<1x8x8xf32>
    %27 = vector.shape_cast %14 : vector<8x8xi1> to vector<1x8x8xi1>
    %cst_11 = arith.constant -1.000000e+30 : f32
    %28 = vector.broadcast %cst_11 : f32 to vector<1x8x8xf32>
    %29 = arith.select %27, %26, %28 : vector<1x8x8xi1>, vector<1x8x8xf32>
    %cst_12 = arith.constant dense<0xFF800000> : vector<1x8xf32>
    %30 = vector.multi_reduction <maximumf>, %29, %cst_12 [2] : vector<1x8x8xf32> to vector<1x8xf32>
    %31 = vector.shape_cast %30 : vector<1x8xf32> to vector<1x8x1xf32>
    %32 = vector.broadcast %31 : vector<1x8x1xf32> to vector<1x8x8xf32>
    %33 = arith.subf %29, %32 : vector<1x8x8xf32>
    %34 = math.exp %33 : vector<1x8x8xf32>
    %cst_13 = arith.constant dense<0.000000e+00> : vector<1x8xf32>
    %35 = vector.multi_reduction <add>, %34, %cst_13 [2] : vector<1x8x8xf32> to vector<1x8xf32>
    %36 = vector.shape_cast %35 : vector<1x8xf32> to vector<1x8x1xf32>
    %37 = tpu.reciprocal %36 {approx = true} : vector<1x8x1xf32> -> vector<1x8x1xf32>
    %38 = vector.broadcast %37 : vector<1x8x1xf32> to vector<1x8x8xf32>
    %39 = arith.mulf %34, %38 : vector<1x8x8xf32>
    %40 = arith.truncf %39 : vector<1x8x8xf32> to vector<1x8x8xbf16>
    "tpu.trace_start"() <{level = 10 : i32, message = "bqk,bkd->bqd"}> : () -> ()
    %cst_14 = arith.constant dense<0.000000e+00> : vector<1x8x8xf32>
    %41 = tpu.matmul %40, %23, %cst_14 {dimension_numbers = #tpu.dot_dimension_numbers<[2], [1], [1], [2], [0, 0, 0, 1, 1, 2], [0], [0]>} : vector<1x8x8xbf16>, vector<1x8x8xbf16>, vector<1x8x8xf32> -> vector<1x8x8xf32>
    "tpu.trace_stop"() : () -> ()
    %42 = vector.extract_strided_slice %11 {offsets = [0, 8], sizes = [8, 8], strides = [1, 1]} : vector<8x96xf32> to vector<8x8xf32>
    %43 = vector.shape_cast %42 : vector<8x8xf32> to vector<1x8x8xf32>
    %44 = arith.truncf %43 : vector<1x8x8xf32> to vector<1x8x8xbf16>
    %45 = vector.extract_strided_slice %11 {offsets = [0, 40], sizes = [8, 8], strides = [1, 1]} : vector<8x96xf32> to vector<8x8xf32>
    %46 = vector.shape_cast %45 : vector<8x8xf32> to vector<1x8x8xf32>
    %47 = arith.truncf %46 : vector<1x8x8xf32> to vector<1x8x8xbf16>
    %48 = vector.extract_strided_slice %11 {offsets = [0, 72], sizes = [8, 8], strides = [1, 1]} : vector<8x96xf32> to vector<8x8xf32>
    %49 = vector.shape_cast %48 : vector<8x8xf32> to vector<1x8x8xf32>
    %50 = arith.truncf %49 : vector<1x8x8xf32> to vector<1x8x8xbf16>
    "tpu.trace_start"() <{level = 10 : i32, message = "bqd,bkd->bqk"}> : () -> ()
    %cst_15 = arith.constant dense<0.000000e+00> : vector<1x8x8xf32>
    %51 = tpu.matmul %44, %47, %cst_15 {dimension_numbers = #tpu.dot_dimension_numbers<[2], [2], [1], [1], [0, 0, 0, 1, 1, 1], [0], [0]>} : vector<1x8x8xbf16>, vector<1x8x8xbf16>, vector<1x8x8xf32> -> vector<1x8x8xf32>
    "tpu.trace_stop"() : () -> ()
    %cst_16 = arith.constant 0.353553385 : f32
    %52 = vector.broadcast %cst_16 : f32 to vector<1x8x8xf32>
    %53 = arith.mulf %51, %52 : vector<1x8x8xf32>
    %54 = vector.shape_cast %14 : vector<8x8xi1> to vector<1x8x8xi1>
    %cst_17 = arith.constant -1.000000e+30 : f32
    %55 = vector.broadcast %cst_17 : f32 to vector<1x8x8xf32>
    %56 = arith.select %54, %53, %55 : vector<1x8x8xi1>, vector<1x8x8xf32>
    %cst_18 = arith.constant dense<0xFF800000> : vector<1x8xf32>
    %57 = vector.multi_reduction <maximumf>, %56, %cst_18 [2] : vector<1x8x8xf32> to vector<1x8xf32>
    %58 = vector.shape_cast %57 : vector<1x8xf32> to vector<1x8x1xf32>
    %59 = vector.broadcast %58 : vector<1x8x1xf32> to vector<1x8x8xf32>
    %60 = arith.subf %56, %59 : vector<1x8x8xf32>
    %61 = math.exp %60 : vector<1x8x8xf32>
    %cst_19 = arith.constant dense<0.000000e+00> : vector<1x8xf32>
    %62 = vector.multi_reduction <add>, %61, %cst_19 [2] : vector<1x8x8xf32> to vector<1x8xf32>
    %63 = vector.shape_cast %62 : vector<1x8xf32> to vector<1x8x1xf32>
    %64 = tpu.reciprocal %63 {approx = true} : vector<1x8x1xf32> -> vector<1x8x1xf32>
    %65 = vector.broadcast %64 : vector<1x8x1xf32> to vector<1x8x8xf32>
    %66 = arith.mulf %61, %65 : vector<1x8x8xf32>
    %67 = arith.truncf %66 : vector<1x8x8xf32> to vector<1x8x8xbf16>
    "tpu.trace_start"() <{level = 10 : i32, message = "bqk,bkd->bqd"}> : () -> ()
    %cst_20 = arith.constant dense<0.000000e+00> : vector<1x8x8xf32>
    %68 = tpu.matmul %67, %50, %cst_20 {dimension_numbers = #tpu.dot_dimension_numbers<[2], [1], [1], [2], [0, 0, 0, 1, 1, 2], [0], [0]>} : vector<1x8x8xbf16>, vector<1x8x8xbf16>, vector<1x8x8xf32> -> vector<1x8x8xf32>
    "tpu.trace_stop"() : () -> ()
    %69 = vector.extract_strided_slice %11 {offsets = [0, 16], sizes = [8, 8], strides = [1, 1]} : vector<8x96xf32> to vector<8x8xf32>
    %70 = vector.shape_cast %69 : vector<8x8xf32> to vector<1x8x8xf32>
    %71 = arith.truncf %70 : vector<1x8x8xf32> to vector<1x8x8xbf16>
    %72 = vector.extract_strided_slice %11 {offsets = [0, 48], sizes = [8, 8], strides = [1, 1]} : vector<8x96xf32> to vector<8x8xf32>
    %73 = vector.shape_cast %72 : vector<8x8xf32> to vector<1x8x8xf32>
    %74 = arith.truncf %73 : vector<1x8x8xf32> to vector<1x8x8xbf16>
    %75 = vector.extract_strided_slice %11 {offsets = [0, 80], sizes = [8, 8], strides = [1, 1]} : vector<8x96xf32> to vector<8x8xf32>
    %76 = vector.shape_cast %75 : vector<8x8xf32> to vector<1x8x8xf32>
    %77 = arith.truncf %76 : vector<1x8x8xf32> to vector<1x8x8xbf16>
    "tpu.trace_start"() <{level = 10 : i32, message = "bqd,bkd->bqk"}> : () -> ()
    %cst_21 = arith.constant dense<0.000000e+00> : vector<1x8x8xf32>
    %78 = tpu.matmul %71, %74, %cst_21 {dimension_numbers = #tpu.dot_dimension_numbers<[2], [2], [1], [1], [0, 0, 0, 1, 1, 1], [0], [0]>} : vector<1x8x8xbf16>, vector<1x8x8xbf16>, vector<1x8x8xf32> -> vector<1x8x8xf32>
    "tpu.trace_stop"() : () -> ()
    %cst_22 = arith.constant 0.353553385 : f32
    %79 = vector.broadcast %cst_22 : f32 to vector<1x8x8xf32>
    %80 = arith.mulf %78, %79 : vector<1x8x8xf32>
    %81 = vector.shape_cast %14 : vector<8x8xi1> to vector<1x8x8xi1>
    %cst_23 = arith.constant -1.000000e+30 : f32
    %82 = vector.broadcast %cst_23 : f32 to vector<1x8x8xf32>
    %83 = arith.select %81, %80, %82 : vector<1x8x8xi1>, vector<1x8x8xf32>
    %cst_24 = arith.constant dense<0xFF800000> : vector<1x8xf32>
    %84 = vector.multi_reduction <maximumf>, %83, %cst_24 [2] : vector<1x8x8xf32> to vector<1x8xf32>
    %85 = vector.shape_cast %84 : vector<1x8xf32> to vector<1x8x1xf32>
    %86 = vector.broadcast %85 : vector<1x8x1xf32> to vector<1x8x8xf32>
    %87 = arith.subf %83, %86 : vector<1x8x8xf32>
    %88 = math.exp %87 : vector<1x8x8xf32>
    %cst_25 = arith.constant dense<0.000000e+00> : vector<1x8xf32>
    %89 = vector.multi_reduction <add>, %88, %cst_25 [2] : vector<1x8x8xf32> to vector<1x8xf32>
    %90 = vector.shape_cast %89 : vector<1x8xf32> to vector<1x8x1xf32>
    %91 = tpu.reciprocal %90 {approx = true} : vector<1x8x1xf32> -> vector<1x8x1xf32>
    %92 = vector.broadcast %91 : vector<1x8x1xf32> to vector<1x8x8xf32>
    %93 = arith.mulf %88, %92 : vector<1x8x8xf32>
    %94 = arith.truncf %93 : vector<1x8x8xf32> to vector<1x8x8xbf16>
    "tpu.trace_start"() <{level = 10 : i32, message = "bqk,bkd->bqd"}> : () -> ()
    %cst_26 = arith.constant dense<0.000000e+00> : vector<1x8x8xf32>
    %95 = tpu.matmul %94, %77, %cst_26 {dimension_numbers = #tpu.dot_dimension_numbers<[2], [1], [1], [2], [0, 0, 0, 1, 1, 2], [0], [0]>} : vector<1x8x8xbf16>, vector<1x8x8xbf16>, vector<1x8x8xf32> -> vector<1x8x8xf32>
    "tpu.trace_stop"() : () -> ()
    %96 = vector.extract_strided_slice %11 {offsets = [0, 24], sizes = [8, 8], strides = [1, 1]} : vector<8x96xf32> to vector<8x8xf32>
    %97 = vector.shape_cast %96 : vector<8x8xf32> to vector<1x8x8xf32>
    %98 = arith.truncf %97 : vector<1x8x8xf32> to vector<1x8x8xbf16>
    %99 = vector.extract_strided_slice %11 {offsets = [0, 56], sizes = [8, 8], strides = [1, 1]} : vector<8x96xf32> to vector<8x8xf32>
    %100 = vector.shape_cast %99 : vector<8x8xf32> to vector<1x8x8xf32>
    %101 = arith.truncf %100 : vector<1x8x8xf32> to vector<1x8x8xbf16>
    %102 = vector.extract_strided_slice %11 {offsets = [0, 88], sizes = [8, 8], strides = [1, 1]} : vector<8x96xf32> to vector<8x8xf32>
    %103 = vector.shape_cast %102 : vector<8x8xf32> to vector<1x8x8xf32>
    %104 = arith.truncf %103 : vector<1x8x8xf32> to vector<1x8x8xbf16>
    "tpu.trace_start"() <{level = 10 : i32, message = "bqd,bkd->bqk"}> : () -> ()
    %cst_27 = arith.constant dense<0.000000e+00> : vector<1x8x8xf32>
    %105 = tpu.matmul %98, %101, %cst_27 {dimension_numbers = #tpu.dot_dimension_numbers<[2], [2], [1], [1], [0, 0, 0, 1, 1, 1], [0], [0]>} : vector<1x8x8xbf16>, vector<1x8x8xbf16>, vector<1x8x8xf32> -> vector<1x8x8xf32>
    "tpu.trace_stop"() : () -> ()
    %cst_28 = arith.constant 0.353553385 : f32
    %106 = vector.broadcast %cst_28 : f32 to vector<1x8x8xf32>
    %107 = arith.mulf %105, %106 : vector<1x8x8xf32>
    %108 = vector.shape_cast %14 : vector<8x8xi1> to vector<1x8x8xi1>
    %cst_29 = arith.constant -1.000000e+30 : f32
    %109 = vector.broadcast %cst_29 : f32 to vector<1x8x8xf32>
    %110 = arith.select %108, %107, %109 : vector<1x8x8xi1>, vector<1x8x8xf32>
    %cst_30 = arith.constant dense<0xFF800000> : vector<1x8xf32>
    %111 = vector.multi_reduction <maximumf>, %110, %cst_30 [2] : vector<1x8x8xf32> to vector<1x8xf32>
    %112 = vector.shape_cast %111 : vector<1x8xf32> to vector<1x8x1xf32>
    %113 = vector.broadcast %112 : vector<1x8x1xf32> to vector<1x8x8xf32>
    %114 = arith.subf %110, %113 : vector<1x8x8xf32>
    %115 = math.exp %114 : vector<1x8x8xf32>
    %cst_31 = arith.constant dense<0.000000e+00> : vector<1x8xf32>
    %116 = vector.multi_reduction <add>, %115, %cst_31 [2] : vector<1x8x8xf32> to vector<1x8xf32>
    %117 = vector.shape_cast %116 : vector<1x8xf32> to vector<1x8x1xf32>
    %118 = tpu.reciprocal %117 {approx = true} : vector<1x8x1xf32> -> vector<1x8x1xf32>
    %119 = vector.broadcast %118 : vector<1x8x1xf32> to vector<1x8x8xf32>
    %120 = arith.mulf %115, %119 : vector<1x8x8xf32>
    %121 = arith.truncf %120 : vector<1x8x8xf32> to vector<1x8x8xbf16>
    "tpu.trace_start"() <{level = 10 : i32, message = "bqk,bkd->bqd"}> : () -> ()
    %cst_32 = arith.constant dense<0.000000e+00> : vector<1x8x8xf32>
    %122 = tpu.matmul %121, %104, %cst_32 {dimension_numbers = #tpu.dot_dimension_numbers<[2], [1], [1], [2], [0, 0, 0, 1, 1, 2], [0], [0]>} : vector<1x8x8xbf16>, vector<1x8x8xbf16>, vector<1x8x8xf32> -> vector<1x8x8xf32>
    "tpu.trace_stop"() : () -> ()
    %123 = tpu.concatenate %41, %68, %95, %122 in 2 : vector<1x8x8xf32>, vector<1x8x8xf32>, vector<1x8x8xf32>, vector<1x8x8xf32> -> vector<1x8x32xf32>
    %124 = vector.shape_cast %123 : vector<1x8x32xf32> to vector<8x32xf32>
    %125 = arith.truncf %124 : vector<8x32xf32> to vector<8x32xbf16>
    %c0_33 = arith.constant 0 : index
    %c0_34 = arith.constant 0 : index
    %126 = vector.load %arg5[%c0_33, %c0_34] : memref<32x32xbf16, #tpu.memory_space<vmem>>, vector<32x32xbf16>
    %cst_35 = arith.constant dense<0.000000e+00> : vector<8x32xf32>
    %127 = tpu.matmul %125, %126, %cst_35 {dimension_numbers = #tpu.dot_dimension_numbers<[1], [0], [0], [1], [0, 0, 1, 1], [], []>} : vector<8x32xbf16>, vector<32x32xbf16>, vector<8x32xf32> -> vector<8x32xf32>
    %c0_36 = arith.constant 0 : index
    %c0_37 = arith.constant 0 : index
    %128 = vector.load %arg6[%c0_36, %c0_37] : memref<1x32xf32, #tpu.memory_space<vmem>>, vector<1x32xf32>
    %129 = vector.broadcast %128 : vector<1x32xf32> to vector<8x32xf32>
    %130 = arith.addf %127, %129 : vector<8x32xf32>
    %131 = arith.addf %2, %130 : vector<8x32xf32>
    %cst_38 = arith.constant dense<0.000000e+00> : vector<8xf32>
    %132 = vector.multi_reduction <add>, %131, %cst_38 [1] : vector<8x32xf32> to vector<8xf32>
    %133 = vector.shape_cast %132 : vector<8xf32> to vector<8x1xf32>
    %cst_39 = arith.constant 3.200000e+01 : f32
    %134 = vector.broadcast %cst_39 : f32 to vector<8x1xf32>
    %135 = arith.divf %133, %134 : vector<8x1xf32>
    %136 = vector.broadcast %135 : vector<8x1xf32> to vector<8x32xf32>
    %137 = arith.subf %131, %136 : vector<8x32xf32>
    %138 = arith.mulf %137, %137 : vector<8x32xf32>
    %cst_40 = arith.constant dense<0.000000e+00> : vector<8xf32>
    %139 = vector.multi_reduction <add>, %138, %cst_40 [1] : vector<8x32xf32> to vector<8xf32>
    %140 = vector.shape_cast %139 : vector<8xf32> to vector<8x1xf32>
    %cst_41 = arith.constant 3.200000e+01 : f32
    %141 = vector.broadcast %cst_41 : f32 to vector<8x1xf32>
    %142 = arith.divf %140, %141 : vector<8x1xf32>
    %cst_42 = arith.constant 9.99999974E-6 : f32
    %143 = vector.broadcast %cst_42 : f32 to vector<8x1xf32>
    %144 = arith.addf %142, %143 : vector<8x1xf32>
    %145 = math.rsqrt %144 : vector<8x1xf32>
    %146 = vector.broadcast %145 : vector<8x1xf32> to vector<8x32xf32>
    %147 = arith.mulf %137, %146 : vector<8x32xf32>
    %c0_43 = arith.constant 0 : index
    %c0_44 = arith.constant 0 : index
    %148 = vector.load %arg17[%c0_43, %c0_44] : memref<1x32xf32, #tpu.memory_space<vmem>>, vector<1x32xf32>
    %149 = vector.broadcast %148 : vector<1x32xf32> to vector<8x32xf32>
    %150 = arith.mulf %147, %149 : vector<8x32xf32>
    %c0_45 = arith.constant 0 : index
    %c0_46 = arith.constant 0 : index
    %151 = vector.load %arg18[%c0_45, %c0_46] : memref<1x32xf32, #tpu.memory_space<vmem>>, vector<1x32xf32>
    %152 = vector.broadcast %151 : vector<1x32xf32> to vector<8x32xf32>
    %153 = arith.addf %150, %152 : vector<8x32xf32>
    %154 = arith.truncf %153 : vector<8x32xf32> to vector<8x32xbf16>
    %c0_47 = arith.constant 0 : index
    %c0_48 = arith.constant 0 : index
    %155 = vector.load %arg7[%c0_47, %c0_48] : memref<32x32xbf16, #tpu.memory_space<vmem>>, vector<32x32xbf16>
    %cst_49 = arith.constant dense<0.000000e+00> : vector<8x32xf32>
    %156 = tpu.matmul %154, %155, %cst_49 {dimension_numbers = #tpu.dot_dimension_numbers<[1], [0], [0], [1], [0, 0, 1, 1], [], []>} : vector<8x32xbf16>, vector<32x32xbf16>, vector<8x32xf32> -> vector<8x32xf32>
    %c0_50 = arith.constant 0 : index
    %c0_51 = arith.constant 0 : index
    %157 = vector.load %arg8[%c0_50, %c0_51] : memref<1x32xf32, #tpu.memory_space<vmem>>, vector<1x32xf32>
    %158 = vector.broadcast %157 : vector<1x32xf32> to vector<8x32xf32>
    %159 = arith.addf %156, %158 : vector<8x32xf32>
    %160 = arith.truncf %5 : vector<8x32xf32> to vector<8x32xbf16>
    %c0_52 = arith.constant 0 : index
    %c0_53 = arith.constant 0 : index
    %161 = vector.load %arg9[%c0_52, %c0_53] : memref<32x64xbf16, #tpu.memory_space<vmem>>, vector<32x64xbf16>
    %cst_54 = arith.constant dense<0.000000e+00> : vector<8x64xf32>
    %162 = tpu.matmul %160, %161, %cst_54 {dimension_numbers = #tpu.dot_dimension_numbers<[1], [0], [0], [1], [0, 0, 1, 1], [], []>} : vector<8x32xbf16>, vector<32x64xbf16>, vector<8x64xf32> -> vector<8x64xf32>
    %c0_55 = arith.constant 0 : index
    %c0_56 = arith.constant 0 : index
    %163 = vector.load %arg10[%c0_55, %c0_56] : memref<1x64xf32, #tpu.memory_space<vmem>>, vector<1x64xf32>
    %164 = vector.broadcast %163 : vector<1x64xf32> to vector<8x64xf32>
    %165 = arith.addf %162, %164 : vector<8x64xf32>
    %166 = vector.extract_strided_slice %159 {offsets = [0, 0], sizes = [8, 8], strides = [1, 1]} : vector<8x32xf32> to vector<8x8xf32>
    %167 = vector.shape_cast %166 : vector<8x8xf32> to vector<1x8x8xf32>
    %168 = arith.truncf %167 : vector<1x8x8xf32> to vector<1x8x8xbf16>
    %169 = vector.extract_strided_slice %165 {offsets = [0, 0], sizes = [8, 8], strides = [1, 1]} : vector<8x64xf32> to vector<8x8xf32>
    %170 = vector.shape_cast %169 : vector<8x8xf32> to vector<1x8x8xf32>
    %171 = arith.truncf %170 : vector<1x8x8xf32> to vector<1x8x8xbf16>
    %172 = vector.extract_strided_slice %165 {offsets = [0, 32], sizes = [8, 8], strides = [1, 1]} : vector<8x64xf32> to vector<8x8xf32>
    %173 = vector.shape_cast %172 : vector<8x8xf32> to vector<1x8x8xf32>
    %174 = arith.truncf %173 : vector<1x8x8xf32> to vector<1x8x8xbf16>
    "tpu.trace_start"() <{level = 10 : i32, message = "bqd,bkd->bqk"}> : () -> ()
    %cst_57 = arith.constant dense<0.000000e+00> : vector<1x8x8xf32>
    %175 = tpu.matmul %168, %171, %cst_57 {dimension_numbers = #tpu.dot_dimension_numbers<[2], [2], [1], [1], [0, 0, 0, 1, 1, 1], [0], [0]>} : vector<1x8x8xbf16>, vector<1x8x8xbf16>, vector<1x8x8xf32> -> vector<1x8x8xf32>
    "tpu.trace_stop"() : () -> ()
    %cst_58 = arith.constant 0.353553385 : f32
    %176 = vector.broadcast %cst_58 : f32 to vector<1x8x8xf32>
    %177 = arith.mulf %175, %176 : vector<1x8x8xf32>
    %cst_59 = arith.constant dense<0xFF800000> : vector<1x8xf32>
    %178 = vector.multi_reduction <maximumf>, %177, %cst_59 [2] : vector<1x8x8xf32> to vector<1x8xf32>
    %179 = vector.shape_cast %178 : vector<1x8xf32> to vector<1x8x1xf32>
    %180 = vector.broadcast %179 : vector<1x8x1xf32> to vector<1x8x8xf32>
    %181 = arith.subf %177, %180 : vector<1x8x8xf32>
    %182 = math.exp %181 : vector<1x8x8xf32>
    %cst_60 = arith.constant dense<0.000000e+00> : vector<1x8xf32>
    %183 = vector.multi_reduction <add>, %182, %cst_60 [2] : vector<1x8x8xf32> to vector<1x8xf32>
    %184 = vector.shape_cast %183 : vector<1x8xf32> to vector<1x8x1xf32>
    %185 = tpu.reciprocal %184 {approx = true} : vector<1x8x1xf32> -> vector<1x8x1xf32>
    %186 = vector.broadcast %185 : vector<1x8x1xf32> to vector<1x8x8xf32>
    %187 = arith.mulf %182, %186 : vector<1x8x8xf32>
    %188 = arith.truncf %187 : vector<1x8x8xf32> to vector<1x8x8xbf16>
    "tpu.trace_start"() <{level = 10 : i32, message = "bqk,bkd->bqd"}> : () -> ()
    %cst_61 = arith.constant dense<0.000000e+00> : vector<1x8x8xf32>
    %189 = tpu.matmul %188, %174, %cst_61 {dimension_numbers = #tpu.dot_dimension_numbers<[2], [1], [1], [2], [0, 0, 0, 1, 1, 2], [0], [0]>} : vector<1x8x8xbf16>, vector<1x8x8xbf16>, vector<1x8x8xf32> -> vector<1x8x8xf32>
    "tpu.trace_stop"() : () -> ()
    %190 = vector.extract_strided_slice %159 {offsets = [0, 8], sizes = [8, 8], strides = [1, 1]} : vector<8x32xf32> to vector<8x8xf32>
    %191 = vector.shape_cast %190 : vector<8x8xf32> to vector<1x8x8xf32>
    %192 = arith.truncf %191 : vector<1x8x8xf32> to vector<1x8x8xbf16>
    %193 = vector.extract_strided_slice %165 {offsets = [0, 8], sizes = [8, 8], strides = [1, 1]} : vector<8x64xf32> to vector<8x8xf32>
    %194 = vector.shape_cast %193 : vector<8x8xf32> to vector<1x8x8xf32>
    %195 = arith.truncf %194 : vector<1x8x8xf32> to vector<1x8x8xbf16>
    %196 = vector.extract_strided_slice %165 {offsets = [0, 40], sizes = [8, 8], strides = [1, 1]} : vector<8x64xf32> to vector<8x8xf32>
    %197 = vector.shape_cast %196 : vector<8x8xf32> to vector<1x8x8xf32>
    %198 = arith.truncf %197 : vector<1x8x8xf32> to vector<1x8x8xbf16>
    "tpu.trace_start"() <{level = 10 : i32, message = "bqd,bkd->bqk"}> : () -> ()
    %cst_62 = arith.constant dense<0.000000e+00> : vector<1x8x8xf32>
    %199 = tpu.matmul %192, %195, %cst_62 {dimension_numbers = #tpu.dot_dimension_numbers<[2], [2], [1], [1], [0, 0, 0, 1, 1, 1], [0], [0]>} : vector<1x8x8xbf16>, vector<1x8x8xbf16>, vector<1x8x8xf32> -> vector<1x8x8xf32>
    "tpu.trace_stop"() : () -> ()
    %cst_63 = arith.constant 0.353553385 : f32
    %200 = vector.broadcast %cst_63 : f32 to vector<1x8x8xf32>
    %201 = arith.mulf %199, %200 : vector<1x8x8xf32>
    %cst_64 = arith.constant dense<0xFF800000> : vector<1x8xf32>
    %202 = vector.multi_reduction <maximumf>, %201, %cst_64 [2] : vector<1x8x8xf32> to vector<1x8xf32>
    %203 = vector.shape_cast %202 : vector<1x8xf32> to vector<1x8x1xf32>
    %204 = vector.broadcast %203 : vector<1x8x1xf32> to vector<1x8x8xf32>
    %205 = arith.subf %201, %204 : vector<1x8x8xf32>
    %206 = math.exp %205 : vector<1x8x8xf32>
    %cst_65 = arith.constant dense<0.000000e+00> : vector<1x8xf32>
    %207 = vector.multi_reduction <add>, %206, %cst_65 [2] : vector<1x8x8xf32> to vector<1x8xf32>
    %208 = vector.shape_cast %207 : vector<1x8xf32> to vector<1x8x1xf32>
    %209 = tpu.reciprocal %208 {approx = true} : vector<1x8x1xf32> -> vector<1x8x1xf32>
    %210 = vector.broadcast %209 : vector<1x8x1xf32> to vector<1x8x8xf32>
    %211 = arith.mulf %206, %210 : vector<1x8x8xf32>
    %212 = arith.truncf %211 : vector<1x8x8xf32> to vector<1x8x8xbf16>
    "tpu.trace_start"() <{level = 10 : i32, message = "bqk,bkd->bqd"}> : () -> ()
    %cst_66 = arith.constant dense<0.000000e+00> : vector<1x8x8xf32>
    %213 = tpu.matmul %212, %198, %cst_66 {dimension_numbers = #tpu.dot_dimension_numbers<[2], [1], [1], [2], [0, 0, 0, 1, 1, 2], [0], [0]>} : vector<1x8x8xbf16>, vector<1x8x8xbf16>, vector<1x8x8xf32> -> vector<1x8x8xf32>
    "tpu.trace_stop"() : () -> ()
    %214 = vector.extract_strided_slice %159 {offsets = [0, 16], sizes = [8, 8], strides = [1, 1]} : vector<8x32xf32> to vector<8x8xf32>
    %215 = vector.shape_cast %214 : vector<8x8xf32> to vector<1x8x8xf32>
    %216 = arith.truncf %215 : vector<1x8x8xf32> to vector<1x8x8xbf16>
    %217 = vector.extract_strided_slice %165 {offsets = [0, 16], sizes = [8, 8], strides = [1, 1]} : vector<8x64xf32> to vector<8x8xf32>
    %218 = vector.shape_cast %217 : vector<8x8xf32> to vector<1x8x8xf32>
    %219 = arith.truncf %218 : vector<1x8x8xf32> to vector<1x8x8xbf16>
    %220 = vector.extract_strided_slice %165 {offsets = [0, 48], sizes = [8, 8], strides = [1, 1]} : vector<8x64xf32> to vector<8x8xf32>
    %221 = vector.shape_cast %220 : vector<8x8xf32> to vector<1x8x8xf32>
    %222 = arith.truncf %221 : vector<1x8x8xf32> to vector<1x8x8xbf16>
    "tpu.trace_start"() <{level = 10 : i32, message = "bqd,bkd->bqk"}> : () -> ()
    %cst_67 = arith.constant dense<0.000000e+00> : vector<1x8x8xf32>
    %223 = tpu.matmul %216, %219, %cst_67 {dimension_numbers = #tpu.dot_dimension_numbers<[2], [2], [1], [1], [0, 0, 0, 1, 1, 1], [0], [0]>} : vector<1x8x8xbf16>, vector<1x8x8xbf16>, vector<1x8x8xf32> -> vector<1x8x8xf32>
    "tpu.trace_stop"() : () -> ()
    %cst_68 = arith.constant 0.353553385 : f32
    %224 = vector.broadcast %cst_68 : f32 to vector<1x8x8xf32>
    %225 = arith.mulf %223, %224 : vector<1x8x8xf32>
    %cst_69 = arith.constant dense<0xFF800000> : vector<1x8xf32>
    %226 = vector.multi_reduction <maximumf>, %225, %cst_69 [2] : vector<1x8x8xf32> to vector<1x8xf32>
    %227 = vector.shape_cast %226 : vector<1x8xf32> to vector<1x8x1xf32>
    %228 = vector.broadcast %227 : vector<1x8x1xf32> to vector<1x8x8xf32>
    %229 = arith.subf %225, %228 : vector<1x8x8xf32>
    %230 = math.exp %229 : vector<1x8x8xf32>
    %cst_70 = arith.constant dense<0.000000e+00> : vector<1x8xf32>
    %231 = vector.multi_reduction <add>, %230, %cst_70 [2] : vector<1x8x8xf32> to vector<1x8xf32>
    %232 = vector.shape_cast %231 : vector<1x8xf32> to vector<1x8x1xf32>
    %233 = tpu.reciprocal %232 {approx = true} : vector<1x8x1xf32> -> vector<1x8x1xf32>
    %234 = vector.broadcast %233 : vector<1x8x1xf32> to vector<1x8x8xf32>
    %235 = arith.mulf %230, %234 : vector<1x8x8xf32>
    %236 = arith.truncf %235 : vector<1x8x8xf32> to vector<1x8x8xbf16>
    "tpu.trace_start"() <{level = 10 : i32, message = "bqk,bkd->bqd"}> : () -> ()
    %cst_71 = arith.constant dense<0.000000e+00> : vector<1x8x8xf32>
    %237 = tpu.matmul %236, %222, %cst_71 {dimension_numbers = #tpu.dot_dimension_numbers<[2], [1], [1], [2], [0, 0, 0, 1, 1, 2], [0], [0]>} : vector<1x8x8xbf16>, vector<1x8x8xbf16>, vector<1x8x8xf32> -> vector<1x8x8xf32>
    "tpu.trace_stop"() : () -> ()
    %238 = vector.extract_strided_slice %159 {offsets = [0, 24], sizes = [8, 8], strides = [1, 1]} : vector<8x32xf32> to vector<8x8xf32>
    %239 = vector.shape_cast %238 : vector<8x8xf32> to vector<1x8x8xf32>
    %240 = arith.truncf %239 : vector<1x8x8xf32> to vector<1x8x8xbf16>
    %241 = vector.extract_strided_slice %165 {offsets = [0, 24], sizes = [8, 8], strides = [1, 1]} : vector<8x64xf32> to vector<8x8xf32>
    %242 = vector.shape_cast %241 : vector<8x8xf32> to vector<1x8x8xf32>
    %243 = arith.truncf %242 : vector<1x8x8xf32> to vector<1x8x8xbf16>
    %244 = vector.extract_strided_slice %165 {offsets = [0, 56], sizes = [8, 8], strides = [1, 1]} : vector<8x64xf32> to vector<8x8xf32>
    %245 = vector.shape_cast %244 : vector<8x8xf32> to vector<1x8x8xf32>
    %246 = arith.truncf %245 : vector<1x8x8xf32> to vector<1x8x8xbf16>
    "tpu.trace_start"() <{level = 10 : i32, message = "bqd,bkd->bqk"}> : () -> ()
    %cst_72 = arith.constant dense<0.000000e+00> : vector<1x8x8xf32>
    %247 = tpu.matmul %240, %243, %cst_72 {dimension_numbers = #tpu.dot_dimension_numbers<[2], [2], [1], [1], [0, 0, 0, 1, 1, 1], [0], [0]>} : vector<1x8x8xbf16>, vector<1x8x8xbf16>, vector<1x8x8xf32> -> vector<1x8x8xf32>
    "tpu.trace_stop"() : () -> ()
    %cst_73 = arith.constant 0.353553385 : f32
    %248 = vector.broadcast %cst_73 : f32 to vector<1x8x8xf32>
    %249 = arith.mulf %247, %248 : vector<1x8x8xf32>
    %cst_74 = arith.constant dense<0xFF800000> : vector<1x8xf32>
    %250 = vector.multi_reduction <maximumf>, %249, %cst_74 [2] : vector<1x8x8xf32> to vector<1x8xf32>
    %251 = vector.shape_cast %250 : vector<1x8xf32> to vector<1x8x1xf32>
    %252 = vector.broadcast %251 : vector<1x8x1xf32> to vector<1x8x8xf32>
    %253 = arith.subf %249, %252 : vector<1x8x8xf32>
    %254 = math.exp %253 : vector<1x8x8xf32>
    %cst_75 = arith.constant dense<0.000000e+00> : vector<1x8xf32>
    %255 = vector.multi_reduction <add>, %254, %cst_75 [2] : vector<1x8x8xf32> to vector<1x8xf32>
    %256 = vector.shape_cast %255 : vector<1x8xf32> to vector<1x8x1xf32>
    %257 = tpu.reciprocal %256 {approx = true} : vector<1x8x1xf32> -> vector<1x8x1xf32>
    %258 = vector.broadcast %257 : vector<1x8x1xf32> to vector<1x8x8xf32>
    %259 = arith.mulf %254, %258 : vector<1x8x8xf32>
    %260 = arith.truncf %259 : vector<1x8x8xf32> to vector<1x8x8xbf16>
    "tpu.trace_start"() <{level = 10 : i32, message = "bqk,bkd->bqd"}> : () -> ()
    %cst_76 = arith.constant dense<0.000000e+00> : vector<1x8x8xf32>
    %261 = tpu.matmul %260, %246, %cst_76 {dimension_numbers = #tpu.dot_dimension_numbers<[2], [1], [1], [2], [0, 0, 0, 1, 1, 2], [0], [0]>} : vector<1x8x8xbf16>, vector<1x8x8xbf16>, vector<1x8x8xf32> -> vector<1x8x8xf32>
    "tpu.trace_stop"() : () -> ()
    %262 = tpu.concatenate %189, %213, %237, %261 in 2 : vector<1x8x8xf32>, vector<1x8x8xf32>, vector<1x8x8xf32>, vector<1x8x8xf32> -> vector<1x8x32xf32>
    %263 = vector.shape_cast %262 : vector<1x8x32xf32> to vector<8x32xf32>
    %264 = arith.truncf %263 : vector<8x32xf32> to vector<8x32xbf16>
    %c0_77 = arith.constant 0 : index
    %c0_78 = arith.constant 0 : index
    %265 = vector.load %arg11[%c0_77, %c0_78] : memref<32x32xbf16, #tpu.memory_space<vmem>>, vector<32x32xbf16>
    %cst_79 = arith.constant dense<0.000000e+00> : vector<8x32xf32>
    %266 = tpu.matmul %264, %265, %cst_79 {dimension_numbers = #tpu.dot_dimension_numbers<[1], [0], [0], [1], [0, 0, 1, 1], [], []>} : vector<8x32xbf16>, vector<32x32xbf16>, vector<8x32xf32> -> vector<8x32xf32>
    %c0_80 = arith.constant 0 : index
    %c0_81 = arith.constant 0 : index
    %267 = vector.load %arg12[%c0_80, %c0_81] : memref<1x32xf32, #tpu.memory_space<vmem>>, vector<1x32xf32>
    %268 = vector.broadcast %267 : vector<1x32xf32> to vector<8x32xf32>
    %269 = arith.addf %266, %268 : vector<8x32xf32>
    %270 = arith.addf %153, %269 : vector<8x32xf32>
    %cst_82 = arith.constant dense<0.000000e+00> : vector<8xf32>
    %271 = vector.multi_reduction <add>, %270, %cst_82 [1] : vector<8x32xf32> to vector<8xf32>
    %272 = vector.shape_cast %271 : vector<8xf32> to vector<8x1xf32>
    %cst_83 = arith.constant 3.200000e+01 : f32
    %273 = vector.broadcast %cst_83 : f32 to vector<8x1xf32>
    %274 = arith.divf %272, %273 : vector<8x1xf32>
    %275 = vector.broadcast %274 : vector<8x1xf32> to vector<8x32xf32>
    %276 = arith.subf %270, %275 : vector<8x32xf32>
    %277 = arith.mulf %276, %276 : vector<8x32xf32>
    %cst_84 = arith.constant dense<0.000000e+00> : vector<8xf32>
    %278 = vector.multi_reduction <add>, %277, %cst_84 [1] : vector<8x32xf32> to vector<8xf32>
    %279 = vector.shape_cast %278 : vector<8xf32> to vector<8x1xf32>
    %cst_85 = arith.constant 3.200000e+01 : f32
    %280 = vector.broadcast %cst_85 : f32 to vector<8x1xf32>
    %281 = arith.divf %279, %280 : vector<8x1xf32>
    %cst_86 = arith.constant 9.99999974E-6 : f32
    %282 = vector.broadcast %cst_86 : f32 to vector<8x1xf32>
    %283 = arith.addf %281, %282 : vector<8x1xf32>
    %284 = math.rsqrt %283 : vector<8x1xf32>
    %285 = vector.broadcast %284 : vector<8x1xf32> to vector<8x32xf32>
    %286 = arith.mulf %276, %285 : vector<8x32xf32>
    %c0_87 = arith.constant 0 : index
    %c0_88 = arith.constant 0 : index
    %287 = vector.load %arg19[%c0_87, %c0_88] : memref<1x32xf32, #tpu.memory_space<vmem>>, vector<1x32xf32>
    %288 = vector.broadcast %287 : vector<1x32xf32> to vector<8x32xf32>
    %289 = arith.mulf %286, %288 : vector<8x32xf32>
    %c0_89 = arith.constant 0 : index
    %c0_90 = arith.constant 0 : index
    %290 = vector.load %arg20[%c0_89, %c0_90] : memref<1x32xf32, #tpu.memory_space<vmem>>, vector<1x32xf32>
    %291 = vector.broadcast %290 : vector<1x32xf32> to vector<8x32xf32>
    %292 = arith.addf %289, %291 : vector<8x32xf32>
    %293 = arith.truncf %292 : vector<8x32xf32> to vector<8x32xbf16>
    %c0_91 = arith.constant 0 : index
    %c0_92 = arith.constant 0 : index
    %294 = vector.load %arg13[%c0_91, %c0_92] : memref<32x64xbf16, #tpu.memory_space<vmem>>, vector<32x64xbf16>
    %cst_93 = arith.constant dense<0.000000e+00> : vector<8x64xf32>
    %295 = tpu.matmul %293, %294, %cst_93 {dimension_numbers = #tpu.dot_dimension_numbers<[1], [0], [0], [1], [0, 0, 1, 1], [], []>} : vector<8x32xbf16>, vector<32x64xbf16>, vector<8x64xf32> -> vector<8x64xf32>
    %c0_94 = arith.constant 0 : index
    %c0_95 = arith.constant 0 : index
    %296 = vector.load %arg14[%c0_94, %c0_95] : memref<1x64xf32, #tpu.memory_space<vmem>>, vector<1x64xf32>
    %297 = vector.broadcast %296 : vector<1x64xf32> to vector<8x64xf32>
    %298 = arith.addf %295, %297 : vector<8x64xf32>
    %cst_96 = arith.constant 0.000000e+00 : f32
    %299 = vector.broadcast %cst_96 : f32 to vector<8x64xf32>
    %300 = arith.maximumf %298, %299 : vector<8x64xf32>
    %301 = arith.truncf %300 : vector<8x64xf32> to vector<8x64xbf16>
    %c0_97 = arith.constant 0 : index
    %c0_98 = arith.constant 0 : index
    %302 = vector.load %arg15[%c0_97, %c0_98] : memref<64x32xbf16, #tpu.memory_space<vmem>>, vector<64x32xbf16>
    %cst_99 = arith.constant dense<0.000000e+00> : vector<8x32xf32>
    %303 = tpu.matmul %301, %302, %cst_99 {dimension_numbers = #tpu.dot_dimension_numbers<[1], [0], [0], [1], [0, 0, 1, 1], [], []>} : vector<8x64xbf16>, vector<64x32xbf16>, vector<8x32xf32> -> vector<8x32xf32>
    %c0_100 = arith.constant 0 : index
    %c0_101 = arith.constant 0 : index
    %304 = vector.load %arg16[%c0_100, %c0_101] : memref<1x32xf32, #tpu.memory_space<vmem>>, vector<1x32xf32>
    %305 = vector.broadcast %304 : vector<1x32xf32> to vector<8x32xf32>
    %306 = arith.addf %303, %305 : vector<8x32xf32>
    %307 = arith.addf %292, %306 : vector<8x32xf32>
    %cst_102 = arith.constant dense<0.000000e+00> : vector<8xf32>
    %308 = vector.multi_reduction <add>, %307, %cst_102 [1] : vector<8x32xf32> to vector<8xf32>
    %309 = vector.shape_cast %308 : vector<8xf32> to vector<8x1xf32>
    %cst_103 = arith.constant 3.200000e+01 : f32
    %310 = vector.broadcast %cst_103 : f32 to vector<8x1xf32>
    %311 = arith.divf %309, %310 : vector<8x1xf32>
    %312 = vector.broadcast %311 : vector<8x1xf32> to vector<8x32xf32>
    %313 = arith.subf %307, %312 : vector<8x32xf32>
    %314 = arith.mulf %313, %313 : vector<8x32xf32>
    %cst_104 = arith.constant dense<0.000000e+00> : vector<8xf32>
    %315 = vector.multi_reduction <add>, %314, %cst_104 [1] : vector<8x32xf32> to vector<8xf32>
    %316 = vector.shape_cast %315 : vector<8xf32> to vector<8x1xf32>
    %cst_105 = arith.constant 3.200000e+01 : f32
    %317 = vector.broadcast %cst_105 : f32 to vector<8x1xf32>
    %318 = arith.divf %316, %317 : vector<8x1xf32>
    %cst_106 = arith.constant 9.99999974E-6 : f32
    %319 = vector.broadcast %cst_106 : f32 to vector<8x1xf32>
    %320 = arith.addf %318, %319 : vector<8x1xf32>
    %321 = math.rsqrt %320 : vector<8x1xf32>
    %322 = vector.broadcast %321 : vector<8x1xf32> to vector<8x32xf32>
    %323 = arith.mulf %313, %322 : vector<8x32xf32>
    %c0_107 = arith.constant 0 : index
    %c0_108 = arith.constant 0 : index
    %324 = vector.load %arg21[%c0_107, %c0_108] : memref<1x32xf32, #tpu.memory_space<vmem>>, vector<1x32xf32>
    %325 = vector.broadcast %324 : vector<1x32xf32> to vector<8x32xf32>
    %326 = arith.mulf %323, %325 : vector<8x32xf32>
    %c0_109 = arith.constant 0 : index
    %c0_110 = arith.constant 0 : index
    %327 = vector.load %arg22[%c0_109, %c0_110] : memref<1x32xf32, #tpu.memory_space<vmem>>, vector<1x32xf32>
    %328 = vector.broadcast %327 : vector<1x32xf32> to vector<8x32xf32>
    %329 = arith.addf %326, %328 : vector<8x32xf32>
    %330 = arith.truncf %329 : vector<8x32xf32> to vector<8x32xbf16>
    %331 = vector.shape_cast %330 : vector<8x32xbf16> to vector<1x8x32xbf16>
    %c0_111 = arith.constant 0 : index
    %c0_112 = arith.constant 0 : index
    %c0_113 = arith.constant 0 : index
    %332 = vector.load %arg23[%c0_111, %c0_112, %c0_113] : memref<1x8x32xbf16, #tpu.memory_space<vmem>>, vector<1x8x32xbf16>
    tpu.vector_store %arg23[%c0_111, %c0_112, %c0_113], %331 {strides = array<i32>} : memref<1x8x32xbf16, #tpu.memory_space<vmem>>, vector<1x8x32xbf16>,
    return
  }
  func.func @transform_0(%arg0: i32) -> (i32, i32, i32) {
    %c0_i32 = arith.constant 0 : i32
    %c0_i32_0 = arith.constant 0 : i32
    %c0_i32_1 = arith.constant 0 : i32
    return %arg0, %c0_i32, %c0_i32_0 : i32, i32, i32
  }
  func.func @transform_1(%arg0: i32) -> (i32, i32, i32) {
    %c0_i32 = arith.constant 0 : i32
    %c0_i32_0 = arith.constant 0 : i32
    %c0_i32_1 = arith.constant 0 : i32
    return %arg0, %c0_i32, %c0_i32_0 : i32, i32, i32
  }
  func.func @transform_2(%arg0: i32) -> (i32, i32) {
    %c0_i32 = arith.constant 0 : i32
    %c0_i32_0 = arith.constant 0 : i32
    %c0_i32_1 = arith.constant 0 : i32
    return %c0_i32, %c0_i32_0 : i32, i32
  }
  func.func @transform_3(%arg0: i32) -> (i32, i32) {
    %c0_i32 = arith.constant 0 : i32
    %c0_i32_0 = arith.constant 0 : i32
    %c0_i32_1 = arith.constant 0 : i32
    return %c0_i32, %c0_i32_0 : i32, i32
  }
  func.func @transform_4(%arg0: i32) -> (i32, i32) {
    %c0_i32 = arith.constant 0 : i32
    %c0_i32_0 = arith.constant 0 : i32
    %c0_i32_1 = arith.constant 0 : i32
    return %c0_i32, %c0_i32_0 : i32, i32
  }
  func.func @transform_5(%arg0: i32) -> (i32, i32) {
    %c0_i32 = arith.constant 0 : i32
    %c0_i32_0 = arith.constant 0 : i32
    %c0_i32_1 = arith.constant 0 : i32
    return %c0_i32, %c0_i32_0 : i32, i32
  }
  func.func @transform_6(%arg0: i32) -> (i32, i32) {
    %c0_i32 = arith.constant 0 : i32
    %c0_i32_0 = arith.constant 0 : i32
    %c0_i32_1 = arith.constant 0 : i32
    return %c0_i32, %c0_i32_0 : i32, i32
  }
  func.func @transform_7(%arg0: i32) -> (i32, i32) {
    %c0_i32 = arith.constant 0 : i32
    %c0_i32_0 = arith.constant 0 : i32
    %c0_i32_1 = arith.constant 0 : i32
    return %c0_i32, %c0_i32_0 : i32, i32
  }
  func.func @transform_8(%arg0: i32) -> (i32, i32) {
    %c0_i32 = arith.constant 0 : i32
    %c0_i32_0 = arith.constant 0 : i32
    %c0_i32_1 = arith.constant 0 : i32
    return %c0_i32, %c0_i32_0 : i32, i32
  }
  func.func @transform_9(%arg0: i32) -> (i32, i32) {
    %c0_i32 = arith.constant 0 : i32
    %c0_i32_0 = arith.constant 0 : i32
    %c0_i32_1 = arith.constant 0 : i32
    return %c0_i32, %c0_i32_0 : i32, i32
  }
  func.func @transform_10(%arg0: i32) -> (i32, i32) {
    %c0_i32 = arith.constant 0 : i32
    %c0_i32_0 = arith.constant 0 : i32
    %c0_i32_1 = arith.constant 0 : i32
    return %c0_i32, %c0_i32_0 : i32, i32
  }
  func.func @transform_11(%arg0: i32) -> (i32, i32) {
    %c0_i32 = arith.constant 0 : i32
    %c0_i32_0 = arith.constant 0 : i32
    %c0_i32_1 = arith.constant 0 : i32
    return %c0_i32, %c0_i32_0 : i32, i32
  }
  func.func @transform_12(%arg0: i32) -> (i32, i32) {
    %c0_i32 = arith.constant 0 : i32
    %c0_i32_0 = arith.constant 0 : i32
    %c0_i32_1 = arith.constant 0 : i32
    return %c0_i32, %c0_i32_0 : i32, i32
  }
  func.func @transform_13(%arg0: i32) -> (i32, i32) {
    %c0_i32 = arith.constant 0 : i32
    %c0_i32_0 = arith.constant 0 : i32
    %c0_i32_1 = arith.constant 0 : i32
    return %c0_i32, %c0_i32_0 : i32, i32
  }
  func.func @transform_14(%arg0: i32) -> (i32, i32) {
    %c0_i32 = arith.constant 0 : i32
    %c0_i32_0 = arith.constant 0 : i32
    %c0_i32_1 = arith.constant 0 : i32
    return %c0_i32, %c0_i32_0 : i32, i32
  }
  func.func @transform_15(%arg0: i32) -> (i32, i32) {
    %c0_i32 = arith.constant 0 : i32
    %c0_i32_0 = arith.constant 0 : i32
    %c0_i32_1 = arith.constant 0 : i32
    return %c0_i32, %c0_i32_0 : i32, i32
  }
  func.func @transform_16(%arg0: i32) -> (i32, i32) {
    %c0_i32 = arith.constant 0 : i32
    %c0_i32_0 = arith.constant 0 : i32
    %c0_i32_1 = arith.constant 0 : i32
    return %c0_i32, %c0_i32_0 : i32, i32
  }
  func.func @transform_17(%arg0: i32) -> (i32, i32) {
    %c0_i32 = arith.constant 0 : i32
    %c0_i32_0 = arith.constant 0 : i32
    %c0_i32_1 = arith.constant 0 : i32
    return %c0_i32, %c0_i32_0 : i32, i32
  }
  func.func @transform_18(%arg0: i32) -> (i32, i32) {
    %c0_i32 = arith.constant 0 : i32
    %c0_i32_0 = arith.constant 0 : i32
    %c0_i32_1 = arith.constant 0 : i32
    return %c0_i32, %c0_i32_0 : i32, i32
  }
  func.func @transform_19(%arg0: i32) -> (i32, i32) {
    %c0_i32 = arith.constant 0 : i32
    %c0_i32_0 = arith.constant 0 : i32
    %c0_i32_1 = arith.constant 0 : i32
    return %c0_i32, %c0_i32_0 : i32, i32
  }
  func.func @transform_20(%arg0: i32) -> (i32, i32) {
    %c0_i32 = arith.constant 0 : i32
    %c0_i32_0 = arith.constant 0 : i32
    %c0_i32_1 = arith.constant 0 : i32
    return %c0_i32, %c0_i32_0 : i32, i32
  }
  func.func @transform_21(%arg0: i32) -> (i32, i32) {
    %c0_i32 = arith.constant 0 : i32
    %c0_i32_0 = arith.constant 0 : i32
    %c0_i32_1 = arith.constant 0 : i32
    return %c0_i32, %c0_i32_0 : i32, i32
  }
  func.func @transform_22(%arg0: i32) -> (i32, i32, i32) {
    %c0_i32 = arith.constant 0 : i32
    %c0_i32_0 = arith.constant 0 : i32
    %c0_i32_1 = arith.constant 0 : i32
    return %arg0, %c0_i32, %c0_i32_0 : i32, i32, i32
  }
}

module attributes {stable_mosaic.version = 11 : i64} {
  func.func @_decoder_block_kernel(%arg0: i32, %arg1: memref<1x8x32xbf16, #tpu.memory_space<vmem>>, %arg2: memref<1x16x32xbf16, #tpu.memory_space<vmem>>, %arg3: memref<32x96xbf16, #tpu.memory_space<vmem>>, %arg4: memref<1x96xf32, #tpu.memory_space<vmem>>, %arg5: memref<32x32xbf16, #tpu.memory_space<vmem>>, %arg6: memref<1x32xf32, #tpu.memory_space<vmem>>, %arg7: memref<32x32xbf16, #tpu.memory_space<vmem>>, %arg8: memref<1x32xf32, #tpu.memory_space<vmem>>, %arg9: memref<32x64xbf16, #tpu.memory_space<vmem>>, %arg10: memref<1x64xf32, #tpu.memory_space<vmem>>, %arg11: memref<32x32xbf16, #tpu.memory_space<vmem>>, %arg12: memref<1x32xf32, #tpu.memory_space<vmem>>, %arg13: memref<32x64xbf16, #tpu.memory_space<vmem>>, %arg14: memref<1x64xf32, #tpu.memory_space<vmem>>, %arg15: memref<64x32xbf16, #tpu.memory_space<vmem>>, %arg16: memref<1x32xf32, #tpu.memory_space<vmem>>, %arg17: memref<1x32xf32, #tpu.memory_space<vmem>>, %arg18: memref<1x32xf32, #tpu.memory_space<vmem>>, %arg19: memref<1x32xf32, #tpu.memory_space<vmem>>, %arg20: memref<1x32xf32, #tpu.memory_space<vmem>>, %arg21: memref<1x32xf32, #tpu.memory_space<vmem>>, %arg22: memref<1x32xf32, #tpu.memory_space<vmem>>, %arg23: memref<1x8x32xf32, #tpu.memory_space<vmem>>) attributes {dimension_semantics = [#tpu.dimension_semantics<parallel>], iteration_bounds = array<i64: 2>, scalar_prefetch = 0 : i64, scratch_operands = 0 : i64, tpu.core_type = #tpu.core_type<tc>, window_params = [{transform_indices = @transform_0, window_bounds = array<i64: 1, 8, 32>}, {transform_indices = @transform_1, window_bounds = array<i64: 1, 16, 32>}, {pipeline_mode = #tpu.pipeline_mode<synchronous>, transform_indices = @transform_2, window_bounds = array<i64: 32, 96>}, {pipeline_mode = #tpu.pipeline_mode<synchronous>, transform_indices = @transform_3, window_bounds = array<i64: 1, 96>}, {pipeline_mode = #tpu.pipeline_mode<synchronous>, transform_indices = @transform_4, window_bounds = array<i64: 32, 32>}, {pipeline_mode = #tpu.pipeline_mode<synchronous>, transform_indices = @transform_5, window_bounds = array<i64: 1, 32>}, {pipeline_mode = #tpu.pipeline_mode<synchronous>, transform_indices = @transform_6, window_bounds = array<i64: 32, 32>}, {pipeline_mode = #tpu.pipeline_mode<synchronous>, transform_indices = @transform_7, window_bounds = array<i64: 1, 32>}, {pipeline_mode = #tpu.pipeline_mode<synchronous>, transform_indices = @transform_8, window_bounds = array<i64: 32, 64>}, {pipeline_mode = #tpu.pipeline_mode<synchronous>, transform_indices = @transform_9, window_bounds = array<i64: 1, 64>}, {pipeline_mode = #tpu.pipeline_mode<synchronous>, transform_indices = @transform_10, window_bounds = array<i64: 32, 32>}, {pipeline_mode = #tpu.pipeline_mode<synchronous>, transform_indices = @transform_11, window_bounds = array<i64: 1, 32>}, {pipeline_mode = #tpu.pipeline_mode<synchronous>, transform_indices = @transform_12, window_bounds = array<i64: 32, 64>}, {pipeline_mode = #tpu.pipeline_mode<synchronous>, transform_indices = @transform_13, window_bounds = array<i64: 1, 64>}, {pipeline_mode = #tpu.pipeline_mode<synchronous>, transform_indices = @transform_14, window_bounds = array<i64: 64, 32>}, {pipeline_mode = #tpu.pipeline_mode<synchronous>, transform_indices = @transform_15, window_bounds = array<i64: 1, 32>}, {pipeline_mode = #tpu.pipeline_mode<synchronous>, transform_indices = @transform_16, window_bounds = array<i64: 1, 32>}, {pipeline_mode = #tpu.pipeline_mode<synchronous>, transform_indices = @transform_17, window_bounds = array<i64: 1, 32>}, {pipeline_mode = #tpu.pipeline_mode<synchronous>, transform_indices = @transform_18, window_bounds = array<i64: 1, 32>}, {pipeline_mode = #tpu.pipeline_mode<synchronous>, transform_indices = @transform_19, window_bounds = array<i64: 1, 32>}, {pipeline_mode = #tpu.pipeline_mode<synchronous>, transform_indices = @transform_20, window_bounds = array<i64: 1, 32>}, {pipeline_mode = #tpu.pipeline_mode<synchronous>, transform_indices = @transform_21, window_bounds = array<i64: 1, 32>}, {transform_indices = @transform_22, window_bounds = array<i64: 1, 8, 32>}]} {
    %c0 = arith.constant 0 : index
    %c0_0 = arith.constant 0 : index
    %c0_1 = arith.constant 0 : index
    %0 = vector.load %arg1[%c0, %c0_0, %c0_1] : memref<1x8x32xbf16, #tpu.memory_space<vmem>>, vector<1x8x32xbf16>
    %1 = arith.extf %0 : vector<1x8x32xbf16> to vector<1x8x32xf32>
    %2 = vector.shape_cast %1 : vector<1x8x32xf32> to vector<8x32xf32>
    %c0_2 = arith.constant 0 : index
    %c0_3 = arith.constant 0 : index
    %c0_4 = arith.constant 0 : index
    %3 = vector.load %arg2[%c0_2, %c0_3, %c0_4] : memref<1x16x32xbf16, #tpu.memory_space<vmem>>, vector<1x16x32xbf16>
    %4 = arith.extf %3 : vector<1x16x32xbf16> to vector<1x16x32xf32>
    %5 = vector.shape_cast %4 : vector<1x16x32xf32> to vector<16x32xf32>
    %6 = arith.truncf %2 : vector<8x32xf32> to vector<8x32xbf16>
    %c0_5 = arith.constant 0 : index
    %c0_6 = arith.constant 0 : index
    %7 = vector.load %arg3[%c0_5, %c0_6] : memref<32x96xbf16, #tpu.memory_space<vmem>>, vector<32x96xbf16>
    %cst = arith.constant dense<0.000000e+00> : vector<8x96xf32>
    %8 = tpu.matmul %6, %7, %cst {dimension_numbers = #tpu.dot_dimension_numbers<[1], [0], [0], [1], [0, 0, 1, 1], [], []>} : vector<8x32xbf16>, vector<32x96xbf16>, vector<8x96xf32> -> vector<8x96xf32>
    %c0_7 = arith.constant 0 : index
    %c0_8 = arith.constant 0 : index
    %9 = vector.load %arg4[%c0_7, %c0_8] : memref<1x96xf32, #tpu.memory_space<vmem>>, vector<1x96xf32>
    %10 = vector.broadcast %9 : vector<1x96xf32> to vector<8x96xf32>
    %11 = arith.addf %8, %10 : vector<8x96xf32>
    %12 = tpu.iota {dimensions = array<i32: 0>} : vector<8x8xi32>
    %13 = tpu.iota {dimensions = array<i32: 1>} : vector<8x8xi32>
    %14 = arith.cmpi sge, %12, %13 : vector<8x8xi32>
    %15 = vector.extract_strided_slice %11 {offsets = [0, 0], sizes = [8, 8], strides = [1, 1]} : vector<8x96xf32> to vector<8x8xf32>
    %16 = vector.shape_cast %15 : vector<8x8xf32> to vector<1x8x8xf32>
    %17 = arith.truncf %16 : vector<1x8x8xf32> to vector<1x8x8xbf16>
    %18 = vector.extract_strided_slice %11 {offsets = [0, 32], sizes = [8, 8], strides = [1, 1]} : vector<8x96xf32> to vector<8x8xf32>
    %19 = vector.shape_cast %18 : vector<8x8xf32> to vector<1x8x8xf32>
    %20 = arith.truncf %19 : vector<1x8x8xf32> to vector<1x8x8xbf16>
    %21 = vector.extract_strided_slice %11 {offsets = [0, 64], sizes = [8, 8], strides = [1, 1]} : vector<8x96xf32> to vector<8x8xf32>
    %22 = vector.shape_cast %21 : vector<8x8xf32> to vector<1x8x8xf32>
    %23 = arith.truncf %22 : vector<1x8x8xf32> to vector<1x8x8xbf16>
    "tpu.trace_start"() <{level = 10 : i32, message = "bqd,bkd->bqk"}> : () -> ()
    %cst_9 = arith.constant dense<0.000000e+00> : vector<1x8x8xf32>
    %24 = tpu.matmul %17, %20, %cst_9 {dimension_numbers = #tpu.dot_dimension_numbers<[2], [2], [1], [1], [0, 0, 0, 1, 1, 1], [0], [0]>} : vector<1x8x8xbf16>, vector<1x8x8xbf16>, vector<1x8x8xf32> -> vector<1x8x8xf32>
    "tpu.trace_stop"() : () -> ()
    %cst_10 = arith.constant 0.353553385 : f32
    %25 = vector.broadcast %cst_10 : f32 to vector<1x8x8xf32>
    %26 = arith.mulf %24, %25 : vector<1x8x8xf32>
    %27 = vector.shape_cast %14 : vector<8x8xi1> to vector<1x8x8xi1>
    %cst_11 = arith.constant -1.000000e+30 : f32
    %28 = vector.broadcast %cst_11 : f32 to vector<1x8x8xf32>
    %29 = arith.select %27, %26, %28 : vector<1x8x8xi1>, vector<1x8x8xf32>
    %cst_12 = arith.constant dense<0xFF800000> : vector<1x8xf32>
    %30 = vector.multi_reduction <maximumf>, %29, %cst_12 [2] : vector<1x8x8xf32> to vector<1x8xf32>
    %31 = vector.shape_cast %30 : vector<1x8xf32> to vector<1x8x1xf32>
    %32 = vector.broadcast %31 : vector<1x8x1xf32> to vector<1x8x8xf32>
    %33 = arith.subf %29, %32 : vector<1x8x8xf32>
    %34 = math.exp %33 : vector<1x8x8xf32>
    %cst_13 = arith.constant dense<0.000000e+00> : vector<1x8xf32>
    %35 = vector.multi_reduction <add>, %34, %cst_13 [2] : vector<1x8x8xf32> to vector<1x8xf32>
    %36 = vector.shape_cast %35 : vector<1x8xf32> to vector<1x8x1xf32>
    %37 = tpu.reciprocal %36 {approx = true} : vector<1x8x1xf32> -> vector<1x8x1xf32>
    %38 = vector.broadcast %37 : vector<1x8x1xf32> to vector<1x8x8xf32>
    %39 = arith.mulf %34, %38 : vector<1x8x8xf32>
    %40 = arith.truncf %39 : vector<1x8x8xf32> to vector<1x8x8xbf16>
    "tpu.trace_start"() <{level = 10 : i32, message = "bqk,bkd->bqd"}> : () -> ()
    %cst_14 = arith.constant dense<0.000000e+00> : vector<1x8x8xf32>
    %41 = tpu.matmul %40, %23, %cst_14 {dimension_numbers = #tpu.dot_dimension_numbers<[2], [1], [1], [2], [0, 0, 0, 1, 1, 2], [0], [0]>} : vector<1x8x8xbf16>, vector<1x8x8xbf16>, vector<1x8x8xf32> -> vector<1x8x8xf32>
    "tpu.trace_stop"() : () -> ()
    %42 = vector.extract_strided_slice %11 {offsets = [0, 8], sizes = [8, 8], strides = [1, 1]} : vector<8x96xf32> to vector<8x8xf32>
    %43 = vector.shape_cast %42 : vector<8x8xf32> to vector<1x8x8xf32>
    %44 = arith.truncf %43 : vector<1x8x8xf32> to vector<1x8x8xbf16>
    %45 = vector.extract_strided_slice %11 {offsets = [0, 40], sizes = [8, 8], strides = [1, 1]} : vector<8x96xf32> to vector<8x8xf32>
    %46 = vector.shape_cast %45 : vector<8x8xf32> to vector<1x8x8xf32>
    %47 = arith.truncf %46 : vector<1x8x8xf32> to vector<1x8x8xbf16>
    %48 = vector.extract_strided_slice %11 {offsets = [0, 72], sizes = [8, 8], strides = [1, 1]} : vector<8x96xf32> to vector<8x8xf32>
    %49 = vector.shape_cast %48 : vector<8x8xf32> to vector<1x8x8xf32>
    %50 = arith.truncf %49 : vector<1x8x8xf32> to vector<1x8x8xbf16>
    "tpu.trace_start"() <{level = 10 : i32, message = "bqd,bkd->bqk"}> : () -> ()
    %cst_15 = arith.constant dense<0.000000e+00> : vector<1x8x8xf32>
    %51 = tpu.matmul %44, %47, %cst_15 {dimension_numbers = #tpu.dot_dimension_numbers<[2], [2], [1], [1], [0, 0, 0, 1, 1, 1], [0], [0]>} : vector<1x8x8xbf16>, vector<1x8x8xbf16>, vector<1x8x8xf32> -> vector<1x8x8xf32>
    "tpu.trace_stop"() : () -> ()
    %cst_16 = arith.constant 0.353553385 : f32
    %52 = vector.broadcast %cst_16 : f32 to vector<1x8x8xf32>
    %53 = arith.mulf %51, %52 : vector<1x8x8xf32>
    %54 = vector.shape_cast %14 : vector<8x8xi1> to vector<1x8x8xi1>
    %cst_17 = arith.constant -1.000000e+30 : f32
    %55 = vector.broadcast %cst_17 : f32 to vector<1x8x8xf32>
    %56 = arith.select %54, %53, %55 : vector<1x8x8xi1>, vector<1x8x8xf32>
    %cst_18 = arith.constant dense<0xFF800000> : vector<1x8xf32>
    %57 = vector.multi_reduction <maximumf>, %56, %cst_18 [2] : vector<1x8x8xf32> to vector<1x8xf32>
    %58 = vector.shape_cast %57 : vector<1x8xf32> to vector<1x8x1xf32>
    %59 = vector.broadcast %58 : vector<1x8x1xf32> to vector<1x8x8xf32>
    %60 = arith.subf %56, %59 : vector<1x8x8xf32>
    %61 = math.exp %60 : vector<1x8x8xf32>
    %cst_19 = arith.constant dense<0.000000e+00> : vector<1x8xf32>
    %62 = vector.multi_reduction <add>, %61, %cst_19 [2] : vector<1x8x8xf32> to vector<1x8xf32>
    %63 = vector.shape_cast %62 : vector<1x8xf32> to vector<1x8x1xf32>
    %64 = tpu.reciprocal %63 {approx = true} : vector<1x8x1xf32> -> vector<1x8x1xf32>
    %65 = vector.broadcast %64 : vector<1x8x1xf32> to vector<1x8x8xf32>
    %66 = arith.mulf %61, %65 : vector<1x8x8xf32>
    %67 = arith.truncf %66 : vector<1x8x8xf32> to vector<1x8x8xbf16>
    "tpu.trace_start"() <{level = 10 : i32, message = "bqk,bkd->bqd"}> : () -> ()
    %cst_20 = arith.constant dense<0.000000e+00> : vector<1x8x8xf32>
    %68 = tpu.matmul %67, %50, %cst_20 {dimension_numbers = #tpu.dot_dimension_numbers<[2], [1], [1], [2], [0, 0, 0, 1, 1, 2], [0], [0]>} : vector<1x8x8xbf16>, vector<1x8x8xbf16>, vector<1x8x8xf32> -> vector<1x8x8xf32>
    "tpu.trace_stop"() : () -> ()
    %69 = vector.extract_strided_slice %11 {offsets = [0, 16], sizes = [8, 8], strides = [1, 1]} : vector<8x96xf32> to vector<8x8xf32>
    %70 = vector.shape_cast %69 : vector<8x8xf32> to vector<1x8x8xf32>
    %71 = arith.truncf %70 : vector<1x8x8xf32> to vector<1x8x8xbf16>
    %72 = vector.extract_strided_slice %11 {offsets = [0, 48], sizes = [8, 8], strides = [1, 1]} : vector<8x96xf32> to vector<8x8xf32>
    %73 = vector.shape_cast %72 : vector<8x8xf32> to vector<1x8x8xf32>
    %74 = arith.truncf %73 : vector<1x8x8xf32> to vector<1x8x8xbf16>
    %75 = vector.extract_strided_slice %11 {offsets = [0, 80], sizes = [8, 8], strides = [1, 1]} : vector<8x96xf32> to vector<8x8xf32>
    %76 = vector.shape_cast %75 : vector<8x8xf32> to vector<1x8x8xf32>
    %77 = arith.truncf %76 : vector<1x8x8xf32> to vector<1x8x8xbf16>
    "tpu.trace_start"() <{level = 10 : i32, message = "bqd,bkd->bqk"}> : () -> ()
    %cst_21 = arith.constant dense<0.000000e+00> : vector<1x8x8xf32>
    %78 = tpu.matmul %71, %74, %cst_21 {dimension_numbers = #tpu.dot_dimension_numbers<[2], [2], [1], [1], [0, 0, 0, 1, 1, 1], [0], [0]>} : vector<1x8x8xbf16>, vector<1x8x8xbf16>, vector<1x8x8xf32> -> vector<1x8x8xf32>
    "tpu.trace_stop"() : () -> ()
    %cst_22 = arith.constant 0.353553385 : f32
    %79 = vector.broadcast %cst_22 : f32 to vector<1x8x8xf32>
    %80 = arith.mulf %78, %79 : vector<1x8x8xf32>
    %81 = vector.shape_cast %14 : vector<8x8xi1> to vector<1x8x8xi1>
    %cst_23 = arith.constant -1.000000e+30 : f32
    %82 = vector.broadcast %cst_23 : f32 to vector<1x8x8xf32>
    %83 = arith.select %81, %80, %82 : vector<1x8x8xi1>, vector<1x8x8xf32>
    %cst_24 = arith.constant dense<0xFF800000> : vector<1x8xf32>
    %84 = vector.multi_reduction <maximumf>, %83, %cst_24 [2] : vector<1x8x8xf32> to vector<1x8xf32>
    %85 = vector.shape_cast %84 : vector<1x8xf32> to vector<1x8x1xf32>
    %86 = vector.broadcast %85 : vector<1x8x1xf32> to vector<1x8x8xf32>
    %87 = arith.subf %83, %86 : vector<1x8x8xf32>
    %88 = math.exp %87 : vector<1x8x8xf32>
    %cst_25 = arith.constant dense<0.000000e+00> : vector<1x8xf32>
    %89 = vector.multi_reduction <add>, %88, %cst_25 [2] : vector<1x8x8xf32> to vector<1x8xf32>
    %90 = vector.shape_cast %89 : vector<1x8xf32> to vector<1x8x1xf32>
    %91 = tpu.reciprocal %90 {approx = true} : vector<1x8x1xf32> -> vector<1x8x1xf32>
    %92 = vector.broadcast %91 : vector<1x8x1xf32> to vector<1x8x8xf32>
    %93 = arith.mulf %88, %92 : vector<1x8x8xf32>
    %94 = arith.truncf %93 : vector<1x8x8xf32> to vector<1x8x8xbf16>
    "tpu.trace_start"() <{level = 10 : i32, message = "bqk,bkd->bqd"}> : () -> ()
    %cst_26 = arith.constant dense<0.000000e+00> : vector<1x8x8xf32>
    %95 = tpu.matmul %94, %77, %cst_26 {dimension_numbers = #tpu.dot_dimension_numbers<[2], [1], [1], [2], [0, 0, 0, 1, 1, 2], [0], [0]>} : vector<1x8x8xbf16>, vector<1x8x8xbf16>, vector<1x8x8xf32> -> vector<1x8x8xf32>
    "tpu.trace_stop"() : () -> ()
    %96 = vector.extract_strided_slice %11 {offsets = [0, 24], sizes = [8, 8], strides = [1, 1]} : vector<8x96xf32> to vector<8x8xf32>
    %97 = vector.shape_cast %96 : vector<8x8xf32> to vector<1x8x8xf32>
    %98 = arith.truncf %97 : vector<1x8x8xf32> to vector<1x8x8xbf16>
    %99 = vector.extract_strided_slice %11 {offsets = [0, 56], sizes = [8, 8], strides = [1, 1]} : vector<8x96xf32> to vector<8x8xf32>
    %100 = vector.shape_cast %99 : vector<8x8xf32> to vector<1x8x8xf32>
    %101 = arith.truncf %100 : vector<1x8x8xf32> to vector<1x8x8xbf16>
    %102 = vector.extract_strided_slice %11 {offsets = [0, 88], sizes = [8, 8], strides = [1, 1]} : vector<8x96xf32> to vector<8x8xf32>
    %103 = vector.shape_cast %102 : vector<8x8xf32> to vector<1x8x8xf32>
    %104 = arith.truncf %103 : vector<1x8x8xf32> to vector<1x8x8xbf16>
    "tpu.trace_start"() <{level = 10 : i32, message = "bqd,bkd->bqk"}> : () -> ()
    %cst_27 = arith.constant dense<0.000000e+00> : vector<1x8x8xf32>
    %105 = tpu.matmul %98, %101, %cst_27 {dimension_numbers = #tpu.dot_dimension_numbers<[2], [2], [1], [1], [0, 0, 0, 1, 1, 1], [0], [0]>} : vector<1x8x8xbf16>, vector<1x8x8xbf16>, vector<1x8x8xf32> -> vector<1x8x8xf32>
    "tpu.trace_stop"() : () -> ()
    %cst_28 = arith.constant 0.353553385 : f32
    %106 = vector.broadcast %cst_28 : f32 to vector<1x8x8xf32>
    %107 = arith.mulf %105, %106 : vector<1x8x8xf32>
    %108 = vector.shape_cast %14 : vector<8x8xi1> to vector<1x8x8xi1>
    %cst_29 = arith.constant -1.000000e+30 : f32
    %109 = vector.broadcast %cst_29 : f32 to vector<1x8x8xf32>
    %110 = arith.select %108, %107, %109 : vector<1x8x8xi1>, vector<1x8x8xf32>
    %cst_30 = arith.constant dense<0xFF800000> : vector<1x8xf32>
    %111 = vector.multi_reduction <maximumf>, %110, %cst_30 [2] : vector<1x8x8xf32> to vector<1x8xf32>
    %112 = vector.shape_cast %111 : vector<1x8xf32> to vector<1x8x1xf32>
    %113 = vector.broadcast %112 : vector<1x8x1xf32> to vector<1x8x8xf32>
    %114 = arith.subf %110, %113 : vector<1x8x8xf32>
    %115 = math.exp %114 : vector<1x8x8xf32>
    %cst_31 = arith.constant dense<0.000000e+00> : vector<1x8xf32>
    %116 = vector.multi_reduction <add>, %115, %cst_31 [2] : vector<1x8x8xf32> to vector<1x8xf32>
    %117 = vector.shape_cast %116 : vector<1x8xf32> to vector<1x8x1xf32>
    %118 = tpu.reciprocal %117 {approx = true} : vector<1x8x1xf32> -> vector<1x8x1xf32>
    %119 = vector.broadcast %118 : vector<1x8x1xf32> to vector<1x8x8xf32>
    %120 = arith.mulf %115, %119 : vector<1x8x8xf32>
    %121 = arith.truncf %120 : vector<1x8x8xf32> to vector<1x8x8xbf16>
    "tpu.trace_start"() <{level = 10 : i32, message = "bqk,bkd->bqd"}> : () -> ()
    %cst_32 = arith.constant dense<0.000000e+00> : vector<1x8x8xf32>
    %122 = tpu.matmul %121, %104, %cst_32 {dimension_numbers = #tpu.dot_dimension_numbers<[2], [1], [1], [2], [0, 0, 0, 1, 1, 2], [0], [0]>} : vector<1x8x8xbf16>, vector<1x8x8xbf16>, vector<1x8x8xf32> -> vector<1x8x8xf32>
    "tpu.trace_stop"() : () -> ()
    %123 = tpu.concatenate %41, %68, %95, %122 in 2 : vector<1x8x8xf32>, vector<1x8x8xf32>, vector<1x8x8xf32>, vector<1x8x8xf32> -> vector<1x8x32xf32>
    %124 = vector.shape_cast %123 : vector<1x8x32xf32> to vector<8x32xf32>
    %125 = arith.truncf %124 : vector<8x32xf32> to vector<8x32xbf16>
    %c0_33 = arith.constant 0 : index
    %c0_34 = arith.constant 0 : index
    %126 = vector.load %arg5[%c0_33, %c0_34] : memref<32x32xbf16, #tpu.memory_space<vmem>>, vector<32x32xbf16>
    %cst_35 = arith.constant dense<0.000000e+00> : vector<8x32xf32>
    %127 = tpu.matmul %125, %126, %cst_35 {dimension_numbers = #tpu.dot_dimension_numbers<[1], [0], [0], [1], [0, 0, 1, 1], [], []>} : vector<8x32xbf16>, vector<32x32xbf16>, vector<8x32xf32> -> vector<8x32xf32>
    %c0_36 = arith.constant 0 : index
    %c0_37 = arith.constant 0 : index
    %128 = vector.load %arg6[%c0_36, %c0_37] : memref<1x32xf32, #tpu.memory_space<vmem>>, vector<1x32xf32>
    %129 = vector.broadcast %128 : vector<1x32xf32> to vector<8x32xf32>
    %130 = arith.addf %127, %129 : vector<8x32xf32>
    %131 = arith.addf %2, %130 : vector<8x32xf32>
    %cst_38 = arith.constant dense<0.000000e+00> : vector<8xf32>
    %132 = vector.multi_reduction <add>, %131, %cst_38 [1] : vector<8x32xf32> to vector<8xf32>
    %133 = vector.shape_cast %132 : vector<8xf32> to vector<8x1xf32>
    %cst_39 = arith.constant 3.200000e+01 : f32
    %134 = vector.broadcast %cst_39 : f32 to vector<8x1xf32>
    %135 = arith.divf %133, %134 : vector<8x1xf32>
    %136 = vector.broadcast %135 : vector<8x1xf32> to vector<8x32xf32>
    %137 = arith.subf %131, %136 : vector<8x32xf32>
    %138 = arith.mulf %137, %137 : vector<8x32xf32>
    %cst_40 = arith.constant dense<0.000000e+00> : vector<8xf32>
    %139 = vector.multi_reduction <add>, %138, %cst_40 [1] : vector<8x32xf32> to vector<8xf32>
    %140 = vector.shape_cast %139 : vector<8xf32> to vector<8x1xf32>
    %cst_41 = arith.constant 3.200000e+01 : f32
    %141 = vector.broadcast %cst_41 : f32 to vector<8x1xf32>
    %142 = arith.divf %140, %141 : vector<8x1xf32>
    %cst_42 = arith.constant 9.99999974E-6 : f32
    %143 = vector.broadcast %cst_42 : f32 to vector<8x1xf32>
    %144 = arith.addf %142, %143 : vector<8x1xf32>
    %145 = math.rsqrt %144 : vector<8x1xf32>
    %146 = vector.broadcast %145 : vector<8x1xf32> to vector<8x32xf32>
    %147 = arith.mulf %137, %146 : vector<8x32xf32>
    %c0_43 = arith.constant 0 : index
    %c0_44 = arith.constant 0 : index
    %148 = vector.load %arg17[%c0_43, %c0_44] : memref<1x32xf32, #tpu.memory_space<vmem>>, vector<1x32xf32>
    %149 = vector.broadcast %148 : vector<1x32xf32> to vector<8x32xf32>
    %150 = arith.mulf %147, %149 : vector<8x32xf32>
    %c0_45 = arith.constant 0 : index
    %c0_46 = arith.constant 0 : index
    %151 = vector.load %arg18[%c0_45, %c0_46] : memref<1x32xf32, #tpu.memory_space<vmem>>, vector<1x32xf32>
    %152 = vector.broadcast %151 : vector<1x32xf32> to vector<8x32xf32>
    %153 = arith.addf %150, %152 : vector<8x32xf32>
    %154 = arith.truncf %153 : vector<8x32xf32> to vector<8x32xbf16>
    %c0_47 = arith.constant 0 : index
    %c0_48 = arith.constant 0 : index
    %155 = vector.load %arg7[%c0_47, %c0_48] : memref<32x32xbf16, #tpu.memory_space<vmem>>, vector<32x32xbf16>
    %cst_49 = arith.constant dense<0.000000e+00> : vector<8x32xf32>
    %156 = tpu.matmul %154, %155, %cst_49 {dimension_numbers = #tpu.dot_dimension_numbers<[1], [0], [0], [1], [0, 0, 1, 1], [], []>} : vector<8x32xbf16>, vector<32x32xbf16>, vector<8x32xf32> -> vector<8x32xf32>
    %c0_50 = arith.constant 0 : index
    %c0_51 = arith.constant 0 : index
    %157 = vector.load %arg8[%c0_50, %c0_51] : memref<1x32xf32, #tpu.memory_space<vmem>>, vector<1x32xf32>
    %158 = vector.broadcast %157 : vector<1x32xf32> to vector<8x32xf32>
    %159 = arith.addf %156, %158 : vector<8x32xf32>
    %160 = arith.truncf %5 : vector<16x32xf32> to vector<16x32xbf16>
    %c0_52 = arith.constant 0 : index
    %c0_53 = arith.constant 0 : index
    %161 = vector.load %arg9[%c0_52, %c0_53] : memref<32x64xbf16, #tpu.memory_space<vmem>>, vector<32x64xbf16>
    %cst_54 = arith.constant dense<0.000000e+00> : vector<16x64xf32>
    %162 = tpu.matmul %160, %161, %cst_54 {dimension_numbers = #tpu.dot_dimension_numbers<[1], [0], [0], [1], [0, 0, 1, 1], [], []>} : vector<16x32xbf16>, vector<32x64xbf16>, vector<16x64xf32> -> vector<16x64xf32>
    %c0_55 = arith.constant 0 : index
    %c0_56 = arith.constant 0 : index
    %163 = vector.load %arg10[%c0_55, %c0_56] : memref<1x64xf32, #tpu.memory_space<vmem>>, vector<1x64xf32>
    %164 = vector.broadcast %163 : vector<1x64xf32> to vector<16x64xf32>
    %165 = arith.addf %162, %164 : vector<16x64xf32>
    %166 = vector.extract_strided_slice %159 {offsets = [0, 0], sizes = [8, 8], strides = [1, 1]} : vector<8x32xf32> to vector<8x8xf32>
    %167 = vector.shape_cast %166 : vector<8x8xf32> to vector<1x8x8xf32>
    %168 = arith.truncf %167 : vector<1x8x8xf32> to vector<1x8x8xbf16>
    %169 = vector.extract_strided_slice %165 {offsets = [0, 0], sizes = [16, 8], strides = [1, 1]} : vector<16x64xf32> to vector<16x8xf32>
    %170 = vector.shape_cast %169 : vector<16x8xf32> to vector<1x16x8xf32>
    %171 = arith.truncf %170 : vector<1x16x8xf32> to vector<1x16x8xbf16>
    %172 = vector.extract_strided_slice %165 {offsets = [0, 32], sizes = [16, 8], strides = [1, 1]} : vector<16x64xf32> to vector<16x8xf32>
    %173 = vector.shape_cast %172 : vector<16x8xf32> to vector<1x16x8xf32>
    %174 = arith.truncf %173 : vector<1x16x8xf32> to vector<1x16x8xbf16>
    "tpu.trace_start"() <{level = 10 : i32, message = "bqd,bkd->bqk"}> : () -> ()
    %cst_57 = arith.constant dense<0.000000e+00> : vector<1x8x16xf32>
    %175 = tpu.matmul %168, %171, %cst_57 {dimension_numbers = #tpu.dot_dimension_numbers<[2], [2], [1], [1], [0, 0, 0, 1, 1, 1], [0], [0]>} : vector<1x8x8xbf16>, vector<1x16x8xbf16>, vector<1x8x16xf32> -> vector<1x8x16xf32>
    "tpu.trace_stop"() : () -> ()
    %cst_58 = arith.constant 0.353553385 : f32
    %176 = vector.broadcast %cst_58 : f32 to vector<1x8x16xf32>
    %177 = arith.mulf %175, %176 : vector<1x8x16xf32>
    %cst_59 = arith.constant dense<0xFF800000> : vector<1x8xf32>
    %178 = vector.multi_reduction <maximumf>, %177, %cst_59 [2] : vector<1x8x16xf32> to vector<1x8xf32>
    %179 = vector.shape_cast %178 : vector<1x8xf32> to vector<1x8x1xf32>
    %180 = vector.broadcast %179 : vector<1x8x1xf32> to vector<1x8x16xf32>
    %181 = arith.subf %177, %180 : vector<1x8x16xf32>
    %182 = math.exp %181 : vector<1x8x16xf32>
    %cst_60 = arith.constant dense<0.000000e+00> : vector<1x8xf32>
    %183 = vector.multi_reduction <add>, %182, %cst_60 [2] : vector<1x8x16xf32> to vector<1x8xf32>
    %184 = vector.shape_cast %183 : vector<1x8xf32> to vector<1x8x1xf32>
    %185 = tpu.reciprocal %184 {approx = true} : vector<1x8x1xf32> -> vector<1x8x1xf32>
    %186 = vector.broadcast %185 : vector<1x8x1xf32> to vector<1x8x16xf32>
    %187 = arith.mulf %182, %186 : vector<1x8x16xf32>
    %188 = arith.truncf %187 : vector<1x8x16xf32> to vector<1x8x16xbf16>
    "tpu.trace_start"() <{level = 10 : i32, message = "bqk,bkd->bqd"}> : () -> ()
    %cst_61 = arith.constant dense<0.000000e+00> : vector<1x8x8xf32>
    %189 = tpu.matmul %188, %174, %cst_61 {dimension_numbers = #tpu.dot_dimension_numbers<[2], [1], [1], [2], [0, 0, 0, 1, 1, 2], [0], [0]>} : vector<1x8x16xbf16>, vector<1x16x8xbf16>, vector<1x8x8xf32> -> vector<1x8x8xf32>
    "tpu.trace_stop"() : () -> ()
    %190 = vector.extract_strided_slice %159 {offsets = [0, 8], sizes = [8, 8], strides = [1, 1]} : vector<8x32xf32> to vector<8x8xf32>
    %191 = vector.shape_cast %190 : vector<8x8xf32> to vector<1x8x8xf32>
    %192 = arith.truncf %191 : vector<1x8x8xf32> to vector<1x8x8xbf16>
    %193 = vector.extract_strided_slice %165 {offsets = [0, 8], sizes = [16, 8], strides = [1, 1]} : vector<16x64xf32> to vector<16x8xf32>
    %194 = vector.shape_cast %193 : vector<16x8xf32> to vector<1x16x8xf32>
    %195 = arith.truncf %194 : vector<1x16x8xf32> to vector<1x16x8xbf16>
    %196 = vector.extract_strided_slice %165 {offsets = [0, 40], sizes = [16, 8], strides = [1, 1]} : vector<16x64xf32> to vector<16x8xf32>
    %197 = vector.shape_cast %196 : vector<16x8xf32> to vector<1x16x8xf32>
    %198 = arith.truncf %197 : vector<1x16x8xf32> to vector<1x16x8xbf16>
    "tpu.trace_start"() <{level = 10 : i32, message = "bqd,bkd->bqk"}> : () -> ()
    %cst_62 = arith.constant dense<0.000000e+00> : vector<1x8x16xf32>
    %199 = tpu.matmul %192, %195, %cst_62 {dimension_numbers = #tpu.dot_dimension_numbers<[2], [2], [1], [1], [0, 0, 0, 1, 1, 1], [0], [0]>} : vector<1x8x8xbf16>, vector<1x16x8xbf16>, vector<1x8x16xf32> -> vector<1x8x16xf32>
    "tpu.trace_stop"() : () -> ()
    %cst_63 = arith.constant 0.353553385 : f32
    %200 = vector.broadcast %cst_63 : f32 to vector<1x8x16xf32>
    %201 = arith.mulf %199, %200 : vector<1x8x16xf32>
    %cst_64 = arith.constant dense<0xFF800000> : vector<1x8xf32>
    %202 = vector.multi_reduction <maximumf>, %201, %cst_64 [2] : vector<1x8x16xf32> to vector<1x8xf32>
    %203 = vector.shape_cast %202 : vector<1x8xf32> to vector<1x8x1xf32>
    %204 = vector.broadcast %203 : vector<1x8x1xf32> to vector<1x8x16xf32>
    %205 = arith.subf %201, %204 : vector<1x8x16xf32>
    %206 = math.exp %205 : vector<1x8x16xf32>
    %cst_65 = arith.constant dense<0.000000e+00> : vector<1x8xf32>
    %207 = vector.multi_reduction <add>, %206, %cst_65 [2] : vector<1x8x16xf32> to vector<1x8xf32>
    %208 = vector.shape_cast %207 : vector<1x8xf32> to vector<1x8x1xf32>
    %209 = tpu.reciprocal %208 {approx = true} : vector<1x8x1xf32> -> vector<1x8x1xf32>
    %210 = vector.broadcast %209 : vector<1x8x1xf32> to vector<1x8x16xf32>
    %211 = arith.mulf %206, %210 : vector<1x8x16xf32>
    %212 = arith.truncf %211 : vector<1x8x16xf32> to vector<1x8x16xbf16>
    "tpu.trace_start"() <{level = 10 : i32, message = "bqk,bkd->bqd"}> : () -> ()
    %cst_66 = arith.constant dense<0.000000e+00> : vector<1x8x8xf32>
    %213 = tpu.matmul %212, %198, %cst_66 {dimension_numbers = #tpu.dot_dimension_numbers<[2], [1], [1], [2], [0, 0, 0, 1, 1, 2], [0], [0]>} : vector<1x8x16xbf16>, vector<1x16x8xbf16>, vector<1x8x8xf32> -> vector<1x8x8xf32>
    "tpu.trace_stop"() : () -> ()
    %214 = vector.extract_strided_slice %159 {offsets = [0, 16], sizes = [8, 8], strides = [1, 1]} : vector<8x32xf32> to vector<8x8xf32>
    %215 = vector.shape_cast %214 : vector<8x8xf32> to vector<1x8x8xf32>
    %216 = arith.truncf %215 : vector<1x8x8xf32> to vector<1x8x8xbf16>
    %217 = vector.extract_strided_slice %165 {offsets = [0, 16], sizes = [16, 8], strides = [1, 1]} : vector<16x64xf32> to vector<16x8xf32>
    %218 = vector.shape_cast %217 : vector<16x8xf32> to vector<1x16x8xf32>
    %219 = arith.truncf %218 : vector<1x16x8xf32> to vector<1x16x8xbf16>
    %220 = vector.extract_strided_slice %165 {offsets = [0, 48], sizes = [16, 8], strides = [1, 1]} : vector<16x64xf32> to vector<16x8xf32>
    %221 = vector.shape_cast %220 : vector<16x8xf32> to vector<1x16x8xf32>
    %222 = arith.truncf %221 : vector<1x16x8xf32> to vector<1x16x8xbf16>
    "tpu.trace_start"() <{level = 10 : i32, message = "bqd,bkd->bqk"}> : () -> ()
    %cst_67 = arith.constant dense<0.000000e+00> : vector<1x8x16xf32>
    %223 = tpu.matmul %216, %219, %cst_67 {dimension_numbers = #tpu.dot_dimension_numbers<[2], [2], [1], [1], [0, 0, 0, 1, 1, 1], [0], [0]>} : vector<1x8x8xbf16>, vector<1x16x8xbf16>, vector<1x8x16xf32> -> vector<1x8x16xf32>
    "tpu.trace_stop"() : () -> ()
    %cst_68 = arith.constant 0.353553385 : f32
    %224 = vector.broadcast %cst_68 : f32 to vector<1x8x16xf32>
    %225 = arith.mulf %223, %224 : vector<1x8x16xf32>
    %cst_69 = arith.constant dense<0xFF800000> : vector<1x8xf32>
    %226 = vector.multi_reduction <maximumf>, %225, %cst_69 [2] : vector<1x8x16xf32> to vector<1x8xf32>
    %227 = vector.shape_cast %226 : vector<1x8xf32> to vector<1x8x1xf32>
    %228 = vector.broadcast %227 : vector<1x8x1xf32> to vector<1x8x16xf32>
    %229 = arith.subf %225, %228 : vector<1x8x16xf32>
    %230 = math.exp %229 : vector<1x8x16xf32>
    %cst_70 = arith.constant dense<0.000000e+00> : vector<1x8xf32>
    %231 = vector.multi_reduction <add>, %230, %cst_70 [2] : vector<1x8x16xf32> to vector<1x8xf32>
    %232 = vector.shape_cast %231 : vector<1x8xf32> to vector<1x8x1xf32>
    %233 = tpu.reciprocal %232 {approx = true} : vector<1x8x1xf32> -> vector<1x8x1xf32>
    %234 = vector.broadcast %233 : vector<1x8x1xf32> to vector<1x8x16xf32>
    %235 = arith.mulf %230, %234 : vector<1x8x16xf32>
    %236 = arith.truncf %235 : vector<1x8x16xf32> to vector<1x8x16xbf16>
    "tpu.trace_start"() <{level = 10 : i32, message = "bqk,bkd->bqd"}> : () -> ()
    %cst_71 = arith.constant dense<0.000000e+00> : vector<1x8x8xf32>
    %237 = tpu.matmul %236, %222, %cst_71 {dimension_numbers = #tpu.dot_dimension_numbers<[2], [1], [1], [2], [0, 0, 0, 1, 1, 2], [0], [0]>} : vector<1x8x16xbf16>, vector<1x16x8xbf16>, vector<1x8x8xf32> -> vector<1x8x8xf32>
    "tpu.trace_stop"() : () -> ()
    %238 = vector.extract_strided_slice %159 {offsets = [0, 24], sizes = [8, 8], strides = [1, 1]} : vector<8x32xf32> to vector<8x8xf32>
    %239 = vector.shape_cast %238 : vector<8x8xf32> to vector<1x8x8xf32>
    %240 = arith.truncf %239 : vector<1x8x8xf32> to vector<1x8x8xbf16>
    %241 = vector.extract_strided_slice %165 {offsets = [0, 24], sizes = [16, 8], strides = [1, 1]} : vector<16x64xf32> to vector<16x8xf32>
    %242 = vector.shape_cast %241 : vector<16x8xf32> to vector<1x16x8xf32>
    %243 = arith.truncf %242 : vector<1x16x8xf32> to vector<1x16x8xbf16>
    %244 = vector.extract_strided_slice %165 {offsets = [0, 56], sizes = [16, 8], strides = [1, 1]} : vector<16x64xf32> to vector<16x8xf32>
    %245 = vector.shape_cast %244 : vector<16x8xf32> to vector<1x16x8xf32>
    %246 = arith.truncf %245 : vector<1x16x8xf32> to vector<1x16x8xbf16>
    "tpu.trace_start"() <{level = 10 : i32, message = "bqd,bkd->bqk"}> : () -> ()
    %cst_72 = arith.constant dense<0.000000e+00> : vector<1x8x16xf32>
    %247 = tpu.matmul %240, %243, %cst_72 {dimension_numbers = #tpu.dot_dimension_numbers<[2], [2], [1], [1], [0, 0, 0, 1, 1, 1], [0], [0]>} : vector<1x8x8xbf16>, vector<1x16x8xbf16>, vector<1x8x16xf32> -> vector<1x8x16xf32>
    "tpu.trace_stop"() : () -> ()
    %cst_73 = arith.constant 0.353553385 : f32
    %248 = vector.broadcast %cst_73 : f32 to vector<1x8x16xf32>
    %249 = arith.mulf %247, %248 : vector<1x8x16xf32>
    %cst_74 = arith.constant dense<0xFF800000> : vector<1x8xf32>
    %250 = vector.multi_reduction <maximumf>, %249, %cst_74 [2] : vector<1x8x16xf32> to vector<1x8xf32>
    %251 = vector.shape_cast %250 : vector<1x8xf32> to vector<1x8x1xf32>
    %252 = vector.broadcast %251 : vector<1x8x1xf32> to vector<1x8x16xf32>
    %253 = arith.subf %249, %252 : vector<1x8x16xf32>
    %254 = math.exp %253 : vector<1x8x16xf32>
    %cst_75 = arith.constant dense<0.000000e+00> : vector<1x8xf32>
    %255 = vector.multi_reduction <add>, %254, %cst_75 [2] : vector<1x8x16xf32> to vector<1x8xf32>
    %256 = vector.shape_cast %255 : vector<1x8xf32> to vector<1x8x1xf32>
    %257 = tpu.reciprocal %256 {approx = true} : vector<1x8x1xf32> -> vector<1x8x1xf32>
    %258 = vector.broadcast %257 : vector<1x8x1xf32> to vector<1x8x16xf32>
    %259 = arith.mulf %254, %258 : vector<1x8x16xf32>
    %260 = arith.truncf %259 : vector<1x8x16xf32> to vector<1x8x16xbf16>
    "tpu.trace_start"() <{level = 10 : i32, message = "bqk,bkd->bqd"}> : () -> ()
    %cst_76 = arith.constant dense<0.000000e+00> : vector<1x8x8xf32>
    %261 = tpu.matmul %260, %246, %cst_76 {dimension_numbers = #tpu.dot_dimension_numbers<[2], [1], [1], [2], [0, 0, 0, 1, 1, 2], [0], [0]>} : vector<1x8x16xbf16>, vector<1x16x8xbf16>, vector<1x8x8xf32> -> vector<1x8x8xf32>
    "tpu.trace_stop"() : () -> ()
    %262 = tpu.concatenate %189, %213, %237, %261 in 2 : vector<1x8x8xf32>, vector<1x8x8xf32>, vector<1x8x8xf32>, vector<1x8x8xf32> -> vector<1x8x32xf32>
    %263 = vector.shape_cast %262 : vector<1x8x32xf32> to vector<8x32xf32>
    %264 = arith.truncf %263 : vector<8x32xf32> to vector<8x32xbf16>
    %c0_77 = arith.constant 0 : index
    %c0_78 = arith.constant 0 : index
    %265 = vector.load %arg11[%c0_77, %c0_78] : memref<32x32xbf16, #tpu.memory_space<vmem>>, vector<32x32xbf16>
    %cst_79 = arith.constant dense<0.000000e+00> : vector<8x32xf32>
    %266 = tpu.matmul %264, %265, %cst_79 {dimension_numbers = #tpu.dot_dimension_numbers<[1], [0], [0], [1], [0, 0, 1, 1], [], []>} : vector<8x32xbf16>, vector<32x32xbf16>, vector<8x32xf32> -> vector<8x32xf32>
    %c0_80 = arith.constant 0 : index
    %c0_81 = arith.constant 0 : index
    %267 = vector.load %arg12[%c0_80, %c0_81] : memref<1x32xf32, #tpu.memory_space<vmem>>, vector<1x32xf32>
    %268 = vector.broadcast %267 : vector<1x32xf32> to vector<8x32xf32>
    %269 = arith.addf %266, %268 : vector<8x32xf32>
    %270 = arith.addf %153, %269 : vector<8x32xf32>
    %cst_82 = arith.constant dense<0.000000e+00> : vector<8xf32>
    %271 = vector.multi_reduction <add>, %270, %cst_82 [1] : vector<8x32xf32> to vector<8xf32>
    %272 = vector.shape_cast %271 : vector<8xf32> to vector<8x1xf32>
    %cst_83 = arith.constant 3.200000e+01 : f32
    %273 = vector.broadcast %cst_83 : f32 to vector<8x1xf32>
    %274 = arith.divf %272, %273 : vector<8x1xf32>
    %275 = vector.broadcast %274 : vector<8x1xf32> to vector<8x32xf32>
    %276 = arith.subf %270, %275 : vector<8x32xf32>
    %277 = arith.mulf %276, %276 : vector<8x32xf32>
    %cst_84 = arith.constant dense<0.000000e+00> : vector<8xf32>
    %278 = vector.multi_reduction <add>, %277, %cst_84 [1] : vector<8x32xf32> to vector<8xf32>
    %279 = vector.shape_cast %278 : vector<8xf32> to vector<8x1xf32>
    %cst_85 = arith.constant 3.200000e+01 : f32
    %280 = vector.broadcast %cst_85 : f32 to vector<8x1xf32>
    %281 = arith.divf %279, %280 : vector<8x1xf32>
    %cst_86 = arith.constant 9.99999974E-6 : f32
    %282 = vector.broadcast %cst_86 : f32 to vector<8x1xf32>
    %283 = arith.addf %281, %282 : vector<8x1xf32>
    %284 = math.rsqrt %283 : vector<8x1xf32>
    %285 = vector.broadcast %284 : vector<8x1xf32> to vector<8x32xf32>
    %286 = arith.mulf %276, %285 : vector<8x32xf32>
    %c0_87 = arith.constant 0 : index
    %c0_88 = arith.constant 0 : index
    %287 = vector.load %arg19[%c0_87, %c0_88] : memref<1x32xf32, #tpu.memory_space<vmem>>, vector<1x32xf32>
    %288 = vector.broadcast %287 : vector<1x32xf32> to vector<8x32xf32>
    %289 = arith.mulf %286, %288 : vector<8x32xf32>
    %c0_89 = arith.constant 0 : index
    %c0_90 = arith.constant 0 : index
    %290 = vector.load %arg20[%c0_89, %c0_90] : memref<1x32xf32, #tpu.memory_space<vmem>>, vector<1x32xf32>
    %291 = vector.broadcast %290 : vector<1x32xf32> to vector<8x32xf32>
    %292 = arith.addf %289, %291 : vector<8x32xf32>
    %293 = arith.truncf %292 : vector<8x32xf32> to vector<8x32xbf16>
    %c0_91 = arith.constant 0 : index
    %c0_92 = arith.constant 0 : index
    %294 = vector.load %arg13[%c0_91, %c0_92] : memref<32x64xbf16, #tpu.memory_space<vmem>>, vector<32x64xbf16>
    %cst_93 = arith.constant dense<0.000000e+00> : vector<8x64xf32>
    %295 = tpu.matmul %293, %294, %cst_93 {dimension_numbers = #tpu.dot_dimension_numbers<[1], [0], [0], [1], [0, 0, 1, 1], [], []>} : vector<8x32xbf16>, vector<32x64xbf16>, vector<8x64xf32> -> vector<8x64xf32>
    %c0_94 = arith.constant 0 : index
    %c0_95 = arith.constant 0 : index
    %296 = vector.load %arg14[%c0_94, %c0_95] : memref<1x64xf32, #tpu.memory_space<vmem>>, vector<1x64xf32>
    %297 = vector.broadcast %296 : vector<1x64xf32> to vector<8x64xf32>
    %298 = arith.addf %295, %297 : vector<8x64xf32>
    %cst_96 = arith.constant 0.000000e+00 : f32
    %299 = vector.broadcast %cst_96 : f32 to vector<8x64xf32>
    %300 = arith.maximumf %298, %299 : vector<8x64xf32>
    %301 = arith.truncf %300 : vector<8x64xf32> to vector<8x64xbf16>
    %c0_97 = arith.constant 0 : index
    %c0_98 = arith.constant 0 : index
    %302 = vector.load %arg15[%c0_97, %c0_98] : memref<64x32xbf16, #tpu.memory_space<vmem>>, vector<64x32xbf16>
    %cst_99 = arith.constant dense<0.000000e+00> : vector<8x32xf32>
    %303 = tpu.matmul %301, %302, %cst_99 {dimension_numbers = #tpu.dot_dimension_numbers<[1], [0], [0], [1], [0, 0, 1, 1], [], []>} : vector<8x64xbf16>, vector<64x32xbf16>, vector<8x32xf32> -> vector<8x32xf32>
    %c0_100 = arith.constant 0 : index
    %c0_101 = arith.constant 0 : index
    %304 = vector.load %arg16[%c0_100, %c0_101] : memref<1x32xf32, #tpu.memory_space<vmem>>, vector<1x32xf32>
    %305 = vector.broadcast %304 : vector<1x32xf32> to vector<8x32xf32>
    %306 = arith.addf %303, %305 : vector<8x32xf32>
    %307 = arith.addf %292, %306 : vector<8x32xf32>
    %cst_102 = arith.constant dense<0.000000e+00> : vector<8xf32>
    %308 = vector.multi_reduction <add>, %307, %cst_102 [1] : vector<8x32xf32> to vector<8xf32>
    %309 = vector.shape_cast %308 : vector<8xf32> to vector<8x1xf32>
    %cst_103 = arith.constant 3.200000e+01 : f32
    %310 = vector.broadcast %cst_103 : f32 to vector<8x1xf32>
    %311 = arith.divf %309, %310 : vector<8x1xf32>
    %312 = vector.broadcast %311 : vector<8x1xf32> to vector<8x32xf32>
    %313 = arith.subf %307, %312 : vector<8x32xf32>
    %314 = arith.mulf %313, %313 : vector<8x32xf32>
    %cst_104 = arith.constant dense<0.000000e+00> : vector<8xf32>
    %315 = vector.multi_reduction <add>, %314, %cst_104 [1] : vector<8x32xf32> to vector<8xf32>
    %316 = vector.shape_cast %315 : vector<8xf32> to vector<8x1xf32>
    %cst_105 = arith.constant 3.200000e+01 : f32
    %317 = vector.broadcast %cst_105 : f32 to vector<8x1xf32>
    %318 = arith.divf %316, %317 : vector<8x1xf32>
    %cst_106 = arith.constant 9.99999974E-6 : f32
    %319 = vector.broadcast %cst_106 : f32 to vector<8x1xf32>
    %320 = arith.addf %318, %319 : vector<8x1xf32>
    %321 = math.rsqrt %320 : vector<8x1xf32>
    %322 = vector.broadcast %321 : vector<8x1xf32> to vector<8x32xf32>
    %323 = arith.mulf %313, %322 : vector<8x32xf32>
    %c0_107 = arith.constant 0 : index
    %c0_108 = arith.constant 0 : index
    %324 = vector.load %arg21[%c0_107, %c0_108] : memref<1x32xf32, #tpu.memory_space<vmem>>, vector<1x32xf32>
    %325 = vector.broadcast %324 : vector<1x32xf32> to vector<8x32xf32>
    %326 = arith.mulf %323, %325 : vector<8x32xf32>
    %c0_109 = arith.constant 0 : index
    %c0_110 = arith.constant 0 : index
    %327 = vector.load %arg22[%c0_109, %c0_110] : memref<1x32xf32, #tpu.memory_space<vmem>>, vector<1x32xf32>
    %328 = vector.broadcast %327 : vector<1x32xf32> to vector<8x32xf32>
    %329 = arith.addf %326, %328 : vector<8x32xf32>
    %330 = vector.shape_cast %329 : vector<8x32xf32> to vector<1x8x32xf32>
    %c0_111 = arith.constant 0 : index
    %c0_112 = arith.constant 0 : index
    %c0_113 = arith.constant 0 : index
    %331 = vector.load %arg23[%c0_111, %c0_112, %c0_113] : memref<1x8x32xf32, #tpu.memory_space<vmem>>, vector<1x8x32xf32>
    tpu.vector_store %arg23[%c0_111, %c0_112, %c0_113], %330 {strides = array<i32>} : memref<1x8x32xf32, #tpu.memory_space<vmem>>, vector<1x8x32xf32>,
    return
  }
  func.func @transform_0(%arg0: i32) -> (i32, i32, i32) {
    %c0_i32 = arith.constant 0 : i32
    %c0_i32_0 = arith.constant 0 : i32
    %c0_i32_1 = arith.constant 0 : i32
    return %arg0, %c0_i32, %c0_i32_0 : i32, i32, i32
  }
  func.func @transform_1(%arg0: i32) -> (i32, i32, i32) {
    %c0_i32 = arith.constant 0 : i32
    %c0_i32_0 = arith.constant 0 : i32
    %c0_i32_1 = arith.constant 0 : i32
    return %arg0, %c0_i32, %c0_i32_0 : i32, i32, i32
  }
  func.func @transform_2(%arg0: i32) -> (i32, i32) {
    %c0_i32 = arith.constant 0 : i32
    %c0_i32_0 = arith.constant 0 : i32
    %c0_i32_1 = arith.constant 0 : i32
    return %c0_i32, %c0_i32_0 : i32, i32
  }
  func.func @transform_3(%arg0: i32) -> (i32, i32) {
    %c0_i32 = arith.constant 0 : i32
    %c0_i32_0 = arith.constant 0 : i32
    %c0_i32_1 = arith.constant 0 : i32
    return %c0_i32, %c0_i32_0 : i32, i32
  }
  func.func @transform_4(%arg0: i32) -> (i32, i32) {
    %c0_i32 = arith.constant 0 : i32
    %c0_i32_0 = arith.constant 0 : i32
    %c0_i32_1 = arith.constant 0 : i32
    return %c0_i32, %c0_i32_0 : i32, i32
  }
  func.func @transform_5(%arg0: i32) -> (i32, i32) {
    %c0_i32 = arith.constant 0 : i32
    %c0_i32_0 = arith.constant 0 : i32
    %c0_i32_1 = arith.constant 0 : i32
    return %c0_i32, %c0_i32_0 : i32, i32
  }
  func.func @transform_6(%arg0: i32) -> (i32, i32) {
    %c0_i32 = arith.constant 0 : i32
    %c0_i32_0 = arith.constant 0 : i32
    %c0_i32_1 = arith.constant 0 : i32
    return %c0_i32, %c0_i32_0 : i32, i32
  }
  func.func @transform_7(%arg0: i32) -> (i32, i32) {
    %c0_i32 = arith.constant 0 : i32
    %c0_i32_0 = arith.constant 0 : i32
    %c0_i32_1 = arith.constant 0 : i32
    return %c0_i32, %c0_i32_0 : i32, i32
  }
  func.func @transform_8(%arg0: i32) -> (i32, i32) {
    %c0_i32 = arith.constant 0 : i32
    %c0_i32_0 = arith.constant 0 : i32
    %c0_i32_1 = arith.constant 0 : i32
    return %c0_i32, %c0_i32_0 : i32, i32
  }
  func.func @transform_9(%arg0: i32) -> (i32, i32) {
    %c0_i32 = arith.constant 0 : i32
    %c0_i32_0 = arith.constant 0 : i32
    %c0_i32_1 = arith.constant 0 : i32
    return %c0_i32, %c0_i32_0 : i32, i32
  }
  func.func @transform_10(%arg0: i32) -> (i32, i32) {
    %c0_i32 = arith.constant 0 : i32
    %c0_i32_0 = arith.constant 0 : i32
    %c0_i32_1 = arith.constant 0 : i32
    return %c0_i32, %c0_i32_0 : i32, i32
  }
  func.func @transform_11(%arg0: i32) -> (i32, i32) {
    %c0_i32 = arith.constant 0 : i32
    %c0_i32_0 = arith.constant 0 : i32
    %c0_i32_1 = arith.constant 0 : i32
    return %c0_i32, %c0_i32_0 : i32, i32
  }
  func.func @transform_12(%arg0: i32) -> (i32, i32) {
    %c0_i32 = arith.constant 0 : i32
    %c0_i32_0 = arith.constant 0 : i32
    %c0_i32_1 = arith.constant 0 : i32
    return %c0_i32, %c0_i32_0 : i32, i32
  }
  func.func @transform_13(%arg0: i32) -> (i32, i32) {
    %c0_i32 = arith.constant 0 : i32
    %c0_i32_0 = arith.constant 0 : i32
    %c0_i32_1 = arith.constant 0 : i32
    return %c0_i32, %c0_i32_0 : i32, i32
  }
  func.func @transform_14(%arg0: i32) -> (i32, i32) {
    %c0_i32 = arith.constant 0 : i32
    %c0_i32_0 = arith.constant 0 : i32
    %c0_i32_1 = arith.constant 0 : i32
    return %c0_i32, %c0_i32_0 : i32, i32
  }
  func.func @transform_15(%arg0: i32) -> (i32, i32) {
    %c0_i32 = arith.constant 0 : i32
    %c0_i32_0 = arith.constant 0 : i32
    %c0_i32_1 = arith.constant 0 : i32
    return %c0_i32, %c0_i32_0 : i32, i32
  }
  func.func @transform_16(%arg0: i32) -> (i32, i32) {
    %c0_i32 = arith.constant 0 : i32
    %c0_i32_0 = arith.constant 0 : i32
    %c0_i32_1 = arith.constant 0 : i32
    return %c0_i32, %c0_i32_0 : i32, i32
  }
  func.func @transform_17(%arg0: i32) -> (i32, i32) {
    %c0_i32 = arith.constant 0 : i32
    %c0_i32_0 = arith.constant 0 : i32
    %c0_i32_1 = arith.constant 0 : i32
    return %c0_i32, %c0_i32_0 : i32, i32
  }
  func.func @transform_18(%arg0: i32) -> (i32, i32) {
    %c0_i32 = arith.constant 0 : i32
    %c0_i32_0 = arith.constant 0 : i32
    %c0_i32_1 = arith.constant 0 : i32
    return %c0_i32, %c0_i32_0 : i32, i32
  }
  func.func @transform_19(%arg0: i32) -> (i32, i32) {
    %c0_i32 = arith.constant 0 : i32
    %c0_i32_0 = arith.constant 0 : i32
    %c0_i32_1 = arith.constant 0 : i32
    return %c0_i32, %c0_i32_0 : i32, i32
  }
  func.func @transform_20(%arg0: i32) -> (i32, i32) {
    %c0_i32 = arith.constant 0 : i32
    %c0_i32_0 = arith.constant 0 : i32
    %c0_i32_1 = arith.constant 0 : i32
    return %c0_i32, %c0_i32_0 : i32, i32
  }
  func.func @transform_21(%arg0: i32) -> (i32, i32) {
    %c0_i32 = arith.constant 0 : i32
    %c0_i32_0 = arith.constant 0 : i32
    %c0_i32_1 = arith.constant 0 : i32
    return %c0_i32, %c0_i32_0 : i32, i32
  }
  func.func @transform_22(%arg0: i32) -> (i32, i32, i32) {
    %c0_i32 = arith.constant 0 : i32
    %c0_i32_0 = arith.constant 0 : i32
    %c0_i32_1 = arith.constant 0 : i32
    return %arg0, %c0_i32, %c0_i32_0 : i32, i32, i32
  }
}

</mosaic_0001>

<bundles_post_ra>
// kernel: _chain_forward.4
= control target key start
LH: loop header
LB: loop body
LE: loop exit
PB: predicated region body
PF: predicated region fallthrough
CT: control target
= control target key end

     0   :  { %s3906_s0 = inlined_call_operand.vmem [shape: f32[2,8,32], index: 0, kind: input, shape index: {}]   ;;  %s3907_s1 = inlined_call_operand.vmem [shape: bf16[2,8,32], index: 1, kind: input, shape index: {}]   ;;  %s3908_s2 = inlined_call_operand.vmem [shape: bf16[32,96], index: 2, kind: input, shape index: {}]   ;;  %s3909_s3 = inlined_call_operand.vmem [shape: f32[1,96], index: 3, kind: input, shape index: {}]   ;;  %s3910_s4 = inlined_call_operand.vmem [shape: bf16[32,32], index: 4, kind: input, shape index: {}]   ;;  %s3911_s5 = inlined_call_operand.vmem [shape: f32[1,32], index: 5, kind: input, shape index: {}]   ;;  %s3912_s6 = inlined_call_operand.vmem [shape: bf16[32,32], index: 6, kind: input, shape index: {}]   ;;  %s3913_s7 = inlined_call_operand.hbm [shape: f32[1,32], index: 7, kind: input, shape index: {}]   ;;  %s3914_s8 = inlined_call_operand.vmem [shape: bf16[32,64], index: 8, kind: input, shape index: {}]   ;;  %s3915_s9 = inlined_call_operand.hbm [shape: f32[1,64], index: 9, kind: input, shape index: {}]   ;;  %s3916_s10 = inlined_call_operand.vmem [shape: bf16[32,32], index: 10, kind: input, shape index: {}]   ;;  %s3917_s11 = inlined_call_operand.hbm [shape: f32[1,32], index: 11, kind: input, shape index: {}]   ;;  %s3918_s12 = inlined_call_operand.vmem [shape: bf16[32,64], index: 12, kind: input, shape index: {}]   ;;  %s3919_s13 = inlined_call_operand.hbm [shape: f32[1,64], index: 13, kind: input, shape index: {}]   ;;  %s3920_s14 = inlined_call_operand.vmem [shape: bf16[64,32], index: 14, kind: input, shape index: {}]   ;;  %s3921_s15 = inlined_call_operand.hbm [shape: f32[1,32], index: 15, kind: input, shape index: {}]   ;;  %s3922_s16 = inlined_call_operand.hbm [shape: f32[1,32], index: 16, kind: input, shape index: {}]   ;;  %s3923_s17 = inlined_call_operand.hbm [shape: f32[1,32], index: 17, kind: input, shape index: {}]   ;;  %s3924_s18 = inlined_call_operand.hbm [shape: f32[1,32], index: 18, kind: input, shape index: {}]   ;;  %s3925_s19 = inlined_call_operand.hbm [shape: f32[1,32], index: 19, kind: input, shape index: {}]   ;;  %s3926_s20 = inlined_call_operand.hbm [shape: f32[1,32], index: 20, kind: input, shape index: {}]   ;;  %s3927_s21 = inlined_call_operand.hbm [shape: f32[1,32], index: 21, kind: input, shape index: {}]   ;;  %s3928_s22 = inlined_call_operand.vmem [shape: bf16[2,8,32], index: 22, kind: output, shape index: {}]  }
   0x1   :  { %3944 = sst [smem:[#allocation25_spill]] %s3906_s0 }
   0x2   :  { %3945 = sst [smem:[#allocation26_spill]] %s3907_s1 }
   0x3   :  { %3946 = sst [smem:[#allocation27_spill]] %s3908_s2 }
   0x4   :  { %3947 = sst [smem:[#allocation28_spill]] %s3909_s3 }
   0x5   :  { %3948 = sst [smem:[#allocation29_spill]] %s3910_s4 }
   0x6   :  { %3949 = sst [smem:[#allocation30_spill]] %s3911_s5 }
   0x7   :  { %3950 = sst [smem:[#allocation31_spill]] %s3912_s6 }
   0x8   :  { %27 = vsyncpa [#allocation3], 0 }
   0x9   :  { %28 = vsyncpa [#allocation5], 0 }
   0xa   :  { %29 = vsyncpa [#allocation8], 0 }
   0xb   :  { %30 = vsyncpa [#allocation11], 0 }
   0xc   :  { %31 = vsyncpa [#allocation14], 0 }
   0xd   :  { %32 = vsyncpa [#allocation17], 0  ;;  %s3469_s3 = smov 0  }
   0xe LB: > { %s3327_s28 = smov [#allocation4]   ;;  %s3475_s30 = sadd.s32 4294967295, %s3325_s3   ;;  %s3325_s3 = sphi %s3469_s3, %s38_s3  }
   0xf   : > { %s583_s29 = sshll.u32 %s3327_s28, 4  ;;  %p2525_p0 = scmp.ge.s32.totalorder %s3325_s3, 1  ;;  %s584_s29 = int_to_ptr.vmem [resolvable:$true] %s583_s29 }
  0x10   : > { %p541_p1 = scmp.lt.s32.totalorder %s3325_s3, 3  ;;  %p3932_p2 = scmp.eq.s32.totalorder %s3475_s30, 0 }
  0x11   : > { %s3328_s0 = smov [#allocation7]   ;;  %s3329_s1 = smov [#allocation10]  }
  0x12   : > { %p3480_p3 = pnand %p2525_p0, %p541_p1  ;;  %s611_s23 = sshll.u32 %s3328_s0, 4  ;;  %s3486_s23 = int_to_ptr.vmem [resolvable:$true] %s611_s23 }
  0x13   : > { %s636_s5 = sshll.u32 %s3329_s1, 4  ;;  %s3330_s6 = smov [#allocation13]   ;;  %s3494_s5 = int_to_ptr.vmem [resolvable:$true] %s636_s5 }
  0x14   : > { %p2863_p4 = pneg %p3480_p3  ;;  %s658_s25 = sshll.u32 %s3330_s6, 4  ;;  %s3496_s25 = int_to_ptr.vmem [resolvable:$true] %s658_s25 }
  0x15   : > { %s3020_s2 = scalar_lea.vmem %s584_s29, 16  ;;  %s3027_s27 = scalar_lea.vmem %s584_s29, 32 }
  0x16   : > { %p3490_p5 = pnand %p3932_p2, %p2863_p4  ;;  %p3021_p7 = scmp.ne.s32.totalorder %s584_s29, %s3020_s2 }
  0x17   : > { %p3028_p10 = scmp.lt.s32.totalorder %s584_s29, %s584_s29  ;;  %p3029_p11 = scmp.lt.s32.totalorder %s3027_s27, %s3020_s2 }
  0x18   : > { %p3500_p6 = pneg %p3490_p5 }
  0x19   : > { %p3030_p12 = por %p3029_p11, %p3028_p10 }
  0x1a   : > { %p3023_p8 = pnand %p3021_p7, %p3500_p6 }
  0x1c   : > { %p3024_p9 = pneg %p3023_p8 }
  0x1e   : > { %p3031_p13 = pnand %p3030_p12, %p3024_p9 }
  0x20   : > { %3034 = shalt.err (!%p3031_p13)
}
  0x21   : > { %2869 = dma.hbm_to_vmem [thread:$0]  (!%p3490_p5), %s3915_s9, 16, %s584_s29, [#allocation5]  }
  0x22   : > { %s3046_s1 = scalar_lea.vmem %s3486_s23, 16  ;;  %s3053_s6 = scalar_lea.vmem %s3486_s23, 32 }
  0x23   : > { %p3047_p0 = scmp.ne.s32.totalorder %s3486_s23, %s3046_s1  ;;  %p3054_p7 = scmp.lt.s32.totalorder %s3486_s23, %s3486_s23 }
  0x24   : > { %p3055_p8 = scmp.lt.s32.totalorder %s3053_s6, %s3046_s1 }
  0x25   : > { %p3049_p1 = pnand %p3047_p0, %p3500_p6 }
  0x26   : > { %p3056_p9 = por %p3055_p8, %p3054_p7 }
  0x27   : > { %p3050_p4 = pneg %p3049_p1 }
  0x29   : > { %p3057_p10 = pnand %p3056_p9, %p3050_p4 }
  0x2b   : > { %3060 = shalt.err (!%p3057_p10)
}
  0x2c   : > { %2875 = dma.hbm_to_vmem [thread:$0]  (!%p3490_p5), %s3919_s13, 16, %s3486_s23, [#allocation8]  }
  0x2d   : > { %s3072_s29 = scalar_lea.vmem %s3494_s5, 16  ;;  %s3079_s28 = scalar_lea.vmem %s3494_s5, 32 }
  0x2e   : > { %p3073_p11 = scmp.ne.s32.totalorder %s3494_s5, %s3072_s29  ;;  %p3080_p0 = scmp.lt.s32.totalorder %s3494_s5, %s3494_s5 }
  0x2f   : > { %p3081_p1 = scmp.lt.s32.totalorder %s3079_s28, %s3072_s29 }
  0x30   : > { %p3075_p12 = pnand %p3073_p11, %p3500_p6 }
  0x31   : > { %p3082_p4 = por %p3081_p1, %p3080_p0 }
  0x32   : > { %p3076_p13 = pneg %p3075_p12 }
  0x34   : > { %p3083_p7 = pnand %p3082_p4, %p3076_p13 }
  0x36   : > { %3086 = shalt.err (!%p3083_p7)
}
  0x37   : > { %2881 = dma.hbm_to_vmem [thread:$0]  (!%p3490_p5), %s3922_s16, 16, %s3494_s5, [#allocation11]  }
  0x38   : > { %s3098_s23 = scalar_lea.vmem %s3496_s25, 16  ;;  %s3105_s6 = scalar_lea.vmem %s3496_s25, 32 }
  0x39   : > { %p3099_p8 = scmp.ne.s32.totalorder %s3496_s25, %s3098_s23  ;;  %p3106_p11 = scmp.lt.s32.totalorder %s3496_s25, %s3496_s25 }
  0x3a   : > { %p3107_p12 = scmp.lt.s32.totalorder %s3105_s6, %s3098_s23 }
  0x3b   : > { %p3101_p9 = pnand %p3099_p8, %p3500_p6 }
  0x3c   : > { %p3108_p13 = por %p3107_p12, %p3106_p11 }
  0x3d   : > { %p3102_p10 = pneg %p3101_p9 }
  0x3f   : > { %p3109_p0 = pnand %p3108_p13, %p3102_p10 }
  0x41   : > { %3112 = shalt.err (!%p3109_p0)
}
  0x42   : > { %2887 = dma.hbm_to_vmem [thread:$0]  (!%p3490_p5), %s3924_s18, 16, %s3496_s25, [#allocation14]  }
  0x43   : > { %s3331_s5 = smov [#allocation16]   ;;  %s3332_s28 = smov [#allocation2]  }
  0x44   : > { %s680_s29 = sshll.u32 %s3331_s5, 4  ;;  %s569_s0 = sshll.u32 %s3332_s28, 4  ;;  %s681_s29 = int_to_ptr.vmem [resolvable:$true] %s680_s29  ;;  %s570_s0 = int_to_ptr.vmem [resolvable:$true] %s569_s0 }
  0x45   : > { %s3124_s1 = scalar_lea.vmem %s681_s29, 16  ;;  %s3131_s23 = scalar_lea.vmem %s681_s29, 32 }
  0x46   : > { %p3125_p1 = scmp.ne.s32.totalorder %s681_s29, %s3124_s1  ;;  %p3132_p8 = scmp.lt.s32.totalorder %s681_s29, %s681_s29 }
  0x47   : > { %p3133_p9 = scmp.lt.s32.totalorder %s3131_s23, %s3124_s1 }
  0x48   : > { %p3127_p4 = pnand %p3125_p1, %p3500_p6 }
  0x49   : > { %p3134_p10 = por %p3133_p9, %p3132_p8 }
  0x4a   : > { %p3128_p7 = pneg %p3127_p4 }
  0x4c   : > { %p3135_p11 = pnand %p3134_p10, %p3128_p7 }
  0x4e   : > { %3138 = shalt.err (!%p3135_p11)
}
  0x4f   : > { %2893 = dma.hbm_to_vmem [thread:$0]  (!%p3490_p5), %s3926_s20, 16, %s681_s29, [#allocation17]  }
  0x50   : > { %s3150_s2 = scalar_lea.vmem %s570_s0, 16  ;;  %s3157_s27 = scalar_lea.vmem %s570_s0, 32 }
  0x51   : > { %p3151_p12 = scmp.ne.s32.totalorder %s570_s0, %s3150_s2  ;;  %p3158_p1 = scmp.lt.s32.totalorder %s570_s0, %s570_s0 }
  0x52   : > { %p3159_p4 = scmp.lt.s32.totalorder %s3157_s27, %s3150_s2 }
  0x53   : > { %p3153_p13 = pnand %p3151_p12, %p3500_p6 }
  0x54   : > { %p3160_p2 = por %p3159_p4, %p3158_p1 }
  0x55   : > { %p3154_p0 = pneg %p3153_p13 }
  0x57   : > { %p3161_p8 = pnand %p3160_p2, %p3154_p0 }
  0x59   : > { %3164 = shalt.err (!%p3161_p8)
}
  0x5a   : > { %2866 = dma.hbm_to_vmem [thread:$0]  (!%p3490_p5), %s3913_s7, 16, %s570_s0, [#allocation3]  }
  0x5b   : > { %s3333_s29 = smov [#allocation6]   ;;  %s3334_s23 = smov [#allocation9]  }
  0x5c   : > { %s597_s1 = sshll.u32 %s3333_s29, 4  ;;  %s625_s6 = sshll.u32 %s3334_s23, 4  ;;  %s598_s1 = int_to_ptr.vmem [resolvable:$true] %s597_s1  ;;  %s626_s6 = int_to_ptr.vmem [resolvable:$true] %s625_s6 }
  0x5d   : > { %s3176_s25 = scalar_lea.vmem %s598_s1, 16  ;;  %s3183_s2 = scalar_lea.vmem %s598_s1, 32 }
  0x5e   : > { %p3177_p7 = scmp.ne.s32.totalorder %s598_s1, %s3176_s25  ;;  %p3184_p2 = scmp.lt.s32.totalorder %s598_s1, %s598_s1 }
  0x5f   : > { %p3185_p11 = scmp.lt.s32.totalorder %s3183_s2, %s3176_s25 }
  0x60   : > { %p3179_p9 = pnand %p3177_p7, %p3500_p6 }
  0x61   : > { %p3186_p12 = por %p3185_p11, %p3184_p2 }
  0x62   : > { %p3180_p10 = pneg %p3179_p9 }
  0x64   : > { %p3187_p13 = pnand %p3186_p12, %p3180_p10 }
  0x66   : > { %3190 = shalt.err (!%p3187_p13)
}
  0x67   : > { %2872 = dma.hbm_to_vmem [thread:$0]  (!%p3490_p5), %s3917_s11, 16, %s598_s1, [#allocation5]  }
  0x68   : > { %s3202_s5 = scalar_lea.vmem %s626_s6, 16  ;;  %s3209_s28 = scalar_lea.vmem %s626_s6, 32 }
  0x69   : > { %p3203_p0 = scmp.ne.s32.totalorder %s626_s6, %s3202_s5  ;;  %p3210_p8 = scmp.lt.s32.totalorder %s626_s6, %s626_s6 }
  0x6a   : > { %p3211_p7 = scmp.lt.s32.totalorder %s3209_s28, %s3202_s5 }
  0x6b   : > { %p3205_p1 = pnand %p3203_p0, %p3500_p6 }
  0x6c   : > { %p3212_p9 = por %p3211_p7, %p3210_p8 }
  0x6d   : > { %p3206_p4 = pneg %p3205_p1 }
  0x6f   : > { %p3213_p2 = pnand %p3212_p9, %p3206_p4 }
  0x71   : > { %3216 = shalt.err (!%p3213_p2)
}
  0x72   : > { %2878 = dma.hbm_to_vmem [thread:$0]  (!%p3490_p5), %s3921_s15, 16, %s626_s6, [#allocation8]  }
  0x73   : > { %s3335_s1 = smov [#allocation12]   ;;  %s3336_s2 = smov [#allocation15]  }
  0x74   : > { %s647_s25 = sshll.u32 %s3335_s1, 4  ;;  %s669_s27 = sshll.u32 %s3336_s2, 4  ;;  %s648_s25 = int_to_ptr.vmem [resolvable:$true] %s647_s25  ;;  %s670_s27 = int_to_ptr.vmem [resolvable:$true] %s669_s27 }
  0x75   : > { %s3228_s0 = scalar_lea.vmem %s648_s25, 16  ;;  %s3235_s5 = scalar_lea.vmem %s648_s25, 32 }
  0x76   : > { %p3229_p10 = scmp.ne.s32.totalorder %s648_s25, %s3228_s0  ;;  %p3236_p13 = scmp.lt.s32.totalorder %s648_s25, %s648_s25 }
  0x77   : > { %p3237_p0 = scmp.lt.s32.totalorder %s3235_s5, %s3228_s0 }
  0x78   : > { %p3231_p11 = pnand %p3229_p10, %p3500_p6 }
  0x79   : > { %p3238_p1 = por %p3237_p0, %p3236_p13 }
  0x7a   : > { %p3232_p12 = pneg %p3231_p11 }
  0x7c   : > { %p3239_p4 = pnand %p3238_p1, %p3232_p12 }
  0x7e   : > { %3242 = shalt.err (!%p3239_p4)
}
  0x7f   : > { %2884 = dma.hbm_to_vmem [thread:$0]  (!%p3490_p5), %s3923_s17, 16, %s648_s25, [#allocation11]  }
  0x80   : > { %s3254_s29 = scalar_lea.vmem %s670_s27, 16  ;;  %s3261_s23 = scalar_lea.vmem %s670_s27, 32 }
  0x81   : > { %p3255_p8 = scmp.ne.s32.totalorder %s670_s27, %s3254_s29  ;;  %p3262_p2 = scmp.lt.s32.totalorder %s670_s27, %s670_s27 }
  0x82   : > { %p3263_p10 = scmp.lt.s32.totalorder %s3261_s23, %s3254_s29 }
  0x83   : > { %p3257_p7 = pnand %p3255_p8, %p3500_p6 }
  0x84   : > { %p3264_p11 = por %p3263_p10, %p3262_p2 }
  0x85   : > { %p3258_p9 = pneg %p3257_p7 }
  0x87   : > { %p3265_p13 = pnand %p3264_p11, %p3258_p9 }
  0x89   : > { %3268 = shalt.err (!%p3265_p13)
}
  0x8a   : > { %2890 = dma.hbm_to_vmem [thread:$0]  (!%p3490_p5), %s3925_s19, 16, %s670_s27, [#allocation14]  }
  0x8b   : > { %s3337_s25 = smov [#allocation18]  }
  0x8c   : > { %s691_s0 = sshll.u32 %s3337_s25, 4  ;;  %s692_s0 = int_to_ptr.vmem [resolvable:$true] %s691_s0 }
  0x8d   : > { %s3280_s5 = scalar_lea.vmem %s692_s0, 16  ;;  %s3287_s28 = scalar_lea.vmem %s692_s0, 32 }
  0x8e   : > { %p3281_p12 = scmp.ne.s32.totalorder %s692_s0, %s3280_s5  ;;  %p3288_p4 = scmp.lt.s32.totalorder %s692_s0, %s692_s0 }
  0x8f   : > { %p3289_p8 = scmp.lt.s32.totalorder %s3287_s28, %s3280_s5 }
  0x90   : > { %p3283_p0 = pnand %p3281_p12, %p3500_p6 }
  0x91   : > { %p3290_p7 = por %p3289_p8, %p3288_p4 }
  0x92   : > { %p3284_p1 = pneg %p3283_p0 }
  0x94   : > { %p3291_p9 = pnand %p3290_p7, %p3284_p1 }
  0x96   : > { %3294 = shalt.err (!%p3291_p9)
}
  0x97   : > { %2896 = dma.hbm_to_vmem [thread:$0]  (!%p3490_p5), %s3927_s21, 16, %s692_s0, [#allocation17]  }
  0x98   : > { %718 = sbr.rel (%p3480_p3) target bundleno = 4265 (0x10a9), region = 108  ;;  %p3954_p2 = scmp.eq.s32.totalorder (!%p3480_p3), %s3475_s30, 0 }
  0x9d   : > { %3300 = dma.done.wait (%p3954_p2), [#allocation3], 16   ;;  %p3955_p6 = pmov %p3954_p2 }
  0x9e   : > { %p3956_p10 = pmov %p3954_p2 }
  0x9f   : > { %3302 = vsyncadd (%p3955_p6), [#allocation3], 4294967280 }
  0xa0   : > { %3304 = dma.done.wait (%p3956_p10), [#allocation5], 32   ;;  %p3957_p11 = pmov %p3954_p2 }
  0xa1   : > { %p3958_p13 = pmov %p3954_p2 }
  0xa2   : > { %3306 = vsyncadd (%p3957_p11), [#allocation5], 4294967264 }
  0xa3   : > { %3308 = dma.done.wait (%p3958_p13), [#allocation8], 32   ;;  %p3959_p5 = pmov %p3954_p2 }
  0xa4   : > { %p3960_p3 = pmov %p3954_p2 }
  0xa5   : > { %3310 = vsyncadd (%p3959_p5), [#allocation8], 4294967264 }
  0xa6   : > { %3312 = dma.done.wait (%p3960_p3), [#allocation11], 32   ;;  %p3961_p12 = pmov %p3954_p2 }
  0xa7   : > { %p3962_p0 = pmov %p3954_p2 }
  0xa8   : > { %3314 = vsyncadd (%p3961_p12), [#allocation11], 4294967264 }
  0xa9   : > { %3316 = dma.done.wait (%p3962_p0), [#allocation14], 32   ;;  %p3963_p1 = pmov %p3962_p0 }
  0xaa   : > { %p3964_p4 = pmov %p3962_p0 }
  0xab   : > { %3318 = vsyncadd (%p3963_p1), [#allocation14], 4294967264 }
  0xac   : > { %3320 = dma.done.wait (%p3964_p4), [#allocation17], 32   ;;  %p3965_p8 = pmov %p3962_p0 }
  0xad   : > { %p822_p7 = scmp.lt.s32.totalorder %s3475_s30, 1  ;;  %v3338_v0 = vmov 0.0   ;;  %vm3339_vm0 = vmmov 0   ;;  %s3966_s27 = sld [smem:[#allocation25_spill]]  ;;  %vm862_vm1 = vcmask 261120   ;;  %vm915_vm2 = vcmask 64512  }
  0xae   : > { %3322 = vsyncadd (%p3965_p8), [#allocation17], 4294967264  ;;  %2663 = vmatprep.subr.bf16.mxu1 %v3338_v0  ;;  %2667 = vmatprep.mubr.msk.bf16.mxu1 %vm3339_vm0, %v3338_v0  ;;  %s3967_s25 = sld [smem:[#allocation27_spill]]  ;;  %s3939_s24 = smov 96   ;;  %v906_v23 = vlaneseq  ;;  %vm981_vm4 = vcmask 1043456   ;;  %vm1374_vm5 = vcmask 130048  }
  0xaf   : > { %s3983_s30 = smov (!%p822_p7, %s3475_s30), 1  ;;  %2677 = vmatprep.subr.bf16.mxu0 %v3338_v0  ;;  %2679 = vmatprep.mubr.msk.bf16.mxu0 %vm3339_vm0, %v3338_v0  ;;  %s3968_s29 = sld [smem:[#allocation28_spill]]  ;;  %vm1376_vm6 = vcmask 195584   ;;  %vm2274_vm7 = vcmask 523264   ;;  %vm2349_vm8 = vcmask 257024  }
  0xb0   : > { %s2550_s4 = sshll.u32 %s3983_s30, 3  ;;  %s3938_s26 = smov 80   ;;  %v907_v24 = vshrl.u32 %v906_v23, 7  ;;  %v909_v25 = vand.u32 127, %v906_v23 }
  0xb1   : > { %s3942_s1 = smov 112   ;;  %s3940_s2 = smov 104  }
  0xb2   : > { %vm910_vm3 = vcmp.ge.s32.totalorder %v907_v24, %v909_v25  ;;  %s3347_s0 = smov 56   ;;  %s3348_s5 = smov 64  }
  0xb3   : > { %s825_s23 = scalar_lea.vmem %s3966_s27, %s2550_s4  ;;  %s3340_s4 = smov 120  }
  0xb4   : > { %v2954_v1 = vld [vmem:[%s3967_s25 + $0x8] sm:$0xff]   ;;  %v2955_v2 = vld [vmem:[%s3967_s25] sm:$0xff]   ;;  %s3933_s27 = smov 88   ;;  %s3349_s28 = smov 40  }
  0xb5   : > { %2664 = vmatpush3.bf16.msra.mxu1 %v2954_v1  ;;  %v3645_v3 = vld [vmem:[%s825_s23] sm:$0xff]  ;;  %s3934_s23 = smov 72   ;;  %s3350_s6 = smov 48  }
  0xb6   : > { %2665 = vmatprep.subr.bf16.mxu1 %v3338_v0  ;;  %v838_v4 = vpack.c.bf16 %v3645_v3, %v3645_v3  ;;  %v2553_v5 = vld [vmem:[%s3968_s29] ss:$0 sm:$0xff]  ;;  %s3937_s29 = smov 8  }
  0xb9   : > { %2666 = vmatpush3.bf16.msra.mxu1 %v2955_v2 }
  0xba   : > { %2671 = vmatprep.subr.bf16.mxu1 %v3338_v0 }
  0xbc   : > { %2668 = vmatmul.mubr.msk.bf16.vlgmr.msra.gmra.mxu1 %vm862_vm1, %v838_v4 }
  0xbd   : > { %2673 = vmatprep.mubr.msk.bf16.mxu1 %vm3339_vm0, %v3338_v0 }
 0x17c   : > { %v900_v6 = vpop.f32.mrf.mxu1 }
 0x17d   : > { %v901_v7 = vadd.f32 %v2553_v5, %v900_v6 }
 0x17e   : > { %v2669_v8 = vpop.f32.mrf.mxu1 }
 0x17f   : > { %v3657_v9 = vpack.c.bf16 %v901_v7, %v901_v7 }
 0x180   : > { %v903_v10 = vpop.f32.mrf.mxu1 }
 0x181   : > { %1025 = vrot.lane.b32.xlu1 %v3657_v9, %s3340_s4  ;;  %913 = vrot.lane.b32.xlu0 %v3657_v9, %s3939_s24  ;;  %s3971_s24 = sld [smem:[#allocation26_spill]] }
 0x182   : > { %v2670_v11 = vpop.f32.mrf.mxu1 }
 0x185   : > { %1139 = vrot.lane.b32.xlu1 %v3657_v9, %s3938_s26  ;;  %1027 = vrot.lane.b32.xlu0 %v3657_v9, %s3933_s27  ;;  %s3974_s26 = smov 104   ;;  %s3978_s27 = smov 88  }
 0x189   : > { %1251 = vrot.lane.b32.xlu1 %v3657_v9, %s3934_s23  ;;  %1137 = vrot.lane.b32.xlu0 %v3657_v9, %s3942_s1  ;;  %s3936_s23 = smov 16   ;;  %s3972_s1 = sld [smem:[#allocation31_spill]] }
 0x18d   : > { %1249 = vrot.lane.b32.xlu0 %v3657_v9, %s3940_s2 }
 0x1f3   : > { %v914_v12 = vpop.permute.xlu0 %913  ;;  %v1026_v15 = vpop.permute.xlu1 %1025 }
 0x1f4   : > { %v920_v13 = vsel %vm915_vm2, %v914_v12, 0 }
 0x1f5   : > { %2672 = vmatpush3.bf16.xpose.msra.mxu1 %v920_v13 }
 0x1f6   : > { %2683 = vmatprep.subr.bf16.mxu1 %v3338_v0 }
 0x1f7   : > { %v1028_v14 = vpop.permute.xlu0 %1027  ;;  %v1140_v17 = vpop.permute.xlu1 %1139 }
 0x1f8   : > { %v1033_v16 = vsel %vm915_vm2, %v1028_v14, 0  ;;  %v1145_v18 = vsel %vm915_vm2, %v1140_v17, 0 }
 0x1fb   : > { %v1252_v19 = vpop.permute.xlu1 %1251  ;;  %v1138_v20 = vpop.permute.xlu0 %1137 }
 0x1fc   : > { %2674 = vmatmul.mubr.msk.bf16.vlgmr.msra.gmra.mxu1 %vm915_vm2, %v3657_v9  ;;  %v1257_v21 = vsel %vm915_vm2, %v1252_v19, 0 }
 0x1fd   : > { %2684 = vmatpush3.bf16.xpose.msra.mxu1 %v1033_v16  ;;  %2685 = vmatprep.mubr.msk.bf16.mxu1 %vm3339_vm0, %v3338_v0 }
 0x1fe   : > { %2695 = vmatprep.subr.bf16.mxu1 %v3338_v0 }
 0x1ff   : > { %v1250_v22 = vpop.permute.xlu0 %1249 }
 0x204   : > { %2686 = vmatmul.mubr.msk.bf16.vlgmr.msra.gmra.mxu1 %vm915_vm2, %v1026_v15 }
 0x205   : > { %2696 = vmatpush3.bf16.xpose.msra.mxu1 %v1145_v18  ;;  %2697 = vmatprep.mubr.msk.bf16.mxu1 %vm3339_vm0, %v3338_v0 }
 0x206   : > { %2707 = vmatprep.subr.bf16.mxu1 %v3338_v0 }
 0x20c   : > { %2698 = vmatmul.mubr.msk.bf16.vlgmr.msra.gmra.mxu1 %vm915_vm2, %v1138_v20 }
 0x20d   : > { %2708 = vmatpush3.bf16.xpose.msra.mxu1 %v1257_v21  ;;  %2709 = vmatprep.mubr.msk.bf16.mxu1 %vm3339_vm0, %v3338_v0 }
 0x20e   : > { %2719 = vmatprep.subr.bf16.mxu1 %v3338_v0 }
 0x214   : > { %2710 = vmatmul.mubr.msk.bf16.vlgmr.msra.gmra.mxu1 %vm915_vm2, %v1250_v22 }
 0x215   : > { %2723 = vmatprep.mubr.msk.bf16.mxu1 %vm3339_vm0, %v3338_v0 }
 0x2bc   : > { %v956_v26 = vpop.f32.mrf.mxu1 }
 0x2bd   : > { %v962_v27 = vmul.f32 0.35355338, %v956_v26 }
 0x2be   : > { %v2675_v28 = vpop.f32.mrf.mxu1 }
 0x2bf   : > { %v963_v29 = vsel %vm910_vm3, %v962_v27, -1e+30 }
 0x2c0   : > { %v959_v30 = vpop.f32.mrf.mxu1  ;;  %v964_v31 = vsel %vm915_vm2, %v963_v29, -inf }
 0x2c1   : > { %965 = vmax.xlane.f32.xlu1 %v964_v31 }
 0x2c2   : > { %v2676_v32 = vpop.f32.mrf.mxu1 }
 0x2c4   : > { %v1069_v33 = vpop.f32.mrf.mxu1 }
 0x2c5   : > { %v1075_v34 = vmul.f32 0.35355338, %v1069_v33 }
 0x2c6   : > { %v2687_v35 = vpop.f32.mrf.mxu1 }
 0x2c7   : > { %v1076_v36 = vsel %vm910_vm3, %v1075_v34, -1e+30 }
 0x2c8   : > { %v1072_v37 = vpop.f32.mrf.mxu1  ;;  %v1077_v38 = vsel %vm915_vm2, %v1076_v36, -inf }
 0x2c9   : > { %1078 = vmax.xlane.f32.xlu0 %v1077_v38 }
 0x2ca   : > { %v2688_v39 = vpop.f32.mrf.mxu1 }
 0x2cc   : > { %v1181_v40 = vpop.f32.mrf.mxu1 }
 0x2cd   : > { %v1187_v41 = vmul.f32 0.35355338, %v1181_v40 }
 0x2ce   : > { %v2699_v42 = vpop.f32.mrf.mxu1 }
 0x2cf   : > { %v1188_v43 = vsel %vm910_vm3, %v1187_v41, -1e+30 }
 0x2d0   : > { %v1184_v44 = vpop.f32.mrf.mxu1  ;;  %v1189_v45 = vsel %vm915_vm2, %v1188_v43, -inf }
 0x2d1   : > { %1190 = vmax.xlane.f32.xlu0 %v1189_v45 }
 0x2d2   : > { %v2700_v46 = vpop.f32.mrf.mxu1 }
 0x2d4   : > { %v1293_v47 = vpop.f32.mrf.mxu1 }
 0x2d5   : > { %v1299_v48 = vmul.f32 0.35355338, %v1293_v47 }
 0x2d6   : > { %v2711_v49 = vpop.f32.mrf.mxu1 }
 0x2d7   : > { %v1300_v50 = vsel %vm910_vm3, %v1299_v48, -1e+30 }
 0x2d8   : > { %v1296_v51 = vpop.f32.mrf.mxu1  ;;  %v1301_v52 = vsel %vm915_vm2, %v1300_v50, -inf }
 0x2d9   : > { %1302 = vmax.xlane.f32.xlu1 %v1301_v52 }
 0x2da   : > { %v2712_v53 = vpop.f32.mrf.mxu1 }
 0x34a   : > { %v966_v54 = vpop.xlane.xlu1 %965 }
 0x34b   : > { %v967_v55 = vsub.f32 %v963_v29, %v966_v54 }
 0x34d   : > { %v968_v56 = vmul.f32 1.442695, %v967_v55 }
 0x34f   : > { %2971 = vpow2.f32 %v968_v56 }
 0x352   : > { %v1079_v57 = vpop.xlane.xlu0 %1078 }
 0x353   : > { %v1080_v58 = vsub.f32 %v1076_v36, %v1079_v57 }
 0x355   : > { %v1081_v59 = vmul.f32 1.442695, %v1080_v58 }
 0x357   : > { %2973 = vpow2.f32 %v1081_v59 }
 0x35a   : > { %v1191_v60 = vpop.xlane.xlu0 %1190 }
 0x35b   : > { %v1192_v61 = vsub.f32 %v1188_v43, %v1191_v60 }
 0x35c   : > { %v2972_v62 = vpop.eup %2971 }
 0x35d   : > { %v1193_v63 = vmul.f32 1.442695, %v1192_v61  ;;  %v970_v1 = vsel %vm915_vm2, %v2972_v62, 0.0 }
 0x35e   : > { %971 = vadd.xlane.f32.xlu0 %v970_v1 }
 0x35f   : > { %2975 = vpow2.f32 %v1193_v63 }
 0x362   : > { %v1303_v7 = vpop.xlane.xlu1 %1302 }
 0x363   : > { %v1304_v8 = vsub.f32 %v1300_v50, %v1303_v7 }
 0x364   : > { %v2974_v2 = vpop.eup %2973 }
 0x365   : > { %v1083_v4 = vsel %vm915_vm2, %v2974_v2, 0.0  ;;  %v1305_v10 = vmul.f32 1.442695, %v1304_v8 }
 0x366   : > { %1084 = vadd.xlane.f32.xlu1 %v1083_v4 }
 0x367   : > { %2977 = vpow2.f32 %v1305_v10 }
 0x36c   : > { %v2976_v5 = vpop.eup %2975 }
 0x36d   : > { %v1195_v6 = vsel %vm915_vm2, %v2976_v5, 0.0 }
 0x36e   : > { %1196 = vadd.xlane.f32.xlu0 %v1195_v6 }
 0x374   : > { %v2978_v11 = vpop.eup %2977 }
 0x375   : > { %v1307_v12 = vsel %vm915_vm2, %v2978_v11, 0.0 }
 0x377   : > { %1089 = vrot.lane.b32.xlu1 %v3657_v9, %s3347_s0  ;;  %s3935_s0 = smov 24  }
 0x384   : > { %976 = vrot.lane.b32.xlu0 %v3657_v9, %s3348_s5 }
 0x388   : > { %1313 = vrot.lane.b32.xlu0 %v3657_v9, %s3349_s28  ;;  %s3969_s28 = sld [smem:[#allocation29_spill]] }
 0x38e   : > { %v2956_v44 = vld [vmem:[%s3969_s28 + $0x8] sm:$0xff]   ;;  %v2957_v45 = vld [vmem:[%s3969_s28] sm:$0xff]  }
 0x38f   : > { %2720 = vmatpush3.bf16.msra.mxu1 %v2956_v44 }
 0x390   : > { %2721 = vmatprep.subr.bf16.mxu1 %v3338_v0 }
 0x393   : > { %2722 = vmatpush3.bf16.msra.mxu1 %v2957_v45 }
 0x394   : > { %2735 = vmatprep.subr.bf16.mxu1 %v3338_v0 }
 0x39b   : > { %1308 = vadd.xlane.f32.xlu1 %v1307_v12 }
 0x3ac   : > { %1201 = vrot.lane.b32.xlu1 %v3657_v9, %s3350_s6  ;;  %s3970_s6 = sld [smem:[#allocation30_spill]] }
 0x3b2   : > { %v2565_v61 = vld [vmem:[%s3970_s6] ss:$0 sm:$0xff]  ;;  %s2551_s6 = sshll.u32 %s3983_s30, 2 }
 0x3b3   : > { %s829_s2 = scalar_lea.vmem %s3971_s24, %s2551_s6  ;;  %s3973_s24 = smov 112  }
 0x3e7   : > { %v972_v13 = vpop.xlane.xlu0 %971 }
 0x3e8   : > { %2979 = vrcp.f32 %v972_v13  ;;  %v2958_v13 = vld [vmem:[%s3914_s8 + $0x8] sm:$0xff]  }
 0x3ef   : > { %v1085_v14 = vpop.xlane.xlu1 %1084 }
 0x3f0   : > { %2981 = vrcp.f32 %v1085_v14  ;;  %v2960_v14 = vld [vmem:[%s829_s2] ss:$0 sps:$4 sm:$0xff]   ;;  %s3976_s2 = smov 80  }
 0x3f3   : > { %v1090_v20 = vpop.permute.xlu1 %1089 }
 0x3f4   : > { %v1095_v23 = vsel %vm981_vm4, %v1090_v20, 0 }
 0x3f5   : > { %v2980_v15 = vpop.eup %2979 }
 0x3f6   : > { %v974_v17 = vmul.f32 %v2980_v15, %v2972_v62  ;;  %v2961_v15 = vld [vmem:[%s3972_s1 + $0x8] sm:$0xff]  }
 0x3f7   : > { %v1197_v16 = vpop.xlane.xlu0 %1196 }
 0x3f8   : > { %v975_v21 = vpack.c.bf16 %v974_v17, %v974_v17  ;;  %2983 = vrcp.f32 %v1197_v16  ;;  %v2962_v16 = vld [vmem:[%s3972_s1] sm:$0xff]  }
 0x3fb   : > { %v977_v18 = vpop.permute.xlu0 %976 }
 0x3fc   : > { %v983_v19 = vsel %vm981_vm4, %v977_v18, 0 }
 0x3fd   : > { %2678 = vmatpush3.bf16.msra.mxu0 %v983_v19  ;;  %v2982_v22 = vpop.eup %2981 }
 0x3fe   : > { %2689 = vmatprep.subr.bf16.mxu0 %v3338_v0  ;;  %v1087_v9 = vmul.f32 %v2982_v22, %v2974_v2 }
 0x3ff   : > { %v1314_v30 = vpop.permute.xlu0 %1313 }
 0x400   : > { %2680 = vmatmul.mubr.msk.bf16.vlgmr.msra.gmra.mxu0 %vm915_vm2, %v975_v21  ;;  %v1088_v24 = vpack.c.bf16 %v1087_v9, %v1087_v9  ;;  %v1319_v32 = vsel %vm981_vm4, %v1314_v30, 0  ;;  %v2569_v21 = vld [vmem:[#allocation10] ss:$0 sm:$0xff] }
 0x401   : > { %2690 = vmatpush3.bf16.msra.mxu0 %v1095_v23  ;;  %2691 = vmatprep.mubr.msk.bf16.mxu0 %vm3339_vm0, %v3338_v0  ;;  %v2570_v23 = vld [vmem:[#allocation12] ss:$0 sm:$0xff] }
 0x402   : > { %2701 = vmatprep.subr.bf16.mxu0 %v3338_v0 }
 0x405   : > { %v2984_v25 = vpop.eup %2983 }
 0x406   : > { %v1199_v27 = vmul.f32 %v2984_v25, %v2976_v5 }
 0x408   : > { %2692 = vmatmul.mubr.msk.bf16.vlgmr.msra.gmra.mxu0 %vm915_vm2, %v1088_v24  ;;  %v1200_v31 = vpack.c.bf16 %v1199_v27, %v1199_v27 }
 0x409   : > { %2703 = vmatprep.mubr.msk.bf16.mxu0 %vm3339_vm0, %v3338_v0 }
 0x424   : > { %v1309_v26 = vpop.xlane.xlu1 %1308 }
 0x425   : > { %2985 = vrcp.f32 %v1309_v26  ;;  %v2576_v26 = vld [vmem:[#allocation4] ss:$0 sm:$0xff] }
 0x428   : > { %v1202_v28 = vpop.permute.xlu1 %1201 }
 0x429   : > { %v1207_v29 = vsel %vm981_vm4, %v1202_v28, 0 }
 0x42a   : > { %2702 = vmatpush3.bf16.msra.mxu0 %v1207_v29 }
 0x42b   : > { %2713 = vmatprep.subr.bf16.mxu0 %v3338_v0 }
 0x42d   : > { %2704 = vmatmul.mubr.msk.bf16.vlgmr.msra.gmra.mxu0 %vm915_vm2, %v1200_v31 }
 0x42e   : > { %2714 = vmatpush3.bf16.msra.mxu0 %v1319_v32  ;;  %2715 = vmatprep.mubr.msk.bf16.mxu0 %vm3339_vm0, %v3338_v0 }
 0x42f   : > { %2727 = vmatprep.subr.bf16.mxu0 %v3338_v0 }
 0x432   : > { %v2986_v33 = vpop.eup %2985 }
 0x433   : > { %v1311_v34 = vmul.f32 %v2986_v33, %v2978_v11 }
 0x435   : > { %v1312_v35 = vpack.c.bf16 %v1311_v34, %v1311_v34  ;;  %v2571_v34 = vld [vmem:[#allocation2] ss:$0 sm:$0xff] }
 0x437   : > { %2716 = vmatmul.mubr.msk.bf16.vlgmr.msra.gmra.mxu0 %vm915_vm2, %v1312_v35 }
 0x438   : > { %2731 = vmatprep.mubr.msk.bf16.mxu0 %vm3339_vm0, %v3338_v0  ;;  %2728 = vmatpush3.bf16.msra.mxu0 %v2961_v15 }
 0x439   : > { %2729 = vmatprep.subr.bf16.mxu0 %v3338_v0 }
 0x43c   : > { %2730 = vmatpush3.bf16.msra.mxu0 %v2962_v16 }
 0x43d   : > { %2743 = vmatprep.subr.bf16.mxu0 %v3338_v0 }
 0x4c0   : > { %v1019_v36 = vpop.f32.mrf.mxu0 }
 0x4c2   : > { %v2681_v37 = vpop.f32.mrf.mxu0 }
 0x4c4   : > { %v1022_v38 = vpop.f32.mrf.mxu0 }
 0x4c6   : > { %v2682_v39 = vpop.f32.mrf.mxu0 }
 0x4c8   : > { %v1131_v40 = vpop.f32.mrf.mxu0 }
 0x4c9   : > { %1362 = vrot.lane.b32.xlu1 %v1131_v40, %s3937_s29  ;;  %s3977_s29 = smov 72  }
 0x4ca   : > { %v2693_v41 = vpop.f32.mrf.mxu0 }
 0x4cc   : > { %v1134_v42 = vpop.f32.mrf.mxu0 }
 0x4ce   : > { %v2694_v43 = vpop.f32.mrf.mxu0 }
 0x4ed   : > { %v1243_v46 = vpop.f32.mrf.mxu0 }
 0x4ee   : > { %1366 = vrot.lane.b32.xlu0 %v1243_v46, %s3936_s23 }
 0x4ef   : > { %v2705_v47 = vpop.f32.mrf.mxu0 }
 0x4f1   : > { %v1246_v48 = vpop.f32.mrf.mxu0 }
 0x4f3   : > { %v2706_v49 = vpop.f32.mrf.mxu0 }
 0x4f7   : > { %v1355_v50 = vpop.f32.mrf.mxu0 }
 0x4f8   : > { %1370 = vrot.lane.b32.xlu1 %v1355_v50, %s3935_s0  ;;  %s3979_s0 = smov 8  }
 0x4f9   : > { %v2717_v51 = vpop.f32.mrf.mxu0 }
 0x4fb   : > { %v1358_v52 = vpop.f32.mrf.mxu0 }
 0x4fd   : > { %v2718_v53 = vpop.f32.mrf.mxu0 }
 0x53b   : > { %v1363_v54 = vpop.permute.xlu1 %1362 }
 0x53c   : > { %v1373_v56 = vsel %vm915_vm2, %v1019_v36, %v1363_v54 }
 0x560   : > { %v1367_v55 = vpop.permute.xlu0 %1366 }
 0x561   : > { %v1375_v57 = vsel %vm1374_vm5, %v1373_v56, %v1367_v55 }
 0x56a   : > { %v1371_v58 = vpop.permute.xlu1 %1370 }
 0x56b   : > { %v1377_v59 = vsel %vm1376_vm6, %v1375_v57, %v1371_v58 }
 0x56c   : > { %v1378_v60 = vpack.c.bf16 %v1377_v59, %v1377_v59 }
 0x56e   : > { %2724 = vmatmul.mubr.msk.bf16.vlgmr.msra.gmra.mxu1 %vm862_vm1, %v1378_v60 }
 0x56f   : > { %2739 = vmatprep.mubr.msk.bf16.mxu1 %vm3339_vm0, %v3338_v0  ;;  %2736 = vmatpush3.bf16.msra.mxu1 %v2958_v13 }
 0x570   : > { %2737 = vmatprep.subr.bf16.mxu1 %v3338_v0 }
 0x62e   : > { %v1439_v62 = vpop.f32.mrf.mxu1 }
 0x62f   : > { %v1440_v63 = vadd.f32 %v2565_v61, %v1439_v62 }
 0x630   : > { %v2725_v1 = vpop.f32.mrf.mxu1 }
 0x631   : > { %v1445_v2 = vadd.f32 %v1440_v63, %v3645_v3  ;;  %v2959_v3 = vld [vmem:[%s3914_s8] sm:$0xff]  }
 0x632   : > { %v1442_v4 = vpop.f32.mrf.mxu1  ;;  %2738 = vmatpush3.bf16.msra.mxu1 %v2959_v3 }
 0x633   : > { %v1446_v5 = vsel %vm862_vm1, %v1445_v2, 0.0  ;;  %2749 = vmatprep.subr.bf16.mxu1 %v3338_v0 }
 0x634   : > { %1447 = vadd.xlane.f32.xlu0 %v1446_v5  ;;  %v2726_v6 = vpop.f32.mrf.mxu1 }
 0x635   : > { %2740 = vmatmul.mubr.msk.bf16.vlgmr.msra.gmra.mxu1 %vm862_vm1, %v2960_v14 }
 0x636   : > { %2751 = vmatprep.mubr.msk.bf16.mxu1 %vm3339_vm0, %v3338_v0 }
 0x6bd   : > { %v1448_v7 = vpop.xlane.xlu0 %1447 }
 0x6be   : > { %v1450_v8 = vmul.f32 0.03125, %v1448_v7 }
 0x6c0   : > { %v1451_v10 = vsub.f32 %v1445_v2, %v1450_v8 }
 0x6c2   : > { %v1452_v11 = vmul.f32 %v1451_v10, %v1451_v10 }
 0x6c4   : > { %v1453_v12 = vsel %vm862_vm1, %v1452_v11, 0.0 }
 0x6c5   : > { %1454 = vadd.xlane.f32.xlu1 %v1453_v12 }
 0x6f5   : > { %v1604_v27 = vpop.f32.mrf.mxu1 }
 0x6f6   : > { %v1605_v28 = vadd.f32 %v2576_v26, %v1604_v27 }
 0x6f7   : > { %v2741_v29 = vpop.f32.mrf.mxu1 }
 0x6f8   : > { %v3785_v30 = vpack.c.bf16 %v1605_v28, %v1605_v28 }
 0x6f9   : > { %v1607_v31 = vpop.f32.mrf.mxu1 }
 0x6fa   : > { %1723 = vrot.lane.b32.xlu0 %v3785_v30, %s3340_s4  ;;  %v1616_v32 = vsel %vm915_vm2, %v3785_v30, 0 }
 0x6fb   : > { %v2742_v33 = vpop.f32.mrf.mxu1 }
 0x6fe   : > { %1834 = vrot.lane.b32.xlu0 %v3785_v30, %s3973_s24 }
 0x702   : > { %1945 = vrot.lane.b32.xlu0 %v3785_v30, %s3974_s26 }
 0x74e   : > { %v1455_v17 = vpop.xlane.xlu1 %1454 }
 0x74f   : > { %v1456_v18 = vmul.f32 0.03125, %v1455_v17 }
 0x751   : > { %v1457_v19 = vadd.f32 1e-05, %v1456_v18 }
 0x753   : > { %2987 = vrsqrt.f32 %v1457_v19 }
 0x760   : > { %v2988_v20 = vpop.eup %2987 }
 0x761   : > { %v1459_v22 = vmul.f32 %v2988_v20, %v1451_v10 }
 0x763   : > { %v1467_v9 = vmul.f32 %v2569_v21, %v1459_v22 }
 0x765   : > { %v3778_v24 = vadd.f32 %v2570_v23, %v1467_v9 }
 0x767   : > { %v1476_v25 = vpack.c.bf16 %v3778_v24, %v3778_v24 }
 0x769   : > { %2732 = vmatmul.mubr.msk.bf16.vlgmr.msra.gmra.mxu0 %vm862_vm1, %v1476_v25 }
 0x76a   : > { %2745 = vmatprep.mubr.msk.bf16.mxu0 %vm3339_vm0, %v3338_v0  ;;  %2744 = vmatpush3.bf16.xpose.msra.mxu0 %v1616_v32 }
 0x76b   : > { %2755 = vmatprep.subr.bf16.mxu0 %v3338_v0 }
 0x76c   : > { %v1724_v38 = vpop.permute.xlu0 %1723 }
 0x76d   : > { %v1729_v40 = vsel %vm915_vm2, %v1724_v38, 0 }
 0x770   : > { %v1835_v43 = vpop.permute.xlu0 %1834 }
 0x771   : > { %v1840_v45 = vsel %vm915_vm2, %v1835_v43, 0 }
 0x774   : > { %v1946_v46 = vpop.permute.xlu0 %1945 }
 0x775   : > { %v1951_v48 = vsel %vm915_vm2, %v1946_v46, 0 }
 0x829   : > { %v1537_v35 = vpop.f32.mrf.mxu0 }
 0x82a   : > { %v1538_v36 = vadd.f32 %v2571_v34, %v1537_v35 }
 0x82b   : > { %v2733_v37 = vpop.f32.mrf.mxu0 }
 0x82c   : > { %v1610_v39 = vpack.c.bf16 %v1538_v36, %v1538_v36 }
 0x82d   : > { %v1540_v41 = vpop.f32.mrf.mxu0 }
 0x82e   : > { %1721 = vrot.lane.b32.xlu1 %v1610_v39, %s3340_s4  ;;  %2746 = vmatmul.mubr.msk.bf16.vlgmr.msra.gmra.mxu0 %vm915_vm2, %v1610_v39  ;;  %s3975_s4 = smov 96  }
 0x82f   : > { %v2734_v42 = vpop.f32.mrf.mxu0  ;;  %2756 = vmatpush3.bf16.xpose.msra.mxu0 %v1729_v40  ;;  %2757 = vmatprep.mubr.msk.bf16.mxu0 %vm3339_vm0, %v3338_v0 }
 0x830   : > { %2767 = vmatprep.subr.bf16.mxu0 %v3338_v0 }
 0x832   : > { %1832 = vrot.lane.b32.xlu1 %v1610_v39, %s3973_s24  ;;  %s833_s24 = scalar_lea.vmem %s3928_s22, %s2551_s6 }
 0x836   : > { %1943 = vrot.lane.b32.xlu1 %v1610_v39, %s3974_s26 }
 0x8a0   : > { %v1722_v44 = vpop.permute.xlu1 %1721 }
 0x8a1   : > { %2758 = vmatmul.mubr.msk.bf16.vlgmr.msra.gmra.mxu0 %vm915_vm2, %v1722_v44 }
 0x8a2   : > { %2768 = vmatpush3.bf16.xpose.msra.mxu0 %v1840_v45  ;;  %2769 = vmatprep.mubr.msk.bf16.mxu0 %vm3339_vm0, %v3338_v0 }
 0x8a3   : > { %2779 = vmatprep.subr.bf16.mxu0 %v3338_v0 }
 0x8a4   : > { %v1833_v47 = vpop.permute.xlu1 %1832 }
 0x8a8   : > { %v1944_v49 = vpop.permute.xlu1 %1943 }
 0x8a9   : > { %2770 = vmatmul.mubr.msk.bf16.vlgmr.msra.gmra.mxu0 %vm915_vm2, %v1833_v47 }
 0x8aa   : > { %2780 = vmatpush3.bf16.xpose.msra.mxu0 %v1951_v48  ;;  %2781 = vmatprep.mubr.msk.bf16.mxu0 %vm3339_vm0, %v3338_v0 }
 0x8ab   : > { %2791 = vmatprep.subr.bf16.mxu0 %v3338_v0 }
 0x8b1   : > { %2782 = vmatmul.mubr.msk.bf16.vlgmr.msra.gmra.mxu0 %vm915_vm2, %v1944_v49 }
 0x8b2   : > { %2795 = vmatprep.mubr.msk.bf16.mxu0 %vm3339_vm0, %v3338_v0 }
 0x8ee   : > { %v1652_v50 = vpop.f32.mrf.mxu0 }
 0x8ef   : > { %v1658_v51 = vmul.f32 0.35355338, %v1652_v50 }
 0x8f0   : > { %v2747_v52 = vpop.f32.mrf.mxu0 }
 0x8f1   : > { %v1659_v53 = vsel %vm915_vm2, %v1658_v51, -inf }
 0x8f2   : > { %1660 = vmax.xlane.f32.xlu0 %v1659_v53  ;;  %v1655_v54 = vpop.f32.mrf.mxu0 }
 0x8f4   : > { %v2748_v55 = vpop.f32.mrf.mxu0 }
 0x961   : > { %v1765_v56 = vpop.f32.mrf.mxu0 }
 0x962   : > { %v1771_v57 = vmul.f32 0.35355338, %v1765_v56 }
 0x963   : > { %v2759_v58 = vpop.f32.mrf.mxu0 }
 0x964   : > { %v1772_v59 = vsel %vm915_vm2, %v1771_v57, -inf }
 0x965   : > { %1773 = vmax.xlane.f32.xlu1 %v1772_v59  ;;  %v1768_v60 = vpop.f32.mrf.mxu0 }
 0x966   : > { %v2963_v60 = vld [vmem:[%s3916_s10 + $0x8] sm:$0xff]  }
 0x967   : > { %v2760_v61 = vpop.f32.mrf.mxu0  ;;  %2792 = vmatpush3.bf16.msra.mxu0 %v2963_v60 }
 0x968   : > { %2793 = vmatprep.subr.bf16.mxu0 %v3338_v0 }
 0x969   : > { %v1876_v62 = vpop.f32.mrf.mxu0 }
 0x96a   : > { %v1882_v63 = vmul.f32 0.35355338, %v1876_v62 }
 0x96b   : > { %v2771_v1 = vpop.f32.mrf.mxu0 }
 0x96c   : > { %v1883_v2 = vsel %vm915_vm2, %v1882_v63, -inf }
 0x96d   : > { %1884 = vmax.xlane.f32.xlu0 %v1883_v2  ;;  %v1879_v4 = vpop.f32.mrf.mxu0 }
 0x96f   : > { %v2772_v5 = vpop.f32.mrf.mxu0 }
 0x971   : > { %v1987_v6 = vpop.f32.mrf.mxu0 }
 0x972   : > { %v1993_v7 = vmul.f32 0.35355338, %v1987_v6 }
 0x973   : > { %v2783_v8 = vpop.f32.mrf.mxu0 }
 0x974   : > { %v1994_v10 = vsel %vm915_vm2, %v1993_v7, -inf }
 0x975   : > { %1995 = vmax.xlane.f32.xlu0 %v1994_v10  ;;  %v1990_v11 = vpop.f32.mrf.mxu0 }
 0x977   : > { %v2784_v12 = vpop.f32.mrf.mxu0 }
 0x97b   : > { %v1661_v13 = vpop.xlane.xlu0 %1660 }
 0x97c   : > { %v1662_v3 = vsub.f32 %v1658_v51, %v1661_v13 }
 0x97e   : > { %v1663_v14 = vmul.f32 1.442695, %v1662_v3 }
 0x980   : > { %2989 = vpow2.f32 %v1663_v14 }
 0x98d   : > { %v2990_v15 = vpop.eup %2989 }
 0x98e   : > { %v1665_v16 = vsel %vm915_vm2, %v2990_v15, 0.0 }
 0x98f   : > { %1666 = vadd.xlane.f32.xlu1 %v1665_v16 }
 0x9a0   : > { %1672 = vrot.lane.b32.xlu1 %v3785_v30, %s3975_s4  ;;  %s3980_s4 = smov 16  }
 0x9ee   : > { %v1774_v17 = vpop.xlane.xlu1 %1773 }
 0x9ef   : > { %v1775_v18 = vsub.f32 %v1771_v57, %v1774_v17 }
 0x9f1   : > { %v1776_v19 = vmul.f32 1.442695, %v1775_v18 }
 0x9f3   : > { %2991 = vpow2.f32 %v1776_v19  ;;  %v2588_v19 = vld [vmem:[#allocation6] ss:$0 sm:$0xff] }
 0x9f6   : > { %v1885_v20 = vpop.xlane.xlu0 %1884 }
 0x9f7   : > { %v1886_v21 = vsub.f32 %v1882_v63, %v1885_v20  ;;  %v2964_v63 = vld [vmem:[%s3916_s10] sm:$0xff]  }
 0x9f8   : > { %2794 = vmatpush3.bf16.msra.mxu0 %v2964_v63 }
 0x9f9   : > { %v1887_v22 = vmul.f32 1.442695, %v1886_v21  ;;  %2807 = vmatprep.subr.bf16.mxu0 %v3338_v0 }
 0x9fb   : > { %2993 = vpow2.f32 %v1887_v22 }
 0x9fe   : > { %v1996_v23 = vpop.xlane.xlu0 %1995 }
 0x9ff   : > { %v1997_v9 = vsub.f32 %v1993_v7, %v1996_v23 }
 0xa00   : > { %v2992_v25 = vpop.eup %2991 }
 0xa01   : > { %v1998_v26 = vmul.f32 1.442695, %v1997_v9  ;;  %v1778_v27 = vsel %vm915_vm2, %v2992_v25, 0.0 }
 0xa02   : > { %1779 = vadd.xlane.f32.xlu0 %v1778_v27 }
 0xa03   : > { %2995 = vpow2.f32 %v1998_v26 }
 0xa08   : > { %v2994_v28 = vpop.eup %2993 }
 0xa09   : > { %v1889_v29 = vsel %vm915_vm2, %v2994_v28, 0.0 }
 0xa0a   : > { %1890 = vadd.xlane.f32.xlu1 %v1889_v29 }
 0xa10   : > { %v2996_v31 = vpop.eup %2995 }
 0xa11   : > { %v2000_v32 = vsel %vm915_vm2, %v2996_v31, 0.0 }
 0xa12   : > { %2001 = vadd.xlane.f32.xlu0 %v2000_v32 }
 0xa18   : > { %v1667_v33 = vpop.xlane.xlu1 %1666 }
 0xa19   : > { %2997 = vrcp.f32 %v1667_v33  ;;  %v2965_v33 = vld [vmem:[%s3918_s12 + $0x8] sm:$0xff]  }
 0xa1b   : > { %1895 = vrot.lane.b32.xlu1 %v3785_v30, %s3976_s2  ;;  %s3981_s2 = smov 24  }
 0xa1c   : > { %v1673_v34 = vpop.permute.xlu1 %1672 }
 0xa1d   : > { %v1678_v35 = vsel %vm981_vm4, %v1673_v34, 0  ;;  %v2967_v34 = vld [vmem:[%s3920_s14 + $0x18] sm:$0xff]  }
 0xa1e   : > { %2750 = vmatpush3.bf16.msra.mxu1 %v1678_v35  ;;  %v2968_v35 = vld [vmem:[%s3920_s14 + $0x10] sm:$0xff]  }
 0xa1f   : > { %2006 = vrot.lane.b32.xlu1 %v3785_v30, %s3977_s29  ;;  %2761 = vmatprep.subr.bf16.mxu1 %v3338_v0 }
 0xa26   : > { %v2998_v36 = vpop.eup %2997 }
 0xa27   : > { %v1669_v37 = vmul.f32 %v2998_v36, %v2990_v15 }
 0xa28   : > { %1784 = vrot.lane.b32.xlu0 %v3785_v30, %s3978_s27 }
 0xa29   : > { %v1670_v38 = vpack.c.bf16 %v1669_v37, %v1669_v37 }
 0xa2b   : > { %2752 = vmatmul.mubr.msk.bf16.vlgmr.msra.gmra.mxu1 %vm915_vm2, %v1670_v38 }
 0xa2c   : > { %2763 = vmatprep.mubr.msk.bf16.mxu1 %vm3339_vm0, %v3338_v0 }
 0xa8b   : > { %v1780_v39 = vpop.xlane.xlu0 %1779 }
 0xa8c   : > { %2999 = vrcp.f32 %v1780_v39 }
 0xa93   : > { %v1891_v40 = vpop.xlane.xlu1 %1890 }
 0xa94   : > { %3001 = vrcp.f32 %v1891_v40  ;;  %v2592_v40 = vld [vmem:[#allocation13] ss:$0 sm:$0xff] }
 0xa97   : > { %v1896_v46 = vpop.permute.xlu1 %1895 }
 0xa98   : > { %v1901_v48 = vsel %vm981_vm4, %v1896_v46, 0  ;;  %v2969_v46 = vld [vmem:[%s3920_s14 + $0x8] sm:$0xff]  }
 0xa99   : > { %v3000_v41 = vpop.eup %2999 }
 0xa9a   : > { %v1782_v43 = vmul.f32 %v3000_v41, %v2992_v25 }
 0xa9b   : > { %v2002_v42 = vpop.xlane.xlu0 %2001  ;;  %v2007_v50 = vpop.permute.xlu1 %2006 }
 0xa9c   : > { %3003 = vrcp.f32 %v2002_v42  ;;  %v1783_v30 = vpack.c.bf16 %v1782_v43, %v1782_v43  ;;  %v2012_v53 = vsel %vm981_vm4, %v2007_v50, 0  ;;  %v2593_v42 = vld [vmem:[#allocation15] ss:$0 sm:$0xff] }
 0xa9f   : > { %v1785_v44 = vpop.permute.xlu0 %1784 }
 0xaa0   : > { %v1790_v45 = vsel %vm981_vm4, %v1785_v44, 0 }
 0xaa1   : > { %2762 = vmatpush3.bf16.msra.mxu1 %v1790_v45  ;;  %v3002_v47 = vpop.eup %3001 }
 0xaa2   : > { %2773 = vmatprep.subr.bf16.mxu1 %v3338_v0  ;;  %v1893_v49 = vmul.f32 %v3002_v47, %v2994_v28  ;;  %v2594_v47 = vld [vmem:[#allocation7] ss:$0 sm:$0xff] }
 0xaa4   : > { %2764 = vmatmul.mubr.msk.bf16.vlgmr.msra.gmra.mxu1 %vm915_vm2, %v1783_v30  ;;  %v1894_v51 = vpack.c.bf16 %v1893_v49, %v1893_v49  ;;  %v2970_v30 = vld [vmem:[%s3920_s14] sm:$0xff]  }
 0xaa5   : > { %2774 = vmatpush3.bf16.msra.mxu1 %v1901_v48  ;;  %2775 = vmatprep.mubr.msk.bf16.mxu1 %vm3339_vm0, %v3338_v0 }
 0xaa6   : > { %2785 = vmatprep.subr.bf16.mxu1 %v3338_v0 }
 0xaa9   : > { %v3004_v52 = vpop.eup %3003 }
 0xaaa   : > { %v2004_v54 = vmul.f32 %v3004_v52, %v2996_v31 }
 0xaac   : > { %2776 = vmatmul.mubr.msk.bf16.vlgmr.msra.gmra.mxu1 %vm915_vm2, %v1894_v51  ;;  %v2005_v55 = vpack.c.bf16 %v2004_v54, %v2004_v54 }
 0xaad   : > { %2786 = vmatpush3.bf16.msra.mxu1 %v2012_v53  ;;  %2787 = vmatprep.mubr.msk.bf16.mxu1 %vm3339_vm0, %v3338_v0 }
 0xaae   : > { %2799 = vmatprep.subr.bf16.mxu1 %v3338_v0 }
 0xab4   : > { %2788 = vmatmul.mubr.msk.bf16.vlgmr.msra.gmra.mxu1 %vm915_vm2, %v2005_v55  ;;  %v2598_v55 = vld [vmem:[#allocation9] ss:$0 sm:$0xff] }
 0xab5   : > { %2803 = vmatprep.mubr.msk.bf16.mxu1 %vm3339_vm0, %v3338_v0  ;;  %2800 = vmatpush3.bf16.msra.mxu1 %v2965_v33 }
 0xab6   : > { %2801 = vmatprep.subr.bf16.mxu1 %v3338_v0 }
 0xaeb   : > { %v1714_v56 = vpop.f32.mrf.mxu1 }
 0xaed   : > { %v2753_v57 = vpop.f32.mrf.mxu1 }
 0xaef   : > { %v1717_v58 = vpop.f32.mrf.mxu1 }
 0xaf1   : > { %v2754_v59 = vpop.f32.mrf.mxu1 }
 0xb64   : > { %v1826_v61 = vpop.f32.mrf.mxu1 }
 0xb65   : > { %2055 = vrot.lane.b32.xlu0 %v1826_v61, %s3979_s0 }
 0xb66   : > { %v2765_v62 = vpop.f32.mrf.mxu1 }
 0xb68   : > { %v1829_v1 = vpop.f32.mrf.mxu1 }
 0xb6a   : > { %v2766_v2 = vpop.f32.mrf.mxu1 }
 0xb6c   : > { %v1937_v4 = vpop.f32.mrf.mxu1 }
 0xb6d   : > { %2059 = vrot.lane.b32.xlu1 %v1937_v4, %s3980_s4 }
 0xb6e   : > { %v2777_v5 = vpop.f32.mrf.mxu1 }
 0xb70   : > { %v1940_v6 = vpop.f32.mrf.mxu1 }
 0xb72   : > { %v2778_v7 = vpop.f32.mrf.mxu1 }
 0xb74   : > { %v2048_v8 = vpop.f32.mrf.mxu1 }
 0xb75   : > { %2063 = vrot.lane.b32.xlu0 %v2048_v8, %s3981_s2 }
 0xb76   : > { %v2789_v10 = vpop.f32.mrf.mxu1 }
 0xb77   : > { %v2604_v10 = vld [vmem:[#allocation16] ss:$0 sm:$0xff] }
 0xb78   : > { %v2051_v11 = vpop.f32.mrf.mxu1 }
 0xb7a   : > { %v2790_v12 = vpop.f32.mrf.mxu1 }
 0xb7b   : > { %v2605_v12 = vld [vmem:[#allocation18] ss:$0 sm:$0xff] }
 0xbd7   : > { %v2056_v13 = vpop.permute.xlu0 %2055 }
 0xbd8   : > { %v2066_v14 = vsel %vm915_vm2, %v1714_v56, %v2056_v13 }
 0xbdf   : > { %v2060_v3 = vpop.permute.xlu1 %2059 }
 0xbe0   : > { %v2067_v15 = vsel %vm1374_vm5, %v2066_v14, %v2060_v3 }
 0xbe7   : > { %v2064_v16 = vpop.permute.xlu0 %2063 }
 0xbe8   : > { %v2068_v17 = vsel %vm1376_vm6, %v2067_v15, %v2064_v16 }
 0xbe9   : > { %v2069_v18 = vpack.c.bf16 %v2068_v17, %v2068_v17 }
 0xbeb   : > { %2796 = vmatmul.mubr.msk.bf16.vlgmr.msra.gmra.mxu0 %vm862_vm1, %v2069_v18 }
 0xbec   : > { %2815 = vmatprep.mubr.msk.bf16.mxu0 %vm3339_vm0, %v3338_v0  ;;  %2808 = vmatpush3.bf16.msra.mxu0 %v2967_v34 }
 0xbed   : > { %2809 = vmatprep.subr.bf16.mxu0 %v3338_v0 }
 0xbf0   : > { %2810 = vmatpush3.bf16.msra.mxu0 %v2968_v35 }
 0xbf1   : > { %2811 = vmatprep.subr.bf16.mxu0 %v3338_v0 }
 0xbf4   : > { %2812 = vmatpush3.bf16.msra.mxu0 %v2969_v46 }
 0xbf5   : > { %2813 = vmatprep.subr.bf16.mxu0 %v3338_v0 }
 0xbf8   : > { %2814 = vmatpush3.bf16.msra.mxu0 %v2970_v30 }
 0xcab   : > { %v2130_v20 = vpop.f32.mrf.mxu0 }
 0xcac   : > { %v2131_v21 = vadd.f32 %v2588_v19, %v2130_v20 }
 0xcad   : > { %v2797_v22 = vpop.f32.mrf.mxu0 }
 0xcae   : > { %v2136_v23 = vadd.f32 %v2131_v21, %v3778_v24  ;;  %v2966_v24 = vld [vmem:[%s3918_s12] sm:$0xff]  }
 0xcaf   : > { %v2133_v9 = vpop.f32.mrf.mxu0  ;;  %2802 = vmatpush3.bf16.msra.mxu1 %v2966_v24 }
 0xcb0   : > { %v2137_v25 = vsel %vm862_vm1, %v2136_v23, 0.0 }
 0xcb1   : > { %2138 = vadd.xlane.f32.xlu1 %v2137_v25  ;;  %v2798_v26 = vpop.f32.mrf.mxu0 }
 0xd3a   : > { %v2139_v27 = vpop.xlane.xlu1 %2138 }
 0xd3b   : > { %v2140_v28 = vmul.f32 0.03125, %v2139_v27 }
 0xd3d   : > { %v2141_v29 = vsub.f32 %v2136_v23, %v2140_v28 }
 0xd3f   : > { %v2142_v31 = vmul.f32 %v2141_v29, %v2141_v29 }
 0xd41   : > { %v2143_v32 = vsel %vm862_vm1, %v2142_v31, 0.0 }
 0xd42   : > { %2144 = vadd.xlane.f32.xlu0 %v2143_v32 }
 0xdcb   : > { %v2145_v36 = vpop.xlane.xlu0 %2144 }
 0xdcc   : > { %v2146_v37 = vmul.f32 0.03125, %v2145_v36 }
 0xdce   : > { %v2147_v38 = vadd.f32 1e-05, %v2146_v37 }
 0xdd0   : > { %3005 = vrsqrt.f32 %v2147_v38 }
 0xddd   : > { %v3006_v39 = vpop.eup %3005 }
 0xdde   : > { %v2149_v41 = vmul.f32 %v3006_v39, %v2141_v29 }
 0xde0   : > { %v2157_v43 = vmul.f32 %v2592_v40, %v2149_v41 }
 0xde2   : > { %v2165_v44 = vadd.f32 %v2593_v42, %v2157_v43 }
 0xde4   : > { %v2166_v45 = vpack.c.bf16 %v2165_v44, %v2165_v44 }
 0xde6   : > { %2804 = vmatmul.mubr.msk.bf16.vlgmr.msra.gmra.mxu1 %vm862_vm1, %v2166_v45 }
 0xea6   : > { %v2227_v48 = vpop.f32.mrf.mxu1 }
 0xea7   : > { %v2228_v49 = vadd.f32 %v2594_v47, %v2227_v48 }
 0xea8   : > { %v2805_v50 = vpop.f32.mrf.mxu1 }
 0xea9   : > { %v2233_v51 = vmax.f32 %v2228_v49, 0.0 }
 0xeaa   : > { %v2230_v52 = vpop.f32.mrf.mxu1 }
 0xeab   : > { %v2234_v53 = vpack.c.bf16 %v2233_v51, %v2233_v51 }
 0xeac   : > { %v2806_v54 = vpop.f32.mrf.mxu1 }
 0xead   : > { %2816 = vmatmul.mubr.msk.bf16.vlgmr.msra.gmra.mxu0 %vm2274_vm7, %v2234_v53 }
 0xf6d   : > { %v2312_v56 = vpop.f32.mrf.mxu0 }
 0xf6e   : > { %v2313_v57 = vadd.f32 %v2598_v55, %v2312_v56 }
 0xf6f   : > { %v2817_v58 = vpop.f32.mrf.mxu0 }
 0xf70   : > { %v2318_v0 = vadd.f32 %v2313_v57, %v2165_v44 }
 0xf71   : > { %v2315_v59 = vpop.f32.mrf.mxu0 }
 0xf72   : > { %v2319_v60 = vsel %vm862_vm1, %v2318_v0, 0.0 }
 0xf73   : > { %2320 = vadd.xlane.f32.xlu0 %v2319_v60  ;;  %v2818_v61 = vpop.f32.mrf.mxu0 }
 0xffc   : > { %v2321_v62 = vpop.xlane.xlu0 %2320 }
 0xffd   : > { %v2322_v63 = vmul.f32 0.03125, %v2321_v62 }
 0xfff   : > { %v2323_v1 = vsub.f32 %v2318_v0, %v2322_v63 }
0x1001   : > { %v2324_v2 = vmul.f32 %v2323_v1, %v2323_v1 }
0x1003   : > { %v2325_v4 = vsel %vm862_vm1, %v2324_v2, 0.0 }
0x1004   : > { %2326 = vadd.xlane.f32.xlu1 %v2325_v4 }
0x108d   : > { %v2327_v5 = vpop.xlane.xlu1 %2326 }
0x108e   : > { %v2328_v6 = vmul.f32 0.03125, %v2327_v5 }
0x1090   : > { %v2329_v7 = vadd.f32 1e-05, %v2328_v6 }
0x1092   : > { %3007 = vrsqrt.f32 %v2329_v7 }
0x109f   : > { %v3008_v8 = vpop.eup %3007 }
0x10a0   : > { %v2331_v11 = vmul.f32 %v3008_v8, %v2323_v1 }
0x10a2   : > { %v2339_v13 = vmul.f32 %v2604_v10, %v2331_v11 }
0x10a4   : > { %v2347_v3 = vadd.f32 %v2605_v12, %v2339_v13 }
0x10a6   : > { %v2348_v14 = vpack.c.bf16 %v2347_v3, %v2347_v3 }
0x10a8   : > { %2350 = vst.msk [vmem:[%s833_s24] sm:$0xf] %vm2349_vm8, %v2348_v14 }
0x10a9 PF: > { %s38_s3 = sadd.s32 1, %s3325_s3  }
0x10aa   : > { %p35_p9 = scmp.ge.s32.totalorder %s38_s3, 4  }
0x10ac   :  { %37 = sbr.rel (!%p35_p9) target bundleno = 14 (0xe), region = 186 }
0x10b1   :  { %2370 = vsyncpa [#allocation3], 1 }
0x10b2   :  { %2372 = vsyncpa [#allocation3 + $0x1], 1 }
0x10b3   :  { %2373 = vsyncpa [#allocation5], 1 }
0x10b4   :  { %2374 = vsyncpa [#allocation8], 1 }
0x10b5   :  { %2375 = vsyncpa [#allocation11], 1 }
0x10b6   :  { %2376 = vsyncpa [#allocation14], 1 }
0x10b7   :  { %2377 = vsyncpa [#allocation17], 1 }

// kernel: _chain_forward.5
= control target key start
LH: loop header
LB: loop body
LE: loop exit
PB: predicated region body
PF: predicated region fallthrough
CT: control target
= control target key end

     0   :  { %s3565_s0 = inlined_call_operand.vmem [shape: bf16[2,8,32], index: 0, kind: input, shape index: {}]   ;;  %s3566_s1 = inlined_call_operand.vmem [shape: bf16[2,16,32], index: 1, kind: input, shape index: {}]   ;;  %s3567_s2 = inlined_call_operand.vmem [shape: bf16[32,96], index: 2, kind: input, shape index: {}]   ;;  %s3568_s3 = inlined_call_operand.vmem [shape: f32[1,96], index: 3, kind: input, shape index: {}]   ;;  %s3569_s4 = inlined_call_operand.vmem [shape: bf16[32,32], index: 4, kind: input, shape index: {}]   ;;  %s3570_s5 = inlined_call_operand.vmem [shape: f32[1,32], index: 5, kind: input, shape index: {}]   ;;  %s3571_s6 = inlined_call_operand.vmem [shape: bf16[32,32], index: 6, kind: input, shape index: {}]   ;;  %s3572_s7 = inlined_call_operand.vmem [shape: f32[1,32], index: 7, kind: input, shape index: {}]   ;;  %s3573_s8 = inlined_call_operand.vmem [shape: bf16[32,64], index: 8, kind: input, shape index: {}]   ;;  %s3574_s9 = inlined_call_operand.vmem [shape: f32[1,64], index: 9, kind: input, shape index: {}]   ;;  %s3575_s10 = inlined_call_operand.vmem [shape: bf16[32,32], index: 10, kind: input, shape index: {}]   ;;  %s3576_s11 = inlined_call_operand.vmem [shape: f32[1,32], index: 11, kind: input, shape index: {}]   ;;  %s3577_s12 = inlined_call_operand.vmem [shape: bf16[32,64], index: 12, kind: input, shape index: {}]   ;;  %s3578_s13 = inlined_call_operand.vmem [shape: f32[1,64], index: 13, kind: input, shape index: {}]   ;;  %s3579_s14 = inlined_call_operand.vmem [shape: bf16[64,32], index: 14, kind: input, shape index: {}]   ;;  %s3580_s15 = inlined_call_operand.vmem [shape: f32[1,32], index: 15, kind: input, shape index: {}]   ;;  %s3581_s16 = inlined_call_operand.hbm [shape: f32[1,32], index: 16, kind: input, shape index: {}]   ;;  %s3582_s17 = inlined_call_operand.hbm [shape: f32[1,32], index: 17, kind: input, shape index: {}]   ;;  %s3583_s18 = inlined_call_operand.hbm [shape: f32[1,32], index: 18, kind: input, shape index: {}]   ;;  %s3584_s19 = inlined_call_operand.hbm [shape: f32[1,32], index: 19, kind: input, shape index: {}]   ;;  %s3585_s20 = inlined_call_operand.hbm [shape: f32[1,32], index: 20, kind: input, shape index: {}]   ;;  %s3586_s21 = inlined_call_operand.hbm [shape: f32[1,32], index: 21, kind: input, shape index: {}]   ;;  %s3587_s22 = inlined_call_operand.vmem [shape: bf16[2,8,32], index: 22, kind: output, shape index: {}]  }
   0x1   :  { %3604 = sst [smem:[#allocation16_spill]] %s3565_s0 }
   0x2   :  { %3605 = sst [smem:[#allocation17_spill]] %s3566_s1 }
   0x3   :  { %3606 = sst [smem:[#allocation18_spill]] %s3567_s2 }
   0x4   :  { %3607 = sst [smem:[#allocation19_spill]] %s3568_s3 }
   0x5   :  { %3608 = sst [smem:[#allocation20_spill]] %s3569_s4 }
   0x6   :  { %3609 = sst [smem:[#allocation21_spill]] %s3570_s5 }
   0x7   :  { %3610 = sst [smem:[#allocation22_spill]] %s3571_s6 }
   0x8   :  { %27 = vsyncpa [#allocation3], 0 }
   0x9   :  { %28 = vsyncpa [#allocation5], 0 }
   0xa   :  { %29 = vsyncpa [#allocation8], 0 }
   0xb   :  { %30 = vsyncpa [#allocation11], 0  ;;  %s3160_s3 = smov 0  }
   0xc LB: > { %s3023_s28 = smov [#allocation4]   ;;  %s3166_s30 = sadd.s32 4294967295, %s3021_s3   ;;  %s3021_s3 = sphi %s3160_s3, %s36_s3  }
   0xd   : > { %s605_s29 = sshll.u32 %s3023_s28, 4  ;;  %p2415_p0 = scmp.ge.s32.totalorder %s3021_s3, 1  ;;  %s606_s29 = int_to_ptr.vmem [resolvable:$true] %s605_s29 }
   0xe   : > { %p539_p1 = scmp.lt.s32.totalorder %s3021_s3, 3  ;;  %p3591_p2 = scmp.eq.s32.totalorder %s3166_s30, 0 }
   0xf   : > { %s3024_s0 = smov [#allocation7]   ;;  %s3025_s1 = smov [#allocation2]  }
  0x10   : > { %p3171_p3 = pnand %p2415_p0, %p539_p1  ;;  %s627_s23 = sshll.u32 %s3024_s0, 4  ;;  %s3177_s23 = int_to_ptr.vmem [resolvable:$true] %s627_s23 }
  0x11   : > { %s594_s5 = sshll.u32 %s3025_s1, 4  ;;  %s3026_s6 = smov [#allocation6]   ;;  %s3185_s5 = int_to_ptr.vmem [resolvable:$true] %s594_s5 }
  0x12   : > { %p2726_p4 = pneg %p3171_p3  ;;  %s616_s25 = sshll.u32 %s3026_s6, 4  ;;  %s3187_s25 = int_to_ptr.vmem [resolvable:$true] %s616_s25 }
  0x13   : > { %s2854_s2 = scalar_lea.vmem %s606_s29, 16  ;;  %s2861_s27 = scalar_lea.vmem %s606_s29, 32 }
  0x14   : > { %p3181_p5 = pnand %p3591_p2, %p2726_p4  ;;  %p2855_p7 = scmp.ne.s32.totalorder %s606_s29, %s2854_s2 }
  0x15   : > { %p2862_p10 = scmp.lt.s32.totalorder %s606_s29, %s606_s29  ;;  %p2863_p11 = scmp.lt.s32.totalorder %s2861_s27, %s2854_s2 }
  0x16   : > { %p3191_p6 = pneg %p3181_p5 }
  0x17   : > { %p2864_p12 = por %p2863_p11, %p2862_p10 }
  0x18   : > { %p2857_p8 = pnand %p2855_p7, %p3191_p6 }
  0x1a   : > { %p2858_p9 = pneg %p2857_p8 }
  0x1c   : > { %p2865_p13 = pnand %p2864_p12, %p2858_p9 }
  0x1e   : > { %2868 = shalt.err (!%p2865_p13)
}
  0x1f   : > { %2732 = dma.hbm_to_vmem [thread:$0]  (!%p3181_p5), %s3582_s17, 16, %s606_s29, [#allocation5]  }
  0x20   : > { %s2880_s1 = scalar_lea.vmem %s3177_s23, 16  ;;  %s2887_s6 = scalar_lea.vmem %s3177_s23, 32 }
  0x21   : > { %p2881_p0 = scmp.ne.s32.totalorder %s3177_s23, %s2880_s1  ;;  %p2888_p7 = scmp.lt.s32.totalorder %s3177_s23, %s3177_s23 }
  0x22   : > { %p2889_p8 = scmp.lt.s32.totalorder %s2887_s6, %s2880_s1 }
  0x23   : > { %p2883_p1 = pnand %p2881_p0, %p3191_p6 }
  0x24   : > { %p2890_p9 = por %p2889_p8, %p2888_p7 }
  0x25   : > { %p2884_p4 = pneg %p2883_p1 }
  0x27   : > { %p2891_p10 = pnand %p2890_p9, %p2884_p4 }
  0x29   : > { %2894 = shalt.err (!%p2891_p10)
}
  0x2a   : > { %2738 = dma.hbm_to_vmem [thread:$0]  (!%p3181_p5), %s3584_s19, 16, %s3177_s23, [#allocation8]  }
  0x2b   : > { %s2906_s29 = scalar_lea.vmem %s3185_s5, 16  ;;  %s2913_s28 = scalar_lea.vmem %s3185_s5, 32 }
  0x2c   : > { %p2907_p11 = scmp.ne.s32.totalorder %s3185_s5, %s2906_s29  ;;  %p2914_p0 = scmp.lt.s32.totalorder %s3185_s5, %s3185_s5 }
  0x2d   : > { %p2915_p1 = scmp.lt.s32.totalorder %s2913_s28, %s2906_s29 }
  0x2e   : > { %p2909_p12 = pnand %p2907_p11, %p3191_p6 }
  0x2f   : > { %p2916_p4 = por %p2915_p1, %p2914_p0 }
  0x30   : > { %p2910_p13 = pneg %p2909_p12 }
  0x32   : > { %p2917_p7 = pnand %p2916_p4, %p2910_p13 }
  0x34   : > { %2920 = shalt.err (!%p2917_p7)
}
  0x35   : > { %2729 = dma.hbm_to_vmem [thread:$0]  (!%p3181_p5), %s3581_s16, 16, %s3185_s5, [#allocation3]  }
  0x36   : > { %s2932_s23 = scalar_lea.vmem %s3187_s25, 16  ;;  %s2939_s6 = scalar_lea.vmem %s3187_s25, 32 }
  0x37   : > { %p2933_p8 = scmp.ne.s32.totalorder %s3187_s25, %s2932_s23  ;;  %p2940_p11 = scmp.lt.s32.totalorder %s3187_s25, %s3187_s25 }
  0x38   : > { %p2941_p12 = scmp.lt.s32.totalorder %s2939_s6, %s2932_s23 }
  0x39   : > { %p2935_p9 = pnand %p2933_p8, %p3191_p6 }
  0x3a   : > { %p2942_p13 = por %p2941_p12, %p2940_p11 }
  0x3b   : > { %p2936_p10 = pneg %p2935_p9 }
  0x3d   : > { %p2943_p0 = pnand %p2942_p13, %p2936_p10 }
  0x3f   : > { %2946 = shalt.err (!%p2943_p0)
}
  0x40   : > { %2735 = dma.hbm_to_vmem [thread:$0]  (!%p3181_p5), %s3583_s18, 16, %s3187_s25, [#allocation5]  }
  0x41   : > { %s3027_s5 = smov [#allocation9]   ;;  %s3028_s28 = smov [#allocation10]  }
  0x42   : > { %s638_s29 = sshll.u32 %s3027_s5, 4  ;;  %s649_s0 = sshll.u32 %s3028_s28, 4  ;;  %s639_s29 = int_to_ptr.vmem [resolvable:$true] %s638_s29  ;;  %s650_s0 = int_to_ptr.vmem [resolvable:$true] %s649_s0 }
  0x43   : > { %s2958_s1 = scalar_lea.vmem %s639_s29, 16  ;;  %s2965_s23 = scalar_lea.vmem %s639_s29, 32 }
  0x44   : > { %p2959_p1 = scmp.ne.s32.totalorder %s639_s29, %s2958_s1  ;;  %p2966_p8 = scmp.lt.s32.totalorder %s639_s29, %s639_s29 }
  0x45   : > { %p2967_p9 = scmp.lt.s32.totalorder %s2965_s23, %s2958_s1 }
  0x46   : > { %p2961_p4 = pnand %p2959_p1, %p3191_p6 }
  0x47   : > { %p2968_p10 = por %p2967_p9, %p2966_p8 }
  0x48   : > { %p2962_p7 = pneg %p2961_p4 }
  0x4a   : > { %p2969_p11 = pnand %p2968_p10, %p2962_p7 }
  0x4c   : > { %2972 = shalt.err (!%p2969_p11)
}
  0x4d   : > { %2741 = dma.hbm_to_vmem [thread:$0]  (!%p3181_p5), %s3585_s20, 16, %s639_s29, [#allocation8]  }
  0x4e   : > { %s2984_s2 = scalar_lea.vmem %s650_s0, 16  ;;  %s2991_s27 = scalar_lea.vmem %s650_s0, 32 }
  0x4f   : > { %p2985_p12 = scmp.ne.s32.totalorder %s650_s0, %s2984_s2  ;;  %p2992_p1 = scmp.lt.s32.totalorder %s650_s0, %s650_s0 }
  0x50   : > { %p2993_p4 = scmp.lt.s32.totalorder %s2991_s27, %s2984_s2 }
  0x51   : > { %p2987_p13 = pnand %p2985_p12, %p3191_p6 }
  0x52   : > { %p2994_p2 = por %p2993_p4, %p2992_p1 }
  0x53   : > { %p2988_p0 = pneg %p2987_p13 }
  0x55   : > { %p2995_p8 = pnand %p2994_p2, %p2988_p0 }
  0x57   : > { %2998 = shalt.err (!%p2995_p8)
}
  0x58   : > { %2744 = dma.hbm_to_vmem [thread:$0]  (!%p3181_p5), %s3586_s21, 16, %s650_s0, [#allocation11]  }
  0x59   : > { %677 = sbr.rel (%p3171_p3) target bundleno = 4196 (0x1064), region = 108  ;;  %p3614_p7 = scmp.eq.s32.totalorder (!%p3171_p3), %s3166_s30, 0 }
  0x5e   : > { %3004 = dma.done.wait (%p3614_p7), [#allocation3], 16   ;;  %p3615_p6 = pmov %p3614_p7 }
  0x60   : > { %3006 = vsyncadd (%p3615_p6), [#allocation3], 4294967280  ;;  %p3616_p9 = pmov %p3615_p6 }
  0x61   : > { %p3617_p2 = pmov %p3615_p6 }
  0x62   : > { %3008 = dma.done.wait (%p3616_p9), [#allocation5], 32  }
  0x63   : > { %3010 = vsyncadd (%p3617_p2), [#allocation5], 4294967264  ;;  %p3618_p10 = pmov %p3617_p2 }
  0x64   : > { %p3619_p5 = pmov %p3617_p2 }
  0x65   : > { %3012 = dma.done.wait (%p3618_p10), [#allocation8], 32  }
  0x66   : > { %3014 = vsyncadd (%p3619_p5), [#allocation8], 4294967264  ;;  %p3620_p3 = pmov %p3617_p2 }
  0x67   : > { %p3621_p11 = pmov %p3617_p2 }
  0x68   : > { %3016 = dma.done.wait (%p3620_p3), [#allocation11], 16  }
  0x69   : > { %3018 = vsyncadd (%p3621_p11), [#allocation11], 4294967280  ;;  %p762_p12 = scmp.lt.s32.totalorder %s3166_s30, 1  ;;  %v3029_v0 = vmov 0.0   ;;  %vm3030_vm0 = vmmov 0   ;;  %s3622_s29 = sld [smem:[#allocation16_spill]]  ;;  %v850_v23 = vlaneseq }
  0x6a   : > { %2546 = vmatprep.subr.bf16.mxu1 %v3029_v0  ;;  %2550 = vmatprep.mubr.msk.bf16.mxu1 %vm3030_vm0, %v3029_v0  ;;  %s3623_s6 = sld [smem:[#allocation18_spill]]  ;;  %vm806_vm1 = vcmask 261120   ;;  %s3031_s24 = smov 120   ;;  %vm859_vm2 = vcmask 64512   ;;  %vm925_vm4 = vcmask 1043456   ;;  %vm1318_vm5 = vcmask 130048  }
  0x6b   : > { %s3640_s30 = smov (!%p762_p12, %s3166_s30), 1  ;;  %2560 = vmatprep.subr.bf16.mxu0 %v3029_v0  ;;  %2562 = vmatprep.mubr.msk.bf16.mxu0 %vm3030_vm0, %v3029_v0  ;;  %s3624_s28 = sld [smem:[#allocation19_spill]]  ;;  %v851_v24 = vshrl.u32 %v850_v23, 7  ;;  %v853_v25 = vand.u32 127, %v850_v23  ;;  %vm1320_vm6 = vcmask 195584   ;;  %vm2211_vm7 = vcmask 523264  }
  0x6c   : > { %s3592_s4 = sshll.u32 %s3640_s30, 2  ;;  %s3599_s26 = smov 96   ;;  %vm2286_vm8 = vcmask 257024  }
  0x6d   : > { %s3594_s1 = smov 72   ;;  %s3602_s23 = smov 112   ;;  %vm854_vm3 = vcmp.ge.s32.totalorder %v851_v24, %v853_v25 }
  0x6e   : > { %s3600_s25 = smov 104   ;;  %s3038_s2 = smov 56  }
  0x6f   : > { %s765_s0 = scalar_lea.vmem %s3622_s29, %s3592_s4  ;;  %s3598_s29 = smov 80  }
  0x70   : > { %v2787_v1 = vld [vmem:[%s3623_s6 + $0x8] sm:$0xff]   ;;  %v2788_v2 = vld [vmem:[%s3623_s6] sm:$0xff]   ;;  %s3039_s27 = smov 64   ;;  %s3040_s5 = smov 40  }
  0x71   : > { %2547 = vmatpush3.bf16.msra.mxu1 %v2787_v1  ;;  %v3295_v3 = vld [vmem:[%s765_s0] sm:$0xf]  ;;  %s3593_s0 = smov 88   ;;  %s3634_s4 = smov 88  }
  0x72   : > { %2548 = vmatprep.subr.bf16.mxu1 %v3029_v0  ;;  %v2434_v4 = vcombine.low %v3295_v3, %v3295_v3  ;;  %v2435_v5 = vld [vmem:[%s3624_s28] ss:$0 sm:$0xff]  ;;  %s3041_s28 = smov 48  }
  0x75   : > { %2549 = vmatpush3.bf16.msra.mxu1 %v2788_v2 }
  0x76   : > { %2554 = vmatprep.subr.bf16.mxu1 %v3029_v0 }
  0x78   : > { %2551 = vmatmul.mubr.msk.bf16.vlgmr.msra.gmra.mxu1 %vm806_vm1, %v2434_v4 }
  0x79   : > { %2556 = vmatprep.mubr.msk.bf16.mxu1 %vm3030_vm0, %v3029_v0 }
 0x138   : > { %v844_v6 = vpop.f32.mrf.mxu1 }
 0x139   : > { %v845_v7 = vadd.f32 %v2435_v5, %v844_v6 }
 0x13a   : > { %v2552_v8 = vpop.f32.mrf.mxu1 }
 0x13b   : > { %v3307_v9 = vpack.c.bf16 %v845_v7, %v845_v7 }
 0x13c   : > { %v847_v10 = vpop.f32.mrf.mxu1 }
 0x13d   : > { %969 = vrot.lane.b32.xlu1 %v3307_v9, %s3031_s24  ;;  %857 = vrot.lane.b32.xlu0 %v3307_v9, %s3599_s26  ;;  %s3628_s26 = sld [smem:[#allocation22_spill]] }
 0x13e   : > { %v2553_v11 = vpop.f32.mrf.mxu1 }
 0x141   : > { %1083 = vrot.lane.b32.xlu1 %v3307_v9, %s3598_s29  ;;  %971 = vrot.lane.b32.xlu0 %v3307_v9, %s3593_s0  ;;  %s2490_s0 = sshll.u32 %s3640_s30, 3 }
 0x145   : > { %1195 = vrot.lane.b32.xlu1 %v3307_v9, %s3594_s1  ;;  %1081 = vrot.lane.b32.xlu0 %v3307_v9, %s3602_s23  ;;  %s3596_s1 = smov 16  }
 0x149   : > { %1193 = vrot.lane.b32.xlu0 %v3307_v9, %s3600_s25  ;;  %s3629_s25 = smov 112  }
 0x1af   : > { %v858_v12 = vpop.permute.xlu0 %857  ;;  %v970_v15 = vpop.permute.xlu1 %969 }
 0x1b0   : > { %v864_v13 = vsel %vm859_vm2, %v858_v12, 0 }
 0x1b1   : > { %2555 = vmatpush3.bf16.xpose.msra.mxu1 %v864_v13 }
 0x1b2   : > { %2566 = vmatprep.subr.bf16.mxu1 %v3029_v0 }
 0x1b3   : > { %v972_v14 = vpop.permute.xlu0 %971  ;;  %v1084_v17 = vpop.permute.xlu1 %1083 }
 0x1b4   : > { %v977_v16 = vsel %vm859_vm2, %v972_v14, 0  ;;  %v1089_v18 = vsel %vm859_vm2, %v1084_v17, 0 }
 0x1b7   : > { %v1196_v19 = vpop.permute.xlu1 %1195  ;;  %v1082_v20 = vpop.permute.xlu0 %1081 }
 0x1b8   : > { %2557 = vmatmul.mubr.msk.bf16.vlgmr.msra.gmra.mxu1 %vm859_vm2, %v3307_v9  ;;  %v1201_v21 = vsel %vm859_vm2, %v1196_v19, 0 }
 0x1b9   : > { %2567 = vmatpush3.bf16.xpose.msra.mxu1 %v977_v16  ;;  %2568 = vmatprep.mubr.msk.bf16.mxu1 %vm3030_vm0, %v3029_v0 }
 0x1ba   : > { %2578 = vmatprep.subr.bf16.mxu1 %v3029_v0 }
 0x1bb   : > { %v1194_v22 = vpop.permute.xlu0 %1193 }
 0x1c0   : > { %2569 = vmatmul.mubr.msk.bf16.vlgmr.msra.gmra.mxu1 %vm859_vm2, %v970_v15 }
 0x1c1   : > { %2579 = vmatpush3.bf16.xpose.msra.mxu1 %v1089_v18  ;;  %2580 = vmatprep.mubr.msk.bf16.mxu1 %vm3030_vm0, %v3029_v0 }
 0x1c2   : > { %2590 = vmatprep.subr.bf16.mxu1 %v3029_v0 }
 0x1c8   : > { %2581 = vmatmul.mubr.msk.bf16.vlgmr.msra.gmra.mxu1 %vm859_vm2, %v1082_v20 }
 0x1c9   : > { %2591 = vmatpush3.bf16.xpose.msra.mxu1 %v1201_v21  ;;  %2592 = vmatprep.mubr.msk.bf16.mxu1 %vm3030_vm0, %v3029_v0 }
 0x1ca   : > { %2602 = vmatprep.subr.bf16.mxu1 %v3029_v0 }
 0x1d0   : > { %2593 = vmatmul.mubr.msk.bf16.vlgmr.msra.gmra.mxu1 %vm859_vm2, %v1194_v22 }
 0x1d1   : > { %2606 = vmatprep.mubr.msk.bf16.mxu1 %vm3030_vm0, %v3029_v0 }
 0x278   : > { %v900_v26 = vpop.f32.mrf.mxu1 }
 0x279   : > { %v906_v27 = vmul.f32 0.35355338, %v900_v26 }
 0x27a   : > { %v2558_v28 = vpop.f32.mrf.mxu1 }
 0x27b   : > { %v907_v29 = vsel %vm854_vm3, %v906_v27, -1e+30 }
 0x27c   : > { %v903_v30 = vpop.f32.mrf.mxu1  ;;  %v908_v31 = vsel %vm859_vm2, %v907_v29, -inf }
 0x27d   : > { %909 = vmax.xlane.f32.xlu1 %v908_v31 }
 0x27e   : > { %v2559_v32 = vpop.f32.mrf.mxu1 }
 0x280   : > { %v1013_v33 = vpop.f32.mrf.mxu1 }
 0x281   : > { %v1019_v34 = vmul.f32 0.35355338, %v1013_v33 }
 0x282   : > { %v2570_v35 = vpop.f32.mrf.mxu1 }
 0x283   : > { %v1020_v36 = vsel %vm854_vm3, %v1019_v34, -1e+30 }
 0x284   : > { %v1016_v37 = vpop.f32.mrf.mxu1  ;;  %v1021_v38 = vsel %vm859_vm2, %v1020_v36, -inf }
 0x285   : > { %1022 = vmax.xlane.f32.xlu0 %v1021_v38 }
 0x286   : > { %v2571_v39 = vpop.f32.mrf.mxu1 }
 0x288   : > { %v1125_v40 = vpop.f32.mrf.mxu1 }
 0x289   : > { %v1131_v41 = vmul.f32 0.35355338, %v1125_v40 }
 0x28a   : > { %v2582_v42 = vpop.f32.mrf.mxu1 }
 0x28b   : > { %v1132_v43 = vsel %vm854_vm3, %v1131_v41, -1e+30 }
 0x28c   : > { %v1128_v44 = vpop.f32.mrf.mxu1  ;;  %v1133_v45 = vsel %vm859_vm2, %v1132_v43, -inf }
 0x28d   : > { %1134 = vmax.xlane.f32.xlu0 %v1133_v45 }
 0x28e   : > { %v2583_v46 = vpop.f32.mrf.mxu1 }
 0x290   : > { %v1237_v47 = vpop.f32.mrf.mxu1 }
 0x291   : > { %v1243_v48 = vmul.f32 0.35355338, %v1237_v47 }
 0x292   : > { %v2594_v49 = vpop.f32.mrf.mxu1 }
 0x293   : > { %v1244_v50 = vsel %vm854_vm3, %v1243_v48, -1e+30 }
 0x294   : > { %v1240_v51 = vpop.f32.mrf.mxu1  ;;  %v1245_v52 = vsel %vm859_vm2, %v1244_v50, -inf }
 0x295   : > { %1246 = vmax.xlane.f32.xlu1 %v1245_v52 }
 0x296   : > { %v2595_v53 = vpop.f32.mrf.mxu1 }
 0x306   : > { %v910_v54 = vpop.xlane.xlu1 %909 }
 0x307   : > { %v911_v55 = vsub.f32 %v907_v29, %v910_v54 }
 0x309   : > { %v912_v56 = vmul.f32 1.442695, %v911_v55 }
 0x30b   : > { %2805 = vpow2.f32 %v912_v56 }
 0x30e   : > { %v1023_v57 = vpop.xlane.xlu0 %1022 }
 0x30f   : > { %v1024_v58 = vsub.f32 %v1020_v36, %v1023_v57 }
 0x311   : > { %v1025_v59 = vmul.f32 1.442695, %v1024_v58 }
 0x313   : > { %2807 = vpow2.f32 %v1025_v59 }
 0x316   : > { %v1135_v60 = vpop.xlane.xlu0 %1134 }
 0x317   : > { %v1136_v61 = vsub.f32 %v1132_v43, %v1135_v60 }
 0x318   : > { %v2806_v62 = vpop.eup %2805 }
 0x319   : > { %v1137_v63 = vmul.f32 1.442695, %v1136_v61  ;;  %v914_v1 = vsel %vm859_vm2, %v2806_v62, 0.0 }
 0x31a   : > { %915 = vadd.xlane.f32.xlu0 %v914_v1 }
 0x31b   : > { %2809 = vpow2.f32 %v1137_v63 }
 0x31e   : > { %v1247_v7 = vpop.xlane.xlu1 %1246 }
 0x31f   : > { %v1248_v8 = vsub.f32 %v1244_v50, %v1247_v7 }
 0x320   : > { %v2808_v2 = vpop.eup %2807 }
 0x321   : > { %v1027_v4 = vsel %vm859_vm2, %v2808_v2, 0.0  ;;  %v1249_v10 = vmul.f32 1.442695, %v1248_v8  ;;  %v2792_v8 = vld [vmem:[%s3573_s8 + $0x8] sm:$0xff]  }
 0x322   : > { %1028 = vadd.xlane.f32.xlu1 %v1027_v4 }
 0x323   : > { %2811 = vpow2.f32 %v1249_v10  ;;  %v2793_v10 = vld [vmem:[%s3573_s8] sm:$0xff]  }
 0x328   : > { %v2810_v5 = vpop.eup %2809 }
 0x329   : > { %v1139_v6 = vsel %vm859_vm2, %v2810_v5, 0.0 }
 0x32a   : > { %1140 = vadd.xlane.f32.xlu0 %v1139_v6 }
 0x330   : > { %v2812_v11 = vpop.eup %2811 }
 0x331   : > { %v1251_v12 = vsel %vm859_vm2, %v2812_v11, 0.0 }
 0x333   : > { %1033 = vrot.lane.b32.xlu1 %v3307_v9, %s3038_s2  ;;  %s3597_s2 = smov 8  }
 0x340   : > { %920 = vrot.lane.b32.xlu0 %v3307_v9, %s3039_s27  ;;  %s3595_s27 = smov 24  }
 0x344   : > { %1257 = vrot.lane.b32.xlu0 %v3307_v9, %s3040_s5  ;;  %s3626_s5 = sld [smem:[#allocation21_spill]] }
 0x34a   : > { %v2447_v61 = vld [vmem:[%s3626_s5] ss:$0 sm:$0xff]  ;;  %s3627_s5 = sld [smem:[#allocation17_spill]] }
 0x350   : > { %s770_s29 = scalar_lea.vmem %s3627_s5, %s2490_s0  ;;  %s3630_s0 = smov 104  }
 0x351   : > { %s3632_s5 = smov 80  }
 0x357   : > { %1252 = vadd.xlane.f32.xlu1 %v1251_v12 }
 0x368   : > { %1145 = vrot.lane.b32.xlu1 %v3307_v9, %s3041_s28  ;;  %s3625_s28 = sld [smem:[#allocation20_spill]] }
 0x36e   : > { %v2790_v44 = vld [vmem:[%s3625_s28 + $0x8] sm:$0xff]   ;;  %v2791_v45 = vld [vmem:[%s3625_s28] sm:$0xff]  }
 0x36f   : > { %2603 = vmatpush3.bf16.msra.mxu1 %v2790_v44 }
 0x370   : > { %2604 = vmatprep.subr.bf16.mxu1 %v3029_v0 }
 0x373   : > { %2605 = vmatpush3.bf16.msra.mxu1 %v2791_v45 }
 0x374   : > { %2618 = vmatprep.subr.bf16.mxu1 %v3029_v0 }
 0x3a3   : > { %v916_v13 = vpop.xlane.xlu0 %915 }
 0x3a4   : > { %2813 = vrcp.f32 %v916_v13 }
 0x3ab   : > { %v1029_v14 = vpop.xlane.xlu1 %1028 }
 0x3ac   : > { %2815 = vrcp.f32 %v1029_v14 }
 0x3af   : > { %v1034_v20 = vpop.permute.xlu1 %1033 }
 0x3b0   : > { %v1039_v23 = vsel %vm925_vm4, %v1034_v20, 0 }
 0x3b1   : > { %v2814_v15 = vpop.eup %2813 }
 0x3b2   : > { %v918_v17 = vmul.f32 %v2814_v15, %v2806_v62  ;;  %v777_v62 = vunpack.c.l.bf16 %v3295_v3  ;;  %v2794_v15 = vld [vmem:[%s770_s29] sm:$0xff]  }
 0x3b3   : > { %v1141_v16 = vpop.xlane.xlu0 %1140 }
 0x3b4   : > { %v919_v21 = vpack.c.bf16 %v918_v17, %v918_v17  ;;  %2817 = vrcp.f32 %v1141_v16  ;;  %v2795_v16 = vld [vmem:[%s3628_s26 + $0x8] sm:$0xff]   ;;  %v2796_v17 = vld [vmem:[%s3628_s26] sm:$0xff]  }
 0x3b7   : > { %v921_v18 = vpop.permute.xlu0 %920 }
 0x3b8   : > { %v927_v19 = vsel %vm925_vm4, %v921_v18, 0 }
 0x3b9   : > { %2561 = vmatpush3.bf16.msra.mxu0 %v927_v19  ;;  %v2816_v22 = vpop.eup %2815 }
 0x3ba   : > { %2572 = vmatprep.subr.bf16.mxu0 %v3029_v0  ;;  %v1031_v9 = vmul.f32 %v2816_v22, %v2808_v2  ;;  %v2451_v22 = vld [vmem:[#allocation2] ss:$0 sm:$0xff] }
 0x3bb   : > { %v1258_v30 = vpop.permute.xlu0 %1257 }
 0x3bc   : > { %2563 = vmatmul.mubr.msk.bf16.vlgmr.msra.gmra.mxu0 %vm859_vm2, %v919_v21  ;;  %v1032_v24 = vpack.c.bf16 %v1031_v9, %v1031_v9  ;;  %v1263_v32 = vsel %vm925_vm4, %v1258_v30, 0  ;;  %v2452_v9 = vld [vmem:[#allocation4] ss:$0 sm:$0xff] }
 0x3bd   : > { %2573 = vmatpush3.bf16.msra.mxu0 %v1039_v23  ;;  %2574 = vmatprep.mubr.msk.bf16.mxu0 %vm3030_vm0, %v3029_v0 }
 0x3be   : > { %2584 = vmatprep.subr.bf16.mxu0 %v3029_v0 }
 0x3c1   : > { %v2818_v25 = vpop.eup %2817 }
 0x3c2   : > { %v1143_v27 = vmul.f32 %v2818_v25, %v2810_v5 }
 0x3c4   : > { %2575 = vmatmul.mubr.msk.bf16.vlgmr.msra.gmra.mxu0 %vm859_vm2, %v1032_v24  ;;  %v1144_v31 = vpack.c.bf16 %v1143_v27, %v1143_v27  ;;  %v2458_v27 = vld [vmem:[%s3574_s9] ss:$0 sm:$0xff] }
 0x3c5   : > { %2586 = vmatprep.mubr.msk.bf16.mxu0 %vm3030_vm0, %v3029_v0 }
 0x3e0   : > { %v1253_v26 = vpop.xlane.xlu1 %1252 }
 0x3e1   : > { %2819 = vrcp.f32 %v1253_v26 }
 0x3e4   : > { %v1146_v28 = vpop.permute.xlu1 %1145 }
 0x3e5   : > { %v1151_v29 = vsel %vm925_vm4, %v1146_v28, 0 }
 0x3e6   : > { %2585 = vmatpush3.bf16.msra.mxu0 %v1151_v29 }
 0x3e7   : > { %2596 = vmatprep.subr.bf16.mxu0 %v3029_v0 }
 0x3e9   : > { %2587 = vmatmul.mubr.msk.bf16.vlgmr.msra.gmra.mxu0 %vm859_vm2, %v1144_v31 }
 0x3ea   : > { %2597 = vmatpush3.bf16.msra.mxu0 %v1263_v32  ;;  %2598 = vmatprep.mubr.msk.bf16.mxu0 %vm3030_vm0, %v3029_v0 }
 0x3eb   : > { %2610 = vmatprep.subr.bf16.mxu0 %v3029_v0 }
 0x3ee   : > { %v2820_v33 = vpop.eup %2819 }
 0x3ef   : > { %v1255_v34 = vmul.f32 %v2820_v33, %v2812_v11 }
 0x3f1   : > { %v1256_v35 = vpack.c.bf16 %v1255_v34, %v1255_v34 }
 0x3f3   : > { %2599 = vmatmul.mubr.msk.bf16.vlgmr.msra.gmra.mxu0 %vm859_vm2, %v1256_v35 }
 0x3f4   : > { %2614 = vmatprep.mubr.msk.bf16.mxu0 %vm3030_vm0, %v3029_v0  ;;  %2611 = vmatpush3.bf16.msra.mxu0 %v2795_v16 }
 0x3f5   : > { %2612 = vmatprep.subr.bf16.mxu0 %v3029_v0 }
 0x3f8   : > { %2613 = vmatpush3.bf16.msra.mxu0 %v2796_v17 }
 0x3f9   : > { %2626 = vmatprep.subr.bf16.mxu0 %v3029_v0 }
 0x47c   : > { %v963_v36 = vpop.f32.mrf.mxu0 }
 0x47e   : > { %v2564_v37 = vpop.f32.mrf.mxu0 }
 0x480   : > { %v966_v38 = vpop.f32.mrf.mxu0 }
 0x482   : > { %v2565_v39 = vpop.f32.mrf.mxu0 }
 0x484   : > { %v1075_v40 = vpop.f32.mrf.mxu0 }
 0x485   : > { %1306 = vrot.lane.b32.xlu1 %v1075_v40, %s3597_s2  ;;  %s3633_s2 = smov 72  }
 0x486   : > { %v2576_v41 = vpop.f32.mrf.mxu0 }
 0x488   : > { %v1078_v42 = vpop.f32.mrf.mxu0 }
 0x48a   : > { %v2577_v43 = vpop.f32.mrf.mxu0 }
 0x4a9   : > { %v1187_v46 = vpop.f32.mrf.mxu0 }
 0x4aa   : > { %1310 = vrot.lane.b32.xlu0 %v1187_v46, %s3596_s1 }
 0x4ab   : > { %v2588_v47 = vpop.f32.mrf.mxu0 }
 0x4ad   : > { %v1190_v48 = vpop.f32.mrf.mxu0 }
 0x4af   : > { %v2589_v49 = vpop.f32.mrf.mxu0 }
 0x4b3   : > { %v1299_v50 = vpop.f32.mrf.mxu0 }
 0x4b4   : > { %1314 = vrot.lane.b32.xlu1 %v1299_v50, %s3595_s27  ;;  %s3636_s27 = smov 16  }
 0x4b5   : > { %v2600_v51 = vpop.f32.mrf.mxu0 }
 0x4b7   : > { %v1302_v52 = vpop.f32.mrf.mxu0 }
 0x4b9   : > { %v2601_v53 = vpop.f32.mrf.mxu0 }
 0x4f7   : > { %v1307_v54 = vpop.permute.xlu1 %1306 }
 0x4f8   : > { %v1317_v56 = vsel %vm859_vm2, %v963_v36, %v1307_v54  ;;  %v2453_v36 = vld [vmem:[%s3572_s7] ss:$0 sm:$0xff] }
 0x51c   : > { %v1311_v55 = vpop.permute.xlu0 %1310 }
 0x51d   : > { %v1319_v57 = vsel %vm1318_vm5, %v1317_v56, %v1311_v55 }
 0x526   : > { %v1315_v58 = vpop.permute.xlu1 %1314 }
 0x527   : > { %v1321_v59 = vsel %vm1320_vm6, %v1319_v57, %v1315_v58 }
 0x528   : > { %v1322_v60 = vpack.c.bf16 %v1321_v59, %v1321_v59 }
 0x52a   : > { %2607 = vmatmul.mubr.msk.bf16.vlgmr.msra.gmra.mxu1 %vm806_vm1, %v1322_v60 }
 0x52b   : > { %2622 = vmatprep.mubr.msk.bf16.mxu1 %vm3030_vm0, %v3029_v0  ;;  %2619 = vmatpush3.bf16.msra.mxu1 %v2792_v8 }
 0x52c   : > { %2620 = vmatprep.subr.bf16.mxu1 %v3029_v0 }
 0x52f   : > { %2621 = vmatpush3.bf16.msra.mxu1 %v2793_v10 }
 0x530   : > { %2632 = vmatprep.subr.bf16.mxu1 %v3029_v0 }
 0x532   : > { %2623 = vmatmul.mubr.msk.bf16.vlgmr.msra.gmra.mxu1 %vm806_vm1, %v2794_v15 }
 0x533   : > { %2634 = vmatprep.mubr.msk.bf16.mxu1 %vm3030_vm0, %v3029_v0 }
 0x5ea   : > { %v1383_v63 = vpop.f32.mrf.mxu1 }
 0x5eb   : > { %v1384_v1 = vadd.f32 %v2447_v61, %v1383_v63 }
 0x5ec   : > { %v2608_v2 = vpop.f32.mrf.mxu1 }
 0x5ed   : > { %v1389_v4 = vadd.f32 %v1384_v1, %v777_v62 }
 0x5ee   : > { %v1386_v5 = vpop.f32.mrf.mxu1 }
 0x5ef   : > { %v1390_v6 = vsel %vm806_vm1, %v1389_v4, 0.0 }
 0x5f0   : > { %v2609_v7 = vpop.f32.mrf.mxu1  ;;  %1391 = vadd.xlane.f32.xlu0 %v1390_v6 }
 0x5f2   : > { %v1548_v28 = vpop.f32.mrf.mxu1 }
 0x5f3   : > { %v1549_v30 = vadd.f32 %v2458_v27, %v1548_v28 }
 0x5f4   : > { %v2624_v29 = vpop.f32.mrf.mxu1 }
 0x5f6   : > { %v1551_v31 = vpop.f32.mrf.mxu1 }
 0x5f7   : > { %v1552_v32 = vadd.f32 %v2458_v27, %v1551_v31 }
 0x5f8   : > { %v2625_v33 = vpop.f32.mrf.mxu1 }
 0x5f9   : > { %v3436_v34 = vpack.c.bf16 %v1552_v32, %v1549_v30 }
 0x5fb   : > { %v1561_v35 = vsel %vm859_vm2, %v3436_v34, 0 }
 0x606   : > { %1666 = vrot.lane.b32.xlu0 %v3436_v34, %s3031_s24 }
 0x60a   : > { %1775 = vrot.lane.b32.xlu0 %v3436_v34, %s3629_s25 }
 0x60e   : > { %1884 = vrot.lane.b32.xlu0 %v3436_v34, %s3630_s0 }
 0x679   : > { %v1392_v3 = vpop.xlane.xlu0 %1391 }
 0x67a   : > { %v1394_v11 = vmul.f32 0.03125, %v1392_v3 }
 0x67c   : > { %v1395_v12 = vsub.f32 %v1389_v4, %v1394_v11 }
 0x67d   : > { %v1667_v40 = vpop.permute.xlu0 %1666 }
 0x67e   : > { %v1396_v13 = vmul.f32 %v1395_v12, %v1395_v12  ;;  %v1672_v42 = vsel %vm859_vm2, %v1667_v40, 0 }
 0x680   : > { %v1397_v14 = vsel %vm806_vm1, %v1396_v13, 0.0 }
 0x681   : > { %1398 = vadd.xlane.f32.xlu1 %v1397_v14  ;;  %v1776_v45 = vpop.permute.xlu0 %1775 }
 0x682   : > { %v1781_v47 = vsel %vm859_vm2, %v1776_v45, 0 }
 0x685   : > { %v1885_v48 = vpop.permute.xlu0 %1884 }
 0x686   : > { %v1890_v50 = vsel %vm859_vm2, %v1885_v48, 0 }
 0x70a   : > { %v1399_v18 = vpop.xlane.xlu1 %1398 }
 0x70b   : > { %v1400_v19 = vmul.f32 0.03125, %v1399_v18 }
 0x70d   : > { %v1401_v20 = vadd.f32 1e-05, %v1400_v19 }
 0x70f   : > { %2821 = vrsqrt.f32 %v1401_v20 }
 0x71c   : > { %v2822_v21 = vpop.eup %2821 }
 0x71d   : > { %v1403_v23 = vmul.f32 %v2822_v21, %v1395_v12 }
 0x71f   : > { %v1411_v24 = vmul.f32 %v2451_v22, %v1403_v23 }
 0x721   : > { %v3426_v25 = vadd.f32 %v2452_v9, %v1411_v24 }
 0x723   : > { %v1420_v26 = vpack.c.bf16 %v3426_v25, %v3426_v25 }
 0x725   : > { %2615 = vmatmul.mubr.msk.bf16.vlgmr.msra.gmra.mxu0 %vm806_vm1, %v1420_v26 }
 0x726   : > { %2628 = vmatprep.mubr.msk.bf16.mxu0 %vm3030_vm0, %v3029_v0  ;;  %2627 = vmatpush3.bf16.xpose.msra.mxu0 %v1561_v35 }
 0x727   : > { %2638 = vmatprep.subr.bf16.mxu0 %v3029_v0 }
 0x7e5   : > { %v1481_v37 = vpop.f32.mrf.mxu0 }
 0x7e6   : > { %v1482_v38 = vadd.f32 %v2453_v36, %v1481_v37 }
 0x7e7   : > { %v2616_v39 = vpop.f32.mrf.mxu0 }
 0x7e8   : > { %v1555_v41 = vpack.c.bf16 %v1482_v38, %v1482_v38 }
 0x7e9   : > { %v1484_v43 = vpop.f32.mrf.mxu0 }
 0x7ea   : > { %1664 = vrot.lane.b32.xlu1 %v1555_v41, %s3031_s24  ;;  %2629 = vmatmul.mubr.msk.bf16.vlgmr.msra.gmra.mxu0 %vm859_vm2, %v1555_v41  ;;  %s3631_s24 = smov 96  }
 0x7eb   : > { %v2617_v44 = vpop.f32.mrf.mxu0  ;;  %2639 = vmatpush3.bf16.xpose.msra.mxu0 %v1672_v42  ;;  %2640 = vmatprep.mubr.msk.bf16.mxu0 %vm3030_vm0, %v3029_v0 }
 0x7ec   : > { %2650 = vmatprep.subr.bf16.mxu0 %v3029_v0 }
 0x7ee   : > { %1773 = vrot.lane.b32.xlu1 %v1555_v41, %s3629_s25  ;;  %s3635_s25 = smov 8  }
 0x7f2   : > { %1882 = vrot.lane.b32.xlu1 %v1555_v41, %s3630_s0 }
 0x85c   : > { %v1665_v46 = vpop.permute.xlu1 %1664 }
 0x85d   : > { %2641 = vmatmul.mubr.msk.bf16.vlgmr.msra.gmra.mxu0 %vm859_vm2, %v1665_v46 }
 0x85e   : > { %2651 = vmatpush3.bf16.xpose.msra.mxu0 %v1781_v47  ;;  %2652 = vmatprep.mubr.msk.bf16.mxu0 %vm3030_vm0, %v3029_v0 }
 0x85f   : > { %2662 = vmatprep.subr.bf16.mxu0 %v3029_v0 }
 0x860   : > { %v1774_v49 = vpop.permute.xlu1 %1773 }
 0x864   : > { %v1883_v51 = vpop.permute.xlu1 %1882 }
 0x865   : > { %2653 = vmatmul.mubr.msk.bf16.vlgmr.msra.gmra.mxu0 %vm859_vm2, %v1774_v49 }
 0x866   : > { %2663 = vmatpush3.bf16.xpose.msra.mxu0 %v1890_v50  ;;  %2664 = vmatprep.mubr.msk.bf16.mxu0 %vm3030_vm0, %v3029_v0 }
 0x867   : > { %2674 = vmatprep.subr.bf16.mxu0 %v3029_v0 }
 0x86d   : > { %2665 = vmatmul.mubr.msk.bf16.vlgmr.msra.gmra.mxu0 %vm859_vm2, %v1883_v51 }
 0x86e   : > { %2678 = vmatprep.mubr.msk.bf16.mxu0 %vm3030_vm0, %v3029_v0 }
 0x8aa   : > { %v1597_v52 = vpop.f32.mrf.mxu0 }
 0x8ab   : > { %v1603_v53 = vmul.f32 0.35355338, %v1597_v52 }
 0x8ac   : > { %v2630_v54 = vpop.f32.mrf.mxu0 }
 0x8ad   : > { %v1604_v55 = vsel %vm1318_vm5, %v1603_v53, -inf }
 0x8ae   : > { %1605 = vmax.xlane.f32.xlu0 %v1604_v55  ;;  %v1600_v56 = vpop.f32.mrf.mxu0 }
 0x8b0   : > { %v2631_v57 = vpop.f32.mrf.mxu0 }
 0x91d   : > { %v1708_v58 = vpop.f32.mrf.mxu0 }
 0x91e   : > { %v1714_v59 = vmul.f32 0.35355338, %v1708_v58  ;;  %v2797_v58 = vld [vmem:[%s3575_s10 + $0x8] sm:$0xff]  }
 0x91f   : > { %v2642_v60 = vpop.f32.mrf.mxu0  ;;  %2675 = vmatpush3.bf16.msra.mxu0 %v2797_v58 }
 0x920   : > { %v1715_v61 = vsel %vm1318_vm5, %v1714_v59, -inf  ;;  %2676 = vmatprep.subr.bf16.mxu0 %v3029_v0 }
 0x921   : > { %1716 = vmax.xlane.f32.xlu1 %v1715_v61  ;;  %v1711_v62 = vpop.f32.mrf.mxu0  ;;  %v2798_v61 = vld [vmem:[%s3575_s10] sm:$0xff]  }
 0x923   : > { %v2643_v63 = vpop.f32.mrf.mxu0  ;;  %2677 = vmatpush3.bf16.msra.mxu0 %v2798_v61 }
 0x924   : > { %2690 = vmatprep.subr.bf16.mxu0 %v3029_v0 }
 0x925   : > { %v1817_v1 = vpop.f32.mrf.mxu0 }
 0x926   : > { %v1823_v2 = vmul.f32 0.35355338, %v1817_v1 }
 0x927   : > { %v2654_v4 = vpop.f32.mrf.mxu0 }
 0x928   : > { %v1824_v5 = vsel %vm1318_vm5, %v1823_v2, -inf }
 0x929   : > { %1825 = vmax.xlane.f32.xlu0 %v1824_v5  ;;  %v1820_v6 = vpop.f32.mrf.mxu0 }
 0x92b   : > { %v2655_v7 = vpop.f32.mrf.mxu0 }
 0x92d   : > { %v1926_v8 = vpop.f32.mrf.mxu0 }
 0x92e   : > { %v1932_v10 = vmul.f32 0.35355338, %v1926_v8 }
 0x92f   : > { %v2666_v3 = vpop.f32.mrf.mxu0 }
 0x930   : > { %v1933_v11 = vsel %vm1318_vm5, %v1932_v10, -inf }
 0x931   : > { %1934 = vmax.xlane.f32.xlu0 %v1933_v11  ;;  %v1929_v12 = vpop.f32.mrf.mxu0 }
 0x933   : > { %v2667_v13 = vpop.f32.mrf.mxu0 }
 0x937   : > { %v1606_v14 = vpop.xlane.xlu0 %1605 }
 0x938   : > { %v1607_v15 = vsub.f32 %v1603_v53, %v1606_v14 }
 0x93a   : > { %v1608_v16 = vmul.f32 1.442695, %v1607_v15 }
 0x93c   : > { %2823 = vpow2.f32 %v1608_v16 }
 0x949   : > { %v2824_v17 = vpop.eup %2823 }
 0x94a   : > { %v1610_v18 = vsel %vm1318_vm5, %v2824_v17, 0.0 }
 0x94b   : > { %1611 = vadd.xlane.f32.xlu1 %v1610_v18 }
 0x95c   : > { %1617 = vrot.lane.b32.xlu1 %v3436_v34, %s3631_s24  ;;  %s3637_s24 = smov 24  }
 0x9aa   : > { %v1717_v19 = vpop.xlane.xlu1 %1716 }
 0x9ab   : > { %v1718_v20 = vsub.f32 %v1714_v59, %v1717_v19 }
 0x9ad   : > { %v1719_v21 = vmul.f32 1.442695, %v1718_v20 }
 0x9af   : > { %2825 = vpow2.f32 %v1719_v21 }
 0x9b2   : > { %v1826_v22 = vpop.xlane.xlu0 %1825 }
 0x9b3   : > { %v1827_v23 = vsub.f32 %v1823_v2, %v1826_v22 }
 0x9b5   : > { %v1828_v9 = vmul.f32 1.442695, %v1827_v23 }
 0x9b7   : > { %2827 = vpow2.f32 %v1828_v9 }
 0x9ba   : > { %v1935_v24 = vpop.xlane.xlu0 %1934 }
 0x9bb   : > { %v1936_v26 = vsub.f32 %v1932_v10, %v1935_v24 }
 0x9bc   : > { %v2826_v27 = vpop.eup %2825 }
 0x9bd   : > { %v1937_v28 = vmul.f32 1.442695, %v1936_v26  ;;  %v1721_v29 = vsel %vm1318_vm5, %v2826_v27, 0.0 }
 0x9be   : > { %1722 = vadd.xlane.f32.xlu0 %v1721_v29 }
 0x9bf   : > { %2829 = vpow2.f32 %v1937_v28 }
 0x9c4   : > { %v2828_v30 = vpop.eup %2827 }
 0x9c5   : > { %v1830_v31 = vsel %vm1318_vm5, %v2828_v30, 0.0 }
 0x9c6   : > { %1831 = vadd.xlane.f32.xlu1 %v1830_v31  ;;  %v2801_v31 = vld [vmem:[%s3579_s14 + $0x18] sm:$0xff]  }
 0x9cc   : > { %v2830_v32 = vpop.eup %2829 }
 0x9cd   : > { %v1939_v33 = vsel %vm1318_vm5, %v2830_v32, 0.0 }
 0x9ce   : > { %1940 = vadd.xlane.f32.xlu0 %v1939_v33 }
 0x9d4   : > { %v1612_v35 = vpop.xlane.xlu1 %1611 }
 0x9d5   : > { %2831 = vrcp.f32 %v1612_v35 }
 0x9d7   : > { %1836 = vrot.lane.b32.xlu1 %v3436_v34, %s3632_s5 }
 0x9d8   : > { %v1618_v36 = vpop.permute.xlu1 %1617 }
 0x9d9   : > { %2633 = vmatpush3.bf16.msra.mxu1 %v1618_v36 }
 0x9da   : > { %2644 = vmatprep.subr.bf16.mxu1 %v3029_v0 }
 0x9db   : > { %1945 = vrot.lane.b32.xlu1 %v3436_v34, %s3633_s2 }
 0x9e2   : > { %v2832_v37 = vpop.eup %2831 }
 0x9e3   : > { %v1614_v38 = vmul.f32 %v2832_v37, %v2824_v17  ;;  %v2470_v17 = vld [vmem:[%s3576_s11] ss:$0 sm:$0xff] }
 0x9e4   : > { %1727 = vrot.lane.b32.xlu0 %v3436_v34, %s3634_s4 }
 0x9e5   : > { %v1615_v39 = vpack.c.bf16 %v1614_v38, %v1614_v38  ;;  %v2474_v38 = vld [vmem:[#allocation6] ss:$0 sm:$0xff] }
 0x9e7   : > { %2635 = vmatmul.mubr.msk.bf16.vlgmr.msra.gmra.mxu1 %vm1318_vm5, %v1615_v39 }
 0x9e8   : > { %2646 = vmatprep.mubr.msk.bf16.mxu1 %vm3030_vm0, %v3029_v0 }
 0xa47   : > { %v1723_v40 = vpop.xlane.xlu0 %1722 }
 0xa48   : > { %2833 = vrcp.f32 %v1723_v40  ;;  %v2475_v40 = vld [vmem:[#allocation7] ss:$0 sm:$0xff] }
 0xa4f   : > { %v1832_v41 = vpop.xlane.xlu1 %1831 }
 0xa50   : > { %2835 = vrcp.f32 %v1832_v41 }
 0xa53   : > { %v1837_v47 = vpop.permute.xlu1 %1836 }
 0xa55   : > { %v2834_v42 = vpop.eup %2833 }
 0xa56   : > { %v1725_v44 = vmul.f32 %v2834_v42, %v2826_v27 }
 0xa57   : > { %v1941_v43 = vpop.xlane.xlu0 %1940  ;;  %v1946_v51 = vpop.permute.xlu1 %1945 }
 0xa58   : > { %2837 = vrcp.f32 %v1941_v43  ;;  %v1726_v46 = vpack.c.bf16 %v1725_v44, %v1725_v44  ;;  %v2803_v44 = vld [vmem:[%s3579_s14 + $0x8] sm:$0xff]  }
 0xa5b   : > { %v1728_v45 = vpop.permute.xlu0 %1727 }
 0xa5c   : > { %2645 = vmatpush3.bf16.msra.mxu1 %v1728_v45  ;;  %v2804_v45 = vld [vmem:[%s3579_s14] sm:$0xff]  }
 0xa5d   : > { %2656 = vmatprep.subr.bf16.mxu1 %v3029_v0  ;;  %v2836_v34 = vpop.eup %2835 }
 0xa5e   : > { %v1834_v48 = vmul.f32 %v2836_v34, %v2828_v30  ;;  %v2799_v30 = vld [vmem:[%s3577_s12 + $0x8] sm:$0xff]  }
 0xa5f   : > { %2647 = vmatmul.mubr.msk.bf16.vlgmr.msra.gmra.mxu1 %vm1318_vm5, %v1726_v46  ;;  %v2476_v46 = vld [vmem:[%s3578_s13] ss:$0 sm:$0xff] }
 0xa60   : > { %2657 = vmatpush3.bf16.msra.mxu1 %v1837_v47  ;;  %2658 = vmatprep.mubr.msk.bf16.mxu1 %vm3030_vm0, %v3029_v0  ;;  %v1835_v49 = vpack.c.bf16 %v1834_v48, %v1834_v48 }
 0xa61   : > { %2668 = vmatprep.subr.bf16.mxu1 %v3029_v0 }
 0xa65   : > { %v2838_v50 = vpop.eup %2837 }
 0xa66   : > { %v1943_v52 = vmul.f32 %v2838_v50, %v2830_v32  ;;  %v2802_v32 = vld [vmem:[%s3579_s14 + $0x10] sm:$0xff]  }
 0xa67   : > { %2659 = vmatmul.mubr.msk.bf16.vlgmr.msra.gmra.mxu1 %vm1318_vm5, %v1835_v49 }
 0xa68   : > { %2669 = vmatpush3.bf16.msra.mxu1 %v1946_v51  ;;  %2670 = vmatprep.mubr.msk.bf16.mxu1 %vm3030_vm0, %v3029_v0  ;;  %v1944_v53 = vpack.c.bf16 %v1943_v52, %v1943_v52 }
 0xa69   : > { %2682 = vmatprep.subr.bf16.mxu1 %v3029_v0 }
 0xa6f   : > { %2671 = vmatmul.mubr.msk.bf16.vlgmr.msra.gmra.mxu1 %vm1318_vm5, %v1944_v53 }
 0xa70   : > { %2686 = vmatprep.mubr.msk.bf16.mxu1 %vm3030_vm0, %v3029_v0  ;;  %2683 = vmatpush3.bf16.msra.mxu1 %v2799_v30 }
 0xa71   : > { %2684 = vmatprep.subr.bf16.mxu1 %v3029_v0 }
 0xaa7   : > { %v1657_v54 = vpop.f32.mrf.mxu1 }
 0xaa9   : > { %v2636_v55 = vpop.f32.mrf.mxu1 }
 0xaab   : > { %v1660_v56 = vpop.f32.mrf.mxu1 }
 0xaad   : > { %v2637_v57 = vpop.f32.mrf.mxu1 }
 0xb1f   : > { %v1767_v59 = vpop.f32.mrf.mxu1 }
 0xb20   : > { %1992 = vrot.lane.b32.xlu0 %v1767_v59, %s3635_s25 }
 0xb21   : > { %v2648_v60 = vpop.f32.mrf.mxu1 }
 0xb23   : > { %v1770_v62 = vpop.f32.mrf.mxu1 }
 0xb25   : > { %v2649_v63 = vpop.f32.mrf.mxu1 }
 0xb27   : > { %v1876_v1 = vpop.f32.mrf.mxu1 }
 0xb28   : > { %1996 = vrot.lane.b32.xlu1 %v1876_v1, %s3636_s27  ;;  %s3638_s27 = sshll.u32 %s3640_s30, 2 }
 0xb29   : > { %v2660_v2 = vpop.f32.mrf.mxu1  ;;  %s774_s2 = scalar_lea.vmem %s3587_s22, %s3638_s27 }
 0xb2b   : > { %v1879_v4 = vpop.f32.mrf.mxu1 }
 0xb2d   : > { %v2661_v5 = vpop.f32.mrf.mxu1 }
 0xb2f   : > { %v1985_v6 = vpop.f32.mrf.mxu1 }
 0xb30   : > { %2000 = vrot.lane.b32.xlu0 %v1985_v6, %s3637_s24 }
 0xb31   : > { %v2672_v7 = vpop.f32.mrf.mxu1 }
 0xb32   : > { %v2486_v7 = vld [vmem:[#allocation9] ss:$0 sm:$0xff] }
 0xb33   : > { %v1988_v8 = vpop.f32.mrf.mxu1 }
 0xb35   : > { %v2673_v10 = vpop.f32.mrf.mxu1 }
 0xb36   : > { %v2487_v10 = vld [vmem:[#allocation10] ss:$0 sm:$0xff] }
 0xb92   : > { %v1993_v3 = vpop.permute.xlu0 %1992 }
 0xb93   : > { %v2003_v12 = vsel %vm859_vm2, %v1657_v54, %v1993_v3 }
 0xb9a   : > { %v1997_v11 = vpop.permute.xlu1 %1996 }
 0xb9b   : > { %v2004_v13 = vsel %vm1318_vm5, %v2003_v12, %v1997_v11 }
 0xba2   : > { %v2001_v14 = vpop.permute.xlu0 %2000 }
 0xba3   : > { %v2005_v15 = vsel %vm1320_vm6, %v2004_v13, %v2001_v14 }
 0xba4   : > { %v2006_v16 = vpack.c.bf16 %v2005_v15, %v2005_v15 }
 0xba6   : > { %2679 = vmatmul.mubr.msk.bf16.vlgmr.msra.gmra.mxu0 %vm806_vm1, %v2006_v16 }
 0xba7   : > { %2698 = vmatprep.mubr.msk.bf16.mxu0 %vm3030_vm0, %v3029_v0  ;;  %2691 = vmatpush3.bf16.msra.mxu0 %v2801_v31 }
 0xba8   : > { %2692 = vmatprep.subr.bf16.mxu0 %v3029_v0 }
 0xbab   : > { %2693 = vmatpush3.bf16.msra.mxu0 %v2802_v32 }
 0xbac   : > { %2694 = vmatprep.subr.bf16.mxu0 %v3029_v0 }
 0xbaf   : > { %2695 = vmatpush3.bf16.msra.mxu0 %v2803_v44 }
 0xbb0   : > { %2696 = vmatprep.subr.bf16.mxu0 %v3029_v0  ;;  %v2480_v0 = vld [vmem:[%s3580_s15] ss:$0 sm:$0xff] }
 0xbb3   : > { %2697 = vmatpush3.bf16.msra.mxu0 %v2804_v45 }
 0xc66   : > { %v2067_v18 = vpop.f32.mrf.mxu0 }
 0xc67   : > { %v2068_v19 = vadd.f32 %v2470_v17, %v2067_v18 }
 0xc68   : > { %v2680_v20 = vpop.f32.mrf.mxu0 }
 0xc69   : > { %v2073_v21 = vadd.f32 %v2068_v19, %v3426_v25  ;;  %v2800_v25 = vld [vmem:[%s3577_s12] sm:$0xff]  }
 0xc6a   : > { %v2070_v22 = vpop.f32.mrf.mxu0  ;;  %2685 = vmatpush3.bf16.msra.mxu1 %v2800_v25 }
 0xc6b   : > { %v2074_v23 = vsel %vm806_vm1, %v2073_v21, 0.0 }
 0xc6c   : > { %2075 = vadd.xlane.f32.xlu1 %v2074_v23  ;;  %v2681_v9 = vpop.f32.mrf.mxu0 }
 0xcf5   : > { %v2076_v24 = vpop.xlane.xlu1 %2075 }
 0xcf6   : > { %v2077_v26 = vmul.f32 0.03125, %v2076_v24 }
 0xcf8   : > { %v2078_v27 = vsub.f32 %v2073_v21, %v2077_v26 }
 0xcfa   : > { %v2079_v28 = vmul.f32 %v2078_v27, %v2078_v27 }
 0xcfc   : > { %v2080_v29 = vsel %vm806_vm1, %v2079_v28, 0.0 }
 0xcfd   : > { %2081 = vadd.xlane.f32.xlu0 %v2080_v29 }
 0xd86   : > { %v2082_v33 = vpop.xlane.xlu0 %2081 }
 0xd87   : > { %v2083_v35 = vmul.f32 0.03125, %v2082_v33 }
 0xd89   : > { %v2084_v36 = vadd.f32 1e-05, %v2083_v35 }
 0xd8b   : > { %2839 = vrsqrt.f32 %v2084_v36 }
 0xd98   : > { %v2840_v37 = vpop.eup %2839 }
 0xd99   : > { %v2086_v39 = vmul.f32 %v2840_v37, %v2078_v27 }
 0xd9b   : > { %v2094_v41 = vmul.f32 %v2474_v38, %v2086_v39 }
 0xd9d   : > { %v2102_v42 = vadd.f32 %v2475_v40, %v2094_v41 }
 0xd9f   : > { %v2103_v43 = vpack.c.bf16 %v2102_v42, %v2102_v42 }
 0xda1   : > { %2687 = vmatmul.mubr.msk.bf16.vlgmr.msra.gmra.mxu1 %vm806_vm1, %v2103_v43 }
 0xe61   : > { %v2164_v34 = vpop.f32.mrf.mxu1 }
 0xe62   : > { %v2165_v47 = vadd.f32 %v2476_v46, %v2164_v34 }
 0xe63   : > { %v2688_v48 = vpop.f32.mrf.mxu1 }
 0xe64   : > { %v2170_v49 = vmax.f32 %v2165_v47, 0.0 }
 0xe65   : > { %v2167_v50 = vpop.f32.mrf.mxu1 }
 0xe66   : > { %v2171_v51 = vpack.c.bf16 %v2170_v49, %v2170_v49 }
 0xe67   : > { %v2689_v52 = vpop.f32.mrf.mxu1 }
 0xe68   : > { %2699 = vmatmul.mubr.msk.bf16.vlgmr.msra.gmra.mxu0 %vm2211_vm7, %v2171_v51 }
 0xf28   : > { %v2249_v53 = vpop.f32.mrf.mxu0 }
 0xf29   : > { %v2250_v54 = vadd.f32 %v2480_v0, %v2249_v53 }
 0xf2a   : > { %v2700_v55 = vpop.f32.mrf.mxu0 }
 0xf2b   : > { %v2255_v56 = vadd.f32 %v2250_v54, %v2102_v42 }
 0xf2c   : > { %v2252_v57 = vpop.f32.mrf.mxu0 }
 0xf2d   : > { %v2256_v58 = vsel %vm806_vm1, %v2255_v56, 0.0 }
 0xf2e   : > { %2257 = vadd.xlane.f32.xlu0 %v2256_v58  ;;  %v2701_v59 = vpop.f32.mrf.mxu0 }
 0xfb7   : > { %v2258_v60 = vpop.xlane.xlu0 %2257 }
 0xfb8   : > { %v2259_v61 = vmul.f32 0.03125, %v2258_v60 }
 0xfba   : > { %v2260_v62 = vsub.f32 %v2255_v56, %v2259_v61 }
 0xfbc   : > { %v2261_v63 = vmul.f32 %v2260_v62, %v2260_v62 }
 0xfbe   : > { %v2262_v1 = vsel %vm806_vm1, %v2261_v63, 0.0 }
 0xfbf   : > { %2263 = vadd.xlane.f32.xlu1 %v2262_v1 }
0x1048   : > { %v2264_v2 = vpop.xlane.xlu1 %2263 }
0x1049   : > { %v2265_v4 = vmul.f32 0.03125, %v2264_v2 }
0x104b   : > { %v2266_v5 = vadd.f32 1e-05, %v2265_v4 }
0x104d   : > { %2841 = vrsqrt.f32 %v2266_v5 }
0x105a   : > { %v2842_v6 = vpop.eup %2841 }
0x105b   : > { %v2268_v8 = vmul.f32 %v2842_v6, %v2260_v62 }
0x105d   : > { %v2276_v3 = vmul.f32 %v2486_v7, %v2268_v8 }
0x105f   : > { %v2284_v11 = vadd.f32 %v2487_v10, %v2276_v3 }
0x1061   : > { %v2285_v12 = vpack.c.bf16 %v2284_v11, %v2284_v11 }
0x1063   : > { %2287 = vst.msk [vmem:[%s774_s2] sm:$0xf] %vm2286_vm8, %v2285_v12 }
0x1064 PF: > { %s36_s3 = sadd.s32 1, %s3021_s3  }
0x1065   : > { %p33_p13 = scmp.ge.s32.totalorder %s36_s3, 4  }
0x1067   :  { %35 = sbr.rel (!%p33_p13) target bundleno = 12 (0xc), region = 166 }
0x106c   :  { %2307 = vsyncpa [#allocation3], 1 }
0x106d   :  { %2309 = vsyncpa [#allocation3 + $0x1], 1 }
0x106e   :  { %2310 = vsyncpa [#allocation5], 1 }
0x106f   :  { %2311 = vsyncpa [#allocation8], 1 }
0x1070   :  { %2312 = vsyncpa [#allocation11], 1 }

// kernel: _chain_forward.6
= control target key start
LH: loop header
LB: loop body
LE: loop exit
PB: predicated region body
PF: predicated region fallthrough
CT: control target
= control target key end

     0   :  { %s3090_s0 = inlined_call_operand.vmem [shape: bf16[2,8,32], index: 0, kind: input, shape index: {}]   ;;  %s3091_s1 = inlined_call_operand.vmem [shape: bf16[2,8,32], index: 1, kind: input, shape index: {}]   ;;  %s3092_s2 = inlined_call_operand.vmem [shape: bf16[32,96], index: 2, kind: input, shape index: {}]   ;;  %s3093_s3 = inlined_call_operand.vmem [shape: f32[1,96], index: 3, kind: input, shape index: {}]   ;;  %s3094_s4 = inlined_call_operand.vmem [shape: bf16[32,32], index: 4, kind: input, shape index: {}]   ;;  %s3095_s5 = inlined_call_operand.vmem [shape: f32[1,32], index: 5, kind: input, shape index: {}]   ;;  %s3096_s6 = inlined_call_operand.vmem [shape: bf16[32,32], index: 6, kind: input, shape index: {}]   ;;  %s3097_s7 = inlined_call_operand.vmem [shape: f32[1,32], index: 7, kind: input, shape index: {}]   ;;  %s3098_s8 = inlined_call_operand.vmem [shape: bf16[32,64], index: 8, kind: input, shape index: {}]   ;;  %s3099_s9 = inlined_call_operand.vmem [shape: f32[1,64], index: 9, kind: input, shape index: {}]   ;;  %s3100_s10 = inlined_call_operand.vmem [shape: bf16[32,32], index: 10, kind: input, shape index: {}]   ;;  %s3101_s11 = inlined_call_operand.vmem [shape: f32[1,32], index: 11, kind: input, shape index: {}]   ;;  %s3102_s12 = inlined_call_operand.vmem [shape: bf16[32,64], index: 12, kind: input, shape index: {}]   ;;  %s3103_s13 = inlined_call_operand.vmem [shape: f32[1,64], index: 13, kind: input, shape index: {}]   ;;  %s3104_s14 = inlined_call_operand.vmem [shape: bf16[64,32], index: 14, kind: input, shape index: {}]   ;;  %s3105_s15 = inlined_call_operand.vmem [shape: f32[1,32], index: 15, kind: input, shape index: {}]   ;;  %s3106_s16 = inlined_call_operand.vmem [shape: f32[1,32], index: 16, kind: input, shape index: {}]   ;;  %s3107_s17 = inlined_call_operand.vmem [shape: f32[1,32], index: 17, kind: input, shape index: {}]   ;;  %s3108_s18 = inlined_call_operand.vmem [shape: f32[1,32], index: 18, kind: input, shape index: {}]   ;;  %s3109_s19 = inlined_call_operand.vmem [shape: f32[1,32], index: 19, kind: input, shape index: {}]   ;;  %s3110_s20 = inlined_call_operand.vmem [shape: f32[1,32], index: 20, kind: input, shape index: {}]   ;;  %s3111_s21 = inlined_call_operand.vmem [shape: f32[1,32], index: 21, kind: input, shape index: {}]   ;;  %s3112_s22 = inlined_call_operand.vmem [shape: bf16[2,8,32], index: 22, kind: output, shape index: {}]  }
   0x1   :  { %3125 = sst [smem:[#allocation2_spill]] %s3090_s0 }
   0x2   :  { %3126 = sst [smem:[#allocation3_spill]] %s3091_s1 }
   0x3   :  { %3127 = sst [smem:[#allocation4_spill]] %s3092_s2 }
   0x4   :  { %3128 = sst [smem:[#allocation5_spill]] %s3093_s3  ;;  %s2773_s3 = smov 0  }
   0x5   :  { %3129 = sst [smem:[#allocation6_spill]] %s3094_s4 }
   0x6   :  { %3130 = sst [smem:[#allocation7_spill]] %s3095_s5 }
   0x7   :  { %3131 = sst [smem:[#allocation8_spill]] %s3096_s6 }
   0x8 LB: > { %s2279_s28 = sadd.s32 4294967295, %s2640_s3   ;;  %p2283_p0 = scmp.ge.s32.totalorder %s2640_s3, 1  ;;  %s2640_s3 = sphi %s2773_s3, %s32_s3  }
   0x9   : > { %p620_p1 = scmp.lt.s32.totalorder %s2640_s3, 3 }
   0xb   : > { %p621_p2 = pnand %p2283_p0, %p620_p1 }
   0xc   : > { %s3132_s4 = sld [smem:[#allocation4_spill]] (!%p621_p2)  ;;  %p684_p3 = scmp.lt.s32.totalorder (!%p621_p2), %s2279_s28, 1 }
   0xd   : > { %624 = sbr.rel (%p621_p2) target bundleno = 4104 (0x1008), region = 108  ;;  %s3133_s6 = sld [smem:[#allocation2_spill]] (!%p621_p2) }
   0xe   : > { %s3134_s27 = sld [smem:[#allocation5_spill]] (!%p621_p2)  ;;  %s3122_s29 = smov (!%p621_p2), 96  }
   0xf   : > { %s3121_s30 = smov (!%p621_p2), 80   ;;  %s3116_s0 = smov (!%p621_p2), 88  }
  0x10   : > { %s3117_s23 = smov (!%p621_p2), 72   ;;  %s2649_s5 = smov (!%p621_p2), 112  }
  0x11   : > { %s3123_s24 = smov (!%p621_p2), 104   ;;  %s2653_s26 = smov (!%p621_p2), 40  }
  0x12   : > { %v2578_v0 = vld [vmem:[%s3132_s4 + $0x8] sm:$0xff]   ;;  %v2642_v1 = vmov 0.0   ;;  %v2579_v2 = vld [vmem:[%s3132_s4] sm:$0xff]   ;;  %vm2643_vm0 = vmmov 0   ;;  %s3148_s28 = smov (!%p684_p3, %s2279_s28), 1  ;;  %vm725_vm1 = vcmask 261120   ;;  %v769_v23 = vlaneseq }
  0x13   : > { %2398 = vmatprep.subr.bf16.mxu1 %v2642_v1  ;;  %2412 = vmatprep.subr.bf16.mxu0 %v2642_v1  ;;  %s2794_s1 = sshll.u32 %s3148_s28, 2  ;;  %s2644_s28 = smov 120   ;;  %vm778_vm2 = vcmask 64512   ;;  %vm844_vm4 = vcmask 1043456   ;;  %vm1237_vm5 = vcmask 130048   ;;  %vm1239_vm6 = vcmask 195584  }
  0x14   : > { %2399 = vmatpush3.bf16.msra.mxu1 %v2578_v0  ;;  %2402 = vmatprep.mubr.msk.bf16.mxu1 %vm2643_vm0, %v2642_v1  ;;  %s687_s25 = scalar_lea.vmem %s3133_s6, %s2794_s1  ;;  %v2288_v5 = vld [vmem:[%s3134_s27] ss:$0 sm:$0xff]  ;;  %v770_v24 = vshrl.u32 %v769_v23, 7  ;;  %v772_v25 = vand.u32 127, %v769_v23  ;;  %s2651_s6 = smov 56   ;;  %vm2137_vm7 = vcmask 523264  }
  0x15   : > { %2400 = vmatprep.subr.bf16.mxu1 %v2642_v1  ;;  %2414 = vmatprep.mubr.msk.bf16.mxu0 %vm2643_vm0, %v2642_v1  ;;  %v2801_v3 = vld [vmem:[%s687_s25] sm:$0xf]  ;;  %s2652_s25 = smov 64   ;;  %s2654_s2 = smov 48   ;;  %vm2212_vm8 = vcmask 257024  }
  0x16   : > { %v2287_v4 = vcombine.low %v2801_v3, %v2801_v3  ;;  %vm773_vm3 = vcmp.ge.s32.totalorder %v770_v24, %v772_v25  ;;  %s3120_s27 = smov 8  }
  0x18   : > { %2401 = vmatpush3.bf16.msra.mxu1 %v2579_v2 }
  0x19   : > { %2406 = vmatprep.subr.bf16.mxu1 %v2642_v1 }
  0x1b   : > { %2403 = vmatmul.mubr.msk.bf16.vlgmr.msra.gmra.mxu1 %vm725_vm1, %v2287_v4 }
  0x1c   : > { %2408 = vmatprep.mubr.msk.bf16.mxu1 %vm2643_vm0, %v2642_v1 }
  0xdb   : > { %v763_v6 = vpop.f32.mrf.mxu1 }
  0xdc   : > { %v764_v7 = vadd.f32 %v2288_v5, %v763_v6 }
  0xdd   : > { %v2404_v8 = vpop.f32.mrf.mxu1 }
  0xde   : > { %v2811_v9 = vpack.c.bf16 %v764_v7, %v764_v7 }
  0xdf   : > { %v766_v10 = vpop.f32.mrf.mxu1 }
  0xe0   : > { %888 = vrot.lane.b32.xlu1 %v2811_v9, %s2644_s28  ;;  %776 = vrot.lane.b32.xlu0 %v2811_v9, %s3122_s29 }
  0xe1   : > { %v2405_v11 = vpop.f32.mrf.mxu1 }
  0xe4   : > { %1002 = vrot.lane.b32.xlu1 %v2811_v9, %s3121_s30  ;;  %890 = vrot.lane.b32.xlu0 %v2811_v9, %s3116_s0  ;;  %s3137_s30 = sld [smem:[#allocation3_spill]] }
  0xe8   : > { %1114 = vrot.lane.b32.xlu1 %v2811_v9, %s3117_s23  ;;  %1000 = vrot.lane.b32.xlu0 %v2811_v9, %s2649_s5  ;;  %s3119_s23 = smov 16  }
  0xea   : > { %s691_s29 = scalar_lea.vmem %s3137_s30, %s2794_s1  ;;  %s3142_s30 = smov 72  }
  0xec   : > { %1112 = vrot.lane.b32.xlu0 %v2811_v9, %s3123_s24  ;;  %s3138_s24 = sld [smem:[#allocation8_spill]] }
 0x152   : > { %v777_v12 = vpop.permute.xlu0 %776  ;;  %v889_v15 = vpop.permute.xlu1 %888 }
 0x153   : > { %v783_v13 = vsel %vm778_vm2, %v777_v12, 0 }
 0x154   : > { %2407 = vmatpush3.bf16.xpose.msra.mxu1 %v783_v13 }
 0x155   : > { %2418 = vmatprep.subr.bf16.mxu1 %v2642_v1 }
 0x156   : > { %v891_v14 = vpop.permute.xlu0 %890  ;;  %v1003_v17 = vpop.permute.xlu1 %1002 }
 0x157   : > { %v896_v16 = vsel %vm778_vm2, %v891_v14, 0  ;;  %v1008_v18 = vsel %vm778_vm2, %v1003_v17, 0 }
 0x15a   : > { %v1115_v19 = vpop.permute.xlu1 %1114  ;;  %v1001_v20 = vpop.permute.xlu0 %1000 }
 0x15b   : > { %2409 = vmatmul.mubr.msk.bf16.vlgmr.msra.gmra.mxu1 %vm778_vm2, %v2811_v9  ;;  %v1120_v21 = vsel %vm778_vm2, %v1115_v19, 0 }
 0x15c   : > { %2419 = vmatpush3.bf16.xpose.msra.mxu1 %v896_v16  ;;  %2420 = vmatprep.mubr.msk.bf16.mxu1 %vm2643_vm0, %v2642_v1 }
 0x15d   : > { %2430 = vmatprep.subr.bf16.mxu1 %v2642_v1 }
 0x15e   : > { %v1113_v22 = vpop.permute.xlu0 %1112 }
 0x163   : > { %2421 = vmatmul.mubr.msk.bf16.vlgmr.msra.gmra.mxu1 %vm778_vm2, %v889_v15 }
 0x164   : > { %2431 = vmatpush3.bf16.xpose.msra.mxu1 %v1008_v18  ;;  %2432 = vmatprep.mubr.msk.bf16.mxu1 %vm2643_vm0, %v2642_v1 }
 0x165   : > { %2442 = vmatprep.subr.bf16.mxu1 %v2642_v1 }
 0x16b   : > { %2433 = vmatmul.mubr.msk.bf16.vlgmr.msra.gmra.mxu1 %vm778_vm2, %v1001_v20 }
 0x16c   : > { %2443 = vmatpush3.bf16.xpose.msra.mxu1 %v1120_v21  ;;  %2444 = vmatprep.mubr.msk.bf16.mxu1 %vm2643_vm0, %v2642_v1 }
 0x16d   : > { %2454 = vmatprep.subr.bf16.mxu1 %v2642_v1 }
 0x173   : > { %2445 = vmatmul.mubr.msk.bf16.vlgmr.msra.gmra.mxu1 %vm778_vm2, %v1113_v22 }
 0x174   : > { %2458 = vmatprep.mubr.msk.bf16.mxu1 %vm2643_vm0, %v2642_v1 }
 0x21b   : > { %v819_v26 = vpop.f32.mrf.mxu1 }
 0x21c   : > { %v825_v27 = vmul.f32 0.35355338, %v819_v26 }
 0x21d   : > { %v2410_v28 = vpop.f32.mrf.mxu1 }
 0x21e   : > { %v826_v29 = vsel %vm773_vm3, %v825_v27, -1e+30 }
 0x21f   : > { %v822_v30 = vpop.f32.mrf.mxu1  ;;  %v827_v31 = vsel %vm778_vm2, %v826_v29, -inf }
 0x220   : > { %828 = vmax.xlane.f32.xlu1 %v827_v31 }
 0x221   : > { %v2411_v32 = vpop.f32.mrf.mxu1 }
 0x223   : > { %v932_v33 = vpop.f32.mrf.mxu1 }
 0x224   : > { %v938_v34 = vmul.f32 0.35355338, %v932_v33 }
 0x225   : > { %v2422_v35 = vpop.f32.mrf.mxu1 }
 0x226   : > { %v939_v36 = vsel %vm773_vm3, %v938_v34, -1e+30 }
 0x227   : > { %v935_v37 = vpop.f32.mrf.mxu1  ;;  %v940_v38 = vsel %vm778_vm2, %v939_v36, -inf }
 0x228   : > { %941 = vmax.xlane.f32.xlu0 %v940_v38 }
 0x229   : > { %v2423_v39 = vpop.f32.mrf.mxu1 }
 0x22b   : > { %v1044_v40 = vpop.f32.mrf.mxu1 }
 0x22c   : > { %v1050_v41 = vmul.f32 0.35355338, %v1044_v40 }
 0x22d   : > { %v2434_v42 = vpop.f32.mrf.mxu1 }
 0x22e   : > { %v1051_v43 = vsel %vm773_vm3, %v1050_v41, -1e+30 }
 0x22f   : > { %v1047_v44 = vpop.f32.mrf.mxu1  ;;  %v1052_v45 = vsel %vm778_vm2, %v1051_v43, -inf }
 0x230   : > { %1053 = vmax.xlane.f32.xlu0 %v1052_v45 }
 0x231   : > { %v2435_v46 = vpop.f32.mrf.mxu1 }
 0x233   : > { %v1156_v47 = vpop.f32.mrf.mxu1 }
 0x234   : > { %v1162_v48 = vmul.f32 0.35355338, %v1156_v47 }
 0x235   : > { %v2446_v49 = vpop.f32.mrf.mxu1 }
 0x236   : > { %v1163_v50 = vsel %vm773_vm3, %v1162_v48, -1e+30 }
 0x237   : > { %v1159_v51 = vpop.f32.mrf.mxu1  ;;  %v1164_v52 = vsel %vm778_vm2, %v1163_v50, -inf }
 0x238   : > { %1165 = vmax.xlane.f32.xlu1 %v1164_v52 }
 0x239   : > { %v2447_v53 = vpop.f32.mrf.mxu1 }
 0x2a9   : > { %v829_v54 = vpop.xlane.xlu1 %828 }
 0x2aa   : > { %v830_v55 = vsub.f32 %v826_v29, %v829_v54 }
 0x2ac   : > { %v831_v56 = vmul.f32 1.442695, %v830_v55 }
 0x2ae   : > { %2596 = vpow2.f32 %v831_v56 }
 0x2b1   : > { %v942_v57 = vpop.xlane.xlu0 %941 }
 0x2b2   : > { %v943_v58 = vsub.f32 %v939_v36, %v942_v57 }
 0x2b4   : > { %v944_v59 = vmul.f32 1.442695, %v943_v58 }
 0x2b6   : > { %2598 = vpow2.f32 %v944_v59 }
 0x2b9   : > { %v1054_v60 = vpop.xlane.xlu0 %1053 }
 0x2ba   : > { %v1055_v61 = vsub.f32 %v1051_v43, %v1054_v60 }
 0x2bb   : > { %v2597_v62 = vpop.eup %2596 }
 0x2bc   : > { %v1056_v63 = vmul.f32 1.442695, %v1055_v61  ;;  %v833_v0 = vsel %vm778_vm2, %v2597_v62, 0.0 }
 0x2bd   : > { %834 = vadd.xlane.f32.xlu0 %v833_v0 }
 0x2be   : > { %2600 = vpow2.f32 %v1056_v63 }
 0x2c1   : > { %v1166_v7 = vpop.xlane.xlu1 %1165 }
 0x2c2   : > { %v1167_v8 = vsub.f32 %v1163_v50, %v1166_v7 }
 0x2c3   : > { %v2599_v2 = vpop.eup %2598 }
 0x2c4   : > { %v946_v4 = vsel %vm778_vm2, %v2599_v2, 0.0  ;;  %v1168_v10 = vmul.f32 1.442695, %v1167_v8 }
 0x2c5   : > { %947 = vadd.xlane.f32.xlu1 %v946_v4 }
 0x2c6   : > { %2602 = vpow2.f32 %v1168_v10 }
 0x2cb   : > { %v2601_v5 = vpop.eup %2600 }
 0x2cc   : > { %v1058_v6 = vsel %vm778_vm2, %v2601_v5, 0.0 }
 0x2cd   : > { %1059 = vadd.xlane.f32.xlu0 %v1058_v6 }
 0x2d3   : > { %v2603_v11 = vpop.eup %2602 }
 0x2d4   : > { %v1170_v12 = vsel %vm778_vm2, %v2603_v11, 0.0 }
 0x2d6   : > { %952 = vrot.lane.b32.xlu1 %v2811_v9, %s2651_s6  ;;  %s3118_s6 = smov 24  }
 0x2e3   : > { %839 = vrot.lane.b32.xlu0 %v2811_v9, %s2652_s25  ;;  %s3144_s25 = smov 8  }
 0x2e7   : > { %1176 = vrot.lane.b32.xlu0 %v2811_v9, %s2653_s26  ;;  %s3135_s26 = sld [smem:[#allocation6_spill]] }
 0x2ed   : > { %v2581_v44 = vld [vmem:[%s3135_s26 + $0x8] sm:$0xff]   ;;  %v2582_v45 = vld [vmem:[%s3135_s26] sm:$0xff]  }
 0x2ee   : > { %2455 = vmatpush3.bf16.msra.mxu1 %v2581_v44 }
 0x2ef   : > { %2456 = vmatprep.subr.bf16.mxu1 %v2642_v1 }
 0x2f2   : > { %2457 = vmatpush3.bf16.msra.mxu1 %v2582_v45 }
 0x2f3   : > { %2470 = vmatprep.subr.bf16.mxu1 %v2642_v1 }
 0x2fa   : > { %1171 = vadd.xlane.f32.xlu1 %v1170_v12 }
 0x30b   : > { %1064 = vrot.lane.b32.xlu1 %v2811_v9, %s2654_s2  ;;  %s3136_s2 = sld [smem:[#allocation7_spill]] }
 0x311   : > { %v2300_v61 = vld [vmem:[%s3136_s2] ss:$0 sm:$0xff] }
 0x346   : > { %v835_v13 = vpop.xlane.xlu0 %834 }
 0x347   : > { %2604 = vrcp.f32 %v835_v13 }
 0x34e   : > { %v948_v14 = vpop.xlane.xlu1 %947 }
 0x34f   : > { %2606 = vrcp.f32 %v948_v14  ;;  %v2584_v14 = vld [vmem:[%s3098_s8] sm:$0xff]  }
 0x352   : > { %v953_v20 = vpop.permute.xlu1 %952 }
 0x353   : > { %v958_v23 = vsel %vm844_vm4, %v953_v20, 0 }
 0x354   : > { %v2605_v15 = vpop.eup %2604 }
 0x355   : > { %v837_v17 = vmul.f32 %v2605_v15, %v2597_v62  ;;  %v698_v62 = vunpack.c.l.bf16 %v2801_v3  ;;  %v2583_v3 = vld [vmem:[%s3098_s8 + $0x8] sm:$0xff]   ;;  %v2585_v15 = vld [vmem:[%s691_s29] ss:$0 sps:$4 sm:$0xff]   ;;  %s3145_s29 = smov 16  }
 0x356   : > { %v1060_v16 = vpop.xlane.xlu0 %1059 }
 0x357   : > { %v838_v21 = vpack.c.bf16 %v837_v17, %v837_v17  ;;  %2608 = vrcp.f32 %v1060_v16  ;;  %v2586_v16 = vld [vmem:[%s3138_s24 + $0x8] sm:$0xff]   ;;  %v2587_v17 = vld [vmem:[%s3138_s24] sm:$0xff]  }
 0x35a   : > { %v840_v18 = vpop.permute.xlu0 %839 }
 0x35b   : > { %v846_v19 = vsel %vm844_vm4, %v840_v18, 0 }
 0x35c   : > { %2413 = vmatpush3.bf16.msra.mxu0 %v846_v19  ;;  %v2607_v22 = vpop.eup %2606 }
 0x35d   : > { %2424 = vmatprep.subr.bf16.mxu0 %v2642_v1  ;;  %v950_v9 = vmul.f32 %v2607_v22, %v2599_v2  ;;  %v2304_v22 = vld [vmem:[%s3106_s16] ss:$0 sm:$0xff] }
 0x35e   : > { %v1177_v30 = vpop.permute.xlu0 %1176 }
 0x35f   : > { %2415 = vmatmul.mubr.msk.bf16.vlgmr.msra.gmra.mxu0 %vm778_vm2, %v838_v21  ;;  %v951_v24 = vpack.c.bf16 %v950_v9, %v950_v9  ;;  %v1182_v32 = vsel %vm844_vm4, %v1177_v30, 0  ;;  %v2305_v9 = vld [vmem:[%s3107_s17] ss:$0 sm:$0xff] }
 0x360   : > { %2425 = vmatpush3.bf16.msra.mxu0 %v958_v23  ;;  %2426 = vmatprep.mubr.msk.bf16.mxu0 %vm2643_vm0, %v2642_v1 }
 0x361   : > { %2436 = vmatprep.subr.bf16.mxu0 %v2642_v1 }
 0x364   : > { %v2609_v25 = vpop.eup %2608 }
 0x365   : > { %v1062_v27 = vmul.f32 %v2609_v25, %v2601_v5 }
 0x367   : > { %2427 = vmatmul.mubr.msk.bf16.vlgmr.msra.gmra.mxu0 %vm778_vm2, %v951_v24  ;;  %v1063_v31 = vpack.c.bf16 %v1062_v27, %v1062_v27  ;;  %v2311_v27 = vld [vmem:[%s3099_s9] ss:$0 sm:$0xff] }
 0x368   : > { %2438 = vmatprep.mubr.msk.bf16.mxu0 %vm2643_vm0, %v2642_v1 }
 0x383   : > { %v1172_v26 = vpop.xlane.xlu1 %1171 }
 0x384   : > { %2610 = vrcp.f32 %v1172_v26 }
 0x387   : > { %v1065_v28 = vpop.permute.xlu1 %1064 }
 0x388   : > { %v1070_v29 = vsel %vm844_vm4, %v1065_v28, 0 }
 0x389   : > { %2437 = vmatpush3.bf16.msra.mxu0 %v1070_v29 }
 0x38a   : > { %2448 = vmatprep.subr.bf16.mxu0 %v2642_v1 }
 0x38c   : > { %2439 = vmatmul.mubr.msk.bf16.vlgmr.msra.gmra.mxu0 %vm778_vm2, %v1063_v31 }
 0x38d   : > { %2449 = vmatpush3.bf16.msra.mxu0 %v1182_v32  ;;  %2450 = vmatprep.mubr.msk.bf16.mxu0 %vm2643_vm0, %v2642_v1 }
 0x38e   : > { %2462 = vmatprep.subr.bf16.mxu0 %v2642_v1 }
 0x391   : > { %v2611_v33 = vpop.eup %2610 }
 0x392   : > { %v1174_v34 = vmul.f32 %v2611_v33, %v2603_v11 }
 0x394   : > { %v1175_v35 = vpack.c.bf16 %v1174_v34, %v1174_v34 }
 0x396   : > { %2451 = vmatmul.mubr.msk.bf16.vlgmr.msra.gmra.mxu0 %vm778_vm2, %v1175_v35  ;;  %v2306_v35 = vld [vmem:[%s3097_s7] ss:$0 sm:$0xff] }
 0x397   : > { %2466 = vmatprep.mubr.msk.bf16.mxu0 %vm2643_vm0, %v2642_v1  ;;  %2463 = vmatpush3.bf16.msra.mxu0 %v2586_v16 }
 0x398   : > { %2464 = vmatprep.subr.bf16.mxu0 %v2642_v1 }
 0x39b   : > { %2465 = vmatpush3.bf16.msra.mxu0 %v2587_v17 }
 0x39c   : > { %2478 = vmatprep.subr.bf16.mxu0 %v2642_v1 }
 0x41f   : > { %v882_v36 = vpop.f32.mrf.mxu0 }
 0x421   : > { %v2416_v37 = vpop.f32.mrf.mxu0 }
 0x423   : > { %v885_v38 = vpop.f32.mrf.mxu0 }
 0x425   : > { %v2417_v39 = vpop.f32.mrf.mxu0 }
 0x427   : > { %v994_v40 = vpop.f32.mrf.mxu0 }
 0x428   : > { %1225 = vrot.lane.b32.xlu1 %v994_v40, %s3120_s27 }
 0x429   : > { %v2428_v41 = vpop.f32.mrf.mxu0 }
 0x42b   : > { %v997_v42 = vpop.f32.mrf.mxu0 }
 0x42d   : > { %v2429_v43 = vpop.f32.mrf.mxu0 }
 0x44c   : > { %v1106_v46 = vpop.f32.mrf.mxu0 }
 0x44d   : > { %1229 = vrot.lane.b32.xlu0 %v1106_v46, %s3119_s23  ;;  %s3143_s23 = smov 88  }
 0x44e   : > { %v2440_v47 = vpop.f32.mrf.mxu0 }
 0x450   : > { %v1109_v48 = vpop.f32.mrf.mxu0 }
 0x452   : > { %v2441_v49 = vpop.f32.mrf.mxu0 }
 0x456   : > { %v1218_v50 = vpop.f32.mrf.mxu0 }
 0x457   : > { %1233 = vrot.lane.b32.xlu1 %v1218_v50, %s3118_s6  ;;  %s3139_s6 = smov 104  }
 0x458   : > { %v2452_v51 = vpop.f32.mrf.mxu0 }
 0x45a   : > { %v1221_v52 = vpop.f32.mrf.mxu0 }
 0x45c   : > { %v2453_v53 = vpop.f32.mrf.mxu0 }
 0x49a   : > { %v1226_v54 = vpop.permute.xlu1 %1225 }
 0x49b   : > { %v1236_v56 = vsel %vm778_vm2, %v882_v36, %v1226_v54 }
 0x4bf   : > { %v1230_v55 = vpop.permute.xlu0 %1229 }
 0x4c0   : > { %v1238_v57 = vsel %vm1237_vm5, %v1236_v56, %v1230_v55 }
 0x4c9   : > { %v1234_v58 = vpop.permute.xlu1 %1233 }
 0x4ca   : > { %v1240_v59 = vsel %vm1239_vm6, %v1238_v57, %v1234_v58 }
 0x4cb   : > { %v1241_v60 = vpack.c.bf16 %v1240_v59, %v1240_v59 }
 0x4cd   : > { %2459 = vmatmul.mubr.msk.bf16.vlgmr.msra.gmra.mxu1 %vm725_vm1, %v1241_v60 }
 0x4ce   : > { %2474 = vmatprep.mubr.msk.bf16.mxu1 %vm2643_vm0, %v2642_v1  ;;  %2471 = vmatpush3.bf16.msra.mxu1 %v2583_v3 }
 0x4cf   : > { %2472 = vmatprep.subr.bf16.mxu1 %v2642_v1 }
 0x4d2   : > { %2473 = vmatpush3.bf16.msra.mxu1 %v2584_v14 }
 0x4d3   : > { %2484 = vmatprep.subr.bf16.mxu1 %v2642_v1 }
 0x4d5   : > { %2475 = vmatmul.mubr.msk.bf16.vlgmr.msra.gmra.mxu1 %vm725_vm1, %v2585_v15 }
 0x4d6   : > { %2486 = vmatprep.mubr.msk.bf16.mxu1 %vm2643_vm0, %v2642_v1 }
 0x58d   : > { %v1302_v63 = vpop.f32.mrf.mxu1 }
 0x58e   : > { %v1303_v0 = vadd.f32 %v2300_v61, %v1302_v63 }
 0x58f   : > { %v2460_v2 = vpop.f32.mrf.mxu1 }
 0x590   : > { %v1308_v4 = vadd.f32 %v1303_v0, %v698_v62 }
 0x591   : > { %v1305_v5 = vpop.f32.mrf.mxu1 }
 0x592   : > { %v1309_v6 = vsel %vm725_vm1, %v1308_v4, 0.0 }
 0x593   : > { %v2461_v7 = vpop.f32.mrf.mxu1  ;;  %1310 = vadd.xlane.f32.xlu0 %v1309_v6 }
 0x595   : > { %v1467_v28 = vpop.f32.mrf.mxu1 }
 0x596   : > { %v1468_v29 = vadd.f32 %v2311_v27, %v1467_v28 }
 0x597   : > { %v2476_v30 = vpop.f32.mrf.mxu1 }
 0x598   : > { %v2946_v31 = vpack.c.bf16 %v1468_v29, %v1468_v29 }
 0x599   : > { %v1470_v32 = vpop.f32.mrf.mxu1 }
 0x59a   : > { %v1479_v33 = vsel %vm778_vm2, %v2946_v31, 0 }
 0x59b   : > { %v2477_v34 = vpop.f32.mrf.mxu1 }
 0x5a9   : > { %1586 = vrot.lane.b32.xlu0 %v2946_v31, %s2644_s28 }
 0x5ad   : > { %1697 = vrot.lane.b32.xlu0 %v2946_v31, %s2649_s5 }
 0x5b1   : > { %1808 = vrot.lane.b32.xlu0 %v2946_v31, %s3139_s6 }
 0x61c   : > { %v1311_v8 = vpop.xlane.xlu0 %1310 }
 0x61d   : > { %v1313_v10 = vmul.f32 0.03125, %v1311_v8 }
 0x61f   : > { %v1314_v11 = vsub.f32 %v1308_v4, %v1313_v10 }
 0x620   : > { %v1587_v39 = vpop.permute.xlu0 %1586 }
 0x621   : > { %v1315_v12 = vmul.f32 %v1314_v11, %v1314_v11  ;;  %v1592_v41 = vsel %vm778_vm2, %v1587_v39, 0 }
 0x623   : > { %v1316_v13 = vsel %vm725_vm1, %v1315_v12, 0.0 }
 0x624   : > { %1317 = vadd.xlane.f32.xlu1 %v1316_v13  ;;  %v1698_v44 = vpop.permute.xlu0 %1697 }
 0x625   : > { %v1703_v46 = vsel %vm778_vm2, %v1698_v44, 0 }
 0x628   : > { %v1809_v47 = vpop.permute.xlu0 %1808 }
 0x629   : > { %v1814_v49 = vsel %vm778_vm2, %v1809_v47, 0 }
 0x6ad   : > { %v1318_v18 = vpop.xlane.xlu1 %1317 }
 0x6ae   : > { %v1319_v19 = vmul.f32 0.03125, %v1318_v18 }
 0x6b0   : > { %v1320_v20 = vadd.f32 1e-05, %v1319_v19 }
 0x6b2   : > { %2612 = vrsqrt.f32 %v1320_v20 }
 0x6bf   : > { %v2613_v21 = vpop.eup %2612 }
 0x6c0   : > { %v1322_v23 = vmul.f32 %v2613_v21, %v1314_v11 }
 0x6c2   : > { %v1330_v24 = vmul.f32 %v2304_v22, %v1322_v23 }
 0x6c4   : > { %v2936_v25 = vadd.f32 %v2305_v9, %v1330_v24 }
 0x6c6   : > { %v1339_v26 = vpack.c.bf16 %v2936_v25, %v2936_v25 }
 0x6c8   : > { %2467 = vmatmul.mubr.msk.bf16.vlgmr.msra.gmra.mxu0 %vm725_vm1, %v1339_v26 }
 0x6c9   : > { %2480 = vmatprep.mubr.msk.bf16.mxu0 %vm2643_vm0, %v2642_v1  ;;  %2479 = vmatpush3.bf16.xpose.msra.mxu0 %v1479_v33 }
 0x6ca   : > { %2490 = vmatprep.subr.bf16.mxu0 %v2642_v1 }
 0x788   : > { %v1400_v36 = vpop.f32.mrf.mxu0 }
 0x789   : > { %v1401_v37 = vadd.f32 %v2306_v35, %v1400_v36 }
 0x78a   : > { %v2468_v38 = vpop.f32.mrf.mxu0 }
 0x78b   : > { %v1473_v40 = vpack.c.bf16 %v1401_v37, %v1401_v37 }
 0x78c   : > { %v1403_v42 = vpop.f32.mrf.mxu0 }
 0x78d   : > { %1584 = vrot.lane.b32.xlu1 %v1473_v40, %s2644_s28  ;;  %2481 = vmatmul.mubr.msk.bf16.vlgmr.msra.gmra.mxu0 %vm778_vm2, %v1473_v40  ;;  %s3140_s28 = smov 96  }
 0x78e   : > { %v2469_v43 = vpop.f32.mrf.mxu0  ;;  %2491 = vmatpush3.bf16.xpose.msra.mxu0 %v1592_v41  ;;  %2492 = vmatprep.mubr.msk.bf16.mxu0 %vm2643_vm0, %v2642_v1 }
 0x78f   : > { %2502 = vmatprep.subr.bf16.mxu0 %v2642_v1 }
 0x791   : > { %1695 = vrot.lane.b32.xlu1 %v1473_v40, %s2649_s5  ;;  %s3141_s5 = smov 80  }
 0x795   : > { %1806 = vrot.lane.b32.xlu1 %v1473_v40, %s3139_s6 }
 0x7ff   : > { %v1585_v45 = vpop.permute.xlu1 %1584 }
 0x800   : > { %2493 = vmatmul.mubr.msk.bf16.vlgmr.msra.gmra.mxu0 %vm778_vm2, %v1585_v45 }
 0x801   : > { %2503 = vmatpush3.bf16.xpose.msra.mxu0 %v1703_v46  ;;  %2504 = vmatprep.mubr.msk.bf16.mxu0 %vm2643_vm0, %v2642_v1 }
 0x802   : > { %2514 = vmatprep.subr.bf16.mxu0 %v2642_v1 }
 0x803   : > { %v1696_v48 = vpop.permute.xlu1 %1695 }
 0x807   : > { %v1807_v50 = vpop.permute.xlu1 %1806 }
 0x808   : > { %2505 = vmatmul.mubr.msk.bf16.vlgmr.msra.gmra.mxu0 %vm778_vm2, %v1696_v48 }
 0x809   : > { %2515 = vmatpush3.bf16.xpose.msra.mxu0 %v1814_v49  ;;  %2516 = vmatprep.mubr.msk.bf16.mxu0 %vm2643_vm0, %v2642_v1 }
 0x80a   : > { %2526 = vmatprep.subr.bf16.mxu0 %v2642_v1 }
 0x810   : > { %2517 = vmatmul.mubr.msk.bf16.vlgmr.msra.gmra.mxu0 %vm778_vm2, %v1807_v50 }
 0x811   : > { %2530 = vmatprep.mubr.msk.bf16.mxu0 %vm2643_vm0, %v2642_v1 }
 0x84d   : > { %v1515_v51 = vpop.f32.mrf.mxu0 }
 0x84e   : > { %v1521_v52 = vmul.f32 0.35355338, %v1515_v51 }
 0x84f   : > { %v2482_v53 = vpop.f32.mrf.mxu0 }
 0x850   : > { %v1522_v54 = vsel %vm778_vm2, %v1521_v52, -inf }
 0x851   : > { %1523 = vmax.xlane.f32.xlu0 %v1522_v54  ;;  %v1518_v55 = vpop.f32.mrf.mxu0 }
 0x853   : > { %v2483_v56 = vpop.f32.mrf.mxu0 }
 0x8c0   : > { %v1628_v57 = vpop.f32.mrf.mxu0 }
 0x8c1   : > { %v1634_v58 = vmul.f32 0.35355338, %v1628_v57 }
 0x8c2   : > { %v2494_v59 = vpop.f32.mrf.mxu0 }
 0x8c3   : > { %v1635_v60 = vsel %vm778_vm2, %v1634_v58, -inf }
 0x8c4   : > { %1636 = vmax.xlane.f32.xlu1 %v1635_v60  ;;  %v1631_v61 = vpop.f32.mrf.mxu0 }
 0x8c5   : > { %v2588_v61 = vld [vmem:[%s3100_s10 + $0x8] sm:$0xff]  }
 0x8c6   : > { %v2495_v62 = vpop.f32.mrf.mxu0  ;;  %2527 = vmatpush3.bf16.msra.mxu0 %v2588_v61 }
 0x8c7   : > { %2528 = vmatprep.subr.bf16.mxu0 %v2642_v1 }
 0x8c8   : > { %v1739_v63 = vpop.f32.mrf.mxu0 }
 0x8c9   : > { %v1745_v0 = vmul.f32 0.35355338, %v1739_v63 }
 0x8ca   : > { %v2506_v2 = vpop.f32.mrf.mxu0 }
 0x8cb   : > { %v1746_v4 = vsel %vm778_vm2, %v1745_v0, -inf }
 0x8cc   : > { %1747 = vmax.xlane.f32.xlu0 %v1746_v4  ;;  %v1742_v5 = vpop.f32.mrf.mxu0 }
 0x8ce   : > { %v2507_v6 = vpop.f32.mrf.mxu0 }
 0x8d0   : > { %v1850_v7 = vpop.f32.mrf.mxu0 }
 0x8d1   : > { %v1856_v8 = vmul.f32 0.35355338, %v1850_v7 }
 0x8d2   : > { %v2518_v10 = vpop.f32.mrf.mxu0 }
 0x8d3   : > { %v1857_v11 = vsel %vm778_vm2, %v1856_v8, -inf }
 0x8d4   : > { %1858 = vmax.xlane.f32.xlu0 %v1857_v11  ;;  %v1853_v12 = vpop.f32.mrf.mxu0 }
 0x8d6   : > { %v2519_v13 = vpop.f32.mrf.mxu0 }
 0x8da   : > { %v1524_v3 = vpop.xlane.xlu0 %1523 }
 0x8db   : > { %v1525_v14 = vsub.f32 %v1521_v52, %v1524_v3 }
 0x8dd   : > { %v1526_v15 = vmul.f32 1.442695, %v1525_v14 }
 0x8df   : > { %2614 = vpow2.f32 %v1526_v15 }
 0x8ec   : > { %v2615_v16 = vpop.eup %2614 }
 0x8ed   : > { %v1528_v17 = vsel %vm778_vm2, %v2615_v16, 0.0 }
 0x8ee   : > { %1529 = vadd.xlane.f32.xlu1 %v1528_v17 }
 0x8ff   : > { %1535 = vrot.lane.b32.xlu1 %v2946_v31, %s3140_s28  ;;  %s3146_s28 = smov 24  }
 0x94d   : > { %v1637_v18 = vpop.xlane.xlu1 %1636 }
 0x94e   : > { %v1638_v19 = vsub.f32 %v1634_v58, %v1637_v18 }
 0x950   : > { %v1639_v20 = vmul.f32 1.442695, %v1638_v19 }
 0x952   : > { %2616 = vpow2.f32 %v1639_v20  ;;  %v2323_v20 = vld [vmem:[%s3101_s11] ss:$0 sm:$0xff] }
 0x955   : > { %v1748_v21 = vpop.xlane.xlu0 %1747 }
 0x956   : > { %v1749_v22 = vsub.f32 %v1745_v0, %v1748_v21  ;;  %v2589_v0 = vld [vmem:[%s3100_s10] sm:$0xff]  }
 0x957   : > { %2529 = vmatpush3.bf16.msra.mxu0 %v2589_v0 }
 0x958   : > { %v1750_v23 = vmul.f32 1.442695, %v1749_v22  ;;  %2542 = vmatprep.subr.bf16.mxu0 %v2642_v1 }
 0x95a   : > { %2618 = vpow2.f32 %v1750_v23 }
 0x95d   : > { %v1859_v9 = vpop.xlane.xlu0 %1858 }
 0x95e   : > { %v1860_v24 = vsub.f32 %v1856_v8, %v1859_v9 }
 0x95f   : > { %v2617_v26 = vpop.eup %2616 }
 0x960   : > { %v1861_v27 = vmul.f32 1.442695, %v1860_v24  ;;  %v1641_v28 = vsel %vm778_vm2, %v2617_v26, 0.0 }
 0x961   : > { %1642 = vadd.xlane.f32.xlu0 %v1641_v28 }
 0x962   : > { %2620 = vpow2.f32 %v1861_v27 }
 0x967   : > { %v2619_v29 = vpop.eup %2618 }
 0x968   : > { %v1752_v30 = vsel %vm778_vm2, %v2619_v29, 0.0 }
 0x969   : > { %1753 = vadd.xlane.f32.xlu1 %v1752_v30 }
 0x96f   : > { %v2621_v32 = vpop.eup %2620 }
 0x970   : > { %v1863_v33 = vsel %vm778_vm2, %v2621_v32, 0.0 }
 0x971   : > { %1864 = vadd.xlane.f32.xlu0 %v1863_v33 }
 0x977   : > { %v1530_v34 = vpop.xlane.xlu1 %1529 }
 0x978   : > { %2622 = vrcp.f32 %v1530_v34  ;;  %v2590_v34 = vld [vmem:[%s3102_s12 + $0x8] sm:$0xff]  }
 0x97a   : > { %1758 = vrot.lane.b32.xlu1 %v2946_v31, %s3141_s5 }
 0x97b   : > { %v1536_v35 = vpop.permute.xlu1 %1535 }
 0x97c   : > { %v1541_v36 = vsel %vm844_vm4, %v1536_v35, 0  ;;  %v2592_v35 = vld [vmem:[%s3104_s14 + $0x18] sm:$0xff]  }
 0x97d   : > { %2485 = vmatpush3.bf16.msra.mxu1 %v1541_v36  ;;  %v2593_v36 = vld [vmem:[%s3104_s14 + $0x10] sm:$0xff]  }
 0x97e   : > { %1869 = vrot.lane.b32.xlu1 %v2946_v31, %s3142_s30  ;;  %2496 = vmatprep.subr.bf16.mxu1 %v2642_v1 }
 0x985   : > { %v2623_v37 = vpop.eup %2622 }
 0x986   : > { %v1532_v38 = vmul.f32 %v2623_v37, %v2615_v16 }
 0x987   : > { %1647 = vrot.lane.b32.xlu0 %v2946_v31, %s3143_s23 }
 0x988   : > { %v1533_v39 = vpack.c.bf16 %v1532_v38, %v1532_v38 }
 0x98a   : > { %2487 = vmatmul.mubr.msk.bf16.vlgmr.msra.gmra.mxu1 %vm778_vm2, %v1533_v39 }
 0x98b   : > { %2498 = vmatprep.mubr.msk.bf16.mxu1 %vm2643_vm0, %v2642_v1 }
 0x9ea   : > { %v1643_v40 = vpop.xlane.xlu0 %1642 }
 0x9eb   : > { %2624 = vrcp.f32 %v1643_v40 }
 0x9f2   : > { %v1754_v41 = vpop.xlane.xlu1 %1753 }
 0x9f3   : > { %2626 = vrcp.f32 %v1754_v41  ;;  %v2327_v41 = vld [vmem:[%s3108_s18] ss:$0 sm:$0xff] }
 0x9f6   : > { %v1759_v47 = vpop.permute.xlu1 %1758 }
 0x9f7   : > { %v1764_v49 = vsel %vm844_vm4, %v1759_v47, 0  ;;  %v2594_v47 = vld [vmem:[%s3104_s14 + $0x8] sm:$0xff]  }
 0x9f8   : > { %v2625_v42 = vpop.eup %2624 }
 0x9f9   : > { %v1645_v44 = vmul.f32 %v2625_v42, %v2617_v26 }
 0x9fa   : > { %v1865_v43 = vpop.xlane.xlu0 %1864  ;;  %v1870_v51 = vpop.permute.xlu1 %1869 }
 0x9fb   : > { %2628 = vrcp.f32 %v1865_v43  ;;  %v1646_v31 = vpack.c.bf16 %v1645_v44, %v1645_v44  ;;  %v1875_v54 = vsel %vm844_vm4, %v1870_v51, 0  ;;  %v2328_v43 = vld [vmem:[%s3109_s19] ss:$0 sm:$0xff] }
 0x9fe   : > { %v1648_v45 = vpop.permute.xlu0 %1647 }
 0x9ff   : > { %v1653_v46 = vsel %vm844_vm4, %v1648_v45, 0 }
 0xa00   : > { %2497 = vmatpush3.bf16.msra.mxu1 %v1653_v46  ;;  %v2627_v48 = vpop.eup %2626 }
 0xa01   : > { %2508 = vmatprep.subr.bf16.mxu1 %v2642_v1  ;;  %v1756_v50 = vmul.f32 %v2627_v48, %v2619_v29  ;;  %v2329_v48 = vld [vmem:[%s3103_s13] ss:$0 sm:$0xff] }
 0xa03   : > { %2499 = vmatmul.mubr.msk.bf16.vlgmr.msra.gmra.mxu1 %vm778_vm2, %v1646_v31  ;;  %v1757_v52 = vpack.c.bf16 %v1756_v50, %v1756_v50  ;;  %v2595_v31 = vld [vmem:[%s3104_s14] sm:$0xff]  }
 0xa04   : > { %2509 = vmatpush3.bf16.msra.mxu1 %v1764_v49  ;;  %2510 = vmatprep.mubr.msk.bf16.mxu1 %vm2643_vm0, %v2642_v1 }
 0xa05   : > { %2520 = vmatprep.subr.bf16.mxu1 %v2642_v1 }
 0xa08   : > { %v2629_v53 = vpop.eup %2628 }
 0xa09   : > { %v1867_v55 = vmul.f32 %v2629_v53, %v2621_v32 }
 0xa0b   : > { %2511 = vmatmul.mubr.msk.bf16.vlgmr.msra.gmra.mxu1 %vm778_vm2, %v1757_v52  ;;  %v1868_v56 = vpack.c.bf16 %v1867_v55, %v1867_v55 }
 0xa0c   : > { %2521 = vmatpush3.bf16.msra.mxu1 %v1875_v54  ;;  %2522 = vmatprep.mubr.msk.bf16.mxu1 %vm2643_vm0, %v2642_v1 }
 0xa0d   : > { %2534 = vmatprep.subr.bf16.mxu1 %v2642_v1 }
 0xa13   : > { %2523 = vmatmul.mubr.msk.bf16.vlgmr.msra.gmra.mxu1 %vm778_vm2, %v1868_v56 }
 0xa14   : > { %2538 = vmatprep.mubr.msk.bf16.mxu1 %vm2643_vm0, %v2642_v1  ;;  %2535 = vmatpush3.bf16.msra.mxu1 %v2590_v34 }
 0xa15   : > { %2536 = vmatprep.subr.bf16.mxu1 %v2642_v1 }
 0xa4a   : > { %v1577_v57 = vpop.f32.mrf.mxu1 }
 0xa4c   : > { %v2488_v58 = vpop.f32.mrf.mxu1 }
 0xa4e   : > { %v1580_v59 = vpop.f32.mrf.mxu1 }
 0xa50   : > { %v2489_v60 = vpop.f32.mrf.mxu1 }
 0xac3   : > { %v1689_v62 = vpop.f32.mrf.mxu1 }
 0xac4   : > { %1918 = vrot.lane.b32.xlu0 %v1689_v62, %s3144_s25 }
 0xac5   : > { %v2500_v63 = vpop.f32.mrf.mxu1 }
 0xac7   : > { %v1692_v2 = vpop.f32.mrf.mxu1 }
 0xac9   : > { %v2501_v4 = vpop.f32.mrf.mxu1 }
 0xacb   : > { %v1800_v5 = vpop.f32.mrf.mxu1 }
 0xacc   : > { %1922 = vrot.lane.b32.xlu1 %v1800_v5, %s3145_s29  ;;  %s695_s29 = scalar_lea.vmem %s3112_s22, %s2794_s1 }
 0xacd   : > { %v2512_v6 = vpop.f32.mrf.mxu1 }
 0xacf   : > { %v1803_v7 = vpop.f32.mrf.mxu1 }
 0xad1   : > { %v2513_v8 = vpop.f32.mrf.mxu1 }
 0xad3   : > { %v1911_v10 = vpop.f32.mrf.mxu1 }
 0xad4   : > { %1926 = vrot.lane.b32.xlu0 %v1911_v10, %s3146_s28 }
 0xad5   : > { %v2524_v11 = vpop.f32.mrf.mxu1 }
 0xad6   : > { %v2339_v11 = vld [vmem:[%s3110_s20] ss:$0 sm:$0xff] }
 0xad7   : > { %v1914_v12 = vpop.f32.mrf.mxu1 }
 0xad9   : > { %v2525_v13 = vpop.f32.mrf.mxu1 }
 0xada   : > { %v2340_v13 = vld [vmem:[%s3111_s21] ss:$0 sm:$0xff] }
 0xb36   : > { %v1919_v3 = vpop.permute.xlu0 %1918 }
 0xb37   : > { %v1929_v15 = vsel %vm778_vm2, %v1577_v57, %v1919_v3 }
 0xb3e   : > { %v1923_v14 = vpop.permute.xlu1 %1922 }
 0xb3f   : > { %v1930_v16 = vsel %vm1237_vm5, %v1929_v15, %v1923_v14 }
 0xb46   : > { %v1927_v17 = vpop.permute.xlu0 %1926 }
 0xb47   : > { %v1931_v18 = vsel %vm1239_vm6, %v1930_v16, %v1927_v17 }
 0xb48   : > { %v1932_v19 = vpack.c.bf16 %v1931_v18, %v1931_v18 }
 0xb4a   : > { %2531 = vmatmul.mubr.msk.bf16.vlgmr.msra.gmra.mxu0 %vm725_vm1, %v1932_v19 }
 0xb4b   : > { %2550 = vmatprep.mubr.msk.bf16.mxu0 %vm2643_vm0, %v2642_v1  ;;  %2543 = vmatpush3.bf16.msra.mxu0 %v2592_v35 }
 0xb4c   : > { %2544 = vmatprep.subr.bf16.mxu0 %v2642_v1 }
 0xb4f   : > { %2545 = vmatpush3.bf16.msra.mxu0 %v2593_v36 }
 0xb50   : > { %2546 = vmatprep.subr.bf16.mxu0 %v2642_v1 }
 0xb53   : > { %2547 = vmatpush3.bf16.msra.mxu0 %v2594_v47 }
 0xb54   : > { %2548 = vmatprep.subr.bf16.mxu0 %v2642_v1  ;;  %v2333_v1 = vld [vmem:[%s3105_s15] ss:$0 sm:$0xff] }
 0xb57   : > { %2549 = vmatpush3.bf16.msra.mxu0 %v2595_v31 }
 0xc0a   : > { %v1993_v21 = vpop.f32.mrf.mxu0 }
 0xc0b   : > { %v1994_v22 = vadd.f32 %v2323_v20, %v1993_v21 }
 0xc0c   : > { %v2532_v23 = vpop.f32.mrf.mxu0 }
 0xc0d   : > { %v1999_v9 = vadd.f32 %v1994_v22, %v2936_v25  ;;  %v2591_v25 = vld [vmem:[%s3102_s12] sm:$0xff]  }
 0xc0e   : > { %v1996_v24 = vpop.f32.mrf.mxu0  ;;  %2537 = vmatpush3.bf16.msra.mxu1 %v2591_v25 }
 0xc0f   : > { %v2000_v26 = vsel %vm725_vm1, %v1999_v9, 0.0 }
 0xc10   : > { %2001 = vadd.xlane.f32.xlu1 %v2000_v26  ;;  %v2533_v27 = vpop.f32.mrf.mxu0 }
 0xc99   : > { %v2002_v28 = vpop.xlane.xlu1 %2001 }
 0xc9a   : > { %v2003_v29 = vmul.f32 0.03125, %v2002_v28 }
 0xc9c   : > { %v2004_v30 = vsub.f32 %v1999_v9, %v2003_v29 }
 0xc9e   : > { %v2005_v32 = vmul.f32 %v2004_v30, %v2004_v30 }
 0xca0   : > { %v2006_v33 = vsel %vm725_vm1, %v2005_v32, 0.0 }
 0xca1   : > { %2007 = vadd.xlane.f32.xlu0 %v2006_v33 }
 0xd2a   : > { %v2008_v37 = vpop.xlane.xlu0 %2007 }
 0xd2b   : > { %v2009_v38 = vmul.f32 0.03125, %v2008_v37 }
 0xd2d   : > { %v2010_v39 = vadd.f32 1e-05, %v2009_v38 }
 0xd2f   : > { %2630 = vrsqrt.f32 %v2010_v39 }
 0xd3c   : > { %v2631_v40 = vpop.eup %2630 }
 0xd3d   : > { %v2012_v42 = vmul.f32 %v2631_v40, %v2004_v30 }
 0xd3f   : > { %v2020_v44 = vmul.f32 %v2327_v41, %v2012_v42 }
 0xd41   : > { %v2028_v45 = vadd.f32 %v2328_v43, %v2020_v44 }
 0xd43   : > { %v2029_v46 = vpack.c.bf16 %v2028_v45, %v2028_v45 }
 0xd45   : > { %2539 = vmatmul.mubr.msk.bf16.vlgmr.msra.gmra.mxu1 %vm725_vm1, %v2029_v46 }
 0xe05   : > { %v2090_v49 = vpop.f32.mrf.mxu1 }
 0xe06   : > { %v2091_v50 = vadd.f32 %v2329_v48, %v2090_v49 }
 0xe07   : > { %v2540_v51 = vpop.f32.mrf.mxu1 }
 0xe08   : > { %v2096_v52 = vmax.f32 %v2091_v50, 0.0 }
 0xe09   : > { %v2093_v53 = vpop.f32.mrf.mxu1 }
 0xe0a   : > { %v2097_v54 = vpack.c.bf16 %v2096_v52, %v2096_v52 }
 0xe0b   : > { %v2541_v55 = vpop.f32.mrf.mxu1 }
 0xe0c   : > { %2551 = vmatmul.mubr.msk.bf16.vlgmr.msra.gmra.mxu0 %vm2137_vm7, %v2097_v54 }
 0xecc   : > { %v2175_v56 = vpop.f32.mrf.mxu0 }
 0xecd   : > { %v2176_v57 = vadd.f32 %v2333_v1, %v2175_v56 }
 0xece   : > { %v2552_v58 = vpop.f32.mrf.mxu0 }
 0xecf   : > { %v2181_v59 = vadd.f32 %v2176_v57, %v2028_v45 }
 0xed0   : > { %v2178_v60 = vpop.f32.mrf.mxu0 }
 0xed1   : > { %v2182_v61 = vsel %vm725_vm1, %v2181_v59, 0.0 }
 0xed2   : > { %2183 = vadd.xlane.f32.xlu0 %v2182_v61  ;;  %v2553_v62 = vpop.f32.mrf.mxu0 }
 0xf5b   : > { %v2184_v63 = vpop.xlane.xlu0 %2183 }
 0xf5c   : > { %v2185_v0 = vmul.f32 0.03125, %v2184_v63 }
 0xf5e   : > { %v2186_v2 = vsub.f32 %v2181_v59, %v2185_v0 }
 0xf60   : > { %v2187_v4 = vmul.f32 %v2186_v2, %v2186_v2 }
 0xf62   : > { %v2188_v5 = vsel %vm725_vm1, %v2187_v4, 0.0 }
 0xf63   : > { %2189 = vadd.xlane.f32.xlu1 %v2188_v5 }
 0xfec   : > { %v2190_v6 = vpop.xlane.xlu1 %2189 }
 0xfed   : > { %v2191_v7 = vmul.f32 0.03125, %v2190_v6 }
 0xfef   : > { %v2192_v8 = vadd.f32 1e-05, %v2191_v7 }
 0xff1   : > { %2632 = vrsqrt.f32 %v2192_v8 }
 0xffe   : > { %v2633_v10 = vpop.eup %2632 }
 0xfff   : > { %v2194_v12 = vmul.f32 %v2633_v10, %v2186_v2 }
0x1001   : > { %v2202_v3 = vmul.f32 %v2339_v11, %v2194_v12 }
0x1003   : > { %v2210_v14 = vadd.f32 %v2340_v13, %v2202_v3 }
0x1005   : > { %v2211_v15 = vpack.c.bf16 %v2210_v14, %v2210_v14 }
0x1007   : > { %2213 = vst.msk [vmem:[%s695_s29] sm:$0xf] %vm2212_vm8, %v2211_v15 }
0x1008 PF: > { %s32_s3 = sadd.s32 1, %s2640_s3  }
0x1009   : > { %p29_p4 = scmp.ge.s32.totalorder %s32_s3, 4  }
0x100b   :  { %31 = sbr.rel (!%p29_p4) target bundleno = 8 (0x8), region = 141 }

// kernel: _chain_forward.7
= control target key start
LH: loop header
LB: loop body
LE: loop exit
PB: predicated region body
PF: predicated region fallthrough
CT: control target
= control target key end

     0   :  { %s3260_s0 = inlined_call_operand.vmem [shape: bf16[2,8,32], index: 0, kind: input, shape index: {}]   ;;  %s3261_s1 = inlined_call_operand.vmem [shape: bf16[2,16,32], index: 1, kind: input, shape index: {}]   ;;  %s3262_s2 = inlined_call_operand.vmem [shape: bf16[32,96], index: 2, kind: input, shape index: {}]   ;;  %s3263_s3 = inlined_call_operand.vmem [shape: f32[1,96], index: 3, kind: input, shape index: {}]   ;;  %s3264_s4 = inlined_call_operand.vmem [shape: bf16[32,32], index: 4, kind: input, shape index: {}]   ;;  %s3265_s5 = inlined_call_operand.vmem [shape: f32[1,32], index: 5, kind: input, shape index: {}]   ;;  %s3266_s6 = inlined_call_operand.vmem [shape: bf16[32,32], index: 6, kind: input, shape index: {}]   ;;  %s3267_s7 = inlined_call_operand.vmem [shape: f32[1,32], index: 7, kind: input, shape index: {}]   ;;  %s3268_s8 = inlined_call_operand.vmem [shape: bf16[32,64], index: 8, kind: input, shape index: {}]   ;;  %s3269_s9 = inlined_call_operand.vmem [shape: f32[1,64], index: 9, kind: input, shape index: {}]   ;;  %s3270_s10 = inlined_call_operand.vmem [shape: bf16[32,32], index: 10, kind: input, shape index: {}]   ;;  %s3271_s11 = inlined_call_operand.vmem [shape: f32[1,32], index: 11, kind: input, shape index: {}]   ;;  %s3272_s12 = inlined_call_operand.vmem [shape: bf16[32,64], index: 12, kind: input, shape index: {}]   ;;  %s3273_s13 = inlined_call_operand.vmem [shape: f32[1,64], index: 13, kind: input, shape index: {}]   ;;  %s3274_s14 = inlined_call_operand.vmem [shape: bf16[64,32], index: 14, kind: input, shape index: {}]   ;;  %s3275_s15 = inlined_call_operand.vmem [shape: f32[1,32], index: 15, kind: input, shape index: {}]   ;;  %s3276_s16 = inlined_call_operand.vmem [shape: f32[1,32], index: 16, kind: input, shape index: {}]   ;;  %s3277_s17 = inlined_call_operand.vmem [shape: f32[1,32], index: 17, kind: input, shape index: {}]   ;;  %s3278_s18 = inlined_call_operand.vmem [shape: f32[1,32], index: 18, kind: input, shape index: {}]   ;;  %s3279_s19 = inlined_call_operand.vmem [shape: f32[1,32], index: 19, kind: input, shape index: {}]   ;;  %s3280_s20 = inlined_call_operand.vmem [shape: f32[1,32], index: 20, kind: input, shape index: {}]   ;;  %s3281_s21 = inlined_call_operand.vmem [shape: f32[1,32], index: 21, kind: input, shape index: {}]   ;;  %s3282_s22 = inlined_call_operand.hbm [shape: f32[2,8,32], index: 22, kind: output, shape index: {}]  }
   0x1   :  { %3300 = sst [smem:[#allocation10_spill]] %s3260_s0 }
   0x2   :  { %3301 = sst [smem:[#allocation11_spill]] %s3261_s1 }
   0x3   :  { %3302 = sst [smem:[#allocation12_spill]] %s3262_s2 }
   0x4   :  { %3303 = sst [smem:[#allocation13_spill]] %s3263_s3 }
   0x5   :  { %3304 = sst [smem:[#allocation14_spill]] %s3264_s4 }
   0x6   :  { %3305 = sst [smem:[#allocation15_spill]] %s3265_s5 }
   0x7   :  { %3306 = sst [smem:[#allocation16_spill]] %s3266_s6 }
   0x8   :  { %3307 = sst [smem:[#allocation17_spill]] %s3267_s7 }
   0x9   :  { %3308 = sst [smem:[#allocation18_spill]] %s3268_s8 }
   0xa   :  { %3309 = sst [smem:[#allocation19_spill]] %s3269_s9 }
   0xb   :  { %27 = vsyncpa [#allocation3], 0 }
   0xc   :  { %29 = vsyncpa [#allocation3 + $0x1], 0  ;;  %s2878_s3 = smov 0   ;;  %s2880_s28 = smov 0  }
   0xd   :  { %s2882_s29 = smov 0   ;;  %s2884_s30 = smov 0  }
   0xe LB: > { %3310 = sst [smem:[#allocation5_spill]] %s2732_s3  ;;  %s2899_s4 = sadd.s32 4294967295, %s2744_s30   ;;  %s2744_s30 = sphi %s2884_s30, %s3336_s30   ;;  %s2740_s29 = sphi %s2882_s29, %s3338_s29   ;;  %s2736_s28 = sphi %s2880_s28, %s3340_s28   ;;  %s2732_s3 = sphi %s2878_s3, %s3339_s3  }
   0xf   : > { %3311 = sst [smem:[#allocation6_spill]] %s2740_s29  ;;  %s2295_s0 = sadd.s32 4294967294, %s2744_s30  }
  0x10   : > { %s2903_s23 = sadd.s32 1, %s2744_s30   ;;  %s514_s1 = sadd.s32 1, %s2740_s29 }
  0x11   : > { %3312 = sst [smem:[#allocation7_spill]] %s2903_s23  ;;  %s511_s5 = ssub.s32 %s2744_s30, %s2903_s23 }
  0x12   : > { %p524_p0 = scmp.ne.s32.totalorder %s2740_s29, %s2736_s28  ;;  %p512_p1 = scmp.eq.s32.totalorder %s511_s5, 0 }
  0x13   : > { %p525_p2 = scmp.eq.s32.totalorder %s2899_s4, 1  ;;  %p530_p3 = scmp.ne.s32.totalorder %s2736_s28, %s2732_s3 }
  0x14   : > { %p531_p4 = scmp.eq.s32.totalorder %s2295_s0, 1  ;;  %p2298_p7 = scmp.ge.s32.totalorder %s2744_s30, 1 }
  0x15   : > { %s2914_s24 = scalar_select %p512_p1, %s2740_s29, %s514_s1  }
  0x16   : > { %p2916_p5 = por %p525_p2, %p524_p0  ;;  %p2920_p6 = por %p531_p4, %p530_p3 }
  0x17   : > { %3313 = sst [smem:[#allocation8_spill]] %s2914_s24  ;;  %p624_p8 = scmp.lt.s32.totalorder %s2744_s30, 3 }
  0x18   : > { %s3315_s25 = scalar_select %p2920_p6, 1, 0 }
  0x19   : > { %p625_p9 = pnand %p2298_p7, %p624_p8 }
  0x1a   : > { %3316 = sst [smem:[#allocation9_spill]] %s3315_s25  ;;  %p690_p10 = scmp.lt.s32.totalorder (!%p625_p9), %s2899_s4, 1 }
  0x1b   : > { %628 = sbr.rel (%p625_p9) target bundleno = 4127 (0x101f), region = 108  ;;  %s3317_s27 = sld [smem:[#allocation12_spill]] (!%p625_p9) }
  0x1c   : > { %s3318_s23 = sld [smem:[#allocation10_spill]] (!%p625_p9)  ;;  %s2748_s24 = smov (!%p625_p9), 120  }
  0x1d   : > { %s3319_s25 = sld [smem:[#allocation11_spill]] (!%p625_p9)  ;;  %s2754_s1 = smov (!%p625_p9), 104  }
  0x1e   : > { %s2756_s29 = smov (!%p625_p9), 64   ;;  %s3323_s8 = sld [smem:[#allocation18_spill]] (!%p625_p9) }
  0x1f   : > { %s3325_s9 = sld [smem:[#allocation19_spill]] (!%p625_p9) }
  0x20   : > { %v2746_v1 = vmov 0.0   ;;  %vm2747_vm0 = vmmov 0   ;;  %s691_s5 = scalar_select %p690_p10, %s2899_s4, 1  ;;  %vm730_vm1 = vcmask 261120   ;;  %vm783_vm2 = vcmask 64512  }
  0x21   : > { %v2628_v0 = vld [vmem:[%s3317_s27 + $0x8] sm:$0xff]   ;;  %2417 = vmatprep.subr.bf16.mxu1 %v2746_v1  ;;  %2431 = vmatprep.subr.bf16.mxu0 %v2746_v1  ;;  %v2629_v2 = vld [vmem:[%s3317_s27] sm:$0xff]   ;;  %s3294_s27 = smov 80   ;;  %v774_v23 = vlaneseq  ;;  %vm849_vm4 = vcmask 1043456   ;;  %vm1242_vm5 = vcmask 130048   ;;  %vm1244_vm6 = vcmask 195584  }
  0x22   : > { %2418 = vmatpush3.bf16.msra.mxu1 %v2628_v0  ;;  %2421 = vmatprep.mubr.msk.bf16.mxu1 %vm2747_vm0, %v2746_v1  ;;  %s2300_s26 = sshll.u32 %s691_s5, 2  ;;  %s2361_s2 = sshll.u32 %s691_s5, 3  ;;  %vm2135_vm7 = vcmask 523264  }
  0x23   : > { %2419 = vmatprep.subr.bf16.mxu1 %v2746_v1  ;;  %2433 = vmatprep.mubr.msk.bf16.mxu0 %vm2747_vm0, %v2746_v1  ;;  %s693_s0 = scalar_lea.vmem %s3318_s23, %s2300_s26  ;;  %s2947_s3 = scalar_lea.vmem %s3319_s25, %s2361_s2  ;;  %v775_v24 = vshrl.u32 %v774_v23, 7  ;;  %v777_v25 = vand.u32 127, %v774_v23 }
  0x24   : > { %v2950_v3 = vld [vmem:[%s693_s0] sm:$0xf]  ;;  %s3320_s23 = sld [smem:[#allocation13_spill]]  ;;  %s3295_s25 = smov 96  }
  0x25   : > { %v2303_v4 = vcombine.low %v2950_v3, %v2950_v3  ;;  %s3292_s26 = smov 88   ;;  %s3293_s2 = smov 72   ;;  %vm778_vm3 = vcmp.ge.s32.totalorder %v775_v24, %v777_v25 }
  0x26   : > { %2420 = vmatpush3.bf16.msra.mxu1 %v2629_v2  ;;  %s2753_s0 = smov 112   ;;  %s2755_s5 = smov 56  }
  0x27   : > { %2425 = vmatprep.subr.bf16.mxu1 %v2746_v1  ;;  %s3326_s7 = sld [smem:[#allocation17_spill]] }
  0x29   : > { %2422 = vmatmul.mubr.msk.bf16.vlgmr.msra.gmra.mxu1 %vm730_vm1, %v2303_v4 }
  0x2a   : > { %2427 = vmatprep.mubr.msk.bf16.mxu1 %vm2747_vm0, %v2746_v1  ;;  %v2304_v5 = vld [vmem:[%s3320_s23] ss:$0 sm:$0xff]  ;;  %s2757_s23 = smov 40  }
  0xe9   : > { %v768_v6 = vpop.f32.mrf.mxu1 }
  0xea   : > { %v769_v7 = vadd.f32 %v2304_v5, %v768_v6 }
  0xeb   : > { %v2423_v8 = vpop.f32.mrf.mxu1 }
  0xec   : > { %v2960_v9 = vpack.c.bf16 %v769_v7, %v769_v7 }
  0xed   : > { %v771_v10 = vpop.f32.mrf.mxu1 }
  0xee   : > { %893 = vrot.lane.b32.xlu1 %v2960_v9, %s2748_s24  ;;  %781 = vrot.lane.b32.xlu0 %v2960_v9, %s3295_s25  ;;  %s3297_s25 = smov 16  }
  0xef   : > { %v2424_v11 = vpop.f32.mrf.mxu1 }
  0xf2   : > { %1007 = vrot.lane.b32.xlu1 %v2960_v9, %s3294_s27  ;;  %895 = vrot.lane.b32.xlu0 %v2960_v9, %s3292_s26  ;;  %s2758_s26 = smov 48  }
  0xf6   : > { %1119 = vrot.lane.b32.xlu1 %v2960_v9, %s3293_s2  ;;  %1005 = vrot.lane.b32.xlu0 %v2960_v9, %s2753_s0 }
  0xfa   : > { %1117 = vrot.lane.b32.xlu0 %v2960_v9, %s2754_s1 }
 0x160   : > { %v782_v12 = vpop.permute.xlu0 %781  ;;  %v894_v15 = vpop.permute.xlu1 %893 }
 0x161   : > { %v788_v13 = vsel %vm783_vm2, %v782_v12, 0 }
 0x162   : > { %2426 = vmatpush3.bf16.xpose.msra.mxu1 %v788_v13 }
 0x163   : > { %2437 = vmatprep.subr.bf16.mxu1 %v2746_v1 }
 0x164   : > { %v896_v14 = vpop.permute.xlu0 %895  ;;  %v1008_v17 = vpop.permute.xlu1 %1007 }
 0x165   : > { %v901_v16 = vsel %vm783_vm2, %v896_v14, 0  ;;  %v1013_v18 = vsel %vm783_vm2, %v1008_v17, 0 }
 0x168   : > { %v1120_v19 = vpop.permute.xlu1 %1119  ;;  %v1006_v20 = vpop.permute.xlu0 %1005 }
 0x169   : > { %2428 = vmatmul.mubr.msk.bf16.vlgmr.msra.gmra.mxu1 %vm783_vm2, %v2960_v9  ;;  %v1125_v21 = vsel %vm783_vm2, %v1120_v19, 0 }
 0x16a   : > { %2438 = vmatpush3.bf16.xpose.msra.mxu1 %v901_v16  ;;  %2439 = vmatprep.mubr.msk.bf16.mxu1 %vm2747_vm0, %v2746_v1 }
 0x16b   : > { %2449 = vmatprep.subr.bf16.mxu1 %v2746_v1 }
 0x16c   : > { %v1118_v22 = vpop.permute.xlu0 %1117 }
 0x171   : > { %2440 = vmatmul.mubr.msk.bf16.vlgmr.msra.gmra.mxu1 %vm783_vm2, %v894_v15 }
 0x172   : > { %2450 = vmatpush3.bf16.xpose.msra.mxu1 %v1013_v18  ;;  %2451 = vmatprep.mubr.msk.bf16.mxu1 %vm2747_vm0, %v2746_v1 }
 0x173   : > { %2461 = vmatprep.subr.bf16.mxu1 %v2746_v1 }
 0x179   : > { %2452 = vmatmul.mubr.msk.bf16.vlgmr.msra.gmra.mxu1 %vm783_vm2, %v1006_v20 }
 0x17a   : > { %2462 = vmatpush3.bf16.xpose.msra.mxu1 %v1125_v21  ;;  %2463 = vmatprep.mubr.msk.bf16.mxu1 %vm2747_vm0, %v2746_v1 }
 0x17b   : > { %2473 = vmatprep.subr.bf16.mxu1 %v2746_v1 }
 0x181   : > { %2464 = vmatmul.mubr.msk.bf16.vlgmr.msra.gmra.mxu1 %vm783_vm2, %v1118_v22 }
 0x182   : > { %2477 = vmatprep.mubr.msk.bf16.mxu1 %vm2747_vm0, %v2746_v1 }
 0x229   : > { %v824_v26 = vpop.f32.mrf.mxu1 }
 0x22a   : > { %v830_v27 = vmul.f32 0.35355338, %v824_v26 }
 0x22b   : > { %v2429_v28 = vpop.f32.mrf.mxu1 }
 0x22c   : > { %v831_v29 = vsel %vm778_vm3, %v830_v27, -1e+30 }
 0x22d   : > { %v827_v30 = vpop.f32.mrf.mxu1  ;;  %v832_v31 = vsel %vm783_vm2, %v831_v29, -inf }
 0x22e   : > { %833 = vmax.xlane.f32.xlu1 %v832_v31 }
 0x22f   : > { %v2430_v32 = vpop.f32.mrf.mxu1 }
 0x231   : > { %v937_v33 = vpop.f32.mrf.mxu1 }
 0x232   : > { %v943_v34 = vmul.f32 0.35355338, %v937_v33 }
 0x233   : > { %v2441_v35 = vpop.f32.mrf.mxu1 }
 0x234   : > { %v944_v36 = vsel %vm778_vm3, %v943_v34, -1e+30 }
 0x235   : > { %v940_v37 = vpop.f32.mrf.mxu1  ;;  %v945_v38 = vsel %vm783_vm2, %v944_v36, -inf }
 0x236   : > { %946 = vmax.xlane.f32.xlu0 %v945_v38 }
 0x237   : > { %v2442_v39 = vpop.f32.mrf.mxu1 }
 0x239   : > { %v1049_v40 = vpop.f32.mrf.mxu1 }
 0x23a   : > { %v1055_v41 = vmul.f32 0.35355338, %v1049_v40 }
 0x23b   : > { %v2453_v42 = vpop.f32.mrf.mxu1 }
 0x23c   : > { %v1056_v43 = vsel %vm778_vm3, %v1055_v41, -1e+30 }
 0x23d   : > { %v1052_v44 = vpop.f32.mrf.mxu1  ;;  %v1057_v45 = vsel %vm783_vm2, %v1056_v43, -inf }
 0x23e   : > { %1058 = vmax.xlane.f32.xlu0 %v1057_v45 }
 0x23f   : > { %v2454_v46 = vpop.f32.mrf.mxu1 }
 0x241   : > { %v1161_v47 = vpop.f32.mrf.mxu1 }
 0x242   : > { %v1167_v48 = vmul.f32 0.35355338, %v1161_v47 }
 0x243   : > { %v2465_v49 = vpop.f32.mrf.mxu1 }
 0x244   : > { %v1168_v50 = vsel %vm778_vm3, %v1167_v48, -1e+30 }
 0x245   : > { %v1164_v51 = vpop.f32.mrf.mxu1  ;;  %v1169_v52 = vsel %vm783_vm2, %v1168_v50, -inf }
 0x246   : > { %1170 = vmax.xlane.f32.xlu1 %v1169_v52 }
 0x247   : > { %v2466_v53 = vpop.f32.mrf.mxu1 }
 0x2b7   : > { %v834_v54 = vpop.xlane.xlu1 %833 }
 0x2b8   : > { %v835_v55 = vsub.f32 %v831_v29, %v834_v54 }
 0x2ba   : > { %v836_v56 = vmul.f32 1.442695, %v835_v55 }
 0x2bc   : > { %2646 = vpow2.f32 %v836_v56 }
 0x2bf   : > { %v947_v57 = vpop.xlane.xlu0 %946 }
 0x2c0   : > { %v948_v58 = vsub.f32 %v944_v36, %v947_v57 }
 0x2c2   : > { %v949_v59 = vmul.f32 1.442695, %v948_v58 }
 0x2c4   : > { %2648 = vpow2.f32 %v949_v59 }
 0x2c7   : > { %v1059_v60 = vpop.xlane.xlu0 %1058 }
 0x2c8   : > { %v1060_v61 = vsub.f32 %v1056_v43, %v1059_v60 }
 0x2c9   : > { %v2647_v62 = vpop.eup %2646 }
 0x2ca   : > { %v1061_v63 = vmul.f32 1.442695, %v1060_v61  ;;  %v838_v0 = vsel %vm783_vm2, %v2647_v62, 0.0 }
 0x2cb   : > { %839 = vadd.xlane.f32.xlu0 %v838_v0 }
 0x2cc   : > { %2650 = vpow2.f32 %v1061_v63 }
 0x2cf   : > { %v1171_v7 = vpop.xlane.xlu1 %1170 }
 0x2d0   : > { %v1172_v8 = vsub.f32 %v1168_v50, %v1171_v7 }
 0x2d1   : > { %v2649_v2 = vpop.eup %2648 }
 0x2d2   : > { %v951_v4 = vsel %vm783_vm2, %v2649_v2, 0.0  ;;  %v1173_v10 = vmul.f32 1.442695, %v1172_v8  ;;  %v2633_v8 = vld [vmem:[%s3323_s8 + $0x8] sm:$0xff]  }
 0x2d3   : > { %952 = vadd.xlane.f32.xlu1 %v951_v4 }
 0x2d4   : > { %2652 = vpow2.f32 %v1173_v10  ;;  %v2634_v10 = vld [vmem:[%s3323_s8] sm:$0xff]  }
 0x2d9   : > { %v2651_v5 = vpop.eup %2650 }
 0x2da   : > { %v1063_v6 = vsel %vm783_vm2, %v2651_v5, 0.0 }
 0x2db   : > { %1064 = vadd.xlane.f32.xlu0 %v1063_v6 }
 0x2e1   : > { %v2653_v11 = vpop.eup %2652 }
 0x2e2   : > { %v1175_v12 = vsel %vm783_vm2, %v2653_v11, 0.0 }
 0x2e4   : > { %957 = vrot.lane.b32.xlu1 %v2960_v9, %s2755_s5  ;;  %s3296_s5 = smov 24  }
 0x2f1   : > { %844 = vrot.lane.b32.xlu0 %v2960_v9, %s2756_s29  ;;  %s3322_s29 = sld [smem:[#allocation15_spill]] }
 0x2f5   : > { %1181 = vrot.lane.b32.xlu0 %v2960_v9, %s2757_s23  ;;  %s3321_s23 = sld [smem:[#allocation14_spill]] }
 0x2f7   : > { %v2316_v61 = vld [vmem:[%s3322_s29] ss:$0 sm:$0xff]  ;;  %s3331_s29 = smov 8  }
 0x2fb   : > { %v2631_v44 = vld [vmem:[%s3321_s23 + $0x8] sm:$0xff]   ;;  %v2632_v45 = vld [vmem:[%s3321_s23] sm:$0xff]  }
 0x2fc   : > { %2474 = vmatpush3.bf16.msra.mxu1 %v2631_v44 }
 0x2fd   : > { %2475 = vmatprep.subr.bf16.mxu1 %v2746_v1 }
 0x300   : > { %2476 = vmatpush3.bf16.msra.mxu1 %v2632_v45 }
 0x301   : > { %2489 = vmatprep.subr.bf16.mxu1 %v2746_v1 }
 0x308   : > { %1176 = vadd.xlane.f32.xlu1 %v1175_v12 }
 0x319   : > { %1069 = vrot.lane.b32.xlu1 %v2960_v9, %s2758_s26  ;;  %s3298_s26 = smov 8  }
 0x354   : > { %v840_v13 = vpop.xlane.xlu0 %839 }
 0x355   : > { %2654 = vrcp.f32 %v840_v13 }
 0x35c   : > { %v953_v14 = vpop.xlane.xlu1 %952 }
 0x35d   : > { %2656 = vrcp.f32 %v953_v14 }
 0x360   : > { %v958_v20 = vpop.permute.xlu1 %957 }
 0x361   : > { %v963_v23 = vsel %vm849_vm4, %v958_v20, 0 }
 0x362   : > { %v2655_v15 = vpop.eup %2654 }
 0x363   : > { %v842_v17 = vmul.f32 %v2655_v15, %v2647_v62  ;;  %v701_v62 = vunpack.c.l.bf16 %v2950_v3  ;;  %v2635_v15 = vld [vmem:[%s2947_s3] sm:$0xff]  }
 0x364   : > { %v1065_v16 = vpop.xlane.xlu0 %1064 }
 0x365   : > { %v843_v21 = vpack.c.bf16 %v842_v17, %v842_v17  ;;  %2658 = vrcp.f32 %v1065_v16 }
 0x368   : > { %v845_v18 = vpop.permute.xlu0 %844 }
 0x369   : > { %v851_v19 = vsel %vm849_vm4, %v845_v18, 0 }
 0x36a   : > { %2432 = vmatpush3.bf16.msra.mxu0 %v851_v19  ;;  %v2657_v22 = vpop.eup %2656 }
 0x36b   : > { %2443 = vmatprep.subr.bf16.mxu0 %v2746_v1  ;;  %v955_v9 = vmul.f32 %v2657_v22, %v2649_v2  ;;  %v2320_v22 = vld [vmem:[%s3276_s16] ss:$0 sm:$0xff] }
 0x36c   : > { %v1182_v30 = vpop.permute.xlu0 %1181 }
 0x36d   : > { %2434 = vmatmul.mubr.msk.bf16.vlgmr.msra.gmra.mxu0 %vm783_vm2, %v843_v21  ;;  %v956_v24 = vpack.c.bf16 %v955_v9, %v955_v9  ;;  %v1187_v32 = vsel %vm849_vm4, %v1182_v30, 0  ;;  %v2321_v9 = vld [vmem:[%s3277_s17] ss:$0 sm:$0xff] }
 0x36e   : > { %2444 = vmatpush3.bf16.msra.mxu0 %v963_v23  ;;  %2445 = vmatprep.mubr.msk.bf16.mxu0 %vm2747_vm0, %v2746_v1 }
 0x36f   : > { %2455 = vmatprep.subr.bf16.mxu0 %v2746_v1 }
 0x372   : > { %v2659_v25 = vpop.eup %2658 }
 0x373   : > { %v1067_v27 = vmul.f32 %v2659_v25, %v2651_v5 }
 0x375   : > { %2446 = vmatmul.mubr.msk.bf16.vlgmr.msra.gmra.mxu0 %vm783_vm2, %v956_v24  ;;  %v1068_v31 = vpack.c.bf16 %v1067_v27, %v1067_v27  ;;  %v2327_v27 = vld [vmem:[%s3325_s9] ss:$0 sm:$0xff] }
 0x376   : > { %2457 = vmatprep.mubr.msk.bf16.mxu0 %vm2747_vm0, %v2746_v1 }
 0x391   : > { %v1177_v26 = vpop.xlane.xlu1 %1176 }
 0x392   : > { %2660 = vrcp.f32 %v1177_v26 }
 0x395   : > { %v1070_v28 = vpop.permute.xlu1 %1069 }
 0x396   : > { %v1075_v29 = vsel %vm849_vm4, %v1070_v28, 0 }
 0x397   : > { %2456 = vmatpush3.bf16.msra.mxu0 %v1075_v29 }
 0x398   : > { %2467 = vmatprep.subr.bf16.mxu0 %v2746_v1 }
 0x39a   : > { %2458 = vmatmul.mubr.msk.bf16.vlgmr.msra.gmra.mxu0 %vm783_vm2, %v1068_v31 }
 0x39b   : > { %2468 = vmatpush3.bf16.msra.mxu0 %v1187_v32  ;;  %2469 = vmatprep.mubr.msk.bf16.mxu0 %vm2747_vm0, %v2746_v1 }
 0x39c   : > { %2481 = vmatprep.subr.bf16.mxu0 %v2746_v1 }
 0x39f   : > { %v2661_v33 = vpop.eup %2660 }
 0x3a0   : > { %v1179_v34 = vmul.f32 %v2661_v33, %v2653_v11 }
 0x3a2   : > { %v1180_v35 = vpack.c.bf16 %v1179_v34, %v1179_v34 }
 0x3a4   : > { %2470 = vmatmul.mubr.msk.bf16.vlgmr.msra.gmra.mxu0 %vm783_vm2, %v1180_v35 }
 0x3a5   : > { %2485 = vmatprep.mubr.msk.bf16.mxu0 %vm2747_vm0, %v2746_v1 }
 0x42d   : > { %v887_v36 = vpop.f32.mrf.mxu0 }
 0x42f   : > { %v2435_v37 = vpop.f32.mrf.mxu0 }
 0x431   : > { %v890_v38 = vpop.f32.mrf.mxu0 }
 0x433   : > { %v2436_v39 = vpop.f32.mrf.mxu0 }
 0x435   : > { %v999_v40 = vpop.f32.mrf.mxu0 }
 0x436   : > { %1230 = vrot.lane.b32.xlu1 %v999_v40, %s3298_s26 }
 0x437   : > { %v2447_v41 = vpop.f32.mrf.mxu0 }
 0x439   : > { %v1002_v42 = vpop.f32.mrf.mxu0 }
 0x43b   : > { %v2448_v43 = vpop.f32.mrf.mxu0 }
 0x45a   : > { %v1111_v46 = vpop.f32.mrf.mxu0 }
 0x45b   : > { %1234 = vrot.lane.b32.xlu0 %v1111_v46, %s3297_s25  ;;  %s3330_s25 = smov 88  }
 0x45c   : > { %v2459_v47 = vpop.f32.mrf.mxu0 }
 0x45e   : > { %v1114_v48 = vpop.f32.mrf.mxu0 }
 0x460   : > { %v2460_v49 = vpop.f32.mrf.mxu0 }
 0x464   : > { %v1223_v50 = vpop.f32.mrf.mxu0 }
 0x465   : > { %1238 = vrot.lane.b32.xlu1 %v1223_v50, %s3296_s5  ;;  %s3324_s5 = sld [smem:[#allocation16_spill]] }
 0x466   : > { %v2471_v51 = vpop.f32.mrf.mxu0 }
 0x468   : > { %v1226_v52 = vpop.f32.mrf.mxu0 }
 0x46a   : > { %v2472_v53 = vpop.f32.mrf.mxu0 }
 0x46b   : > { %v2636_v16 = vld [vmem:[%s3324_s5 + $0x8] sm:$0xff]   ;;  %v2637_v17 = vld [vmem:[%s3324_s5] sm:$0xff]  }
 0x46c   : > { %2482 = vmatpush3.bf16.msra.mxu0 %v2636_v16 }
 0x46d   : > { %2483 = vmatprep.subr.bf16.mxu0 %v2746_v1 }
 0x470   : > { %2484 = vmatpush3.bf16.msra.mxu0 %v2637_v17 }
 0x471   : > { %2497 = vmatprep.subr.bf16.mxu0 %v2746_v1 }
 0x4a8   : > { %v1231_v54 = vpop.permute.xlu1 %1230 }
 0x4a9   : > { %v1241_v56 = vsel %vm783_vm2, %v887_v36, %v1231_v54  ;;  %v2322_v36 = vld [vmem:[%s3326_s7] ss:$0 sm:$0xff] }
 0x4cd   : > { %v1235_v55 = vpop.permute.xlu0 %1234 }
 0x4ce   : > { %v1243_v57 = vsel %vm1242_vm5, %v1241_v56, %v1235_v55 }
 0x4d7   : > { %v1239_v58 = vpop.permute.xlu1 %1238 }
 0x4d8   : > { %v1245_v59 = vsel %vm1244_vm6, %v1243_v57, %v1239_v58 }
 0x4d9   : > { %v1246_v60 = vpack.c.bf16 %v1245_v59, %v1245_v59 }
 0x4db   : > { %2478 = vmatmul.mubr.msk.bf16.vlgmr.msra.gmra.mxu1 %vm730_vm1, %v1246_v60 }
 0x4dc   : > { %2493 = vmatprep.mubr.msk.bf16.mxu1 %vm2747_vm0, %v2746_v1  ;;  %2490 = vmatpush3.bf16.msra.mxu1 %v2633_v8 }
 0x4dd   : > { %2491 = vmatprep.subr.bf16.mxu1 %v2746_v1 }
 0x4e0   : > { %2492 = vmatpush3.bf16.msra.mxu1 %v2634_v10 }
 0x4e1   : > { %2503 = vmatprep.subr.bf16.mxu1 %v2746_v1 }
 0x4e3   : > { %2494 = vmatmul.mubr.msk.bf16.vlgmr.msra.gmra.mxu1 %vm730_vm1, %v2635_v15 }
 0x4e4   : > { %2505 = vmatprep.mubr.msk.bf16.mxu1 %vm2747_vm0, %v2746_v1 }
 0x59b   : > { %v1307_v63 = vpop.f32.mrf.mxu1 }
 0x59c   : > { %v1308_v0 = vadd.f32 %v2316_v61, %v1307_v63 }
 0x59d   : > { %v2479_v2 = vpop.f32.mrf.mxu1 }
 0x59e   : > { %v1313_v4 = vadd.f32 %v1308_v0, %v701_v62 }
 0x59f   : > { %v1310_v5 = vpop.f32.mrf.mxu1 }
 0x5a0   : > { %v1314_v6 = vsel %vm730_vm1, %v1313_v4, 0.0 }
 0x5a1   : > { %v2480_v7 = vpop.f32.mrf.mxu1  ;;  %1315 = vadd.xlane.f32.xlu0 %v1314_v6 }
 0x5a3   : > { %v1472_v28 = vpop.f32.mrf.mxu1 }
 0x5a4   : > { %v1473_v30 = vadd.f32 %v2327_v27, %v1472_v28 }
 0x5a5   : > { %v2495_v29 = vpop.f32.mrf.mxu1 }
 0x5a7   : > { %v1475_v31 = vpop.f32.mrf.mxu1 }
 0x5a8   : > { %v1476_v32 = vadd.f32 %v2327_v27, %v1475_v31 }
 0x5a9   : > { %v2496_v33 = vpop.f32.mrf.mxu1 }
 0x5aa   : > { %v3092_v34 = vpack.c.bf16 %v1476_v32, %v1473_v30 }
 0x5ac   : > { %v1485_v35 = vsel %vm783_vm2, %v3092_v34, 0 }
 0x5b7   : > { %1590 = vrot.lane.b32.xlu0 %v3092_v34, %s2748_s24 }
 0x5bb   : > { %1699 = vrot.lane.b32.xlu0 %v3092_v34, %s2753_s0 }
 0x5bf   : > { %1808 = vrot.lane.b32.xlu0 %v3092_v34, %s2754_s1 }
 0x62a   : > { %v1316_v3 = vpop.xlane.xlu0 %1315 }
 0x62b   : > { %v1318_v11 = vmul.f32 0.03125, %v1316_v3 }
 0x62d   : > { %v1319_v12 = vsub.f32 %v1313_v4, %v1318_v11 }
 0x62e   : > { %v1591_v40 = vpop.permute.xlu0 %1590 }
 0x62f   : > { %v1320_v13 = vmul.f32 %v1319_v12, %v1319_v12  ;;  %v1596_v42 = vsel %vm783_vm2, %v1591_v40, 0 }
 0x631   : > { %v1321_v14 = vsel %vm730_vm1, %v1320_v13, 0.0 }
 0x632   : > { %1322 = vadd.xlane.f32.xlu1 %v1321_v14  ;;  %v1700_v45 = vpop.permute.xlu0 %1699 }
 0x633   : > { %v1705_v47 = vsel %vm783_vm2, %v1700_v45, 0 }
 0x636   : > { %v1809_v48 = vpop.permute.xlu0 %1808 }
 0x637   : > { %v1814_v50 = vsel %vm783_vm2, %v1809_v48, 0 }
 0x6bb   : > { %v1323_v18 = vpop.xlane.xlu1 %1322 }
 0x6bc   : > { %v1324_v19 = vmul.f32 0.03125, %v1323_v18 }
 0x6be   : > { %v1325_v20 = vadd.f32 1e-05, %v1324_v19 }
 0x6c0   : > { %2662 = vrsqrt.f32 %v1325_v20 }
 0x6cd   : > { %v2663_v21 = vpop.eup %2662 }
 0x6ce   : > { %v1327_v23 = vmul.f32 %v2663_v21, %v1319_v12 }
 0x6d0   : > { %v1335_v24 = vmul.f32 %v2320_v22, %v1327_v23 }
 0x6d2   : > { %v3082_v25 = vadd.f32 %v2321_v9, %v1335_v24 }
 0x6d4   : > { %v1344_v26 = vpack.c.bf16 %v3082_v25, %v3082_v25 }
 0x6d6   : > { %2486 = vmatmul.mubr.msk.bf16.vlgmr.msra.gmra.mxu0 %vm730_vm1, %v1344_v26 }
 0x6d7   : > { %2499 = vmatprep.mubr.msk.bf16.mxu0 %vm2747_vm0, %v2746_v1  ;;  %2498 = vmatpush3.bf16.xpose.msra.mxu0 %v1485_v35 }
 0x6d8   : > { %2509 = vmatprep.subr.bf16.mxu0 %v2746_v1 }
 0x796   : > { %v1405_v37 = vpop.f32.mrf.mxu0 }
 0x797   : > { %v1406_v38 = vadd.f32 %v2322_v36, %v1405_v37 }
 0x798   : > { %v2487_v39 = vpop.f32.mrf.mxu0 }
 0x799   : > { %v1479_v41 = vpack.c.bf16 %v1406_v38, %v1406_v38 }
 0x79a   : > { %v1408_v43 = vpop.f32.mrf.mxu0 }
 0x79b   : > { %1588 = vrot.lane.b32.xlu1 %v1479_v41, %s2748_s24  ;;  %2500 = vmatmul.mubr.msk.bf16.vlgmr.msra.gmra.mxu0 %vm783_vm2, %v1479_v41  ;;  %s3327_s24 = smov 96  }
 0x79c   : > { %v2488_v44 = vpop.f32.mrf.mxu0  ;;  %2510 = vmatpush3.bf16.xpose.msra.mxu0 %v1596_v42  ;;  %2511 = vmatprep.mubr.msk.bf16.mxu0 %vm2747_vm0, %v2746_v1 }
 0x79d   : > { %2521 = vmatprep.subr.bf16.mxu0 %v2746_v1 }
 0x79f   : > { %1697 = vrot.lane.b32.xlu1 %v1479_v41, %s2753_s0  ;;  %s3328_s0 = smov 80  }
 0x7a3   : > { %1806 = vrot.lane.b32.xlu1 %v1479_v41, %s2754_s1  ;;  %s3329_s1 = smov 72  }
 0x80d   : > { %v1589_v46 = vpop.permute.xlu1 %1588 }
 0x80e   : > { %2512 = vmatmul.mubr.msk.bf16.vlgmr.msra.gmra.mxu0 %vm783_vm2, %v1589_v46 }
 0x80f   : > { %2522 = vmatpush3.bf16.xpose.msra.mxu0 %v1705_v47  ;;  %2523 = vmatprep.mubr.msk.bf16.mxu0 %vm2747_vm0, %v2746_v1 }
 0x810   : > { %2533 = vmatprep.subr.bf16.mxu0 %v2746_v1 }
 0x811   : > { %v1698_v49 = vpop.permute.xlu1 %1697 }
 0x815   : > { %v1807_v51 = vpop.permute.xlu1 %1806 }
 0x816   : > { %2524 = vmatmul.mubr.msk.bf16.vlgmr.msra.gmra.mxu0 %vm783_vm2, %v1698_v49 }
 0x817   : > { %2534 = vmatpush3.bf16.xpose.msra.mxu0 %v1814_v50  ;;  %2535 = vmatprep.mubr.msk.bf16.mxu0 %vm2747_vm0, %v2746_v1 }
 0x818   : > { %2545 = vmatprep.subr.bf16.mxu0 %v2746_v1 }
 0x81e   : > { %2536 = vmatmul.mubr.msk.bf16.vlgmr.msra.gmra.mxu0 %vm783_vm2, %v1807_v51 }
 0x81f   : > { %2549 = vmatprep.mubr.msk.bf16.mxu0 %vm2747_vm0, %v2746_v1 }
 0x85b   : > { %v1521_v52 = vpop.f32.mrf.mxu0 }
 0x85c   : > { %v1527_v53 = vmul.f32 0.35355338, %v1521_v52 }
 0x85d   : > { %v2501_v54 = vpop.f32.mrf.mxu0 }
 0x85e   : > { %v1528_v55 = vsel %vm1242_vm5, %v1527_v53, -inf }
 0x85f   : > { %1529 = vmax.xlane.f32.xlu0 %v1528_v55  ;;  %v1524_v56 = vpop.f32.mrf.mxu0 }
 0x861   : > { %v2502_v57 = vpop.f32.mrf.mxu0 }
 0x8ce   : > { %v1632_v58 = vpop.f32.mrf.mxu0 }
 0x8cf   : > { %v1638_v59 = vmul.f32 0.35355338, %v1632_v58  ;;  %v2638_v58 = vld [vmem:[%s3270_s10 + $0x8] sm:$0xff]  }
 0x8d0   : > { %v2513_v60 = vpop.f32.mrf.mxu0  ;;  %2546 = vmatpush3.bf16.msra.mxu0 %v2638_v58 }
 0x8d1   : > { %v1639_v61 = vsel %vm1242_vm5, %v1638_v59, -inf  ;;  %2547 = vmatprep.subr.bf16.mxu0 %v2746_v1 }
 0x8d2   : > { %1640 = vmax.xlane.f32.xlu1 %v1639_v61  ;;  %v1635_v62 = vpop.f32.mrf.mxu0  ;;  %v2639_v61 = vld [vmem:[%s3270_s10] sm:$0xff]  }
 0x8d4   : > { %v2514_v63 = vpop.f32.mrf.mxu0  ;;  %2548 = vmatpush3.bf16.msra.mxu0 %v2639_v61 }
 0x8d5   : > { %2561 = vmatprep.subr.bf16.mxu0 %v2746_v1 }
 0x8d6   : > { %v1741_v0 = vpop.f32.mrf.mxu0 }
 0x8d7   : > { %v1747_v2 = vmul.f32 0.35355338, %v1741_v0 }
 0x8d8   : > { %v2525_v4 = vpop.f32.mrf.mxu0 }
 0x8d9   : > { %v1748_v5 = vsel %vm1242_vm5, %v1747_v2, -inf }
 0x8da   : > { %1749 = vmax.xlane.f32.xlu0 %v1748_v5  ;;  %v1744_v6 = vpop.f32.mrf.mxu0 }
 0x8dc   : > { %v2526_v7 = vpop.f32.mrf.mxu0 }
 0x8de   : > { %v1850_v8 = vpop.f32.mrf.mxu0 }
 0x8df   : > { %v1856_v10 = vmul.f32 0.35355338, %v1850_v8 }
 0x8e0   : > { %v2537_v3 = vpop.f32.mrf.mxu0 }
 0x8e1   : > { %v1857_v11 = vsel %vm1242_vm5, %v1856_v10, -inf }
 0x8e2   : > { %1858 = vmax.xlane.f32.xlu0 %v1857_v11  ;;  %v1853_v12 = vpop.f32.mrf.mxu0 }
 0x8e4   : > { %v2538_v13 = vpop.f32.mrf.mxu0 }
 0x8e8   : > { %v1530_v14 = vpop.xlane.xlu0 %1529 }
 0x8e9   : > { %v1531_v15 = vsub.f32 %v1527_v53, %v1530_v14 }
 0x8eb   : > { %v1532_v16 = vmul.f32 1.442695, %v1531_v15 }
 0x8ed   : > { %2664 = vpow2.f32 %v1532_v16 }
 0x8fa   : > { %v2665_v17 = vpop.eup %2664 }
 0x8fb   : > { %v1534_v18 = vsel %vm1242_vm5, %v2665_v17, 0.0 }
 0x8fc   : > { %1535 = vadd.xlane.f32.xlu1 %v1534_v18 }
 0x90d   : > { %1541 = vrot.lane.b32.xlu1 %v3092_v34, %s3327_s24  ;;  %s3332_s24 = smov 16  }
 0x95b   : > { %v1641_v19 = vpop.xlane.xlu1 %1640 }
 0x95c   : > { %v1642_v20 = vsub.f32 %v1638_v59, %v1641_v19 }
 0x95e   : > { %v1643_v21 = vmul.f32 1.442695, %v1642_v20 }
 0x960   : > { %2666 = vpow2.f32 %v1643_v21 }
 0x963   : > { %v1750_v22 = vpop.xlane.xlu0 %1749 }
 0x964   : > { %v1751_v23 = vsub.f32 %v1747_v2, %v1750_v22 }
 0x966   : > { %v1752_v9 = vmul.f32 1.442695, %v1751_v23 }
 0x968   : > { %2668 = vpow2.f32 %v1752_v9 }
 0x96b   : > { %v1859_v24 = vpop.xlane.xlu0 %1858 }
 0x96c   : > { %v1860_v26 = vsub.f32 %v1856_v10, %v1859_v24 }
 0x96d   : > { %v2667_v27 = vpop.eup %2666 }
 0x96e   : > { %v1861_v28 = vmul.f32 1.442695, %v1860_v26  ;;  %v1645_v29 = vsel %vm1242_vm5, %v2667_v27, 0.0 }
 0x96f   : > { %1646 = vadd.xlane.f32.xlu0 %v1645_v29 }
 0x970   : > { %2670 = vpow2.f32 %v1861_v28 }
 0x975   : > { %v2669_v30 = vpop.eup %2668 }
 0x976   : > { %v1754_v31 = vsel %vm1242_vm5, %v2669_v30, 0.0 }
 0x977   : > { %1755 = vadd.xlane.f32.xlu1 %v1754_v31  ;;  %v2642_v31 = vld [vmem:[%s3274_s14 + $0x18] sm:$0xff]  }
 0x97d   : > { %v2671_v32 = vpop.eup %2670 }
 0x97e   : > { %v1863_v33 = vsel %vm1242_vm5, %v2671_v32, 0.0 }
 0x97f   : > { %1864 = vadd.xlane.f32.xlu0 %v1863_v33 }
 0x985   : > { %v1536_v35 = vpop.xlane.xlu1 %1535 }
 0x986   : > { %2672 = vrcp.f32 %v1536_v35 }
 0x988   : > { %1760 = vrot.lane.b32.xlu1 %v3092_v34, %s3328_s0  ;;  %s3333_s0 = smov 24  }
 0x989   : > { %v1542_v36 = vpop.permute.xlu1 %1541 }
 0x98a   : > { %2504 = vmatpush3.bf16.msra.mxu1 %v1542_v36 }
 0x98b   : > { %2515 = vmatprep.subr.bf16.mxu1 %v2746_v1 }
 0x98c   : > { %1869 = vrot.lane.b32.xlu1 %v3092_v34, %s3329_s1 }
 0x993   : > { %v2673_v37 = vpop.eup %2672 }
 0x994   : > { %v1538_v38 = vmul.f32 %v2673_v37, %v2665_v17  ;;  %v2339_v17 = vld [vmem:[%s3271_s11] ss:$0 sm:$0xff] }
 0x995   : > { %1651 = vrot.lane.b32.xlu0 %v3092_v34, %s3330_s25  ;;  %s2358_s25 = sshll.u32 %s2899_s4, 7 }
 0x996   : > { %v1539_v39 = vpack.c.bf16 %v1538_v38, %v1538_v38  ;;  %v2343_v38 = vld [vmem:[%s3278_s18] ss:$0 sm:$0xff]  ;;  %s2222_s8 = scalar_lea.hbm %s3282_s22, %s2358_s25 }
 0x998   : > { %2506 = vmatmul.mubr.msk.bf16.vlgmr.msra.gmra.mxu1 %vm1242_vm5, %v1539_v39 }
 0x999   : > { %2517 = vmatprep.mubr.msk.bf16.mxu1 %vm2747_vm0, %v2746_v1 }
 0x9f8   : > { %v1647_v40 = vpop.xlane.xlu0 %1646 }
 0x9f9   : > { %2674 = vrcp.f32 %v1647_v40  ;;  %v2344_v40 = vld [vmem:[%s3279_s19] ss:$0 sm:$0xff] }
 0xa00   : > { %v1756_v41 = vpop.xlane.xlu1 %1755 }
 0xa01   : > { %2676 = vrcp.f32 %v1756_v41 }
 0xa04   : > { %v1761_v47 = vpop.permute.xlu1 %1760 }
 0xa06   : > { %v2675_v42 = vpop.eup %2674 }
 0xa07   : > { %v1649_v44 = vmul.f32 %v2675_v42, %v2667_v27 }
 0xa08   : > { %v1865_v43 = vpop.xlane.xlu0 %1864  ;;  %v1870_v51 = vpop.permute.xlu1 %1869 }
 0xa09   : > { %2678 = vrcp.f32 %v1865_v43  ;;  %v1650_v46 = vpack.c.bf16 %v1649_v44, %v1649_v44  ;;  %v2644_v44 = vld [vmem:[%s3274_s14 + $0x8] sm:$0xff]  }
 0xa0c   : > { %v1652_v45 = vpop.permute.xlu0 %1651 }
 0xa0d   : > { %2516 = vmatpush3.bf16.msra.mxu1 %v1652_v45  ;;  %v2645_v45 = vld [vmem:[%s3274_s14] sm:$0xff]  }
 0xa0e   : > { %2527 = vmatprep.subr.bf16.mxu1 %v2746_v1  ;;  %v2677_v34 = vpop.eup %2676 }
 0xa0f   : > { %v1758_v48 = vmul.f32 %v2677_v34, %v2669_v30  ;;  %v2640_v30 = vld [vmem:[%s3272_s12 + $0x8] sm:$0xff]  }
 0xa10   : > { %2518 = vmatmul.mubr.msk.bf16.vlgmr.msra.gmra.mxu1 %vm1242_vm5, %v1650_v46  ;;  %v2345_v46 = vld [vmem:[%s3273_s13] ss:$0 sm:$0xff] }
 0xa11   : > { %2528 = vmatpush3.bf16.msra.mxu1 %v1761_v47  ;;  %2529 = vmatprep.mubr.msk.bf16.mxu1 %vm2747_vm0, %v2746_v1  ;;  %v1759_v49 = vpack.c.bf16 %v1758_v48, %v1758_v48 }
 0xa12   : > { %2539 = vmatprep.subr.bf16.mxu1 %v2746_v1 }
 0xa16   : > { %v2679_v50 = vpop.eup %2678 }
 0xa17   : > { %v1867_v52 = vmul.f32 %v2679_v50, %v2671_v32  ;;  %v2643_v32 = vld [vmem:[%s3274_s14 + $0x10] sm:$0xff]  }
 0xa18   : > { %2530 = vmatmul.mubr.msk.bf16.vlgmr.msra.gmra.mxu1 %vm1242_vm5, %v1759_v49 }
 0xa19   : > { %2540 = vmatpush3.bf16.msra.mxu1 %v1870_v51  ;;  %2541 = vmatprep.mubr.msk.bf16.mxu1 %vm2747_vm0, %v2746_v1  ;;  %v1868_v53 = vpack.c.bf16 %v1867_v52, %v1867_v52 }
 0xa1a   : > { %2553 = vmatprep.subr.bf16.mxu1 %v2746_v1 }
 0xa20   : > { %2542 = vmatmul.mubr.msk.bf16.vlgmr.msra.gmra.mxu1 %vm1242_vm5, %v1868_v53 }
 0xa21   : > { %2557 = vmatprep.mubr.msk.bf16.mxu1 %vm2747_vm0, %v2746_v1  ;;  %2554 = vmatpush3.bf16.msra.mxu1 %v2640_v30 }
 0xa22   : > { %2555 = vmatprep.subr.bf16.mxu1 %v2746_v1 }
 0xa58   : > { %v1581_v54 = vpop.f32.mrf.mxu1 }
 0xa5a   : > { %v2507_v55 = vpop.f32.mrf.mxu1 }
 0xa5c   : > { %v1584_v56 = vpop.f32.mrf.mxu1 }
 0xa5e   : > { %v2508_v57 = vpop.f32.mrf.mxu1 }
 0xad0   : > { %v1691_v59 = vpop.f32.mrf.mxu1 }
 0xad1   : > { %1916 = vrot.lane.b32.xlu0 %v1691_v59, %s3331_s29  ;;  %s687_s29 = sand.u32 1, %s2736_s28  }
 0xad2   : > { %v2519_v60 = vpop.f32.mrf.mxu1  ;;  %s2299_s3 = sshll.u32 %s687_s29, 3  ;;  %s2211_s9 = scalar_lea.sflag [#allocation3], %s687_s29 }
 0xad3   : > { %s689_s26 = scalar_lea.vmem [#allocation2], %s2299_s3 }
 0xad4   : > { %v1694_v62 = vpop.f32.mrf.mxu1  ;;  %s2224_s2 = sshll.u32 %s689_s26, 4  ;;  %s2225_s2 = int_to_ptr.vmem [resolvable:$true] %s2224_s2 }
 0xad5   : > { %s2684_s27 = scalar_lea.vmem %s2225_s2, 128 }
 0xad6   : > { %v2520_v63 = vpop.f32.mrf.mxu1  ;;  %p2685_p11 = scmp.ne.s32.totalorder %s2225_s2, %s2684_s27 }
 0xad8   : > { %v1800_v0 = vpop.f32.mrf.mxu1  ;;  %p2686_p12 = pnand %p2685_p11, %p2916_p5 }
 0xad9   : > { %1920 = vrot.lane.b32.xlu1 %v1800_v0, %s3332_s24  ;;  %s2762_s24 = smov [#allocation2]  }
 0xada   : > { %v2531_v2 = vpop.f32.mrf.mxu1  ;;  %p2687_p13 = pneg %p2686_p12 }
 0xadc   : > { %v1803_v4 = vpop.f32.mrf.mxu1 }
 0xade   : > { %v2532_v5 = vpop.f32.mrf.mxu1 }
 0xae0   : > { %v1909_v6 = vpop.f32.mrf.mxu1 }
 0xae1   : > { %1924 = vrot.lane.b32.xlu0 %v1909_v6, %s3333_s0  ;;  %s2688_s0 = sshll.u32 %s2762_s24, 4  ;;  %s2689_s0 = int_to_ptr.vmem [resolvable:$false] %s2688_s0 }
 0xae2   : > { %v2543_v7 = vpop.f32.mrf.mxu1  ;;  %s2690_s4 = scalar_lea.vmem %s2689_s0, 256  ;;  %p2691_p0 = scmp.lt.s32.totalorder %s2225_s2, %s2689_s0 }
 0xae3   : > { %v2355_v7 = vld [vmem:[%s3280_s20] ss:$0 sm:$0xff]  ;;  %p2692_p1 = scmp.lt.s32.totalorder %s2690_s4, %s2684_s27 }
 0xae4   : > { %v1912_v8 = vpop.f32.mrf.mxu1 }
 0xae5   : > { %p2693_p2 = por %p2692_p1, %p2691_p0 }
 0xae6   : > { %v2544_v10 = vpop.f32.mrf.mxu1 }
 0xae7   : > { %v2356_v10 = vld [vmem:[%s3281_s21] ss:$0 sm:$0xff]  ;;  %p2694_p3 = pnand %p2693_p2, %p2687_p13 }
 0xb43   : > { %v1917_v3 = vpop.permute.xlu0 %1916 }
 0xb44   : > { %v1927_v12 = vsel %vm783_vm2, %v1581_v54, %v1917_v3 }
 0xb4b   : > { %v1921_v11 = vpop.permute.xlu1 %1920 }
 0xb4c   : > { %v1928_v13 = vsel %vm1242_vm5, %v1927_v12, %v1921_v11 }
 0xb53   : > { %v1925_v14 = vpop.permute.xlu0 %1924 }
 0xb54   : > { %v1929_v15 = vsel %vm1244_vm6, %v1928_v13, %v1925_v14 }
 0xb55   : > { %v1930_v16 = vpack.c.bf16 %v1929_v15, %v1929_v15 }
 0xb57   : > { %2550 = vmatmul.mubr.msk.bf16.vlgmr.msra.gmra.mxu0 %vm730_vm1, %v1930_v16 }
 0xb58   : > { %2569 = vmatprep.mubr.msk.bf16.mxu0 %vm2747_vm0, %v2746_v1  ;;  %2562 = vmatpush3.bf16.msra.mxu0 %v2642_v31 }
 0xb59   : > { %2563 = vmatprep.subr.bf16.mxu0 %v2746_v1 }
 0xb5c   : > { %2564 = vmatpush3.bf16.msra.mxu0 %v2643_v32 }
 0xb5d   : > { %2565 = vmatprep.subr.bf16.mxu0 %v2746_v1 }
 0xb60   : > { %2566 = vmatpush3.bf16.msra.mxu0 %v2644_v44 }
 0xb61   : > { %2567 = vmatprep.subr.bf16.mxu0 %v2746_v1  ;;  %v2349_v1 = vld [vmem:[%s3275_s15] ss:$0 sm:$0xff] }
 0xb64   : > { %2568 = vmatpush3.bf16.msra.mxu0 %v2645_v45 }
 0xc17   : > { %v1991_v18 = vpop.f32.mrf.mxu0 }
 0xc18   : > { %v1992_v19 = vadd.f32 %v2339_v17, %v1991_v18 }
 0xc19   : > { %v2551_v20 = vpop.f32.mrf.mxu0 }
 0xc1a   : > { %v1997_v21 = vadd.f32 %v1992_v19, %v3082_v25  ;;  %v2641_v25 = vld [vmem:[%s3272_s12] sm:$0xff]  }
 0xc1b   : > { %v1994_v22 = vpop.f32.mrf.mxu0  ;;  %2556 = vmatpush3.bf16.msra.mxu1 %v2641_v25 }
 0xc1c   : > { %v1998_v23 = vsel %vm730_vm1, %v1997_v21, 0.0 }
 0xc1d   : > { %1999 = vadd.xlane.f32.xlu1 %v1998_v23  ;;  %v2552_v9 = vpop.f32.mrf.mxu0 }
 0xca6   : > { %v2000_v24 = vpop.xlane.xlu1 %1999 }
 0xca7   : > { %v2001_v26 = vmul.f32 0.03125, %v2000_v24 }
 0xca9   : > { %v2002_v27 = vsub.f32 %v1997_v21, %v2001_v26 }
 0xcab   : > { %v2003_v28 = vmul.f32 %v2002_v27, %v2002_v27 }
 0xcad   : > { %v2004_v29 = vsel %vm730_vm1, %v2003_v28, 0.0 }
 0xcae   : > { %2005 = vadd.xlane.f32.xlu0 %v2004_v29 }
 0xd37   : > { %v2006_v33 = vpop.xlane.xlu0 %2005 }
 0xd38   : > { %v2007_v35 = vmul.f32 0.03125, %v2006_v33 }
 0xd3a   : > { %v2008_v36 = vadd.f32 1e-05, %v2007_v35 }
 0xd3c   : > { %2680 = vrsqrt.f32 %v2008_v36 }
 0xd49   : > { %v2681_v37 = vpop.eup %2680 }
 0xd4a   : > { %v2010_v39 = vmul.f32 %v2681_v37, %v2002_v27 }
 0xd4c   : > { %v2018_v41 = vmul.f32 %v2343_v38, %v2010_v39 }
 0xd4e   : > { %v2026_v42 = vadd.f32 %v2344_v40, %v2018_v41 }
 0xd50   : > { %v2027_v43 = vpack.c.bf16 %v2026_v42, %v2026_v42 }
 0xd52   : > { %2558 = vmatmul.mubr.msk.bf16.vlgmr.msra.gmra.mxu1 %vm730_vm1, %v2027_v43 }
 0xe12   : > { %v2088_v34 = vpop.f32.mrf.mxu1 }
 0xe13   : > { %v2089_v47 = vadd.f32 %v2345_v46, %v2088_v34 }
 0xe14   : > { %v2559_v48 = vpop.f32.mrf.mxu1 }
 0xe15   : > { %v2094_v49 = vmax.f32 %v2089_v47, 0.0 }
 0xe16   : > { %v2091_v50 = vpop.f32.mrf.mxu1 }
 0xe17   : > { %v2095_v51 = vpack.c.bf16 %v2094_v49, %v2094_v49 }
 0xe18   : > { %v2560_v52 = vpop.f32.mrf.mxu1 }
 0xe19   : > { %2570 = vmatmul.mubr.msk.bf16.vlgmr.msra.gmra.mxu0 %vm2135_vm7, %v2095_v51 }
 0xed9   : > { %v2173_v53 = vpop.f32.mrf.mxu0 }
 0xeda   : > { %v2174_v54 = vadd.f32 %v2349_v1, %v2173_v53 }
 0xedb   : > { %v2571_v55 = vpop.f32.mrf.mxu0 }
 0xedc   : > { %v2179_v56 = vadd.f32 %v2174_v54, %v2026_v42 }
 0xedd   : > { %v2176_v57 = vpop.f32.mrf.mxu0 }
 0xede   : > { %v2180_v58 = vsel %vm730_vm1, %v2179_v56, 0.0 }
 0xedf   : > { %2181 = vadd.xlane.f32.xlu0 %v2180_v58  ;;  %v2572_v59 = vpop.f32.mrf.mxu0 }
 0xf68   : > { %v2182_v60 = vpop.xlane.xlu0 %2181 }
 0xf69   : > { %v2183_v61 = vmul.f32 0.03125, %v2182_v60 }
 0xf6b   : > { %v2184_v62 = vsub.f32 %v2179_v56, %v2183_v61 }
 0xf6d   : > { %v2185_v63 = vmul.f32 %v2184_v62, %v2184_v62 }
 0xf6f   : > { %v2186_v0 = vsel %vm730_vm1, %v2185_v63, 0.0 }
 0xf70   : > { %2187 = vadd.xlane.f32.xlu1 %v2186_v0 }
 0xff9   : > { %v2188_v2 = vpop.xlane.xlu1 %2187 }
 0xffa   : > { %v2189_v4 = vmul.f32 0.03125, %v2188_v2 }
 0xffc   : > { %v2190_v5 = vadd.f32 1e-05, %v2189_v4 }
 0xffe   : > { %2682 = vrsqrt.f32 %v2190_v5 }
0x100b   : > { %v2683_v6 = vpop.eup %2682 }
0x100c   : > { %v2192_v8 = vmul.f32 %v2683_v6, %v2184_v62 }
0x100e   : > { %v2200_v3 = vmul.f32 %v2355_v7, %v2192_v8 }
0x1010   : > { %v2208_v11 = vadd.f32 %v2356_v10, %v2200_v3 }
0x1012   : > { %2209 = vst.msk [vmem:[%s689_s26] sm:$0xff] %vm730_vm1, %v2208_v11 }
0x1013   : > { %2697 = shalt.err (!%p2694_p3)
}
0x1014   : > { %s2698_s7 = scalar_lea.hbm %s2222_s8, 128  ;;  %s2702_s3 = scalar_lea.hbm %s3282_s22, 256 }
0x1015   : > { %p2699_p4 = scmp.ne.s32.totalorder %s2222_s8, %s2698_s7  ;;  %p2703_p9 = scmp.lt.s32.totalorder %s2222_s8, %s3282_s22 }
0x1016   : > { %p2704_p10 = scmp.lt.s32.totalorder %s2702_s3, %s2698_s7 }
0x1017   : > { %p2700_p7 = pnand %p2699_p4, %p2916_p5 }
0x1018   : > { %p2705_p11 = por %p2704_p10, %p2703_p9 }
0x1019   : > { %p2701_p8 = pneg %p2700_p7 }
0x101b   : > { %p2706_p12 = pnand %p2705_p11, %p2701_p8 }
0x101d   : > { %2709 = shalt.err (!%p2706_p12)
}
0x101e   : > { %2573 = dma.vmem_to_hbm [thread:$0]  (%p2916_p5), %s2225_s2, 128, %s2222_s8, %s2211_s9  }
0x101f PF: > { %s3334_s26 = sld [smem:[#allocation5_spill]]  ;;  %p2579_p13 = scmp.ge.s32.totalorder %s2744_s30, 2 }
0x1021   : > { %p2576_p0 = pnand %p2579_p13, %p2920_p6 }
0x1023   : > { %p2577_p1 = pneg %p2576_p0 }
0x1025   : > { %s2236_s24 = sand.u32 1, %s3334_s26  }
0x1026   : > { %s2237_s0 = scalar_lea.sflag [#allocation3], %s2236_s24 }
0x1027   : > { %2727 = dma.done.wait (%p2577_p1), %s2237_s0, 128  }
0x1028   : > { %2729 = vsyncadd (%p2577_p1), %s2237_s0, 4294967168  ;;  %s3336_s30 = sld [smem:[#allocation7_spill]]  ;;  %s3339_s3 = smov %s2736_s28 }
0x1029   : > { %s3337_s4 = sld [smem:[#allocation6_spill]] }
0x102a   : > { %s3338_s29 = sld [smem:[#allocation8_spill]] }
0x102e   : > { %p32_p2 = scmp.ge.s32.totalorder %s3336_s30, 4  }
0x102f   : > { %s3340_s28 = smov %s3337_s4 }
0x1030   :  { %34 = sbr.rel (!%p32_p2) target bundleno = 14 (0xe), region = 146 }
0x1035   :  { %2242 = vsyncpa [#allocation3], 1 }
0x1036   :  { %2244 = vsyncpa [#allocation3 + $0x1], 1 }

</bundles_post_ra>
